<compile_context>
chip_gen: v7x
topology: tpu7x:2x2x1
jax: 0.10.0
libtpu: 0.0.40
codegen_flags: <defaults>
</compile_context>

<pallas_src>
import functools

import jax
import jax.numpy as jnp
from jax.experimental import pallas as pl
from jax.experimental.pallas import tpu as pltpu

# ---------------------------------------------------------------------------
# Model geometry (fixed by the PyTorch module: seq_len=250, fc1 in = 62*32)
# ---------------------------------------------------------------------------
SEQ_LEN = 250                    # conv1 output length (k=3, padding=1)
EMB = 32                         # embedding dim / conv1 in-channels
K1, C1, C1_PAD = 3, 64, 128      # conv1: kernel, out-channels, lane-padded
K2, C2 = 5, 32                   # conv2: kernel, out-channels
P1 = SEQ_LEN // 2                # 125 = pooled conv1 length = conv2 length
P2 = P1 // 2                     # 62  = pooled conv2 length (floor mode)
P2_PAD = 64                      # conv-kernel output rows (2 zero pad rows)
DIN_PAD = P2_PAD * C2            # 2048 = padded fc1 input width
HID = 1024                       # fc1 hidden size
FC1_TK = 512                     # streamed fw1 slab rows (2048 / 512 = 4)

# conv2 padded-input scratch geometry (per batch element): pooled conv1 rows
# live at [P1_OFF, P1_OFF + 125); rows 6..7 and 133..134 are conv2's zero
# padding (pad=2); offset 8 keeps the store sublane-aligned.
P1PAD_ROWS = 136
P1_OFF = 8


# ---------------------------------------------------------------------------
# Kernel 1: fused conv1 -> ReLU -> pool -> conv2 -> ReLU -> pool (+ flatten
# layout), whole batch in a single grid step.
# ---------------------------------------------------------------------------
def _conv_stage_kernel(x_ref, w1_ref, b1_ref, w2_ref, b2_ref, o_ref,
                       p1_ref, p1pad_ref, *, batch):
    # ---- conv1 (k=3, pad=1) as ONE batched im2col matmul on the MXU --------
    # x_ref: (batch*250, 96) bf16 im2col rows (batch folded into M),
    # w1_ref: (96, 128) bf16 (out-channels zero padded 64 -> 128).
    y1 = jnp.dot(x_ref[...], w1_ref[...],
                 preferred_element_type=jnp.float32)            # (B*250, 128)
    y1 = jnp.maximum(y1 + b1_ref[...], 0.0)                     # bias+ReLU, f32
    # TODO(synk): F.dropout(p=0.2) after ReLU treated as identity (inference).
    # MaxPool1d(2): rows pair up within each batch element (250 is even).
    p1_ref[...] = jnp.max(y1.reshape(batch * P1, 2, C1_PAD), axis=1)

    # ---- conv2 (k=5, pad=2) + ReLU + floor MaxPool1d(2), per batch ----------
    p1pad_ref[...] = jnp.zeros_like(p1pad_ref)   # zero rows = conv2 padding
    o_ref[...] = jnp.zeros_like(o_ref)           # rows 62..63 stay 0 (Din pad)
    for b in range(batch):                       # static tiny python loop
        p1pad_ref[b, P1_OFF:P1_OFF + P1, :] = p1_ref[b * P1:(b + 1) * P1, :]
        # Lane-aligned im2col: 5 taps, each a full 128-lane (zero-padded) slab.
        xcol2 = jnp.concatenate(
            [p1pad_ref[b, 6 + k:6 + k + P1, :] for k in range(K2)],
            axis=-1)                                             # (125, 640)
        y2 = jnp.dot(xcol2.astype(jnp.bfloat16), w2_ref[...],
                     preferred_element_type=jnp.float32)         # (125, 32)
        y2 = jnp.maximum(y2 + b2_ref[...], 0.0)
        # TODO(synk): F.dropout(p=0.2) after ReLU treated as identity.
        # Floor-mode MaxPool1d(2): drop row 124, pool pairs -> (62, 32).
        o_ref[b, :P2, :] = jnp.max(y2[:2 * P2].reshape(P2, 2, C2), axis=1)


def conv_stage(xcol1, w1, b1, w2, b2, *, batch):
    """xcol1: (batch*250, 96) bf16 im2col of the embedded input.

    Returns (batch, 64, 32) f32 pooled conv2 output in (L, C) order with two
    trailing zero rows (so reshape(batch, 2048) is already fc1's padded input).
    """
    kernel = functools.partial(_conv_stage_kernel, batch=batch)
    return pl.pallas_call(
        kernel,
        out_shape=jax.ShapeDtypeStruct((batch, P2_PAD, C2), jnp.float32),
        grid=(1,),
        in_specs=[
            pl.BlockSpec(xcol1.shape, lambda i: (0, 0)),
            pl.BlockSpec(w1.shape, lambda i: (0, 0)),
            pl.BlockSpec(b1.shape, lambda i: (0, 0)),
            pl.BlockSpec(w2.shape, lambda i: (0, 0)),
            pl.BlockSpec(b2.shape, lambda i: (0, 0)),
        ],
        out_specs=pl.BlockSpec((batch, P2_PAD, C2), lambda i: (0, 0, 0)),
        scratch_shapes=[
            pltpu.VMEM((batch * P1, C1_PAD), jnp.float32),      # pooled conv1
            pltpu.VMEM((batch, P1PAD_ROWS, C1_PAD), jnp.float32),  # zero-padded
        ],
        compiler_params=pltpu.CompilerParams(
            dimension_semantics=("arbitrary",)),
    )(xcol1, w1, b1, w2, b2)


# ---------------------------------------------------------------------------
# Kernel 2: fc1 -> (dropout identity) -> fc2, with fw1 streamed over a
# reduction grid (f32 accumulator scratch, pl.when init/finalize).
# ---------------------------------------------------------------------------
def _mlp_kernel(h_ref, fw1_ref, fb1_ref, fw2_ref, fb2_ref, o_ref, acc_ref):
    k = pl.program_id(0)

    @pl.when(k == 0)
    def _():
        acc_ref[...] = jnp.zeros_like(acc_ref)

    # fc1 partial product for one streamed (FC1_TK, HID) slab of fw1.
    acc_ref[...] += jnp.dot(h_ref[...].astype(jnp.bfloat16), fw1_ref[...],
                            preferred_element_type=jnp.float32)

    @pl.when(k == pl.num_programs(0) - 1)
    def _():
        h1 = acc_ref[...] + fb1_ref[...]
        # TODO(synk): F.dropout(p=0.2) after fc1 treated as identity.
        out = jnp.dot(h1.astype(jnp.bfloat16), fw2_ref[...],
                      preferred_element_type=jnp.float32) + fb2_ref[...]
        o_ref[...] = out.astype(o_ref.dtype)


def mlp(h, fw1, fb1, fw2, fb2):
    batch, din_pad = h.shape
    hid = fw1.shape[1]
    tgt = fw2.shape[1]
    nk = din_pad // FC1_TK
    return pl.pallas_call(
        _mlp_kernel,
        out_shape=jax.ShapeDtypeStruct((batch, tgt), jnp.float32),
        grid=(nk,),
        in_specs=[
            pl.BlockSpec((batch, FC1_TK), lambda k: (0, k)),
            pl.BlockSpec((FC1_TK, hid), lambda k: (k, 0)),
            pl.BlockSpec((1, hid), lambda k: (0, 0)),
            pl.BlockSpec((fw2.shape[0], tgt), lambda k: (0, 0)),
            pl.BlockSpec((1, tgt), lambda k: (0, 0)),
        ],
        out_specs=pl.BlockSpec((batch, tgt), lambda k: (0, 0)),
        scratch_shapes=[pltpu.VMEM((batch, hid), jnp.float32)],
        compiler_params=pltpu.CompilerParams(
            dimension_semantics=("arbitrary",)),
    )(h, fw1, fb1, fw2, fb2)


# ---------------------------------------------------------------------------
# Parameter init: generate PyTorch-layout weights, convert to kernel layouts.
# ---------------------------------------------------------------------------
def init_params(key, *, vocab_size=1000, embedding_dim=EMB, target_size=100):
    ks = jax.random.split(key, 9)
    # ScaledEmbedding: normal(0, 1/embedding_dim)
    emb = jax.random.normal(ks[0], (vocab_size, embedding_dim),
                            jnp.float32) * (1.0 / embedding_dim)

    # --- PyTorch layouts ----------------------------------------------------
    w1_t = jax.random.normal(ks[1], (C1, embedding_dim, K1), jnp.float32) * 0.1
    b1_t = jax.random.normal(ks[2], (C1,), jnp.float32) * 0.1
    w2_t = jax.random.normal(ks[3], (C2, C1, K2), jnp.float32) * 0.05
    b2_t = jax.random.normal(ks[4], (C2,), jnp.float32) * 0.05
    fw1_t = jax.random.normal(ks[5], (HID, P2 * C2), jnp.float32) * 0.02
    fb1_t = jax.random.normal(ks[6], (HID,), jnp.float32) * 0.02
    fw2_t = jax.random.normal(ks[7], (target_size, HID), jnp.float32) * 0.02
    fb2_t = jax.random.normal(ks[8], (target_size,), jnp.float32) * 0.02

    # --- kernel layouts -----------------------------------------------------
    # conv1: (Cout,Cin,K) -> im2col (K*Cin, Cout), Cout zero-padded 64 -> 128.
    w1 = jnp.transpose(w1_t, (2, 1, 0)).reshape(K1 * embedding_dim, C1)
    w1 = jnp.pad(w1, ((0, 0), (0, C1_PAD - C1))).astype(jnp.bfloat16)
    b1 = jnp.pad(b1_t, (0, C1_PAD - C1)).reshape(1, C1_PAD)          # f32
    # conv2: (Cout,Cin,K) -> (K, Cin, Cout), Cin zero-padded 64 -> 128 to match
    # the lane-aligned im2col slabs, then flattened to (K*128, Cout).
    w2 = jnp.pad(jnp.transpose(w2_t, (2, 1, 0)), ((0, 0), (0, C1_PAD - C1), (0, 0)))
    w2 = w2.reshape(K2 * C1_PAD, C2).astype(jnp.bfloat16)
    b2 = b2_t.reshape(1, C2)                                          # f32
    # fc1: reorder rows from PyTorch's (C, L) flatten order to the kernel's
    # natural (L, C) order, pad L 62 -> 64 (kernel emits 2 zero rows).
    fw1 = jnp.transpose(fw1_t.reshape(HID, C2, P2), (2, 1, 0))        # (62,32,H)
    fw1 = jnp.pad(fw1, ((0, P2_PAD - P2), (0, 0), (0, 0)))
    fw1 = fw1.reshape(DIN_PAD, HID).astype(jnp.bfloat16)              # (2048,H)
    fb1 = fb1_t.reshape(1, HID)                                       # f32
    fw2 = fw2_t.T.astype(jnp.bfloat16)                                # (H, T)
    fb2 = fb2_t.reshape(1, target_size)                               # f32
    return dict(emb=emb, w1=w1, b1=b1, w2=w2, b2=b2,
                fw1=fw1, fb1=fb1, fw2=fw2, fb2=fb2)


# ---------------------------------------------------------------------------
# Forward pass
# ---------------------------------------------------------------------------
@jax.jit
def conv_model_forward(params, idx):
    batch, seq = idx.shape
    # Embedding lookup + conv1 im2col (both are tiny XLA ops that fuse with the
    # gather).  TODO(synk): could be folded into the conv kernel with a
    # PrefetchScalarGridSpec row-gather from the embedding table.
    x = jnp.take(params["emb"], idx, axis=0)                  # (B, 250, 32)
    xp = jnp.pad(x, ((0, 0), (1, 1), (0, 0)))                 # (B, 252, 32)
    xcol1 = jnp.concatenate([xp[:, k:k + seq, :] for k in range(K1)], axis=-1)
    xcol1 = xcol1.reshape(batch * seq, K1 * EMB).astype(jnp.bfloat16)

    # Fused conv1/relu/pool + conv2/relu/pool, whole batch, one pallas_call.
    h = conv_stage(xcol1, params["w1"], params["b1"],
                   params["w2"], params["b2"], batch=batch)   # (B, 64, 32)
    # (L, C)-order flatten (fw1 rows were permuted to match); the 2 zero rows
    # provide the 1984 -> 2048 Din padding for the streamed fc1 reduction.
    h = h.reshape(batch, DIN_PAD)                             # (B, 2048)

    # fc1 -> fc2 with fw1 streamed in (512, 1024) bf16 slabs.
    return mlp(h, params["fw1"], params["fb1"], params["fw2"], params["fb2"])


if __name__ == "__main__":
    key = jax.random.PRNGKey(0)
    k_params, k_x = jax.random.split(key)

    BATCH, VOCAB, TARGET = 2, 1000, 100
    params = init_params(k_params, vocab_size=VOCAB, embedding_dim=EMB,
                         target_size=TARGET)
    idx = jax.random.randint(k_x, (BATCH, SEQ_LEN), 0, VOCAB, dtype=jnp.int32)

    out = conv_model_forward(params, idx)
    out = jax.block_until_ready(out)
    assert out.shape == (BATCH, TARGET), out.shape
    assert out.dtype == jnp.float32
    print("KERNEL_OK")
</pallas_src>

<mosaic_0001>
module attributes {stable_mosaic.version = 11 : i64} {
  func.func @_conv_stage_kernel(%arg0: i32, %arg1: memref<500x96xbf16, #tpu.memory_space<vmem>>, %arg2: memref<96x128xbf16, #tpu.memory_space<vmem>>, %arg3: memref<1x128xf32, #tpu.memory_space<vmem>>, %arg4: memref<640x32xbf16, #tpu.memory_space<vmem>>, %arg5: memref<1x32xf32, #tpu.memory_space<vmem>>, %arg6: memref<2x64x32xf32, #tpu.memory_space<vmem>>, %arg7: memref<250x128xf32, #tpu.memory_space<vmem>>, %arg8: memref<2x136x128xf32, #tpu.memory_space<vmem>>) attributes {dimension_semantics = [#tpu.dimension_semantics<arbitrary>], iteration_bounds = array<i64: 1>, scalar_prefetch = 0 : i64, scratch_operands = 2 : i64, tpu.core_type = #tpu.core_type<tc>, window_params = [{pipeline_mode = #tpu.pipeline_mode<synchronous>, transform_indices = @transform_0, window_bounds = array<i64: 500, 96>}, {pipeline_mode = #tpu.pipeline_mode<synchronous>, transform_indices = @transform_1, window_bounds = array<i64: 96, 128>}, {pipeline_mode = #tpu.pipeline_mode<synchronous>, transform_indices = @transform_2, window_bounds = array<i64: 1, 128>}, {pipeline_mode = #tpu.pipeline_mode<synchronous>, transform_indices = @transform_3, window_bounds = array<i64: 640, 32>}, {pipeline_mode = #tpu.pipeline_mode<synchronous>, transform_indices = @transform_4, window_bounds = array<i64: 1, 32>}, {pipeline_mode = #tpu.pipeline_mode<synchronous>, transform_indices = @transform_5, window_bounds = array<i64: 2, 64, 32>}]} {
    %c0 = arith.constant 0 : index
    %c0_0 = arith.constant 0 : index
    %0 = vector.load %arg1[%c0, %c0_0] : memref<500x96xbf16, #tpu.memory_space<vmem>>, vector<500x96xbf16>
    %c0_1 = arith.constant 0 : index
    %c0_2 = arith.constant 0 : index
    %1 = vector.load %arg2[%c0_1, %c0_2] : memref<96x128xbf16, #tpu.memory_space<vmem>>, vector<96x128xbf16>
    %cst = arith.constant dense<0.000000e+00> : vector<500x128xf32>
    %2 = tpu.matmul %0, %1, %cst {dimension_numbers = #tpu.dot_dimension_numbers<[1], [0], [0], [1], [0, 0, 1, 1], [], []>} : vector<500x96xbf16>, vector<96x128xbf16>, vector<500x128xf32> -> vector<500x128xf32>
    %c0_3 = arith.constant 0 : index
    %c0_4 = arith.constant 0 : index
    %3 = vector.load %arg3[%c0_3, %c0_4] : memref<1x128xf32, #tpu.memory_space<vmem>>, vector<1x128xf32>
    %4 = vector.broadcast %3 : vector<1x128xf32> to vector<500x128xf32>
    %5 = arith.addf %2, %4 : vector<500x128xf32>
    %cst_5 = arith.constant 0.000000e+00 : f32
    %6 = vector.broadcast %cst_5 : f32 to vector<500x128xf32>
    %7 = arith.maximumf %5, %6 : vector<500x128xf32>
    %8 = vector.shape_cast %7 : vector<500x128xf32> to vector<250x2x128xf32>
    %cst_6 = arith.constant dense<0xFF800000> : vector<250x128xf32>
    %9 = vector.multi_reduction <maximumf>, %8, %cst_6 [1] : vector<250x2x128xf32> to vector<250x128xf32>
    %c0_7 = arith.constant 0 : index
    %c0_8 = arith.constant 0 : index
    %10 = vector.load %arg7[%c0_7, %c0_8] : memref<250x128xf32, #tpu.memory_space<vmem>>, vector<250x128xf32>
    tpu.vector_store %arg7[%c0_7, %c0_8], %9 {strides = array<i32>} : memref<250x128xf32, #tpu.memory_space<vmem>>, vector<250x128xf32>,
    %cst_9 = arith.constant 0.000000e+00 : f32
    %11 = vector.broadcast %cst_9 : f32 to vector<2x136x128xf32>
    %c0_10 = arith.constant 0 : index
    %c0_11 = arith.constant 0 : index
    %c0_12 = arith.constant 0 : index
    %12 = vector.load %arg8[%c0_10, %c0_11, %c0_12] : memref<2x136x128xf32, #tpu.memory_space<vmem>>, vector<2x136x128xf32>
    tpu.vector_store %arg8[%c0_10, %c0_11, %c0_12], %11 {strides = array<i32>} : memref<2x136x128xf32, #tpu.memory_space<vmem>>, vector<2x136x128xf32>,
    %cst_13 = arith.constant 0.000000e+00 : f32
    %13 = vector.broadcast %cst_13 : f32 to vector<2x64x32xf32>
    %c0_14 = arith.constant 0 : index
    %c0_15 = arith.constant 0 : index
    %c0_16 = arith.constant 0 : index
    %14 = vector.load %arg6[%c0_14, %c0_15, %c0_16] : memref<2x64x32xf32, #tpu.memory_space<vmem>>, vector<2x64x32xf32>
    tpu.vector_store %arg6[%c0_14, %c0_15, %c0_16], %13 {strides = array<i32>} : memref<2x64x32xf32, #tpu.memory_space<vmem>>, vector<2x64x32xf32>,
    %c0_17 = arith.constant 0 : index
    %c0_18 = arith.constant 0 : index
    %15 = vector.load %arg7[%c0_17, %c0_18] : memref<250x128xf32, #tpu.memory_space<vmem>>, vector<125x128xf32>
    %c0_19 = arith.constant 0 : index
    %c8 = arith.constant 8 : index
    %c0_20 = arith.constant 0 : index
    %16 = vector.load %arg8[%c0_19, %c8, %c0_20] : memref<2x136x128xf32, #tpu.memory_space<vmem>>, vector<1x125x128xf32>
    %17 = vector.shape_cast %16 : vector<1x125x128xf32> to vector<125x128xf32>
    %18 = vector.shape_cast %15 : vector<125x128xf32> to vector<1x125x128xf32>
    tpu.vector_store %arg8[%c0_19, %c8, %c0_20], %18 {strides = array<i32>} : memref<2x136x128xf32, #tpu.memory_space<vmem>>, vector<1x125x128xf32>,
    %c0_21 = arith.constant 0 : index
    %c6 = arith.constant 6 : index
    %c0_22 = arith.constant 0 : index
    %19 = vector.load %arg8[%c0_21, %c6, %c0_22] : memref<2x136x128xf32, #tpu.memory_space<vmem>>, vector<1x125x128xf32>
    %20 = vector.shape_cast %19 : vector<1x125x128xf32> to vector<125x128xf32>
    %c0_23 = arith.constant 0 : index
    %c7 = arith.constant 7 : index
    %c0_24 = arith.constant 0 : index
    %21 = vector.load %arg8[%c0_23, %c7, %c0_24] : memref<2x136x128xf32, #tpu.memory_space<vmem>>, vector<1x125x128xf32>
    %22 = vector.shape_cast %21 : vector<1x125x128xf32> to vector<125x128xf32>
    %c0_25 = arith.constant 0 : index
    %c8_26 = arith.constant 8 : index
    %c0_27 = arith.constant 0 : index
    %23 = vector.load %arg8[%c0_25, %c8_26, %c0_27] : memref<2x136x128xf32, #tpu.memory_space<vmem>>, vector<1x125x128xf32>
    %24 = vector.shape_cast %23 : vector<1x125x128xf32> to vector<125x128xf32>
    %c0_28 = arith.constant 0 : index
    %c9 = arith.constant 9 : index
    %c0_29 = arith.constant 0 : index
    %25 = vector.load %arg8[%c0_28, %c9, %c0_29] : memref<2x136x128xf32, #tpu.memory_space<vmem>>, vector<1x125x128xf32>
    %26 = vector.shape_cast %25 : vector<1x125x128xf32> to vector<125x128xf32>
    %c0_30 = arith.constant 0 : index
    %c10 = arith.constant 10 : index
    %c0_31 = arith.constant 0 : index
    %27 = vector.load %arg8[%c0_30, %c10, %c0_31] : memref<2x136x128xf32, #tpu.memory_space<vmem>>, vector<1x125x128xf32>
    %28 = vector.shape_cast %27 : vector<1x125x128xf32> to vector<125x128xf32>
    %29 = tpu.concatenate %20, %22, %24, %26, %28 in 1 : vector<125x128xf32>, vector<125x128xf32>, vector<125x128xf32>, vector<125x128xf32>, vector<125x128xf32> -> vector<125x640xf32>
    %30 = arith.truncf %29 : vector<125x640xf32> to vector<125x640xbf16>
    %c0_32 = arith.constant 0 : index
    %c0_33 = arith.constant 0 : index
    %31 = vector.load %arg4[%c0_32, %c0_33] : memref<640x32xbf16, #tpu.memory_space<vmem>>, vector<640x32xbf16>
    %cst_34 = arith.constant dense<0.000000e+00> : vector<125x32xf32>
    %32 = tpu.matmul %30, %31, %cst_34 {dimension_numbers = #tpu.dot_dimension_numbers<[1], [0], [0], [1], [0, 0, 1, 1], [], []>} : vector<125x640xbf16>, vector<640x32xbf16>, vector<125x32xf32> -> vector<125x32xf32>
    %c0_35 = arith.constant 0 : index
    %c0_36 = arith.constant 0 : index
    %33 = vector.load %arg5[%c0_35, %c0_36] : memref<1x32xf32, #tpu.memory_space<vmem>>, vector<1x32xf32>
    %34 = vector.broadcast %33 : vector<1x32xf32> to vector<125x32xf32>
    %35 = arith.addf %32, %34 : vector<125x32xf32>
    %cst_37 = arith.constant 0.000000e+00 : f32
    %36 = vector.broadcast %cst_37 : f32 to vector<125x32xf32>
    %37 = arith.maximumf %35, %36 : vector<125x32xf32>
    %38 = vector.extract_strided_slice %37 {offsets = [0, 0], sizes = [124, 32], strides = [1, 1]} : vector<125x32xf32> to vector<124x32xf32>
    %39 = vector.shape_cast %38 : vector<124x32xf32> to vector<62x2x32xf32>
    %cst_38 = arith.constant dense<0xFF800000> : vector<62x32xf32>
    %40 = vector.multi_reduction <maximumf>, %39, %cst_38 [1] : vector<62x2x32xf32> to vector<62x32xf32>
    %c0_39 = arith.constant 0 : index
    %c0_40 = arith.constant 0 : index
    %c0_41 = arith.constant 0 : index
    %41 = vector.load %arg6[%c0_39, %c0_40, %c0_41] : memref<2x64x32xf32, #tpu.memory_space<vmem>>, vector<1x62x32xf32>
    %42 = vector.shape_cast %41 : vector<1x62x32xf32> to vector<62x32xf32>
    %43 = vector.shape_cast %40 : vector<62x32xf32> to vector<1x62x32xf32>
    tpu.vector_store %arg6[%c0_39, %c0_40, %c0_41], %43 {strides = array<i32>} : memref<2x64x32xf32, #tpu.memory_space<vmem>>, vector<1x62x32xf32>,
    %c125 = arith.constant 125 : index
    %c0_42 = arith.constant 0 : index
    %44 = vector.load %arg7[%c125, %c0_42] : memref<250x128xf32, #tpu.memory_space<vmem>>, vector<125x128xf32>
    %c1 = arith.constant 1 : index
    %c8_43 = arith.constant 8 : index
    %c0_44 = arith.constant 0 : index
    %45 = vector.load %arg8[%c1, %c8_43, %c0_44] : memref<2x136x128xf32, #tpu.memory_space<vmem>>, vector<1x125x128xf32>
    %46 = vector.shape_cast %45 : vector<1x125x128xf32> to vector<125x128xf32>
    %47 = vector.shape_cast %44 : vector<125x128xf32> to vector<1x125x128xf32>
    tpu.vector_store %arg8[%c1, %c8_43, %c0_44], %47 {strides = array<i32>} : memref<2x136x128xf32, #tpu.memory_space<vmem>>, vector<1x125x128xf32>,
    %c1_45 = arith.constant 1 : index
    %c6_46 = arith.constant 6 : index
    %c0_47 = arith.constant 0 : index
    %48 = vector.load %arg8[%c1_45, %c6_46, %c0_47] : memref<2x136x128xf32, #tpu.memory_space<vmem>>, vector<1x125x128xf32>
    %49 = vector.shape_cast %48 : vector<1x125x128xf32> to vector<125x128xf32>
    %c1_48 = arith.constant 1 : index
    %c7_49 = arith.constant 7 : index
    %c0_50 = arith.constant 0 : index
    %50 = vector.load %arg8[%c1_48, %c7_49, %c0_50] : memref<2x136x128xf32, #tpu.memory_space<vmem>>, vector<1x125x128xf32>
    %51 = vector.shape_cast %50 : vector<1x125x128xf32> to vector<125x128xf32>
    %c1_51 = arith.constant 1 : index
    %c8_52 = arith.constant 8 : index
    %c0_53 = arith.constant 0 : index
    %52 = vector.load %arg8[%c1_51, %c8_52, %c0_53] : memref<2x136x128xf32, #tpu.memory_space<vmem>>, vector<1x125x128xf32>
    %53 = vector.shape_cast %52 : vector<1x125x128xf32> to vector<125x128xf32>
    %c1_54 = arith.constant 1 : index
    %c9_55 = arith.constant 9 : index
    %c0_56 = arith.constant 0 : index
    %54 = vector.load %arg8[%c1_54, %c9_55, %c0_56] : memref<2x136x128xf32, #tpu.memory_space<vmem>>, vector<1x125x128xf32>
    %55 = vector.shape_cast %54 : vector<1x125x128xf32> to vector<125x128xf32>
    %c1_57 = arith.constant 1 : index
    %c10_58 = arith.constant 10 : index
    %c0_59 = arith.constant 0 : index
    %56 = vector.load %arg8[%c1_57, %c10_58, %c0_59] : memref<2x136x128xf32, #tpu.memory_space<vmem>>, vector<1x125x128xf32>
    %57 = vector.shape_cast %56 : vector<1x125x128xf32> to vector<125x128xf32>
    %58 = tpu.concatenate %49, %51, %53, %55, %57 in 1 : vector<125x128xf32>, vector<125x128xf32>, vector<125x128xf32>, vector<125x128xf32>, vector<125x128xf32> -> vector<125x640xf32>
    %59 = arith.truncf %58 : vector<125x640xf32> to vector<125x640xbf16>
    %c0_60 = arith.constant 0 : index
    %c0_61 = arith.constant 0 : index
    %60 = vector.load %arg4[%c0_60, %c0_61] : memref<640x32xbf16, #tpu.memory_space<vmem>>, vector<640x32xbf16>
    %cst_62 = arith.constant dense<0.000000e+00> : vector<125x32xf32>
    %61 = tpu.matmul %59, %60, %cst_62 {dimension_numbers = #tpu.dot_dimension_numbers<[1], [0], [0], [1], [0, 0, 1, 1], [], []>} : vector<125x640xbf16>, vector<640x32xbf16>, vector<125x32xf32> -> vector<125x32xf32>
    %c0_63 = arith.constant 0 : index
    %c0_64 = arith.constant 0 : index
    %62 = vector.load %arg5[%c0_63, %c0_64] : memref<1x32xf32, #tpu.memory_space<vmem>>, vector<1x32xf32>
    %63 = vector.broadcast %62 : vector<1x32xf32> to vector<125x32xf32>
    %64 = arith.addf %61, %63 : vector<125x32xf32>
    %cst_65 = arith.constant 0.000000e+00 : f32
    %65 = vector.broadcast %cst_65 : f32 to vector<125x32xf32>
    %66 = arith.maximumf %64, %65 : vector<125x32xf32>
    %67 = vector.extract_strided_slice %66 {offsets = [0, 0], sizes = [124, 32], strides = [1, 1]} : vector<125x32xf32> to vector<124x32xf32>
    %68 = vector.shape_cast %67 : vector<124x32xf32> to vector<62x2x32xf32>
    %cst_66 = arith.constant dense<0xFF800000> : vector<62x32xf32>
    %69 = vector.multi_reduction <maximumf>, %68, %cst_66 [1] : vector<62x2x32xf32> to vector<62x32xf32>
    %c1_67 = arith.constant 1 : index
    %c0_68 = arith.constant 0 : index
    %c0_69 = arith.constant 0 : index
    %70 = vector.load %arg6[%c1_67, %c0_68, %c0_69] : memref<2x64x32xf32, #tpu.memory_space<vmem>>, vector<1x62x32xf32>
    %71 = vector.shape_cast %70 : vector<1x62x32xf32> to vector<62x32xf32>
    %72 = vector.shape_cast %69 : vector<62x32xf32> to vector<1x62x32xf32>
    tpu.vector_store %arg6[%c1_67, %c0_68, %c0_69], %72 {strides = array<i32>} : memref<2x64x32xf32, #tpu.memory_space<vmem>>, vector<1x62x32xf32>,
    return
  }
  func.func @transform_0(%arg0: i32) -> (i32, i32) {
    %c0_i32 = arith.constant 0 : i32
    %c0_i32_0 = arith.constant 0 : i32
    %c0_i32_1 = arith.constant 0 : i32
    return %c0_i32, %c0_i32_0 : i32, i32
  }
  func.func @transform_1(%arg0: i32) -> (i32, i32) {
    %c0_i32 = arith.constant 0 : i32
    %c0_i32_0 = arith.constant 0 : i32
    %c0_i32_1 = arith.constant 0 : i32
    return %c0_i32, %c0_i32_0 : i32, i32
  }
  func.func @transform_2(%arg0: i32) -> (i32, i32) {
    %c0_i32 = arith.constant 0 : i32
    %c0_i32_0 = arith.constant 0 : i32
    %c0_i32_1 = arith.constant 0 : i32
    return %c0_i32, %c0_i32_0 : i32, i32
  }
  func.func @transform_3(%arg0: i32) -> (i32, i32) {
    %c0_i32 = arith.constant 0 : i32
    %c0_i32_0 = arith.constant 0 : i32
    %c0_i32_1 = arith.constant 0 : i32
    return %c0_i32, %c0_i32_0 : i32, i32
  }
  func.func @transform_4(%arg0: i32) -> (i32, i32) {
    %c0_i32 = arith.constant 0 : i32
    %c0_i32_0 = arith.constant 0 : i32
    %c0_i32_1 = arith.constant 0 : i32
    return %c0_i32, %c0_i32_0 : i32, i32
  }
  func.func @transform_5(%arg0: i32) -> (i32, i32, i32) {
    %c0_i32 = arith.constant 0 : i32
    %c0_i32_0 = arith.constant 0 : i32
    %c0_i32_1 = arith.constant 0 : i32
    %c0_i32_2 = arith.constant 0 : i32
    return %c0_i32, %c0_i32_0, %c0_i32_1 : i32, i32, i32
  }
}

module attributes {stable_mosaic.version = 11 : i64} {
  func.func @_mlp_kernel(%arg0: i32, %arg1: memref<2x512xf32, #tpu.memory_space<vmem>>, %arg2: memref<512x1024xbf16, #tpu.memory_space<vmem>>, %arg3: memref<1x1024xf32, #tpu.memory_space<vmem>>, %arg4: memref<1024x100xbf16, #tpu.memory_space<vmem>>, %arg5: memref<1x100xf32, #tpu.memory_space<vmem>>, %arg6: memref<2x100xf32, #tpu.memory_space<vmem>>, %arg7: memref<2x1024xf32, #tpu.memory_space<vmem>>) attributes {dimension_semantics = [#tpu.dimension_semantics<arbitrary>], iteration_bounds = array<i64: 4>, scalar_prefetch = 0 : i64, scratch_operands = 1 : i64, tpu.core_type = #tpu.core_type<tc>, window_params = [{transform_indices = @transform_0, window_bounds = array<i64: 2, 512>}, {transform_indices = @transform_1, window_bounds = array<i64: 512, 1024>}, {pipeline_mode = #tpu.pipeline_mode<synchronous>, transform_indices = @transform_2, window_bounds = array<i64: 1, 1024>}, {pipeline_mode = #tpu.pipeline_mode<synchronous>, transform_indices = @transform_3, window_bounds = array<i64: 1024, 100>}, {pipeline_mode = #tpu.pipeline_mode<synchronous>, transform_indices = @transform_4, window_bounds = array<i64: 1, 100>}, {pipeline_mode = #tpu.pipeline_mode<synchronous>, transform_indices = @transform_5, window_bounds = array<i64: 2, 100>}]} {
    %c0_i32 = arith.constant 0 : i32
    %0 = arith.cmpi eq, %arg0, %c0_i32 : i32
    %1 = arith.extui %0 : i1 to i32
    %c0_i32_0 = arith.constant 0 : i32
    %2 = arith.cmpi ne, %1, %c0_i32_0 : i32
    scf.if %2 {
      %cst_9 = arith.constant 0.000000e+00 : f32
      %13 = vector.broadcast %cst_9 : f32 to vector<2x1024xf32>
      %c0_10 = arith.constant 0 : index
      %c0_11 = arith.constant 0 : index
      %14 = vector.load %arg7[%c0_10, %c0_11] : memref<2x1024xf32, #tpu.memory_space<vmem>>, vector<2x1024xf32>
      tpu.vector_store %arg7[%c0_10, %c0_11], %13 {strides = array<i32>} : memref<2x1024xf32, #tpu.memory_space<vmem>>, vector<2x1024xf32>,
    } else {
    }
    %c0 = arith.constant 0 : index
    %c0_1 = arith.constant 0 : index
    %3 = vector.load %arg7[%c0, %c0_1] : memref<2x1024xf32, #tpu.memory_space<vmem>>, vector<2x1024xf32>
    %c0_2 = arith.constant 0 : index
    %c0_3 = arith.constant 0 : index
    %4 = vector.load %arg1[%c0_2, %c0_3] : memref<2x512xf32, #tpu.memory_space<vmem>>, vector<2x512xf32>
    %5 = arith.truncf %4 : vector<2x512xf32> to vector<2x512xbf16>
    %c0_4 = arith.constant 0 : index
    %c0_5 = arith.constant 0 : index
    %6 = vector.load %arg2[%c0_4, %c0_5] : memref<512x1024xbf16, #tpu.memory_space<vmem>>, vector<512x1024xbf16>
    %cst = arith.constant dense<0.000000e+00> : vector<2x1024xf32>
    %7 = tpu.matmul %5, %6, %cst {dimension_numbers = #tpu.dot_dimension_numbers<[1], [0], [0], [1], [0, 0, 1, 1], [], []>} : vector<2x512xbf16>, vector<512x1024xbf16>, vector<2x1024xf32> -> vector<2x1024xf32>
    %8 = arith.addf %3, %7 : vector<2x1024xf32>
    %c0_6 = arith.constant 0 : index
    %c0_7 = arith.constant 0 : index
    %9 = vector.load %arg7[%c0_6, %c0_7] : memref<2x1024xf32, #tpu.memory_space<vmem>>, vector<2x1024xf32>
    tpu.vector_store %arg7[%c0_6, %c0_7], %8 {strides = array<i32>} : memref<2x1024xf32, #tpu.memory_space<vmem>>, vector<2x1024xf32>,
    %c3_i32 = arith.constant 3 : i32
    %10 = arith.cmpi eq, %arg0, %c3_i32 : i32
    %11 = arith.extui %10 : i1 to i32
    %c0_i32_8 = arith.constant 0 : i32
    %12 = arith.cmpi ne, %11, %c0_i32_8 : i32
    scf.if %12 {
      %c0_9 = arith.constant 0 : index
      %c0_10 = arith.constant 0 : index
      %13 = vector.load %arg7[%c0_9, %c0_10] : memref<2x1024xf32, #tpu.memory_space<vmem>>, vector<2x1024xf32>
      %c0_11 = arith.constant 0 : index
      %c0_12 = arith.constant 0 : index
      %14 = vector.load %arg3[%c0_11, %c0_12] : memref<1x1024xf32, #tpu.memory_space<vmem>>, vector<1x1024xf32>
      %15 = vector.broadcast %14 : vector<1x1024xf32> to vector<2x1024xf32>
      %16 = arith.addf %13, %15 : vector<2x1024xf32>
      %17 = arith.truncf %16 : vector<2x1024xf32> to vector<2x1024xbf16>
      %c0_13 = arith.constant 0 : index
      %c0_14 = arith.constant 0 : index
      %18 = vector.load %arg4[%c0_13, %c0_14] : memref<1024x100xbf16, #tpu.memory_space<vmem>>, vector<1024x100xbf16>
      %cst_15 = arith.constant dense<0.000000e+00> : vector<2x100xf32>
      %19 = tpu.matmul %17, %18, %cst_15 {dimension_numbers = #tpu.dot_dimension_numbers<[1], [0], [0], [1], [0, 0, 1, 1], [], []>} : vector<2x1024xbf16>, vector<1024x100xbf16>, vector<2x100xf32> -> vector<2x100xf32>
      %c0_16 = arith.constant 0 : index
      %c0_17 = arith.constant 0 : index
      %20 = vector.load %arg5[%c0_16, %c0_17] : memref<1x100xf32, #tpu.memory_space<vmem>>, vector<1x100xf32>
      %21 = vector.broadcast %20 : vector<1x100xf32> to vector<2x100xf32>
      %22 = arith.addf %19, %21 : vector<2x100xf32>
      %c0_18 = arith.constant 0 : index
      %c0_19 = arith.constant 0 : index
      %23 = vector.load %arg6[%c0_18, %c0_19] : memref<2x100xf32, #tpu.memory_space<vmem>>, vector<2x100xf32>
      tpu.vector_store %arg6[%c0_18, %c0_19], %22 {strides = array<i32>} : memref<2x100xf32, #tpu.memory_space<vmem>>, vector<2x100xf32>,
    } else {
    }
    return
  }
  func.func @transform_0(%arg0: i32) -> (i32, i32) {
    %c0_i32 = arith.constant 0 : i32
    %c0_i32_0 = arith.constant 0 : i32
    return %c0_i32, %arg0 : i32, i32
  }
  func.func @transform_1(%arg0: i32) -> (i32, i32) {
    %c0_i32 = arith.constant 0 : i32
    %c0_i32_0 = arith.constant 0 : i32
    return %arg0, %c0_i32 : i32, i32
  }
  func.func @transform_2(%arg0: i32) -> (i32, i32) {
    %c0_i32 = arith.constant 0 : i32
    %c0_i32_0 = arith.constant 0 : i32
    %c0_i32_1 = arith.constant 0 : i32
    return %c0_i32, %c0_i32_0 : i32, i32
  }
  func.func @transform_3(%arg0: i32) -> (i32, i32) {
    %c0_i32 = arith.constant 0 : i32
    %c0_i32_0 = arith.constant 0 : i32
    %c0_i32_1 = arith.constant 0 : i32
    return %c0_i32, %c0_i32_0 : i32, i32
  }
  func.func @transform_4(%arg0: i32) -> (i32, i32) {
    %c0_i32 = arith.constant 0 : i32
    %c0_i32_0 = arith.constant 0 : i32
    %c0_i32_1 = arith.constant 0 : i32
    return %c0_i32, %c0_i32_0 : i32, i32
  }
  func.func @transform_5(%arg0: i32) -> (i32, i32) {
    %c0_i32 = arith.constant 0 : i32
    %c0_i32_0 = arith.constant 0 : i32
    %c0_i32_1 = arith.constant 0 : i32
    return %c0_i32, %c0_i32_0 : i32, i32
  }
}

</mosaic_0001>

<bundles_post_ra>
// kernel: conv_model_forward.3
= control target key start
LH: loop header
LB: loop body
LE: loop exit
PB: predicated region body
PF: predicated region fallthrough
CT: control target
= control target key end

     0   :  { %10 = vsyncpa [#allocation4], 0  ;;  %s4638_s0 = inlined_call_operand.vmem [shape: f32[2,2048], index: 0, kind: input, shape index: {}]   ;;  %s4639_s1 = inlined_call_operand.hbm [shape: bf16[2048,1024], index: 1, kind: input, shape index: {}]   ;;  %s4640_s2 = inlined_call_operand.hbm [shape: f32[1,1024], index: 2, kind: input, shape index: {}]   ;;  %s4641_s3 = inlined_call_operand.vmem [shape: bf16[1024,100], index: 3, kind: input, shape index: {}]   ;;  %s4642_s4 = inlined_call_operand.hbm [shape: f32[1,100], index: 4, kind: input, shape index: {}]   ;;  %s4643_s5 = inlined_call_operand.hbm [shape: f32[2,100], index: 5, kind: output, shape index: {}]  }
   0x1   :  { %12 = vsyncpa [#allocation4 + $0x1], 0 }
   0x2   :  { %13 = vsyncpa [#allocation7], 0 }
   0x3   :  { %14 = vsyncpa [#allocation5], 0  ;;  %s3905_s18 = smov 0   ;;  %s3907_s19 = smov 0  }
   0x4   :  { %s3909_s20 = smov 0   ;;  %s3911_s21 = smov 0  }
   0x5 LB: > { %s3924_s22 = sadd.s32 4294967295, %s3865_s21   ;;  %s3927_s23 = sadd.s32 1, %s3865_s21   ;;  %s3865_s21 = sphi %s3911_s21, %s4662_s21   ;;  %s3861_s20 = sphi %s3909_s20, %s4661_s20   ;;  %s3857_s19 = sphi %s3907_s19, %s4660_s19   ;;  %s3853_s18 = sphi %s3905_s18, %s4659_s18  }
   0x6   : > { %s50_s24 = ssub.s32 %s3865_s21, %s3927_s23  ;;  %s53_s25 = sadd.s32 1, %s3861_s20 }
   0x7   : > { %p51_p0 = scmp.eq.s32.totalorder %s50_s24, 0  ;;  %p60_p1 = scmp.ne.s32.totalorder %s3861_s20, %s3857_s19 }
   0x8   : > { %p61_p2 = scmp.eq.s32.totalorder %s3865_s21, 0  ;;  %p66_p3 = scmp.ne.s32.totalorder %s3857_s19, %s3853_s18 }
   0x9   : > { %s3937_s26 = scalar_select %p51_p0, %s3861_s20, %s53_s25  }
   0xa   : > { %p3939_p4 = por %p61_p2, %p60_p1  ;;  %p4644_p5 = scmp.eq.s32.totalorder %s3924_s22, 0 }
   0xb   : > { %p3128_p6 = scmp.ge.s32.totalorder %s3865_s21, 1  ;;  %p161_p7 = scmp.lt.s32.totalorder %s3865_s21, 5 }
   0xc   : > { %p3948_p8 = por %p4644_p5, %p66_p3  ;;  %s3867_s30 = smov [#allocation6]  }
   0xd   : > { %p3953_p10 = pnand %p3128_p6, %p161_p7  ;;  %s174_s6 = sshll.u32 %s3867_s30, 4  ;;  %s175_s6 = int_to_ptr.vmem [resolvable:$true] %s174_s6 }
   0xe   : > { %s4649_s28 = scalar_select %p3948_p8, 1, 0 }
   0xf   : > { %s4650_s29 = scalar_select %p3953_p10, 1, 0 }
  0x10   : > { %p3589_p11 = pneg %p3953_p10  ;;  %p3602_p12 = scmp.lt.s32.totalorder %s3865_s21, 4 }
  0x11   : > { %s3868_s8 = smov [#allocation8]   ;;  %s208_s11 = sand.u32 1, %s3861_s20  }
  0x12   : > { %p3962_p13 = pnand %p3589_p11, %p4644_p5  ;;  %s188_s9 = sshll.u32 %s3868_s8, 4  ;;  %s3972_s9 = int_to_ptr.vmem [resolvable:$true] %s188_s9 }
  0x13   : > { %p3968_p0 = pnand %p3602_p12, %p3939_p4  ;;  %s3711_s14 = scalar_lea.hbm %s4640_s2, 128 }
  0x14   : > { %p3712_p1 = scmp.ne.s32.totalorder %s4640_s2, %s3711_s14  ;;  %p3713_p2 = pneg %p3962_p13 }
  0x15   : > { %s4652_s10 = scalar_select %p3968_p0, 1, 0 }
  0x16   : > { %p3714_p3 = pnand %p3713_p2, %p3712_p1  ;;  %p3718_p6 = scmp.lt.u32.totalorder %s3711_s14, %s4640_s2 }
  0x18   : > { %p3715_p4 = pneg %p3714_p3 }
  0x1a   : > { %p3720_p7 = pnand %p3718_p6, %p3715_p4 }
  0x1c   : > { %3723 = shalt.err (!%p3720_p7)
}
  0x1d   : > { %s3724_s24 = scalar_lea.vmem %s175_s6, 128  ;;  %p3732_p5 = scmp.lt.s32.totalorder %s175_s6, %s175_s6 }
  0x1e   : > { %p3725_p11 = scmp.ne.s32.totalorder %s175_s6, %s3724_s24  ;;  %p3733_p8 = scmp.lt.s32.totalorder %s3724_s24, %s3724_s24 }
  0x20   : > { %p3727_p12 = pnand %p3725_p11, %p3713_p2  ;;  %p3734_p10 = por %p3733_p8, %p3732_p5 }
  0x22   : > { %p3728_p9 = pneg %p3727_p12 }
  0x24   : > { %p3735_p0 = pnand %p3734_p10, %p3728_p9 }
  0x26   : > { %3738 = shalt.err (!%p3735_p0)
}
  0x27   : > { %3592 = dma.hbm_to_vmem [thread:$0]  (!%p3962_p13), %s4640_s2, 128, %s175_s6, [#allocation7]  }
  0x28   : > { %s3739_s12 = scalar_lea.hbm %s4642_s4, 16 }
  0x29   : > { %p3740_p1 = scmp.ne.s32.totalorder %s4642_s4, %s3739_s12  ;;  %p3746_p9 = scmp.lt.u32.totalorder %s3739_s12, %s4642_s4 }
  0x2b   : > { %p3742_p5 = pnand %p3740_p1, %p3713_p2 }
  0x2d   : > { %p3743_p8 = pneg %p3742_p5 }
  0x2f   : > { %p3748_p10 = pnand %p3746_p9, %p3743_p8 }
  0x31   : > { %3751 = shalt.err (!%p3748_p10)
}
  0x32   : > { %s3752_s6 = scalar_lea.vmem %s3972_s9, 16  ;;  %s3759_s17 = scalar_lea.vmem %s3972_s9, 32 }
  0x33   : > { %p3753_p0 = scmp.ne.s32.totalorder %s3972_s9, %s3752_s6  ;;  %p3760_p6 = scmp.lt.s32.totalorder %s3972_s9, %s3972_s9 }
  0x34   : > { %p3761_p7 = scmp.lt.s32.totalorder %s3759_s17, %s3752_s6 }
  0x35   : > { %p3755_p3 = pnand %p3753_p0, %p3713_p2 }
  0x36   : > { %p3762_p11 = por %p3761_p7, %p3760_p6 }
  0x37   : > { %p3756_p4 = pneg %p3755_p3 }
  0x39   : > { %p3763_p12 = pnand %p3762_p11, %p3756_p4 }
  0x3b   : > { %3766 = shalt.err (!%p3763_p12)
}
  0x3c   : > { %3595 = dma.hbm_to_vmem [thread:$0]  (!%p3962_p13), %s4642_s4, 16, %s3972_s9, [#allocation7]  }
  0x3d   : > { %s3132_s25 = sshll.u32 %s208_s11, 11  ;;  %s3470_s27 = sshll.u32 %s3865_s21, 15 }
  0x3e   : > { %s4029_s12 = scalar_lea.hbm %s4639_s1, %s3470_s27  ;;  %s212_s7 = scalar_lea.vmem [#allocation3], %s3132_s25 }
  0x3f   : > { %s220_s13 = sshll.u32 %s212_s7, 4  ;;  %s4035_s14 = scalar_lea.sflag [#allocation4], %s208_s11  ;;  %s4031_s13 = int_to_ptr.vmem [resolvable:$true] %s220_s13 }
  0x40   : > { %s3767_s9 = scalar_lea.hbm %s4029_s12, 32768  ;;  %p4653_p2 = scmp.ne.s32.totalorder %s4652_s10, 0 }
  0x41   : > { %p3768_p13 = scmp.ne.s32.totalorder %s4029_s12, %s3767_s9  ;;  %s3772_s16 = scalar_lea.hbm %s4639_s1, 131072 }
  0x42   : > { %p3769_p1 = pneg %p4653_p2  ;;  %p3773_p9 = scmp.lt.u32.totalorder %s4029_s12, %s4639_s1 }
  0x43   : > { %p3774_p10 = scmp.lt.u32.totalorder %s3772_s16, %s3767_s9  ;;  %p3776_p3 = scmp.lt.u32.totalorder %s3767_s9, %s4029_s12 }
  0x44   : > { %p3770_p5 = pnand %p3769_p1, %p3768_p13 }
  0x45   : > { %p3775_p0 = por %p3774_p10, %p3773_p9 }
  0x46   : > { %p3771_p8 = pneg %p3770_p5 }
  0x47   : > { %p3777_p4 = por %p3776_p3, %p3775_p0 }
  0x49   : > { %p3778_p6 = pnand %p3777_p4, %p3771_p8 }
  0x4b   : > { %3781 = shalt.err (!%p3778_p6)
}
  0x4c   : > { %s3782_s11 = scalar_lea.vmem %s4031_s13, 32768  ;;  %s3869_s18 = smov [#allocation3]  }
  0x4d   : > { %p3783_p7 = scmp.ne.s32.totalorder %s4031_s13, %s3782_s11  ;;  %s3787_s24 = sshll.u32 %s3869_s18, 4  ;;  %s3788_s24 = int_to_ptr.vmem [resolvable:$false] %s3787_s24 }
  0x4e   : > { %s3789_s25 = scalar_lea.vmem %s3788_s24, 65536  ;;  %p3790_p13 = scmp.lt.s32.totalorder %s4031_s13, %s3788_s24 }
  0x4f   : > { %p3785_p11 = pnand %p3783_p7, %p3769_p1  ;;  %p3791_p5 = scmp.lt.s32.totalorder %s3789_s25, %s3782_s11 }
  0x51   : > { %p3786_p12 = pneg %p3785_p11  ;;  %p3792_p9 = por %p3791_p5, %p3790_p13 }
  0x53   : > { %p3793_p10 = pnand %p3792_p9, %p3786_p12 }
  0x55   : > { %3796 = shalt.err (!%p3793_p10)
}
  0x56   : > { %s3870_s27 = smov 512   ;;  %s3871_s30 = smov 32  }
  0x57   : > { %3599 = dma.hbm_to_vmem [thread:$0]  (!%p4653_p2), %s4029_s12, 32768, %s4031_s13, %s4035_s14, %s3870_s27, %s3870_s27, %s3871_s30  }
  0x58   : > { %p4654_p1 = scmp.ne.s32.totalorder %s4650_s29, 0 }
  0x59   : > { %s234_s8 = sand.u32 (!%p4654_p1), 1, %s3857_s19   ;;  %p4655_p8 = scmp.ne.s32.totalorder (!%p4654_p1), %s4649_s28, 0 }
  0x5a   : > { %232 = sbr.rel (%p4654_p1) target bundleno = 871 (0x367), region = 40  ;;  %s3137_s7 = sshll.u32 (!%p4654_p1), %s234_s8, 11 }
  0x5b   : > { %s235_s9 = scalar_lea.sflag (!%p4654_p1), [#allocation4], %s234_s8  ;;  %s4066_s21 = scalar_lea.vmem (!%p4654_p1), [#allocation3], %s3137_s7 }
  0x61   : > { %3840 = dma.done.wait (%p4655_p8), %s235_s9, 32768  }
  0x62   : > { %3842 = vsyncadd (%p4655_p8), %s235_s9, 4294934528  ;;  %p4656_p0 = scmp.eq.s32.totalorder %s3924_s22, 0 }
  0x64   : > { %3844 = dma.done.wait (%p4656_p0), [#allocation7], 144   ;;  %p4657_p2 = pmov %p4656_p0 }
  0x65   : > { %s3140_s29 = sshll.u32 %s3924_s22, 2  ;;  %p4658_p4 = scmp.ne.s32.totalorder %s3924_s22, 0 }
  0x66   : > { %3846 = vsyncadd (%p4657_p2), [#allocation7], 4294967152  ;;  %p274_p3 = scmp.lt.s32.totalorder %s3140_s29, 15  ;;  %v3872_v0 = vmov (!%p4658_p4), 0.0  }
  0x67   : > { %284 = sbr.rel (%p4658_p4) target bundleno = 110 (0x6e), region = 56  ;;  %285 = vst [vmem:[#allocation2] sm:$0xff] (!%p4658_p4), %v3872_v0  ;;  %286 = vst [vmem:[#allocation2 + $0x8] sm:$0xff] (!%p4658_p4), %v3872_v0 }
  0x68   : > { %s4664_s29 = smov (!%p274_p3, %s3140_s29), 15 }
  0x69   : > { %s3141_s10 = sshll.u32 %s4664_s29, 1 }
  0x6a   : > { %s4080_s14 = scalar_lea.vmem %s4638_s0, %s3141_s10 }
  0x6e PF: > { %v316_v1 = vld [vmem:[%s4066_s21] sm:$0xff]  ;;  %v317_v3 = vld [vmem:[%s4066_s21 + $0x8] sm:$0xff]  ;;  %v3873_v33 = vmov 1983009808   ;;  %v295_v35 = vlaneseq  ;;  %v4118_v60 = vld [vmem:[%s4080_s14] sm:$0xff]  ;;  %p3399_p6 = scmp.ne.s32.totalorder %s3924_s22, 3 }
  0x6f   : > { %v320_v2 = vld [vmem:[%s4066_s21 + $0x20] sm:$0xff]  ;;  %v321_v5 = vld [vmem:[%s4066_s21 + $0x28] sm:$0xff]  ;;  %v293_v34 = vunpack.c.l.s4 %v3873_v33  ;;  %vm3037_vm0 = vcmask (!%p3399_p6), 812032  }
  0x70   : > { %v3144_v4 = vcombine.high %v316_v1, %v320_v2  ;;  %v3143_v6 = vcombine.low %v316_v1, %v320_v2  ;;  %v324_v7 = vld [vmem:[%s4066_s21 + $0x40] sm:$0xff]  ;;  %v3146_v9 = vcombine.high %v317_v3, %v321_v5  ;;  %v3145_v10 = vcombine.low %v317_v3, %v321_v5  ;;  %v325_v12 = vld [vmem:[%s4066_s21 + $0x48] sm:$0xff] }
  0x71   : > { %v328_v8 = vld [vmem:[%s4066_s21 + $0x60] sm:$0xff]  ;;  %v329_v13 = vld [vmem:[%s4066_s21 + $0x68] sm:$0xff]  ;;  %v294_v44 = vunpack.c.0.s8 %v293_v34  ;;  %v4106_v45 = vshrl.u32 %v295_v35, 7 }
  0x72   : > { %v3152_v11 = vcombine.high %v324_v7, %v328_v8  ;;  %v332_v14 = vld [vmem:[%s4066_s21 + $0x80] sm:$0xff]  ;;  %1852 = vmatprep.subr.bf16.mxu0 %v3144_v4  ;;  %v3154_v15 = vcombine.high %v325_v12, %v329_v13  ;;  %v333_v17 = vld [vmem:[%s4066_s21 + $0x88] sm:$0xff]  ;;  %1934 = vmatprep.subr.bf16.mxu1 %v3146_v9  ;;  %v3151_v19 = vcombine.low %v324_v7, %v328_v8 }
  0x73   : > { %v336_v16 = vld [vmem:[%s4066_s21 + $0xa0] sm:$0xff]  ;;  %v337_v18 = vld [vmem:[%s4066_s21 + $0xa8] sm:$0xff]  ;;  %1853 = vmatpush1.bf16.msra.mxu0 %v3143_v6  ;;  %1935 = vmatpush1.bf16.msra.mxu1 %v3145_v10  ;;  %v3153_v20 = vcombine.low %v325_v12, %v329_v13  ;;  %v4113_v54 = vsub.s32 %v294_v44, %v4106_v45 }
  0x74   : > { %1854 = vmatprep.subr.bf16.mxu0 %v3152_v11  ;;  %v3160_v21 = vcombine.high %v332_v14, %v336_v16  ;;  %1936 = vmatprep.subr.bf16.mxu1 %v3154_v15  ;;  %v3162_v22 = vcombine.high %v333_v17, %v337_v18  ;;  %v340_v23 = vld [vmem:[%s4066_s21 + $0xc0] sm:$0xff]  ;;  %v341_v25 = vld [vmem:[%s4066_s21 + $0xc8] sm:$0xff]  ;;  %v3159_v27 = vcombine.low %v332_v14, %v336_v16 }
  0x75   : > { %v344_v24 = vld [vmem:[%s4066_s21 + $0xe0] sm:$0xff]  ;;  %v345_v26 = vld [vmem:[%s4066_s21 + $0xe8] sm:$0xff]  ;;  %v3161_v28 = vcombine.low %v333_v17, %v337_v18  ;;  %v4124_v0 = vrot.slane %v4118_v60, %v4113_v54 }
  0x76   : > { %v3168_v29 = vcombine.high %v340_v23, %v344_v24  ;;  %v3170_v30 = vcombine.high %v341_v25, %v345_v26  ;;  %v348_v31 = vld [vmem:[%s4066_s21 + $0x100] sm:$0xff]  ;;  %v349_v36 = vld [vmem:[%s4066_s21 + $0x108] sm:$0xff]  ;;  %v3167_v38 = vcombine.low %v340_v23, %v344_v24  ;;  %v3169_v39 = vcombine.low %v341_v25, %v345_v26 }
  0x77   : > { %1855 = vmatpush1.bf16.msra.mxu0 %v3151_v19  ;;  %1937 = vmatpush1.bf16.msra.mxu1 %v3153_v20  ;;  %v352_v32 = vld [vmem:[%s4066_s21 + $0x120] sm:$0xff]  ;;  %v353_v37 = vld [vmem:[%s4066_s21 + $0x128] sm:$0xff]  ;;  %v306_v4 = vcombine.high %v4124_v0, %v4124_v0 }
  0x78   : > { %1856 = vmatprep.subr.bf16.mxu0 %v3160_v21  ;;  %1938 = vmatprep.subr.bf16.mxu1 %v3162_v22  ;;  %v3176_v40 = vcombine.high %v348_v31, %v352_v32  ;;  %v3178_v41 = vcombine.high %v349_v36, %v353_v37  ;;  %v356_v42 = vld [vmem:[%s4066_s21 + $0x140] sm:$0xff]  ;;  %v357_v46 = vld [vmem:[%s4066_s21 + $0x148] sm:$0xff]  ;;  %v3175_v48 = vcombine.low %v348_v31, %v352_v32 }
  0x79   : > { %v360_v43 = vld [vmem:[%s4066_s21 + $0x160] sm:$0xff]  ;;  %v361_v47 = vld [vmem:[%s4066_s21 + $0x168] sm:$0xff]  ;;  %v3177_v49 = vcombine.low %v349_v36, %v353_v37  ;;  %v4132_v10 = vpack.c.bf16 %v306_v4, %v306_v4 }
  0x7a   : > { %v3184_v50 = vcombine.high %v356_v42, %v360_v43  ;;  %v3186_v51 = vcombine.high %v357_v46, %v361_v47  ;;  %v364_v52 = vld [vmem:[%s4066_s21 + $0x180] sm:$0xff]  ;;  %v365_v55 = vld [vmem:[%s4066_s21 + $0x188] sm:$0xff]  ;;  %v3183_v57 = vcombine.low %v356_v42, %v360_v43  ;;  %v3185_v58 = vcombine.low %v357_v46, %v361_v47 }
  0x7b   : > { %1857 = vmatpush1.bf16.msra.mxu0 %v3159_v27  ;;  %1939 = vmatpush1.bf16.msra.mxu1 %v3161_v28  ;;  %v368_v53 = vld [vmem:[%s4066_s21 + $0x1a0] sm:$0xff]  ;;  %v369_v56 = vld [vmem:[%s4066_s21 + $0x1a8] sm:$0xff] }
  0x7c   : > { %1858 = vmatprep.subr.bf16.mxu0 %v3168_v29  ;;  %1940 = vmatprep.subr.bf16.mxu1 %v3170_v30  ;;  %v3192_v59 = vcombine.high %v364_v52, %v368_v53  ;;  %v3194_v61 = vcombine.high %v365_v55, %v369_v56  ;;  %v372_v62 = vld [vmem:[%s4066_s21 + $0x1c0] sm:$0xff]  ;;  %v373_v1 = vld [vmem:[%s4066_s21 + $0x1c8] sm:$0xff]  ;;  %v3191_v3 = vcombine.low %v364_v52, %v368_v53 }
  0x7d   : > { %v376_v63 = vld [vmem:[%s4066_s21 + $0x1e0] sm:$0xff]  ;;  %v377_v2 = vld [vmem:[%s4066_s21 + $0x1e8] sm:$0xff]  ;;  %v3193_v5 = vcombine.low %v365_v55, %v369_v56  ;;  %1884 = vmatprep.mubr.bf16.mxu0 %v4132_v10  ;;  %1966 = vmatprep.mubr.bf16.mxu1 %v4132_v10 }
  0x7e   : > { %v3200_v6 = vcombine.high %v372_v62, %v376_v63  ;;  %v3202_v7 = vcombine.high %v373_v1, %v377_v2  ;;  %v380_v8 = vld [vmem:[%s4066_s21 + $0x200] sm:$0xff]  ;;  %v381_v11 = vld [vmem:[%s4066_s21 + $0x208] sm:$0xff]  ;;  %v3199_v13 = vcombine.low %v372_v62, %v376_v63  ;;  %v3201_v14 = vcombine.low %v373_v1, %v377_v2 }
  0x7f   : > { %1859 = vmatpush1.bf16.msra.mxu0 %v3167_v38  ;;  %1941 = vmatpush1.bf16.msra.mxu1 %v3169_v39  ;;  %v384_v9 = vld [vmem:[%s4066_s21 + $0x220] sm:$0xff]  ;;  %v385_v12 = vld [vmem:[%s4066_s21 + $0x228] sm:$0xff] }
  0x80   : > { %1860 = vmatprep.subr.bf16.mxu0 %v3176_v40  ;;  %1942 = vmatprep.subr.bf16.mxu1 %v3178_v41  ;;  %v3208_v15 = vcombine.high %v380_v8, %v384_v9  ;;  %v3210_v16 = vcombine.high %v381_v11, %v385_v12  ;;  %v388_v17 = vld [vmem:[%s4066_s21 + $0x240] sm:$0xff]  ;;  %v389_v19 = vld [vmem:[%s4066_s21 + $0x248] sm:$0xff]  ;;  %v3207_v21 = vcombine.low %v380_v8, %v384_v9 }
  0x81   : > { %v392_v18 = vld [vmem:[%s4066_s21 + $0x260] sm:$0xff]  ;;  %v393_v20 = vld [vmem:[%s4066_s21 + $0x268] sm:$0xff]  ;;  %v3209_v22 = vcombine.low %v381_v11, %v385_v12 }
  0x82   : > { %v3216_v23 = vcombine.high %v388_v17, %v392_v18  ;;  %v3218_v24 = vcombine.high %v389_v19, %v393_v20  ;;  %v396_v25 = vld [vmem:[%s4066_s21 + $0x280] sm:$0xff]  ;;  %v397_v27 = vld [vmem:[%s4066_s21 + $0x288] sm:$0xff]  ;;  %v3215_v29 = vcombine.low %v388_v17, %v392_v18  ;;  %v3217_v30 = vcombine.low %v389_v19, %v393_v20 }
  0x83   : > { %1861 = vmatpush1.bf16.msra.mxu0 %v3175_v48  ;;  %1943 = vmatpush1.bf16.msra.mxu1 %v3177_v49  ;;  %v400_v26 = vld [vmem:[%s4066_s21 + $0x2a0] sm:$0xff]  ;;  %v401_v28 = vld [vmem:[%s4066_s21 + $0x2a8] sm:$0xff] }
  0x84   : > { %1862 = vmatprep.subr.bf16.mxu0 %v3184_v50  ;;  %1944 = vmatprep.subr.bf16.mxu1 %v3186_v51  ;;  %v3224_v31 = vcombine.high %v396_v25, %v400_v26  ;;  %v3226_v32 = vcombine.high %v397_v27, %v401_v28  ;;  %v404_v33 = vld [vmem:[%s4066_s21 + $0x2c0] sm:$0xff]  ;;  %v405_v35 = vld [vmem:[%s4066_s21 + $0x2c8] sm:$0xff]  ;;  %v3223_v37 = vcombine.low %v396_v25, %v400_v26 }
  0x85   : > { %v408_v34 = vld [vmem:[%s4066_s21 + $0x2e0] sm:$0xff]  ;;  %v409_v36 = vld [vmem:[%s4066_s21 + $0x2e8] sm:$0xff]  ;;  %v3225_v38 = vcombine.low %v397_v27, %v401_v28  ;;  %v4181_v26 = vpack.c.bf16 %v4124_v0, %v4124_v0 }
  0x86   : > { %v3232_v39 = vcombine.high %v404_v33, %v408_v34  ;;  %v3234_v40 = vcombine.high %v405_v35, %v409_v36  ;;  %v412_v41 = vld [vmem:[%s4066_s21 + $0x300] sm:$0xff]  ;;  %v413_v43 = vld [vmem:[%s4066_s21 + $0x308] sm:$0xff]  ;;  %v3231_v46 = vcombine.low %v404_v33, %v408_v34  ;;  %v3233_v47 = vcombine.low %v405_v35, %v409_v36 }
  0x87   : > { %1863 = vmatpush1.bf16.msra.mxu0 %v3183_v57  ;;  %1945 = vmatpush1.bf16.msra.mxu1 %v3185_v58  ;;  %v416_v42 = vld [vmem:[%s4066_s21 + $0x320] sm:$0xff]  ;;  %v417_v44 = vld [vmem:[%s4066_s21 + $0x328] sm:$0xff] }
  0x88   : > { %1864 = vmatprep.subr.bf16.mxu0 %v3192_v59  ;;  %1946 = vmatprep.subr.bf16.mxu1 %v3194_v61  ;;  %v3240_v48 = vcombine.high %v412_v41, %v416_v42  ;;  %v3242_v49 = vcombine.high %v413_v43, %v417_v44  ;;  %v420_v50 = vld [vmem:[%s4066_s21 + $0x340] sm:$0xff]  ;;  %v421_v52 = vld [vmem:[%s4066_s21 + $0x348] sm:$0xff]  ;;  %v3239_v55 = vcombine.low %v412_v41, %v416_v42 }
  0x89   : > { %v424_v51 = vld [vmem:[%s4066_s21 + $0x360] sm:$0xff]  ;;  %v425_v53 = vld [vmem:[%s4066_s21 + $0x368] sm:$0xff]  ;;  %v3241_v56 = vcombine.low %v413_v43, %v417_v44 }
  0x8a   : > { %v3248_v57 = vcombine.high %v420_v50, %v424_v51  ;;  %v3250_v58 = vcombine.high %v421_v52, %v425_v53  ;;  %v428_v59 = vld [vmem:[%s4066_s21 + $0x380] sm:$0xff]  ;;  %v429_v62 = vld [vmem:[%s4066_s21 + $0x388] sm:$0xff]  ;;  %v3247_v1 = vcombine.low %v420_v50, %v424_v51  ;;  %v3249_v2 = vcombine.low %v421_v52, %v425_v53 }
  0x8b   : > { %1865 = vmatpush1.bf16.msra.mxu0 %v3191_v3  ;;  %1947 = vmatpush1.bf16.msra.mxu1 %v3193_v5  ;;  %v432_v61 = vld [vmem:[%s4066_s21 + $0x3a0] sm:$0xff]  ;;  %v433_v63 = vld [vmem:[%s4066_s21 + $0x3a8] sm:$0xff] }
  0x8c   : > { %1866 = vmatprep.subr.bf16.mxu0 %v3200_v6  ;;  %1948 = vmatprep.subr.bf16.mxu1 %v3202_v7  ;;  %v3256_v3 = vcombine.high %v428_v59, %v432_v61  ;;  %v3258_v4 = vcombine.high %v429_v62, %v433_v63  ;;  %v436_v5 = vld [vmem:[%s4066_s21 + $0x3c0] sm:$0xff]  ;;  %v291_v7 = vcombine.high %v4118_v60, %v4118_v60  ;;  %v437_v8 = vld [vmem:[%s4066_s21 + $0x3c8] sm:$0xff] }
  0x8d   : > { %v440_v6 = vld [vmem:[%s4066_s21 + $0x3e0] sm:$0xff]  ;;  %v441_v9 = vld [vmem:[%s4066_s21 + $0x3e8] sm:$0xff]  ;;  %v3255_v11 = vcombine.low %v428_v59, %v432_v61  ;;  %v3257_v12 = vcombine.low %v429_v62, %v433_v63 }
  0x8e   : > { %v4171_v17 = vrot.slane %v291_v7, %v4113_v54  ;;  %v445_v60 = vld [vmem:[%s4066_s21 + $0x408] sm:$0xff]  ;;  %v3263_v19 = vcombine.low %v436_v5, %v440_v6  ;;  %v3265_v20 = vcombine.low %v437_v8, %v441_v9  ;;  %v460_v33 = vld [vmem:[%s4066_s21 + $0x480] sm:$0xff] }
  0x8f   : > { %1867 = vmatpush1.bf16.msra.mxu0 %v3199_v13  ;;  %1949 = vmatpush1.bf16.msra.mxu1 %v3201_v14  ;;  %v3264_v13 = vcombine.high %v436_v5, %v440_v6  ;;  %v3266_v14 = vcombine.high %v437_v8, %v441_v9  ;;  %v449_v18 = vld [vmem:[%s4066_s21 + $0x428] sm:$0xff]  ;;  %v464_v34 = vld [vmem:[%s4066_s21 + $0x4a0] sm:$0xff] }
  0x90   : > { %1868 = vmatprep.subr.bf16.mxu0 %v3208_v15  ;;  %1950 = vmatprep.subr.bf16.mxu1 %v3210_v16  ;;  %v444_v15 = vld [vmem:[%s4066_s21 + $0x400] sm:$0xff]  ;;  %v307_v25 = vcombine.high %v4171_v17, %v4171_v17  ;;  %v453_v27 = vld [vmem:[%s4066_s21 + $0x448] sm:$0xff] }
  0x91   : > { %v448_v16 = vld [vmem:[%s4066_s21 + $0x420] sm:$0xff]  ;;  %v457_v28 = vld [vmem:[%s4066_s21 + $0x468] sm:$0xff] }
  0x92   : > { %v4187_v35 = vpack.c.bf16 %v307_v25, %v307_v25  ;;  %v461_v0 = vld [vmem:[%s4066_s21 + $0x488] sm:$0xff]  ;;  %v468_v41 = vld [vmem:[%s4066_s21 + $0x4c0] sm:$0xff] }
  0x93   : > { %1869 = vmatpush1.bf16.msra.mxu0 %v3207_v21  ;;  %1951 = vmatpush1.bf16.msra.mxu1 %v3209_v22  ;;  %v3272_v21 = vcombine.high %v444_v15, %v448_v16  ;;  %v3274_v22 = vcombine.high %v445_v60, %v449_v18  ;;  %v465_v36 = vld [vmem:[%s4066_s21 + $0x4a8] sm:$0xff]  ;;  %v472_v42 = vld [vmem:[%s4066_s21 + $0x4e0] sm:$0xff] }
  0x94   : > { %1870 = vmatprep.subr.bf16.mxu0 %v3216_v23  ;;  %1952 = vmatprep.subr.bf16.mxu1 %v3218_v24  ;;  %v452_v23 = vld [vmem:[%s4066_s21 + $0x440] sm:$0xff]  ;;  %v469_v43 = vld [vmem:[%s4066_s21 + $0x4c8] sm:$0xff] }
  0x95   : > { %v456_v24 = vld [vmem:[%s4066_s21 + $0x460] sm:$0xff]  ;;  %v473_v44 = vld [vmem:[%s4066_s21 + $0x4e8] sm:$0xff] }
  0x96   : > { %v476_v50 = vld [vmem:[%s4066_s21 + $0x500] sm:$0xff]  ;;  %v477_v52 = vld [vmem:[%s4066_s21 + $0x508] sm:$0xff] }
  0x97   : > { %1871 = vmatpush1.bf16.msra.mxu0 %v3215_v29  ;;  %1953 = vmatpush1.bf16.msra.mxu1 %v3217_v30  ;;  %v3271_v29 = vcombine.low %v444_v15, %v448_v16  ;;  %v3273_v30 = vcombine.low %v445_v60, %v449_v18  ;;  %v480_v51 = vld [vmem:[%s4066_s21 + $0x520] sm:$0xff]  ;;  %v481_v53 = vld [vmem:[%s4066_s21 + $0x528] sm:$0xff] }
  0x98   : > { %1872 = vmatprep.subr.bf16.mxu0 %v3224_v31  ;;  %1954 = vmatprep.subr.bf16.mxu1 %v3226_v32  ;;  %v3280_v31 = vcombine.high %v452_v23, %v456_v24  ;;  %v3282_v32 = vcombine.high %v453_v27, %v457_v28  ;;  %v484_v59 = vld [vmem:[%s4066_s21 + $0x540] sm:$0xff]  ;;  %v485_v62 = vld [vmem:[%s4066_s21 + $0x548] sm:$0xff] }
  0x99   : > { %v488_v61 = vld [vmem:[%s4066_s21 + $0x560] sm:$0xff]  ;;  %v489_v63 = vld [vmem:[%s4066_s21 + $0x568] sm:$0xff] }
  0x9a   : > { %v492_v5 = vld [vmem:[%s4066_s21 + $0x580] sm:$0xff]  ;;  %v493_v7 = vld [vmem:[%s4066_s21 + $0x588] sm:$0xff]  ;;  %v3311_v9 = vcombine.low %v484_v59, %v488_v61 }
  0x9b   : > { %1873 = vmatpush1.bf16.msra.mxu0 %v3223_v37  ;;  %1955 = vmatpush1.bf16.msra.mxu1 %v3225_v38  ;;  %v3279_v37 = vcombine.low %v452_v23, %v456_v24  ;;  %v3281_v38 = vcombine.low %v453_v27, %v457_v28  ;;  %v496_v6 = vld [vmem:[%s4066_s21 + $0x5a0] sm:$0xff]  ;;  %v497_v8 = vld [vmem:[%s4066_s21 + $0x5a8] sm:$0xff] }
  0x9c   : > { %1874 = vmatprep.subr.bf16.mxu0 %v3232_v39  ;;  %1956 = vmatprep.subr.bf16.mxu1 %v3234_v40  ;;  %v3288_v39 = vcombine.high %v460_v33, %v464_v34  ;;  %v3290_v40 = vcombine.high %v461_v0, %v465_v36  ;;  %v504_v15 = vld [vmem:[%s4066_s21 + $0x5e0] sm:$0xff]  ;;  %v501_v16 = vld [vmem:[%s4066_s21 + $0x5c8] sm:$0xff]  ;;  %v3319_v18 = vcombine.low %v492_v5, %v496_v6 }
  0x9d   : > { %v505_v60 = vld [vmem:[%s4066_s21 + $0x5e8] sm:$0xff]  ;;  %v512_v23 = vld [vmem:[%s4066_s21 + $0x620] sm:$0xff] }
  0x9e   : > { %v509_v24 = vld [vmem:[%s4066_s21 + $0x608] sm:$0xff]  ;;  %v3329_v28 = vcombine.low %v501_v16, %v505_v60 }
  0x9f   : > { %1875 = vmatpush1.bf16.msra.mxu0 %v3231_v46  ;;  %1957 = vmatpush1.bf16.msra.mxu1 %v3233_v47  ;;  %v3287_v46 = vcombine.low %v460_v33, %v464_v34  ;;  %v3289_v47 = vcombine.low %v461_v0, %v465_v36  ;;  %v513_v25 = vld [vmem:[%s4066_s21 + $0x628] sm:$0xff] }
  0xa0   : > { %1876 = vmatprep.subr.bf16.mxu0 %v3240_v48  ;;  %1958 = vmatprep.subr.bf16.mxu1 %v3242_v49  ;;  %v3296_v48 = vcombine.high %v468_v41, %v472_v42  ;;  %v3298_v49 = vcombine.high %v469_v43, %v473_v44  ;;  %v517_v33 = vld [vmem:[%s4066_s21 + $0x648] sm:$0xff]  ;;  %v3337_v36 = vcombine.low %v509_v24, %v513_v25 }
  0xa1   : > { %v521_v34 = vld [vmem:[%s4066_s21 + $0x668] sm:$0xff] }
  0xa3   : > { %1877 = vmatpush1.bf16.msra.mxu0 %v3239_v55  ;;  %1959 = vmatpush1.bf16.msra.mxu1 %v3241_v56  ;;  %v3295_v55 = vcombine.low %v468_v41, %v472_v42  ;;  %v3297_v56 = vcombine.low %v469_v43, %v473_v44  ;;  %v525_v41 = vld [vmem:[%s4066_s21 + $0x688] sm:$0xff]  ;;  %v3345_v44 = vcombine.low %v517_v33, %v521_v34 }
  0xa4   : > { %1878 = vmatprep.subr.bf16.mxu0 %v3248_v57  ;;  %1960 = vmatprep.subr.bf16.mxu1 %v3250_v58  ;;  %v3304_v57 = vcombine.high %v476_v50, %v480_v51  ;;  %v3306_v58 = vcombine.high %v477_v52, %v481_v53  ;;  %v529_v42 = vld [vmem:[%s4066_s21 + $0x6a8] sm:$0xff] }
  0xa7   : > { %1879 = vmatpush1.bf16.msra.mxu0 %v3247_v1  ;;  %1961 = vmatpush1.bf16.msra.mxu1 %v3249_v2  ;;  %v3303_v1 = vcombine.low %v476_v50, %v480_v51  ;;  %v3305_v2 = vcombine.low %v477_v52, %v481_v53  ;;  %v533_v50 = vld [vmem:[%s4066_s21 + $0x6c8] sm:$0xff]  ;;  %v3353_v53 = vcombine.low %v525_v41, %v529_v42 }
  0xa8   : > { %1880 = vmatprep.subr.bf16.mxu0 %v3256_v3  ;;  %1962 = vmatprep.subr.bf16.mxu1 %v3258_v4  ;;  %v3312_v3 = vcombine.high %v484_v59, %v488_v61  ;;  %v3314_v4 = vcombine.high %v485_v62, %v489_v63  ;;  %v537_v51 = vld [vmem:[%s4066_s21 + $0x6e8] sm:$0xff] }
  0xa9   : > { %v541_v59 = vld [vmem:[%s4066_s21 + $0x708] sm:$0xff] }
  0xaa   : > { %v545_v61 = vld [vmem:[%s4066_s21 + $0x728] sm:$0xff] }
  0xab   : > { %1881 = vmatpush1.bf16.msra.mxu0 %v3255_v11  ;;  %1963 = vmatpush1.bf16.msra.mxu1 %v3257_v12  ;;  %v3313_v11 = vcombine.low %v485_v62, %v489_v63  ;;  %v3320_v12 = vcombine.high %v492_v5, %v496_v6  ;;  %v3361_v63 = vcombine.low %v533_v50, %v537_v51  ;;  %v549_v5 = vld [vmem:[%s4066_s21 + $0x748] sm:$0xff] }
  0xac   : > { %1882 = vmatprep.subr.bf16.mxu0 %v3264_v13  ;;  %1964 = vmatprep.subr.bf16.mxu1 %v3266_v14  ;;  %v3322_v13 = vcombine.high %v493_v7, %v497_v8  ;;  %v500_v14 = vld [vmem:[%s4066_s21 + $0x5c0] sm:$0xff]  ;;  %v553_v6 = vld [vmem:[%s4066_s21 + $0x768] sm:$0xff] }
  0xad   : > { %v3327_v27 = vcombine.low %v500_v14, %v504_v15 }
  0xaf   : > { %1883 = vmatpush1.bf16.msra.mxu0 %v3263_v19  ;;  %1965 = vmatpush1.bf16.msra.mxu1 %v3265_v20  ;;  %v3321_v19 = vcombine.low %v493_v7, %v497_v8  ;;  %v3328_v20 = vcombine.high %v500_v14, %v504_v15  ;;  %v3369_v8 = vcombine.low %v541_v59, %v545_v61  ;;  %v557_v14 = vld [vmem:[%s4066_s21 + $0x788] sm:$0xff] }
  0xb0   : > { %1893 = vmatprep.subr.bf16.mxu0 %v3272_v21  ;;  %1975 = vmatprep.subr.bf16.mxu1 %v3274_v22  ;;  %v3330_v21 = vcombine.high %v501_v16, %v505_v60  ;;  %v508_v22 = vld [vmem:[%s4066_s21 + $0x600] sm:$0xff]  ;;  %v561_v15 = vld [vmem:[%s4066_s21 + $0x7a8] sm:$0xff]  ;;  %v3377_v60 = vcombine.low %v549_v5, %v553_v6 }
  0xb1   : > { %v3335_v0 = vcombine.low %v508_v22, %v512_v23 }
  0xb2   : > { %1885 = vmatmul.mubr.bf16.vlgmr.msra.gmra.mrb[0].mxu0 %v4181_v26  ;;  %1967 = vmatmul.mubr.bf16.vlgmr.msra.gmra.mrb[0].mxu1 %v4181_v26 }
  0xb3   : > { %1894 = vmatpush1.bf16.msra.mxu0 %v3271_v29  ;;  %1976 = vmatpush1.bf16.msra.mxu1 %v3273_v30  ;;  %v3336_v29 = vcombine.high %v508_v22, %v512_v23  ;;  %v3338_v30 = vcombine.high %v509_v24, %v513_v25  ;;  %v565_v22 = vld [vmem:[%s4066_s21 + $0x7c8] sm:$0xff]  ;;  %v3385_v25 = vcombine.low %v557_v14, %v561_v15 }
  0xb4   : > { %1895 = vmatprep.subr.bf16.mxu0 %v3280_v31  ;;  %1977 = vmatprep.subr.bf16.mxu1 %v3282_v32  ;;  %v516_v31 = vld [vmem:[%s4066_s21 + $0x640] sm:$0xff]  ;;  %v569_v23 = vld [vmem:[%s4066_s21 + $0x7e8] sm:$0xff] }
  0xb5   : > { %1925 = vmatprep.mubr.bf16.mxu0 %v4187_v35  ;;  %2007 = vmatprep.mubr.bf16.mxu1 %v4187_v35  ;;  %v520_v32 = vld [vmem:[%s4066_s21 + $0x660] sm:$0xff] }
  0xb6   : > { %v3343_v43 = vcombine.low %v516_v31, %v520_v32 }
  0xb7   : > { %1896 = vmatpush1.bf16.msra.mxu0 %v3279_v37  ;;  %1978 = vmatpush1.bf16.msra.mxu1 %v3281_v38  ;;  %v3344_v37 = vcombine.high %v516_v31, %v520_v32  ;;  %v3346_v38 = vcombine.high %v517_v33, %v521_v34  ;;  %v319_v31 = vld [vmem:[%s4066_s21 + $0x18] sm:$0xff]  ;;  %v3393_v34 = vcombine.low %v565_v22, %v569_v23 }
  0xb8   : > { %1897 = vmatprep.subr.bf16.mxu0 %v3288_v39  ;;  %1979 = vmatprep.subr.bf16.mxu1 %v3290_v40  ;;  %v524_v39 = vld [vmem:[%s4066_s21 + $0x680] sm:$0xff]  ;;  %v323_v32 = vld [vmem:[%s4066_s21 + $0x38] sm:$0xff] }
  0xb9   : > { %v528_v40 = vld [vmem:[%s4066_s21 + $0x6a0] sm:$0xff] }
  0xba   : > { %v3351_v52 = vcombine.low %v524_v39, %v528_v40 }
  0xbb   : > { %1898 = vmatpush1.bf16.msra.mxu0 %v3287_v46  ;;  %1980 = vmatpush1.bf16.msra.mxu1 %v3289_v47  ;;  %v3352_v46 = vcombine.high %v524_v39, %v528_v40  ;;  %v3354_v47 = vcombine.high %v525_v41, %v529_v42  ;;  %v4255_v39 = vpack.c.bf16 %v4171_v17, %v4171_v17  ;;  %v327_v40 = vld [vmem:[%s4066_s21 + $0x58] sm:$0xff] }
  0xbc   : > { %1899 = vmatprep.subr.bf16.mxu0 %v3296_v48  ;;  %1981 = vmatprep.subr.bf16.mxu1 %v3298_v49  ;;  %v532_v48 = vld [vmem:[%s4066_s21 + $0x6c0] sm:$0xff]  ;;  %v331_v41 = vld [vmem:[%s4066_s21 + $0x78] sm:$0xff] }
  0xbd   : > { %v536_v49 = vld [vmem:[%s4066_s21 + $0x6e0] sm:$0xff]  ;;  %v335_v17 = vld [vmem:[%s4066_s21 + $0x98] sm:$0xff] }
  0xbe   : > { %v3359_v62 = vcombine.low %v532_v48, %v536_v49 }
  0xbf   : > { %1900 = vmatpush1.bf16.msra.mxu0 %v3295_v55  ;;  %1982 = vmatpush1.bf16.msra.mxu1 %v3297_v56  ;;  %v3360_v55 = vcombine.high %v532_v48, %v536_v49  ;;  %v3362_v56 = vcombine.high %v533_v50, %v537_v51  ;;  %v338_v48 = vld [vmem:[%s4066_s21 + $0xb0] sm:$0xff]  ;;  %v339_v49 = vld [vmem:[%s4066_s21 + $0xb8] sm:$0xff]  ;;  %v3157_v51 = vcombine.low %v327_v40, %v331_v41 }
  0xc0   : > { %1901 = vmatprep.subr.bf16.mxu0 %v3304_v57  ;;  %1983 = vmatprep.subr.bf16.mxu1 %v3306_v58  ;;  %v540_v57 = vld [vmem:[%s4066_s21 + $0x700] sm:$0xff] }
  0xc1   : > { %v544_v58 = vld [vmem:[%s4066_s21 + $0x720] sm:$0xff] }
  0xc2   : > { %v3367_v7 = vcombine.low %v540_v57, %v544_v58 }
  0xc3   : > { %1902 = vmatpush1.bf16.msra.mxu0 %v3303_v1  ;;  %1984 = vmatpush1.bf16.msra.mxu1 %v3305_v2  ;;  %v3368_v1 = vcombine.high %v540_v57, %v544_v58  ;;  %v3370_v2 = vcombine.high %v541_v59, %v545_v61  ;;  %v343_v57 = vld [vmem:[%s4066_s21 + $0xd8] sm:$0xff]  ;;  %v3165_v61 = vcombine.low %v335_v17, %v339_v49 }
  0xc4   : > { %1903 = vmatprep.subr.bf16.mxu0 %v3312_v3  ;;  %1985 = vmatprep.subr.bf16.mxu1 %v3314_v4  ;;  %v548_v3 = vld [vmem:[%s4066_s21 + $0x740] sm:$0xff]  ;;  %v347_v58 = vld [vmem:[%s4066_s21 + $0xf8] sm:$0xff] }
  0xc5   : > { %v552_v4 = vld [vmem:[%s4066_s21 + $0x760] sm:$0xff] }
  0xc6   : > { %v3375_v16 = vcombine.low %v548_v3, %v552_v4 }
  0xc7   : > { %1904 = vmatpush1.bf16.msra.mxu0 %v3311_v9  ;;  %1986 = vmatpush1.bf16.msra.mxu1 %v3313_v11  ;;  %v3376_v9 = vcombine.high %v548_v3, %v552_v4  ;;  %v3378_v11 = vcombine.high %v549_v5, %v553_v6  ;;  %v351_v3 = vld [vmem:[%s4066_s21 + $0x118] sm:$0xff] }
  0xc8   : > { %1905 = vmatprep.subr.bf16.mxu0 %v3320_v12  ;;  %1987 = vmatprep.subr.bf16.mxu1 %v3322_v13  ;;  %v556_v12 = vld [vmem:[%s4066_s21 + $0x780] sm:$0xff]  ;;  %v355_v4 = vld [vmem:[%s4066_s21 + $0x138] sm:$0xff] }
  0xc9   : > { %v560_v13 = vld [vmem:[%s4066_s21 + $0x7a0] sm:$0xff] }
  0xca   : > { %v3383_v24 = vcombine.low %v556_v12, %v560_v13 }
  0xcb   : > { %1906 = vmatpush1.bf16.msra.mxu0 %v3319_v18  ;;  %1988 = vmatpush1.bf16.msra.mxu1 %v3321_v19  ;;  %v3384_v18 = vcombine.high %v556_v12, %v560_v13  ;;  %v3386_v19 = vcombine.high %v557_v14, %v561_v15  ;;  %v363_v12 = vld [vmem:[%s4066_s21 + $0x178] sm:$0xff]  ;;  %v3181_v14 = vcombine.low %v351_v3, %v355_v4 }
  0xcc   : > { %1907 = vmatprep.subr.bf16.mxu0 %v3328_v20  ;;  %1989 = vmatprep.subr.bf16.mxu1 %v3330_v21  ;;  %v564_v20 = vld [vmem:[%s4066_s21 + $0x7c0] sm:$0xff] }
  0xcd   : > { %v568_v21 = vld [vmem:[%s4066_s21 + $0x7e0] sm:$0xff] }
  0xce   : > { %v3391_v33 = vcombine.low %v564_v20, %v568_v21 }
  0xcf   : > { %1908 = vmatpush1.bf16.msra.mxu0 %v3327_v27  ;;  %1990 = vmatpush1.bf16.msra.mxu1 %v3329_v28  ;;  %v3392_v27 = vcombine.high %v564_v20, %v568_v21  ;;  %v3394_v28 = vcombine.high %v565_v22, %v569_v23  ;;  %v371_v20 = vld [vmem:[%s4066_s21 + $0x1b8] sm:$0xff] }
  0xd0   : > { %1909 = vmatprep.subr.bf16.mxu0 %v3336_v29  ;;  %1991 = vmatprep.subr.bf16.mxu1 %v3338_v30  ;;  %v318_v29 = vld [vmem:[%s4066_s21 + $0x10] sm:$0xff] }
  0xd1   : > { %v322_v30 = vld [vmem:[%s4066_s21 + $0x30] sm:$0xff] }
  0xd2   : > { %v3147_v42 = vcombine.low %v318_v29, %v322_v30 }
  0xd3   : > { %1910 = vmatpush1.bf16.msra.mxu0 %v3335_v0  ;;  %1992 = vmatpush1.bf16.msra.mxu1 %v3337_v36  ;;  %v3148_v0 = vcombine.high %v318_v29, %v322_v30  ;;  %v3150_v36 = vcombine.high %v319_v31, %v323_v32  ;;  %v379_v29 = vld [vmem:[%s4066_s21 + $0x1f8] sm:$0xff] }
  0xd4   : > { %1911 = vmatprep.subr.bf16.mxu0 %v3344_v37  ;;  %1993 = vmatprep.subr.bf16.mxu1 %v3346_v38  ;;  %v326_v37 = vld [vmem:[%s4066_s21 + $0x50] sm:$0xff] }
  0xd5   : > { %v330_v38 = vld [vmem:[%s4066_s21 + $0x70] sm:$0xff] }
  0xd6   : > { %v3155_v50 = vcombine.low %v326_v37, %v330_v38 }
  0xd7   : > { %1912 = vmatpush1.bf16.msra.mxu0 %v3343_v43  ;;  %1994 = vmatpush1.bf16.msra.mxu1 %v3345_v44  ;;  %v3149_v43 = vcombine.low %v319_v31, %v323_v32  ;;  %v3156_v44 = vcombine.high %v326_v37, %v330_v38  ;;  %v387_v37 = vld [vmem:[%s4066_s21 + $0x238] sm:$0xff] }
  0xd8   : > { %1913 = vmatprep.subr.bf16.mxu0 %v3352_v46  ;;  %1995 = vmatprep.subr.bf16.mxu1 %v3354_v47  ;;  %v3158_v46 = vcombine.high %v327_v40, %v331_v41  ;;  %v334_v47 = vld [vmem:[%s4066_s21 + $0x90] sm:$0xff] }
  0xd9   : > { %v3163_v59 = vcombine.low %v334_v47, %v338_v48 }
  0xdb   : > { %1914 = vmatpush1.bf16.msra.mxu0 %v3351_v52  ;;  %1996 = vmatpush1.bf16.msra.mxu1 %v3353_v53  ;;  %v3164_v52 = vcombine.high %v334_v47, %v338_v48  ;;  %v3166_v53 = vcombine.high %v335_v17, %v339_v49  ;;  %v395_v47 = vld [vmem:[%s4066_s21 + $0x278] sm:$0xff] }
  0xdc   : > { %1915 = vmatprep.subr.bf16.mxu0 %v3360_v55  ;;  %1997 = vmatprep.subr.bf16.mxu1 %v3362_v56  ;;  %v342_v55 = vld [vmem:[%s4066_s21 + $0xd0] sm:$0xff] }
  0xdd   : > { %v346_v56 = vld [vmem:[%s4066_s21 + $0xf0] sm:$0xff] }
  0xde   : > { %v3171_v5 = vcombine.low %v342_v55, %v346_v56 }
  0xdf   : > { %1916 = vmatpush1.bf16.msra.mxu0 %v3359_v62  ;;  %1998 = vmatpush1.bf16.msra.mxu1 %v3361_v63  ;;  %v3172_v62 = vcombine.high %v342_v55, %v346_v56  ;;  %v3174_v63 = vcombine.high %v343_v57, %v347_v58  ;;  %v403_v55 = vld [vmem:[%s4066_s21 + $0x2b8] sm:$0xff] }
  0xe0   : > { %1917 = vmatprep.subr.bf16.mxu0 %v3368_v1  ;;  %1999 = vmatprep.subr.bf16.mxu1 %v3370_v2  ;;  %v350_v1 = vld [vmem:[%s4066_s21 + $0x110] sm:$0xff] }
  0xe1   : > { %v354_v2 = vld [vmem:[%s4066_s21 + $0x130] sm:$0xff] }
  0xe2   : > { %v3180_v6 = vcombine.high %v350_v1, %v354_v2  ;;  %v3179_v13 = vcombine.low %v350_v1, %v354_v2  ;;  %v411_v1 = vld [vmem:[%s4066_s21 + $0x2f8] sm:$0xff] }
  0xe3   : > { %1918 = vmatpush1.bf16.msra.mxu0 %v3367_v7  ;;  %2000 = vmatpush1.bf16.msra.mxu1 %v3369_v8  ;;  %v3182_v7 = vcombine.high %v351_v3, %v355_v4  ;;  %v358_v8 = vld [vmem:[%s4066_s21 + $0x150] sm:$0xff] }
  0xe4   : > { %1919 = vmatprep.subr.bf16.mxu0 %v3376_v9  ;;  %2001 = vmatprep.subr.bf16.mxu1 %v3378_v11  ;;  %v362_v9 = vld [vmem:[%s4066_s21 + $0x170] sm:$0xff]  ;;  %v359_v11 = vld [vmem:[%s4066_s21 + $0x158] sm:$0xff] }
  0xe5   : > { %v3188_v15 = vcombine.high %v358_v8, %v362_v9  ;;  %v3187_v21 = vcombine.low %v358_v8, %v362_v9  ;;  %v3189_v22 = vcombine.low %v359_v11, %v363_v12  ;;  %v419_v8 = vld [vmem:[%s4066_s21 + $0x338] sm:$0xff] }
  0xe7   : > { %1920 = vmatpush1.bf16.msra.mxu0 %v3375_v16  ;;  %2002 = vmatpush1.bf16.msra.mxu1 %v3377_v60  ;;  %v3190_v16 = vcombine.high %v359_v11, %v363_v12  ;;  %v366_v60 = vld [vmem:[%s4066_s21 + $0x190] sm:$0xff] }
  0xe8   : > { %1921 = vmatprep.subr.bf16.mxu0 %v3384_v18  ;;  %2003 = vmatprep.subr.bf16.mxu1 %v3386_v19  ;;  %v370_v18 = vld [vmem:[%s4066_s21 + $0x1b0] sm:$0xff]  ;;  %v367_v19 = vld [vmem:[%s4066_s21 + $0x198] sm:$0xff] }
  0xe9   : > { %v3196_v23 = vcombine.high %v366_v60, %v370_v18  ;;  %v3195_v30 = vcombine.low %v366_v60, %v370_v18  ;;  %v3197_v31 = vcombine.low %v367_v19, %v371_v20  ;;  %v427_v60 = vld [vmem:[%s4066_s21 + $0x378] sm:$0xff] }
  0xeb   : > { %1922 = vmatpush1.bf16.msra.mxu0 %v3383_v24  ;;  %2004 = vmatpush1.bf16.msra.mxu1 %v3385_v25  ;;  %v3198_v24 = vcombine.high %v367_v19, %v371_v20  ;;  %v374_v25 = vld [vmem:[%s4066_s21 + $0x1d0] sm:$0xff] }
  0xec   : > { %1923 = vmatprep.subr.bf16.mxu0 %v3392_v27  ;;  %2005 = vmatprep.subr.bf16.mxu1 %v3394_v28  ;;  %v378_v27 = vld [vmem:[%s4066_s21 + $0x1f0] sm:$0xff]  ;;  %v375_v28 = vld [vmem:[%s4066_s21 + $0x1d8] sm:$0xff] }
  0xed   : > { %v3204_v32 = vcombine.high %v374_v25, %v378_v27  ;;  %v3203_v38 = vcombine.low %v374_v25, %v378_v27  ;;  %v3205_v40 = vcombine.low %v375_v28, %v379_v29  ;;  %v435_v25 = vld [vmem:[%s4066_s21 + $0x3b8] sm:$0xff] }
  0xef   : > { %1924 = vmatpush1.bf16.msra.mxu0 %v3391_v33  ;;  %2006 = vmatpush1.bf16.msra.mxu1 %v3393_v34  ;;  %v3206_v33 = vcombine.high %v375_v28, %v379_v29  ;;  %v382_v34 = vld [vmem:[%s4066_s21 + $0x210] sm:$0xff] }
  0xf0   : > { %2016 = vmatprep.subr.bf16.mxu0 %v3148_v0  ;;  %2098 = vmatprep.subr.bf16.mxu1 %v3150_v36  ;;  %v386_v0 = vld [vmem:[%s4066_s21 + $0x230] sm:$0xff]  ;;  %v383_v36 = vld [vmem:[%s4066_s21 + $0x218] sm:$0xff] }
  0xf1   : > { %v3212_v41 = vcombine.high %v382_v34, %v386_v0  ;;  %v3211_v48 = vcombine.low %v382_v34, %v386_v0  ;;  %v3213_v17 = vcombine.low %v383_v36, %v387_v37  ;;  %v443_v34 = vld [vmem:[%s4066_s21 + $0x3f8] sm:$0xff] }
  0xf2   : > { %1926 = vmatmul.mubr.bf16.vlgmr.msra.gmra.mrb[0].mxu0 %v4255_v39  ;;  %2008 = vmatmul.mubr.bf16.vlgmr.msra.gmra.mrb[0].mxu1 %v4255_v39 }
  0xf3   : > { %2017 = vmatpush1.bf16.msra.mxu0 %v3147_v42  ;;  %2099 = vmatpush1.bf16.msra.mxu1 %v3149_v43  ;;  %v3214_v42 = vcombine.high %v383_v36, %v387_v37  ;;  %v390_v43 = vld [vmem:[%s4066_s21 + $0x250] sm:$0xff] }
  0xf4   : > { %2018 = vmatprep.subr.bf16.mxu0 %v3156_v44  ;;  %2100 = vmatprep.subr.bf16.mxu1 %v3158_v46  ;;  %v394_v44 = vld [vmem:[%s4066_s21 + $0x270] sm:$0xff]  ;;  %v391_v46 = vld [vmem:[%s4066_s21 + $0x258] sm:$0xff] }
  0xf5   : > { %2048 = vmatprep.mubr.bf16.mxu0 %v4132_v10  ;;  %2130 = vmatprep.mubr.bf16.mxu1 %v4132_v10  ;;  %v3173_v10 = vcombine.low %v343_v57, %v347_v58  ;;  %v3220_v49 = vcombine.high %v390_v43, %v394_v44  ;;  %v3219_v56 = vcombine.low %v390_v43, %v394_v44  ;;  %v451_v43 = vld [vmem:[%s4066_s21 + $0x438] sm:$0xff] }
  0xf6   : > { %v3221_v57 = vcombine.low %v391_v46, %v395_v47 }
  0xf7   : > { %2019 = vmatpush1.bf16.msra.mxu0 %v3155_v50  ;;  %2101 = vmatpush1.bf16.msra.mxu1 %v3157_v51  ;;  %v3222_v50 = vcombine.high %v391_v46, %v395_v47  ;;  %v398_v51 = vld [vmem:[%s4066_s21 + $0x290] sm:$0xff] }
  0xf8   : > { %2020 = vmatprep.subr.bf16.mxu0 %v3164_v52  ;;  %2102 = vmatprep.subr.bf16.mxu1 %v3166_v53  ;;  %v402_v52 = vld [vmem:[%s4066_s21 + $0x2b0] sm:$0xff]  ;;  %v399_v53 = vld [vmem:[%s4066_s21 + $0x298] sm:$0xff] }
  0xf9   : > { %v3228_v58 = vcombine.high %v398_v51, %v402_v52  ;;  %v3227_v2 = vcombine.low %v398_v51, %v402_v52  ;;  %v3229_v3 = vcombine.low %v399_v53, %v403_v55  ;;  %v459_v51 = vld [vmem:[%s4066_s21 + $0x478] sm:$0xff] }
  0xfb   : > { %2021 = vmatpush1.bf16.msra.mxu0 %v3163_v59  ;;  %2103 = vmatpush1.bf16.msra.mxu1 %v3165_v61  ;;  %v3230_v59 = vcombine.high %v399_v53, %v403_v55  ;;  %v406_v61 = vld [vmem:[%s4066_s21 + $0x2d0] sm:$0xff] }
  0xfc   : > { %2022 = vmatprep.subr.bf16.mxu0 %v3172_v62  ;;  %2104 = vmatprep.subr.bf16.mxu1 %v3174_v63  ;;  %v410_v62 = vld [vmem:[%s4066_s21 + $0x2f0] sm:$0xff]  ;;  %v407_v63 = vld [vmem:[%s4066_s21 + $0x2d8] sm:$0xff] }
  0xfd   : > { %v3236_v4 = vcombine.high %v406_v61, %v410_v62  ;;  %v3235_v9 = vcombine.low %v406_v61, %v410_v62  ;;  %v3237_v11 = vcombine.low %v407_v63, %v411_v1  ;;  %v467_v61 = vld [vmem:[%s4066_s21 + $0x4b8] sm:$0xff] }
  0xff   : > { %2023 = vmatpush1.bf16.msra.mxu0 %v3171_v5  ;;  %2105 = vmatpush1.bf16.msra.mxu1 %v3173_v10  ;;  %v3238_v5 = vcombine.high %v407_v63, %v411_v1  ;;  %v414_v10 = vld [vmem:[%s4066_s21 + $0x310] sm:$0xff] }
 0x100   : > { %2024 = vmatprep.subr.bf16.mxu0 %v3180_v6  ;;  %2106 = vmatprep.subr.bf16.mxu1 %v3182_v7  ;;  %v418_v6 = vld [vmem:[%s4066_s21 + $0x330] sm:$0xff]  ;;  %v415_v7 = vld [vmem:[%s4066_s21 + $0x318] sm:$0xff] }
 0x101   : > { %v3244_v12 = vcombine.high %v414_v10, %v418_v6  ;;  %v3243_v18 = vcombine.low %v414_v10, %v418_v6  ;;  %v3245_v19 = vcombine.low %v415_v7, %v419_v8  ;;  %v475_v10 = vld [vmem:[%s4066_s21 + $0x4f8] sm:$0xff] }
 0x103   : > { %2025 = vmatpush1.bf16.msra.mxu0 %v3179_v13  ;;  %2107 = vmatpush1.bf16.msra.mxu1 %v3181_v14  ;;  %v3246_v13 = vcombine.high %v415_v7, %v419_v8  ;;  %v422_v14 = vld [vmem:[%s4066_s21 + $0x350] sm:$0xff] }
 0x104   : > { %2026 = vmatprep.subr.bf16.mxu0 %v3188_v15  ;;  %2108 = vmatprep.subr.bf16.mxu1 %v3190_v16  ;;  %v426_v15 = vld [vmem:[%s4066_s21 + $0x370] sm:$0xff]  ;;  %v423_v16 = vld [vmem:[%s4066_s21 + $0x358] sm:$0xff] }
 0x105   : > { %v3252_v20 = vcombine.high %v422_v14, %v426_v15  ;;  %v3251_v27 = vcombine.low %v422_v14, %v426_v15  ;;  %v3253_v28 = vcombine.low %v423_v16, %v427_v60 }
 0x107   : > { %2027 = vmatpush1.bf16.msra.mxu0 %v3187_v21  ;;  %2109 = vmatpush1.bf16.msra.mxu1 %v3189_v22  ;;  %v3254_v21 = vcombine.high %v423_v16, %v427_v60  ;;  %v430_v22 = vld [vmem:[%s4066_s21 + $0x390] sm:$0xff] }
 0x108   : > { %2028 = vmatprep.subr.bf16.mxu0 %v3196_v23  ;;  %2110 = vmatprep.subr.bf16.mxu1 %v3198_v24  ;;  %v434_v23 = vld [vmem:[%s4066_s21 + $0x3b0] sm:$0xff]  ;;  %v431_v24 = vld [vmem:[%s4066_s21 + $0x398] sm:$0xff] }
 0x109   : > { %v3260_v29 = vcombine.high %v430_v22, %v434_v23  ;;  %v3259_v0 = vcombine.low %v430_v22, %v434_v23  ;;  %v3261_v36 = vcombine.low %v431_v24, %v435_v25  ;;  %v486_v60 = vld [vmem:[%s4066_s21 + $0x550] sm:$0xff] }
 0x10b   : > { %2029 = vmatpush1.bf16.msra.mxu0 %v3195_v30  ;;  %2111 = vmatpush1.bf16.msra.mxu1 %v3197_v31  ;;  %v3262_v30 = vcombine.high %v431_v24, %v435_v25  ;;  %v438_v31 = vld [vmem:[%s4066_s21 + $0x3d0] sm:$0xff] }
 0x10c   : > { %2030 = vmatprep.subr.bf16.mxu0 %v3204_v32  ;;  %2112 = vmatprep.subr.bf16.mxu1 %v3206_v33  ;;  %v442_v32 = vld [vmem:[%s4066_s21 + $0x3f0] sm:$0xff]  ;;  %v439_v33 = vld [vmem:[%s4066_s21 + $0x3d8] sm:$0xff] }
 0x10d   : > { %v3268_v37 = vcombine.high %v438_v31, %v442_v32  ;;  %v3267_v44 = vcombine.low %v438_v31, %v442_v32  ;;  %v3269_v46 = vcombine.low %v439_v33, %v443_v34  ;;  %v494_v25 = vld [vmem:[%s4066_s21 + $0x590] sm:$0xff] }
 0x10f   : > { %2031 = vmatpush1.bf16.msra.mxu0 %v3203_v38  ;;  %2113 = vmatpush1.bf16.msra.mxu1 %v3205_v40  ;;  %v3270_v38 = vcombine.high %v439_v33, %v443_v34  ;;  %v446_v40 = vld [vmem:[%s4066_s21 + $0x410] sm:$0xff] }
 0x110   : > { %2032 = vmatprep.subr.bf16.mxu0 %v3212_v41  ;;  %2114 = vmatprep.subr.bf16.mxu1 %v3214_v42  ;;  %v450_v41 = vld [vmem:[%s4066_s21 + $0x430] sm:$0xff]  ;;  %v447_v42 = vld [vmem:[%s4066_s21 + $0x418] sm:$0xff] }
 0x111   : > { %v3276_v47 = vcombine.high %v446_v40, %v450_v41  ;;  %v3275_v52 = vcombine.low %v446_v40, %v450_v41  ;;  %v3277_v53 = vcombine.low %v447_v42, %v451_v43  ;;  %v502_v34 = vld [vmem:[%s4066_s21 + $0x5d0] sm:$0xff] }
 0x113   : > { %2033 = vmatpush1.bf16.msra.mxu0 %v3211_v48  ;;  %2115 = vmatpush1.bf16.msra.mxu1 %v3213_v17  ;;  %v3278_v48 = vcombine.high %v447_v42, %v451_v43  ;;  %v454_v17 = vld [vmem:[%s4066_s21 + $0x450] sm:$0xff] }
 0x114   : > { %2034 = vmatprep.subr.bf16.mxu0 %v3220_v49  ;;  %2116 = vmatprep.subr.bf16.mxu1 %v3222_v50  ;;  %v458_v49 = vld [vmem:[%s4066_s21 + $0x470] sm:$0xff]  ;;  %v455_v50 = vld [vmem:[%s4066_s21 + $0x458] sm:$0xff] }
 0x115   : > { %v3284_v55 = vcombine.high %v454_v17, %v458_v49  ;;  %v3283_v62 = vcombine.low %v454_v17, %v458_v49  ;;  %v3285_v63 = vcombine.low %v455_v50, %v459_v51  ;;  %v510_v43 = vld [vmem:[%s4066_s21 + $0x610] sm:$0xff] }
 0x117   : > { %2035 = vmatpush1.bf16.msra.mxu0 %v3219_v56  ;;  %2117 = vmatpush1.bf16.msra.mxu1 %v3221_v57  ;;  %v3286_v56 = vcombine.high %v455_v50, %v459_v51  ;;  %v462_v57 = vld [vmem:[%s4066_s21 + $0x490] sm:$0xff] }
 0x118   : > { %2036 = vmatprep.subr.bf16.mxu0 %v3228_v58  ;;  %2118 = vmatprep.subr.bf16.mxu1 %v3230_v59  ;;  %v466_v58 = vld [vmem:[%s4066_s21 + $0x4b0] sm:$0xff]  ;;  %v463_v59 = vld [vmem:[%s4066_s21 + $0x498] sm:$0xff] }
 0x119   : > { %v3292_v1 = vcombine.high %v462_v57, %v466_v58  ;;  %v3293_v6 = vcombine.low %v463_v59, %v467_v61  ;;  %v518_v51 = vld [vmem:[%s4066_s21 + $0x650] sm:$0xff] }
 0x11b   : > { %2037 = vmatpush1.bf16.msra.mxu0 %v3227_v2  ;;  %2119 = vmatpush1.bf16.msra.mxu1 %v3229_v3  ;;  %v3294_v2 = vcombine.high %v463_v59, %v467_v61  ;;  %v470_v3 = vld [vmem:[%s4066_s21 + $0x4d0] sm:$0xff] }
 0x11c   : > { %2038 = vmatprep.subr.bf16.mxu0 %v3236_v4  ;;  %2120 = vmatprep.subr.bf16.mxu1 %v3238_v5  ;;  %v474_v4 = vld [vmem:[%s4066_s21 + $0x4f0] sm:$0xff]  ;;  %v471_v5 = vld [vmem:[%s4066_s21 + $0x4d8] sm:$0xff] }
 0x11d   : > { %v3300_v7 = vcombine.high %v470_v3, %v474_v4  ;;  %v3302_v8 = vcombine.high %v471_v5, %v475_v10  ;;  %v3299_v14 = vcombine.low %v470_v3, %v474_v4  ;;  %v526_v61 = vld [vmem:[%s4066_s21 + $0x690] sm:$0xff] }
 0x11f   : > { %2039 = vmatpush1.bf16.msra.mxu0 %v3235_v9  ;;  %2121 = vmatpush1.bf16.msra.mxu1 %v3237_v11  ;;  %v478_v9 = vld [vmem:[%s4066_s21 + $0x510] sm:$0xff] }
 0x120   : > { %2040 = vmatprep.subr.bf16.mxu0 %v3244_v12  ;;  %2122 = vmatprep.subr.bf16.mxu1 %v3246_v13  ;;  %v482_v11 = vld [vmem:[%s4066_s21 + $0x530] sm:$0xff]  ;;  %v479_v12 = vld [vmem:[%s4066_s21 + $0x518] sm:$0xff] }
 0x121   : > { %v483_v13 = vld [vmem:[%s4066_s21 + $0x538] sm:$0xff]  ;;  %v3308_v15 = vcombine.high %v478_v9, %v482_v11 }
 0x122   : > { %v3310_v16 = vcombine.high %v479_v12, %v483_v13  ;;  %v3309_v22 = vcombine.low %v479_v12, %v483_v13  ;;  %v542_v13 = vld [vmem:[%s4066_s21 + $0x710] sm:$0xff] }
 0x123   : > { %2041 = vmatpush1.bf16.msra.mxu0 %v3243_v18  ;;  %2123 = vmatpush1.bf16.msra.mxu1 %v3245_v19  ;;  %v490_v18 = vld [vmem:[%s4066_s21 + $0x570] sm:$0xff]  ;;  %v487_v19 = vld [vmem:[%s4066_s21 + $0x558] sm:$0xff] }
 0x124   : > { %2042 = vmatprep.subr.bf16.mxu0 %v3252_v20  ;;  %2124 = vmatprep.subr.bf16.mxu1 %v3254_v21  ;;  %v491_v20 = vld [vmem:[%s4066_s21 + $0x578] sm:$0xff]  ;;  %v3307_v21 = vcombine.low %v478_v9, %v482_v11  ;;  %v3316_v23 = vcombine.high %v486_v60, %v490_v18 }
 0x125   : > { %v3318_v24 = vcombine.high %v487_v19, %v491_v20  ;;  %v3317_v31 = vcombine.low %v487_v19, %v491_v20  ;;  %v550_v20 = vld [vmem:[%s4066_s21 + $0x750] sm:$0xff] }
 0x127   : > { %2043 = vmatpush1.bf16.msra.mxu0 %v3251_v27  ;;  %2125 = vmatpush1.bf16.msra.mxu1 %v3253_v28  ;;  %v498_v27 = vld [vmem:[%s4066_s21 + $0x5b0] sm:$0xff]  ;;  %v495_v28 = vld [vmem:[%s4066_s21 + $0x598] sm:$0xff] }
 0x128   : > { %2044 = vmatprep.subr.bf16.mxu0 %v3260_v29  ;;  %2126 = vmatprep.subr.bf16.mxu1 %v3262_v30  ;;  %v499_v29 = vld [vmem:[%s4066_s21 + $0x5b8] sm:$0xff]  ;;  %v3315_v30 = vcombine.low %v486_v60, %v490_v18  ;;  %v3324_v32 = vcombine.high %v494_v25, %v498_v27 }
 0x129   : > { %v3326_v33 = vcombine.high %v495_v28, %v499_v29  ;;  %v3325_v40 = vcombine.low %v495_v28, %v499_v29  ;;  %v558_v29 = vld [vmem:[%s4066_s21 + $0x790] sm:$0xff] }
 0x12b   : > { %2045 = vmatpush1.bf16.msra.mxu0 %v3259_v0  ;;  %2127 = vmatpush1.bf16.msra.mxu1 %v3261_v36  ;;  %v506_v0 = vld [vmem:[%s4066_s21 + $0x5f0] sm:$0xff]  ;;  %v503_v36 = vld [vmem:[%s4066_s21 + $0x5d8] sm:$0xff] }
 0x12c   : > { %2046 = vmatprep.subr.bf16.mxu0 %v3268_v37  ;;  %2128 = vmatprep.subr.bf16.mxu1 %v3270_v38  ;;  %v507_v37 = vld [vmem:[%s4066_s21 + $0x5f8] sm:$0xff]  ;;  %v3323_v38 = vcombine.low %v494_v25, %v498_v27  ;;  %v3332_v41 = vcombine.high %v502_v34, %v506_v0 }
 0x12d   : > { %v3334_v42 = vcombine.high %v503_v36, %v507_v37  ;;  %v3333_v17 = vcombine.low %v503_v36, %v507_v37  ;;  %v566_v37 = vld [vmem:[%s4066_s21 + $0x7d0] sm:$0xff] }
 0x12f   : > { %2047 = vmatpush1.bf16.msra.mxu0 %v3267_v44  ;;  %2129 = vmatpush1.bf16.msra.mxu1 %v3269_v46  ;;  %v514_v44 = vld [vmem:[%s4066_s21 + $0x630] sm:$0xff]  ;;  %v511_v46 = vld [vmem:[%s4066_s21 + $0x618] sm:$0xff] }
 0x130   : > { %2057 = vmatprep.subr.bf16.mxu0 %v3276_v47  ;;  %2139 = vmatprep.subr.bf16.mxu1 %v3278_v48  ;;  %v515_v47 = vld [vmem:[%s4066_s21 + $0x638] sm:$0xff]  ;;  %v3331_v48 = vcombine.low %v502_v34, %v506_v0  ;;  %v3340_v49 = vcombine.high %v510_v43, %v514_v44 }
 0x131   : > { %v3342_v50 = vcombine.high %v511_v46, %v515_v47 }
 0x132   : > { %2049 = vmatmul.mubr.bf16.vlgmr.msra.gmra.mrb[4].mxu0 %v4181_v26  ;;  %2131 = vmatmul.mubr.bf16.vlgmr.msra.gmra.mrb[4].mxu1 %v4181_v26  ;;  %v3291_v26 = vcombine.low %v462_v57, %v466_v58  ;;  %v3341_v57 = vcombine.low %v511_v46, %v515_v47 }
 0x133   : > { %2058 = vmatpush1.bf16.msra.mxu0 %v3275_v52  ;;  %2140 = vmatpush1.bf16.msra.mxu1 %v3277_v53  ;;  %v522_v52 = vld [vmem:[%s4066_s21 + $0x670] sm:$0xff]  ;;  %v519_v53 = vld [vmem:[%s4066_s21 + $0x658] sm:$0xff] }
 0x134   : > { %2059 = vmatprep.subr.bf16.mxu0 %v3284_v55  ;;  %2141 = vmatprep.subr.bf16.mxu1 %v3286_v56  ;;  %v523_v55 = vld [vmem:[%s4066_s21 + $0x678] sm:$0xff]  ;;  %v3339_v56 = vcombine.low %v510_v43, %v514_v44  ;;  %v3348_v58 = vcombine.high %v518_v51, %v522_v52 }
 0x135   : > { %2089 = vmatprep.mubr.bf16.mxu0 %v4187_v35  ;;  %2171 = vmatprep.mubr.bf16.mxu1 %v4187_v35  ;;  %v3301_v35 = vcombine.low %v471_v5, %v475_v10  ;;  %v3350_v59 = vcombine.high %v519_v53, %v523_v55  ;;  %v3349_v3 = vcombine.low %v519_v53, %v523_v55  ;;  %v534_v10 = vld [vmem:[%s4066_s21 + $0x6d0] sm:$0xff] }
 0x137   : > { %2060 = vmatpush1.bf16.msra.mxu0 %v3283_v62  ;;  %2142 = vmatpush1.bf16.msra.mxu1 %v3285_v63  ;;  %v530_v62 = vld [vmem:[%s4066_s21 + $0x6b0] sm:$0xff]  ;;  %v527_v63 = vld [vmem:[%s4066_s21 + $0x698] sm:$0xff] }
 0x138   : > { %2061 = vmatprep.subr.bf16.mxu0 %v3292_v1  ;;  %2143 = vmatprep.subr.bf16.mxu1 %v3294_v2  ;;  %v531_v1 = vld [vmem:[%s4066_s21 + $0x6b8] sm:$0xff]  ;;  %v3347_v2 = vcombine.low %v518_v51, %v522_v52  ;;  %v3356_v4 = vcombine.high %v526_v61, %v530_v62 }
 0x139   : > { %v3358_v5 = vcombine.high %v527_v63, %v531_v1  ;;  %v3357_v9 = vcombine.low %v527_v63, %v531_v1 }
 0x13b   : > { %2062 = vmatpush1.bf16.msra.mxu0 %v3291_v26  ;;  %2144 = vmatpush1.bf16.msra.mxu1 %v3293_v6  ;;  %v538_v26 = vld [vmem:[%s4066_s21 + $0x6f0] sm:$0xff]  ;;  %v535_v6 = vld [vmem:[%s4066_s21 + $0x6d8] sm:$0xff] }
 0x13c   : > { %2063 = vmatprep.subr.bf16.mxu0 %v3300_v7  ;;  %2145 = vmatprep.subr.bf16.mxu1 %v3302_v8  ;;  %v539_v7 = vld [vmem:[%s4066_s21 + $0x6f8] sm:$0xff]  ;;  %v3355_v8 = vcombine.low %v526_v61, %v530_v62  ;;  %v3364_v11 = vcombine.high %v534_v10, %v538_v26  ;;  %v287_v62 = vld [vmem:[#allocation2] sm:$0xff] }
 0x13d   : > { %v3366_v12 = vcombine.high %v535_v6, %v539_v7  ;;  %v3365_v60 = vcombine.low %v535_v6, %v539_v7 }
 0x13f   : > { %2064 = vmatpush1.bf16.msra.mxu0 %v3299_v14  ;;  %2146 = vmatpush1.bf16.msra.mxu1 %v3301_v35  ;;  %v546_v14 = vld [vmem:[%s4066_s21 + $0x730] sm:$0xff]  ;;  %v543_v35 = vld [vmem:[%s4066_s21 + $0x718] sm:$0xff] }
 0x140   : > { %2065 = vmatprep.subr.bf16.mxu0 %v3308_v15  ;;  %2147 = vmatprep.subr.bf16.mxu1 %v3310_v16  ;;  %v547_v15 = vld [vmem:[%s4066_s21 + $0x738] sm:$0xff]  ;;  %v3363_v16 = vcombine.low %v534_v10, %v538_v26  ;;  %v3372_v18 = vcombine.high %v542_v13, %v546_v14 }
 0x141   : > { %v3374_v19 = vcombine.high %v543_v35, %v547_v15  ;;  %v3373_v25 = vcombine.low %v543_v35, %v547_v15  ;;  %v3647_v35 = vld [vmem:[%s4641_s3 + $0x40] sm:$0xff] (!%p3399_p6)  }
 0x142   : > { %v3648_v15 = vld [vmem:[%s4641_s3 + $0xc0] sm:$0xff] (!%p3399_p6)  }
 0x143   : > { %2066 = vmatpush1.bf16.msra.mxu0 %v3307_v21  ;;  %2148 = vmatpush1.bf16.msra.mxu1 %v3309_v22  ;;  %v554_v21 = vld [vmem:[%s4066_s21 + $0x770] sm:$0xff]  ;;  %v551_v22 = vld [vmem:[%s4066_s21 + $0x758] sm:$0xff] }
 0x144   : > { %2067 = vmatprep.subr.bf16.mxu0 %v3316_v23  ;;  %2149 = vmatprep.subr.bf16.mxu1 %v3318_v24  ;;  %v555_v23 = vld [vmem:[%s4066_s21 + $0x778] sm:$0xff]  ;;  %v3371_v24 = vcombine.low %v542_v13, %v546_v14  ;;  %v3380_v27 = vcombine.high %v550_v20, %v554_v21 }
 0x145   : > { %v3382_v28 = vcombine.high %v551_v22, %v555_v23  ;;  %v3381_v34 = vcombine.low %v551_v22, %v555_v23  ;;  %v3655_v22 = vld [vmem:[%s4641_s3 + $0x50] sm:$0xff] (!%p3399_p6)  }
 0x146   : > { %v3656_v23 = vld [vmem:[%s4641_s3 + $0xd0] sm:$0xff] (!%p3399_p6)  }
 0x147   : > { %2068 = vmatpush1.bf16.msra.mxu0 %v3315_v30  ;;  %2150 = vmatpush1.bf16.msra.mxu1 %v3317_v31  ;;  %v562_v30 = vld [vmem:[%s4066_s21 + $0x7b0] sm:$0xff]  ;;  %v559_v31 = vld [vmem:[%s4066_s21 + $0x798] sm:$0xff] }
 0x148   : > { %2069 = vmatprep.subr.bf16.mxu0 %v3324_v32  ;;  %2151 = vmatprep.subr.bf16.mxu1 %v3326_v33  ;;  %v563_v32 = vld [vmem:[%s4066_s21 + $0x7b8] sm:$0xff]  ;;  %v3379_v33 = vcombine.low %v550_v20, %v554_v21  ;;  %v3388_v0 = vcombine.high %v558_v29, %v562_v30 }
 0x149   : > { %v3390_v36 = vcombine.high %v559_v31, %v563_v32  ;;  %v3389_v43 = vcombine.low %v559_v31, %v563_v32  ;;  %v3653_v20 = vld [vmem:[%s4641_s3 + $0x8] sm:$0xff] (!%p3399_p6)   ;;  %v3663_v31 = vld [vmem:[%s4641_s3 + $0x60] sm:$0xff] (!%p3399_p6)  }
 0x14a   : > { %v3654_v21 = vld [vmem:[%s4641_s3 + $0x88] sm:$0xff] (!%p3399_p6)   ;;  %v3664_v32 = vld [vmem:[%s4641_s3 + $0xe0] sm:$0xff] (!%p3399_p6)  }
 0x14b   : > { %2070 = vmatpush1.bf16.msra.mxu0 %v3323_v38  ;;  %2152 = vmatpush1.bf16.msra.mxu1 %v3325_v40  ;;  %v570_v38 = vld [vmem:[%s4066_s21 + $0x7f0] sm:$0xff]  ;;  %v567_v40 = vld [vmem:[%s4066_s21 + $0x7d8] sm:$0xff] }
 0x14c   : > { %2071 = vmatprep.subr.bf16.mxu0 %v3332_v41  ;;  %2153 = vmatprep.subr.bf16.mxu1 %v3334_v42  ;;  %v571_v41 = vld [vmem:[%s4066_s21 + $0x7f8] sm:$0xff]  ;;  %v3387_v42 = vcombine.low %v558_v29, %v562_v30  ;;  %v3396_v44 = vcombine.high %v566_v37, %v570_v38  ;;  %v3395_v47 = vcombine.low %v566_v37, %v570_v38  ;;  %v3661_v29 = vld [vmem:[%s4641_s3 + $0x18] sm:$0xff] (!%p3399_p6)  }
 0x14d   : > { %v3398_v46 = vcombine.high %v567_v40, %v571_v41  ;;  %v3662_v30 = vld [vmem:[%s4641_s3 + $0x98] sm:$0xff] (!%p3399_p6)   ;;  %v3669_v37 = vld [vmem:[%s4641_s3 + $0x28] sm:$0xff] (!%p3399_p6)  }
 0x14e   : > { %v3670_v38 = vld [vmem:[%s4641_s3 + $0xa8] sm:$0xff] (!%p3399_p6)  }
 0x14f   : > { %2072 = vmatpush1.bf16.msra.mxu0 %v3331_v48  ;;  %2154 = vmatpush1.bf16.msra.mxu1 %v3333_v17  ;;  %v3397_v48 = vcombine.low %v567_v40, %v571_v41  ;;  %v3671_v40 = vld [vmem:[%s4641_s3 + $0x70] sm:$0xff] (!%p3399_p6)  }
 0x150   : > { %2073 = vmatprep.subr.bf16.mxu0 %v3340_v49  ;;  %2155 = vmatprep.subr.bf16.mxu1 %v3342_v50  ;;  %v3672_v41 = vld [vmem:[%s4641_s3 + $0xf0] sm:$0xff] (!%p3399_p6)  }
 0x153   : > { %2074 = vmatpush1.bf16.msra.mxu0 %v3339_v56  ;;  %2156 = vmatpush1.bf16.msra.mxu1 %v3341_v57 }
 0x154   : > { %2075 = vmatprep.subr.bf16.mxu0 %v3348_v58  ;;  %2157 = vmatprep.subr.bf16.mxu1 %v3350_v59 }
 0x157   : > { %2076 = vmatpush1.bf16.msra.mxu0 %v3347_v2  ;;  %2158 = vmatpush1.bf16.msra.mxu1 %v3349_v3 }
 0x158   : > { %2077 = vmatprep.subr.bf16.mxu0 %v3356_v4  ;;  %2159 = vmatprep.subr.bf16.mxu1 %v3358_v5 }
 0x15b   : > { %2078 = vmatpush1.bf16.msra.mxu0 %v3355_v8  ;;  %2160 = vmatpush1.bf16.msra.mxu1 %v3357_v9 }
 0x15c   : > { %2079 = vmatprep.subr.bf16.mxu0 %v3364_v11  ;;  %2161 = vmatprep.subr.bf16.mxu1 %v3366_v12  ;;  %v288_v12 = vld [vmem:[#allocation2 + $0x8] sm:$0xff] }
 0x15f   : > { %2080 = vmatpush1.bf16.msra.mxu0 %v3363_v16  ;;  %2162 = vmatpush1.bf16.msra.mxu1 %v3365_v60  ;;  %v3649_v16 = vld [vmem:[%s4641_s3] sm:$0xff] (!%p3399_p6)  }
 0x160   : > { %2081 = vmatprep.subr.bf16.mxu0 %v3372_v18  ;;  %2163 = vmatprep.subr.bf16.mxu1 %v3374_v19  ;;  %v3650_v60 = vld [vmem:[%s4641_s3 + $0x80] sm:$0xff] (!%p3399_p6)   ;;  %v3651_v18 = vld [vmem:[%s4641_s3 + $0x48] sm:$0xff] (!%p3399_p6)  }
 0x161   : > { %v3652_v19 = vld [vmem:[%s4641_s3 + $0xc8] sm:$0xff] (!%p3399_p6)  }
 0x163   : > { %2082 = vmatpush1.bf16.msra.mxu0 %v3371_v24  ;;  %2164 = vmatpush1.bf16.msra.mxu1 %v3373_v25  ;;  %v3657_v24 = vld [vmem:[%s4641_s3 + $0x10] sm:$0xff] (!%p3399_p6)  }
 0x164   : > { %2083 = vmatprep.subr.bf16.mxu0 %v3380_v27  ;;  %2165 = vmatprep.subr.bf16.mxu1 %v3382_v28  ;;  %v3658_v25 = vld [vmem:[%s4641_s3 + $0x90] sm:$0xff] (!%p3399_p6)   ;;  %v3659_v27 = vld [vmem:[%s4641_s3 + $0x58] sm:$0xff] (!%p3399_p6)  }
 0x165   : > { %v3660_v28 = vld [vmem:[%s4641_s3 + $0xd8] sm:$0xff] (!%p3399_p6)  }
 0x167   : > { %2084 = vmatpush1.bf16.msra.mxu0 %v3379_v33  ;;  %2166 = vmatpush1.bf16.msra.mxu1 %v3381_v34  ;;  %v3665_v33 = vld [vmem:[%s4641_s3 + $0x20] sm:$0xff] (!%p3399_p6)  }
 0x168   : > { %2085 = vmatprep.subr.bf16.mxu0 %v3388_v0  ;;  %2167 = vmatprep.subr.bf16.mxu1 %v3390_v36  ;;  %v3666_v34 = vld [vmem:[%s4641_s3 + $0xa0] sm:$0xff] (!%p3399_p6)   ;;  %v3667_v0 = vld [vmem:[%s4641_s3 + $0x68] sm:$0xff] (!%p3399_p6)  }
 0x169   : > { %v3668_v36 = vld [vmem:[%s4641_s3 + $0xe8] sm:$0xff] (!%p3399_p6)  }
 0x16b   : > { %2086 = vmatpush1.bf16.msra.mxu0 %v3387_v42  ;;  %2168 = vmatpush1.bf16.msra.mxu1 %v3389_v43  ;;  %v3673_v42 = vld [vmem:[%s4641_s3 + $0x30] sm:$0xff] (!%p3399_p6)   ;;  %v2238_v43 = vsub.s32 (!%p3399_p6), 0, %v4106_v45 }
 0x16c   : > { %2087 = vmatprep.subr.bf16.mxu0 %v3396_v44  ;;  %2169 = vmatprep.subr.bf16.mxu1 %v3398_v46  ;;  %v3674_v44 = vld [vmem:[%s4641_s3 + $0xb0] sm:$0xff] (!%p3399_p6)   ;;  %v2242_v46 = vsub.s32 (!%p3399_p6), 1, %v4106_v45 }
 0x16f   : > { %2088 = vmatpush1.bf16.msra.mxu0 %v3395_v47  ;;  %2170 = vmatpush1.bf16.msra.mxu1 %v3397_v48  ;;  %v3675_v47 = vld [vmem:[%s4641_s3 + $0x78] sm:$0xff] (!%p3399_p6)   ;;  %v2246_v48 = vsub.s32 (!%p3399_p6), 2, %v4106_v45 }
 0x170   : > { %3471 = vmatprep.subr.bf16.mxu0 (!%p3399_p6), %v3647_v35  ;;  %3493 = vmatprep.subr.bf16.mxu1 (!%p3399_p6), %v3648_v15  ;;  %v3683_v15 = vld [vmem:[%s4641_s3 + $0x148] sm:$0xff] (!%p3399_p6)  }
 0x172   : > { %2090 = vmatmul.mubr.bf16.vlgmr.msra.gmra.mrb[4].mxu0 %v4255_v39  ;;  %2172 = vmatmul.mubr.bf16.vlgmr.msra.gmra.mrb[4].mxu1 %v4255_v39 }
 0x173   : > { %3472 = vmatpush3.bf16.msra.mxu0 (!%p3399_p6), %v3649_v16  ;;  %3494 = vmatpush3.bf16.msra.mxu1 (!%p3399_p6), %v3650_v60 }
 0x174   : > { %3473 = vmatprep.subr.bf16.mxu0 (!%p3399_p6), %v3651_v18  ;;  %3495 = vmatprep.subr.bf16.mxu1 (!%p3399_p6), %v3652_v19  ;;  %v3682_v18 = vld [vmem:[%s4641_s3 + $0x180] sm:$0xff] (!%p3399_p6)  }
 0x177   : > { %3474 = vmatpush3.bf16.msra.mxu0 (!%p3399_p6), %v3653_v20  ;;  %3496 = vmatpush3.bf16.msra.mxu1 (!%p3399_p6), %v3654_v21  ;;  %v3684_v21 = vld [vmem:[%s4641_s3 + $0x1c8] sm:$0xff] (!%p3399_p6)  }
 0x178   : > { %3475 = vmatprep.subr.bf16.mxu0 (!%p3399_p6), %v3655_v22  ;;  %3497 = vmatprep.subr.bf16.mxu1 (!%p3399_p6), %v3656_v23  ;;  %v3685_v22 = vld [vmem:[%s4641_s3 + $0x108] sm:$0xff] (!%p3399_p6)   ;;  %v3687_v23 = vld [vmem:[%s4641_s3 + $0x150] sm:$0xff] (!%p3399_p6)  }
 0x17b   : > { %3476 = vmatpush3.bf16.msra.mxu0 (!%p3399_p6), %v3657_v24  ;;  %3498 = vmatpush3.bf16.msra.mxu1 (!%p3399_p6), %v3658_v25  ;;  %v3686_v24 = vld [vmem:[%s4641_s3 + $0x188] sm:$0xff] (!%p3399_p6)  }
 0x17c   : > { %3477 = vmatprep.subr.bf16.mxu0 (!%p3399_p6), %v3659_v27  ;;  %3499 = vmatprep.subr.bf16.mxu1 (!%p3399_p6), %v3660_v28  ;;  %v3688_v28 = vld [vmem:[%s4641_s3 + $0x1d0] sm:$0xff] (!%p3399_p6)  }
 0x17f   : > { %3478 = vmatpush3.bf16.msra.mxu0 (!%p3399_p6), %v3661_v29  ;;  %3500 = vmatpush3.bf16.msra.mxu1 (!%p3399_p6), %v3662_v30  ;;  %v3689_v29 = vld [vmem:[%s4641_s3 + $0x110] sm:$0xff] (!%p3399_p6)   ;;  %v3691_v30 = vld [vmem:[%s4641_s3 + $0x158] sm:$0xff] (!%p3399_p6)  }
 0x180   : > { %3479 = vmatprep.subr.bf16.mxu0 (!%p3399_p6), %v3663_v31  ;;  %3501 = vmatprep.subr.bf16.mxu1 (!%p3399_p6), %v3664_v32  ;;  %v3690_v31 = vld [vmem:[%s4641_s3 + $0x190] sm:$0xff] (!%p3399_p6)  }
 0x183   : > { %3480 = vmatpush3.bf16.msra.mxu0 (!%p3399_p6), %v3665_v33  ;;  %3502 = vmatpush3.bf16.msra.mxu1 (!%p3399_p6), %v3666_v34  ;;  %v3692_v34 = vld [vmem:[%s4641_s3 + $0x1d8] sm:$0xff] (!%p3399_p6)  }
 0x184   : > { %3481 = vmatprep.subr.bf16.mxu0 (!%p3399_p6), %v3667_v0  ;;  %3503 = vmatprep.subr.bf16.mxu1 (!%p3399_p6), %v3668_v36  ;;  %v3693_v0 = vld [vmem:[%s4641_s3 + $0x118] sm:$0xff] (!%p3399_p6)   ;;  %v3695_v36 = vld [vmem:[%s4641_s3 + $0x160] sm:$0xff] (!%p3399_p6)  }
 0x187   : > { %3482 = vmatpush3.bf16.msra.mxu0 (!%p3399_p6), %v3669_v37  ;;  %3504 = vmatpush3.bf16.msra.mxu1 (!%p3399_p6), %v3670_v38  ;;  %v3694_v37 = vld [vmem:[%s4641_s3 + $0x198] sm:$0xff] (!%p3399_p6)  }
 0x188   : > { %3483 = vmatprep.subr.bf16.mxu0 (!%p3399_p6), %v3671_v40  ;;  %3505 = vmatprep.subr.bf16.mxu1 (!%p3399_p6), %v3672_v41  ;;  %v3696_v40 = vld [vmem:[%s4641_s3 + $0x1e0] sm:$0xff] (!%p3399_p6)  }
 0x189   : > { %v3697_v41 = vld [vmem:[%s4641_s3 + $0x120] sm:$0xff] (!%p3399_p6)  }
 0x18b   : > { %3484 = vmatpush3.bf16.msra.mxu0 (!%p3399_p6), %v3673_v42  ;;  %3506 = vmatpush3.bf16.msra.mxu1 (!%p3399_p6), %v3674_v44  ;;  %v3699_v42 = vld [vmem:[%s4641_s3 + $0x168] sm:$0xff] (!%p3399_p6)   ;;  %v3698_v44 = vld [vmem:[%s4641_s3 + $0x1a0] sm:$0xff] (!%p3399_p6)  }
 0x18c   : > { %3485 = vmatprep.subr.bf16.mxu0 (!%p3399_p6), %v3675_v47  ;;  %v3700_v47 = vld [vmem:[%s4641_s3 + $0x1e8] sm:$0xff] (!%p3399_p6)  }
 0x1c5   : > { %v1927_v17 = vpop.f32.mrb[0].mxu0  ;;  %v2009_v49 = vpop.f32.mrb[0].mxu1 }
 0x1c6   : > { %v1929_v50 = vpop.f32.mrb[1].mxu0  ;;  %v2011_v52 = vpop.f32.mrb[1].mxu1 }
 0x1c7   : > { %v2188_v51 = vcombine.low %v1927_v17, %v1929_v50  ;;  %v1931_v53 = vpop.f32.mrb[2].mxu0  ;;  %v2189_v55 = vcombine.low %v2009_v49, %v2011_v52  ;;  %v2013_v56 = vpop.f32.mrb[2].mxu1  ;;  %v3676_v17 = vld [vmem:[%s4641_s3 + $0xf8] sm:$0xff] (!%p3399_p6)   ;;  %v2250_v49 = vsub.s32 (!%p3399_p6), 3, %v4106_v45  ;;  %v2234_v52 = vld [vmem:[#allocation6] sm:$0xff] (!%p3399_p6) }
 0x1c8   : > { %v1932_v57 = vpop.f32.mrb[3].mxu0  ;;  %v2014_v59 = vpop.f32.mrb[3].mxu1  ;;  %v3677_v50 = vld [vmem:[%s4641_s3 + $0x38] sm:$0xff] (!%p3399_p6)   ;;  %3507 = vmatprep.subr.bf16.mxu1 (!%p3399_p6), %v3676_v17  ;;  %v2239_v53 = vrot.slane (!%p3399_p6), %v2234_v52, %v2238_v43  ;;  %v2247_v56 = vrot.slane (!%p3399_p6), %v2234_v52, %v2246_v48  ;;  %v3701_v48 = vld [vmem:[%s4641_s3 + $0x128] sm:$0xff] (!%p3399_p6)  }
 0x1c9   : > { %v2196_v58 = vrot.slane %v2188_v51, %v4113_v54  ;;  %v2203_v61 = vrot.slane %v2189_v55, %v4113_v54  ;;  %v3678_v51 = vld [vmem:[%s4641_s3 + $0xb8] sm:$0xff] (!%p3399_p6)   ;;  %3486 = vmatpush3.bf16.msra.mxu0 (!%p3399_p6), %v3677_v50  ;;  %v2243_v55 = vrot.slane (!%p3399_p6), %v2234_v52, %v2242_v46  ;;  %v2251_v57 = vrot.slane (!%p3399_p6), %v2234_v52, %v2250_v49  ;;  %v3680_v59 = vld [vmem:[%s4641_s3 + $0x1c0] sm:$0xff] (!%p3399_p6)   ;;  %v3703_v50 = vld [vmem:[%s4641_s3 + $0x170] sm:$0xff] (!%p3399_p6)  }
 0x1ca   : > { %3508 = vmatpush3.bf16.msra.mxu1 (!%p3399_p6), %v3678_v51  ;;  %v3702_v51 = vld [vmem:[%s4641_s3 + $0x1a8] sm:$0xff] (!%p3399_p6)  }
 0x1cb   : > { %v2204_v63 = vcombine.low %v2196_v58, %v2203_v61  ;;  %v3679_v58 = vld [vmem:[%s4641_s3 + $0x140] sm:$0xff] (!%p3399_p6)   ;;  %v2268_v61 = vcombine.low (!%p3399_p6), %v2239_v53, %v2243_v55  ;;  %3537 = vmatprep.subr.bf16.mxu1 (!%p3399_p6), %v3680_v59  ;;  %v3704_v55 = vld [vmem:[%s4641_s3 + $0x1f0] sm:$0xff] (!%p3399_p6)   ;;  %v3707_v59 = vld [vmem:[%s4641_s3 + $0x178] sm:$0xff] (!%p3399_p6)  }
 0x1cc   : > { %3515 = vmatprep.subr.bf16.mxu0 (!%p3399_p6), %v3679_v58 }
 0x1cd   : > { %v2224_v1 = vadd.f32 %v2204_v63, %v287_v62  ;;  %v2269_v62 = vcombine.low (!%p3399_p6), %v2247_v56, %v2251_v57  ;;  %v2276_v63 = vrot.slane (!%p3399_p6), %v2268_v61, %v4113_v54  ;;  %v3705_v56 = vld [vmem:[%s4641_s3 + $0x130] sm:$0xff] (!%p3399_p6)  }
 0x1cf   : > { %2226 = vst [vmem:[#allocation2] sm:$0xff] %v2224_v1  ;;  %v2283_v1 = vrot.slane (!%p3399_p6), %v2269_v62, %v4113_v54  ;;  %v3708_v62 = vld [vmem:[%s4641_s3 + $0x1f8] sm:$0xff] (!%p3399_p6)  }
 0x245   : > { %v2091_v2 = vpop.f32.mrb[4].mxu0  ;;  %v2173_v39 = vpop.f32.mrb[4].mxu1 }
 0x246   : > { %v2093_v3 = vpop.f32.mrb[5].mxu0  ;;  %v2175_v5 = vpop.f32.mrb[5].mxu1 }
 0x247   : > { %v2205_v4 = vcombine.low %v2091_v2, %v2093_v3  ;;  %v2095_v10 = vpop.f32.mrb[6].mxu0  ;;  %v2206_v26 = vcombine.low %v2173_v39, %v2175_v5  ;;  %v2177_v6 = vpop.f32.mrb[6].mxu1  ;;  %v2232_v2 = vld [vmem:[#allocation2] sm:$0xff] (!%p3399_p6)  ;;  %v2284_v39 = vcombine.low (!%p3399_p6), %v2276_v63, %v2283_v1  ;;  %v3709_v63 = vld [vmem:[%s4641_s3 + $0x138] sm:$0xff] (!%p3399_p6)  }
 0x248   : > { %v2096_v7 = vpop.f32.mrb[7].mxu0  ;;  %v2178_v9 = vpop.f32.mrb[7].mxu1  ;;  %v2254_v10 = vsub.s32 (!%p3399_p6), 4, %v4106_v45  ;;  %v3710_v1 = vld [vmem:[%s4641_s3 + $0x1b8] sm:$0xff] (!%p3399_p6)  }
 0x249   : > { %v2213_v8 = vrot.slane %v2205_v4, %v4113_v54  ;;  %v2220_v11 = vrot.slane %v2206_v26, %v4113_v54  ;;  %2231 = sbr.rel (%p3399_p6) target bundleno = 846 (0x34e), region = 60  ;;  %v2304_v3 = vadd.f32 (!%p3399_p6), %v2284_v39, %v2232_v2  ;;  %v2258_v26 = vsub.s32 (!%p3399_p6), 5, %v4106_v45 }
 0x24a   : > { %v2266_v9 = vsub.s32 (!%p3399_p6), 7, %v4106_v45  ;;  %v2255_v16 = vrot.slane (!%p3399_p6), %v2234_v52, %v2254_v10 }
 0x24b   : > { %v2221_v13 = vcombine.low %v2213_v8, %v2220_v11  ;;  %v2315_v4 = vrot.slane (!%p3399_p6), %v2304_v3, %v4113_v54  ;;  %v2308_v5 = vcombine.high (!%p3399_p6), %v2304_v3, %v2304_v3  ;;  %v2262_v8 = vsub.s32 (!%p3399_p6), 6, %v4106_v45 }
 0x24c   : > { %v2259_v45 = vrot.slane (!%p3399_p6), %v2234_v52, %v2258_v26  ;;  %v2267_v20 = vrot.slane (!%p3399_p6), %v2234_v52, %v2266_v9 }
 0x24d   : > { %v2225_v14 = vadd.f32 %v2221_v13, %v288_v12  ;;  %v2323_v6 = vcombine.high (!%p3399_p6), %v2315_v4, %v2315_v4  ;;  %v2322_v7 = vrot.slane (!%p3399_p6), %v2308_v5, %v4113_v54  ;;  %v2350_v11 = vpack.c.bf16 (!%p3399_p6), %v2315_v4, %v2315_v4  ;;  %v3400_v4 = vld [vmem:[#allocation8] ss:$0 sm:$0xff] (!%p3399_p6) }
 0x24e   : > { %v2263_v19 = vrot.slane (!%p3399_p6), %v2234_v52, %v2262_v8  ;;  %v2285_v25 = vcombine.low (!%p3399_p6), %v2255_v16, %v2259_v45 }
 0x24f   : > { %2227 = vst [vmem:[#allocation2 + $0x8] sm:$0xff] %v2225_v14  ;;  %v2351_v12 = vpack.c.bf16 (!%p3399_p6), %v2323_v6, %v2323_v6  ;;  %v2324_v13 = vcombine.high (!%p3399_p6), %v2322_v7, %v2322_v7  ;;  %v3681_v14 = vld [vmem:[%s4641_s3 + $0x100] sm:$0xff] (!%p3399_p6)   ;;  %v2352_v35 = vpack.c.bf16 (!%p3399_p6), %v2322_v7, %v2322_v7 }
 0x250   : > { %v2286_v27 = vcombine.low %v2263_v19, %v2267_v20  ;;  %v2293_v32 = vrot.slane %v2285_v25, %v4113_v54 }
 0x251   : > { %2909 = vmatprep.mubr.bf16.mxu0 %v2351_v12  ;;  %v2353_v60 = vpack.c.bf16 %v2324_v13, %v2324_v13 }
 0x252   : > { %2910 = vmatmul.mubr.bf16.vlgmr.msra.gmra.mrb[0].mxu0 %v2350_v11  ;;  %v2300_v33 = vrot.slane %v2286_v27, %v4113_v54 }
 0x253   : > { %2949 = vmatprep.mubr.bf16.mxu1 %v2353_v60  ;;  %3516 = vmatpush3.bf16.msra.mxu0 %v3681_v14 }
 0x254   : > { %2950 = vmatmul.mubr.bf16.vlgmr.msra.gmra.mrb[0].mxu1 %v2352_v35  ;;  %3517 = vmatprep.subr.bf16.mxu0 %v3683_v15  ;;  %v2301_v38 = vcombine.low %v2293_v32, %v2300_v33 }
 0x255   : > { %3538 = vmatpush3.bf16.msra.mxu1 %v3682_v18 }
 0x256   : > { %3539 = vmatprep.subr.bf16.mxu1 %v3684_v21  ;;  %v2233_v43 = vld [vmem:[#allocation2 + $0x8] sm:$0xff] }
 0x257   : > { %3518 = vmatpush3.bf16.msra.mxu0 %v3685_v22  ;;  %v2305_v46 = vadd.f32 %v2301_v38, %v2233_v43 }
 0x258   : > { %3519 = vmatprep.subr.bf16.mxu0 %v3687_v23 }
 0x259   : > { %3540 = vmatpush3.bf16.msra.mxu1 %v3686_v24  ;;  %v2332_v17 = vrot.slane %v2305_v46, %v4113_v54  ;;  %v2325_v49 = vcombine.high %v2305_v46, %v2305_v46 }
 0x25a   : > { %3541 = vmatprep.subr.bf16.mxu1 %v3688_v28 }
 0x25b   : > { %3520 = vmatpush3.bf16.msra.mxu0 %v3689_v29  ;;  %v2340_v52 = vcombine.high %v2332_v17, %v2332_v17  ;;  %v2339_v53 = vrot.slane %v2325_v49, %v4113_v54  ;;  %v3706_v54 = vld [vmem:[%s4641_s3 + $0x1b0] sm:$0xff]   ;;  %v2354_v2 = vpack.c.bf16 %v2332_v17, %v2332_v17 }
 0x25c   : > { %3521 = vmatprep.subr.bf16.mxu0 %v3691_v30 }
 0x25d   : > { %3542 = vmatpush3.bf16.msra.mxu1 %v3690_v31  ;;  %v2355_v57 = vpack.c.bf16 %v2340_v52, %v2340_v52  ;;  %v2341_v58 = vcombine.high %v2339_v53, %v2339_v53  ;;  %v2356_v39 = vpack.c.bf16 %v2339_v53, %v2339_v53 }
 0x25e   : > { %3543 = vmatprep.subr.bf16.mxu1 %v3692_v34 }
 0x25f   : > { %3522 = vmatpush3.bf16.msra.mxu0 %v3693_v0  ;;  %2989 = vmatprep.mubr.bf16.mxu0 %v2355_v57  ;;  %v2357_v61 = vpack.c.bf16 %v2341_v58, %v2341_v58 }
 0x260   : > { %3523 = vmatprep.subr.bf16.mxu0 %v3695_v36 }
 0x261   : > { %3544 = vmatpush3.bf16.msra.mxu1 %v3694_v37  ;;  %3029 = vmatprep.mubr.bf16.mxu1 %v2357_v61 }
 0x262   : > { %3545 = vmatprep.subr.bf16.mxu1 %v3696_v40 }
 0x263   : > { %3524 = vmatpush3.bf16.msra.mxu0 %v3697_v41 }
 0x264   : > { %3525 = vmatprep.subr.bf16.mxu0 %v3699_v42 }
 0x265   : > { %3546 = vmatpush3.bf16.msra.mxu1 %v3698_v44 }
 0x266   : > { %3547 = vmatprep.subr.bf16.mxu1 %v3700_v47 }
 0x267   : > { %3526 = vmatpush3.bf16.msra.mxu0 %v3701_v48 }
 0x268   : > { %3527 = vmatprep.subr.bf16.mxu0 %v3703_v50 }
 0x269   : > { %3548 = vmatpush3.bf16.msra.mxu1 %v3702_v51 }
 0x26a   : > { %3549 = vmatprep.subr.bf16.mxu1 %v3704_v55 }
 0x26b   : > { %3528 = vmatpush3.bf16.msra.mxu0 %v3705_v56 }
 0x26c   : > { %3529 = vmatprep.subr.bf16.mxu0 %v3707_v59 }
 0x26d   : > { %3550 = vmatpush3.bf16.msra.mxu1 %v3706_v54 }
 0x26e   : > { %3551 = vmatprep.subr.bf16.mxu1 %v3708_v62 }
 0x26f   : > { %3530 = vmatpush3.bf16.msra.mxu0 %v3709_v63 }
 0x271   : > { %3552 = vmatpush3.bf16.msra.mxu1 %v3710_v1 }
 0x272   : > { %2990 = vmatmul.mubr.bf16.vlgmr.msra.gmra.mrb[4].mxu0 %v2354_v2 }
 0x274   : > { %3030 = vmatmul.mubr.bf16.vlgmr.msra.gmra.mrb[4].mxu1 %v2356_v39 }
 0x325   : > { %v3487_v3 = vpop.f32.mrb[0].mxu0 }
 0x326   : > { %v3488_v5 = vpop.f32.mrb[1].mxu0 }
 0x327   : > { %v3509_v10 = vpop.f32.mrb[0].mxu1  ;;  %v3489_v26 = vadd.f32 %v3488_v5, %v3487_v3  ;;  %v3490_v6 = vpop.f32.mrb[2].mxu0 }
 0x328   : > { %v3510_v7 = vpop.f32.mrb[1].mxu1  ;;  %v3491_v8 = vpop.f32.mrb[3].mxu0 }
 0x329   : > { %v2912_v9 = vadd.f32 %v3489_v26, %v3400_v4  ;;  %v3511_v11 = vadd.f32 %v3510_v7, %v3509_v10  ;;  %v3512_v12 = vpop.f32.mrb[2].mxu1 }
 0x32a   : > { %v3513_v13 = vpop.f32.mrb[3].mxu1 }
 0x32b   : > { %v2952_v14 = vadd.f32 %v3511_v11, %v2912_v9 }
 0x345   : > { %v3531_v35 = vpop.f32.mrb[4].mxu0 }
 0x346   : > { %v3532_v15 = vpop.f32.mrb[5].mxu0 }
 0x347   : > { %v3553_v16 = vpop.f32.mrb[4].mxu1  ;;  %v3533_v60 = vadd.f32 %v3532_v15, %v3531_v35  ;;  %v3534_v18 = vpop.f32.mrb[6].mxu0 }
 0x348   : > { %v3554_v45 = vpop.f32.mrb[5].mxu1  ;;  %v3535_v19 = vpop.f32.mrb[7].mxu0 }
 0x349   : > { %v2992_v20 = vadd.f32 %v3533_v60, %v2952_v14  ;;  %v3555_v21 = vadd.f32 %v3554_v45, %v3553_v16  ;;  %v3556_v22 = vpop.f32.mrb[6].mxu1 }
 0x34a   : > { %v3557_v23 = vpop.f32.mrb[7].mxu1 }
 0x34b   : > { %v3032_v24 = vadd.f32 %v3555_v21, %v2992_v20 }
 0x34d   : > { %3038 = vst.msk [vmem:[#allocation9] sm:$0x3] %vm3037_vm0, %v3032_v24 }
 0x34e PF: > { %p3605_p7 = scmp.eq.s32.totalorder %s3924_s22, 3  ;;  %s3874_s25 = smov [#allocation9]  }
 0x34f   : > { %s3046_s27 = sshll.u32 %s3874_s25, 4  ;;  %s3047_s27 = int_to_ptr.vmem [resolvable:$true] %s3046_s27 }
 0x350   : > { %s3797_s30 = scalar_lea.vmem %s3047_s27, 32  ;;  %p3804_p5 = scmp.lt.s32.totalorder %s3047_s27, %s3047_s27 }
 0x351   : > { %p3798_p11 = scmp.ne.s32.totalorder %s3047_s27, %s3797_s30  ;;  %p3805_p9 = scmp.lt.s32.totalorder %s3797_s30, %s3797_s30 }
 0x353   : > { %p3799_p12 = pnand %p3798_p11, %p3605_p7  ;;  %p3806_p10 = por %p3805_p9, %p3804_p5 }
 0x355   : > { %p3800_p13 = pneg %p3799_p12 }
 0x357   : > { %p3807_p1 = pnand %p3806_p10, %p3800_p13 }
 0x359   : > { %3810 = shalt.err (!%p3807_p1)
}
 0x35a   : > { %s3811_s9 = scalar_lea.hbm %s4643_s5, 32 }
 0x35b   : > { %p3812_p8 = scmp.ne.s32.totalorder %s4643_s5, %s3811_s9  ;;  %p3817_p3 = scmp.lt.u32.totalorder %s3811_s9, %s4643_s5 }
 0x35d   : > { %p3813_p0 = pnand %p3812_p8, %p3605_p7 }
 0x35f   : > { %p3814_p2 = pneg %p3813_p0 }
 0x361   : > { %p3819_p4 = pnand %p3817_p3, %p3814_p2 }
 0x363   : > { %3822 = shalt.err (!%p3819_p4)
}
 0x364   : > { %3586 = dma.vmem_to_hbm [thread:$0]  (%p3605_p7), %s3047_s27, 32, %s4643_s5, [#allocation5]  }
 0x365   : > { %3848 = dma.done.wait (%p3605_p7), [#allocation5], 32  }
 0x366   : > { %3850 = vsyncadd (%p3605_p7), [#allocation5], 4294967264 }
 0x367 PF: > { %p17_p6 = scmp.ge.s32.totalorder %s3927_s23, 6   ;;  %s4659_s18 = smov %s3857_s19 }
 0x368   : > { %s4660_s19 = smov %s3861_s20  ;;  %s4661_s20 = smov %s3937_s26 }
 0x369   : > { %s4662_s21 = smov %s3927_s23  ;;  %19 = sbr.rel (!%p17_p6) target bundleno = 5 (0x5), region = 96 }
 0x370   :  { %3059 = vsyncpa [#allocation4], 1 }
 0x371   :  { %3061 = vsyncpa [#allocation4 + $0x1], 1 }
 0x372   :  { %3062 = vsyncpa [#allocation7], 1 }
 0x373   :  { %3063 = vsyncpa [#allocation5], 1 }
 0x374   :  { %3065 = vsyncpa [#allocation5 + $0x1], 1 }

// kernel: conv_model_forward.2
= control target key start
LH: loop header
LB: loop body
LE: loop exit
PB: predicated region body
PF: predicated region fallthrough
CT: control target
= control target key end

     0   :  { %10 = vsyncpa [#allocation5], 0  ;;  %s11131_s0 = inlined_call_operand.vmem [shape: bf16[500,96], index: 0, kind: input, shape index: {}]   ;;  %s11132_s1 = inlined_call_operand.hbm [shape: bf16[96,128], index: 1, kind: input, shape index: {}]   ;;  %s11133_s2 = inlined_call_operand.hbm [shape: f32[1,128], index: 2, kind: input, shape index: {}]   ;;  %s11134_s3 = inlined_call_operand.vmem [shape: bf16[640,32], index: 3, kind: input, shape index: {}]   ;;  %s11135_s4 = inlined_call_operand.hbm [shape: f32[1,32], index: 4, kind: input, shape index: {}]   ;;  %s11136_s5 = inlined_call_operand.vmem [shape: f32[2,64,32], index: 5, kind: output, shape index: {}]  }
   0x1   :  { %11 = vsyncpa [#allocation7], 0  ;;  %s8728_s18 = smov [#allocation6]   ;;  %s8729_s20 = smov [#allocation4]  }
   0x2   :  { %s32_s19 = sshll.u32 %s8728_s18, 4  ;;  %s19_s21 = sshll.u32 %s8729_s20, 4  ;;  %s33_s19 = int_to_ptr.vmem [resolvable:$true] %s32_s19  ;;  %s8765_s21 = int_to_ptr.vmem [resolvable:$true] %s19_s21 }
   0x3   :  { %s8658_s24 = scalar_lea.hbm %s11133_s2, 16 }
   0x4   :  { %p8659_p0 = scmp.ne.s32.totalorder %s11133_s2, %s8658_s24  ;;  %p8662_p1 = scmp.lt.u32.totalorder %s8658_s24, %s11133_s2 }
   0x6   :  { %p8664_p2 = pnand %p8662_p1, %p8659_p0 }
   0x8   :  { %8667 = shalt.err (!%p8664_p2)
}
   0x9   :  { %s8668_s29 = scalar_lea.vmem %s33_s19, 16  ;;  %s8672_s30 = scalar_lea.vmem %s33_s19, 32 }
   0xa   :  { %p8669_p3 = scmp.ne.s32.totalorder %s33_s19, %s8668_s29  ;;  %p8673_p4 = scmp.lt.s32.totalorder %s33_s19, %s33_s19 }
   0xb   :  { %p8674_p5 = scmp.lt.s32.totalorder %s8672_s30, %s8668_s29 }
   0xd   :  { %p8675_p6 = por %p8674_p5, %p8673_p4 }
   0xf   :  { %p8676_p7 = pnand %p8675_p6, %p8669_p3 }
  0x11   :  { %8679 = shalt.err (!%p8676_p7)
}
  0x12   :  { %35 = dma.hbm_to_vmem [thread:$0]  %s11133_s2, 16, %s33_s19, [#allocation7]  }
  0x13   :  { %s8680_s10 = scalar_lea.hbm %s11132_s1, 768 }
  0x14   :  { %p8681_p8 = scmp.ne.s32.totalorder %s11132_s1, %s8680_s10  ;;  %p8684_p9 = scmp.lt.u32.totalorder %s8680_s10, %s11132_s1 }
  0x16   :  { %p8686_p10 = pnand %p8684_p9, %p8681_p8 }
  0x18   :  { %8689 = shalt.err (!%p8686_p10)
}
  0x19   :  { %s8690_s15 = scalar_lea.vmem %s8765_s21, 768  ;;  %p8695_p12 = scmp.lt.s32.totalorder %s8765_s21, %s8765_s21 }
  0x1a   :  { %p8691_p11 = scmp.ne.s32.totalorder %s8765_s21, %s8690_s15  ;;  %p8696_p13 = scmp.lt.s32.totalorder %s8690_s15, %s8690_s15 }
  0x1c   :  { %p8697_p0 = por %p8696_p13, %p8695_p12 }
  0x1e   :  { %p8698_p1 = pnand %p8697_p0, %p8691_p11 }
  0x20   :  { %8701 = shalt.err (!%p8698_p1)
}
  0x21   :  { %s8730_s2 = smov 64   ;;  %s8731_s16 = smov 4  }
  0x22   :  { %25 = dma.hbm_to_vmem [thread:$0]  %s11132_s1, 768, %s8765_s21, [#allocation5], %s8730_s2, %s8730_s2, %s8731_s16  }
  0x23   :  { %s8732_s19 = smov [#allocation8]   ;;  %s8702_s24 = scalar_lea.hbm %s11135_s4, 16 }
  0x24   :  { %s44_s20 = sshll.u32 %s8732_s19, 4  ;;  %p8703_p2 = scmp.ne.s32.totalorder %s11135_s4, %s8702_s24  ;;  %s45_s20 = int_to_ptr.vmem [resolvable:$true] %s44_s20 }
  0x25   :  { %p8706_p3 = scmp.lt.u32.totalorder %s8702_s24, %s11135_s4 }
  0x27   :  { %p8708_p4 = pnand %p8706_p3, %p8703_p2 }
  0x29   :  { %8711 = shalt.err (!%p8708_p4)
}
  0x2a   :  { %s8712_s29 = scalar_lea.vmem %s45_s20, 16  ;;  %s8716_s1 = scalar_lea.vmem %s45_s20, 32 }
  0x2b   :  { %p8713_p5 = scmp.ne.s32.totalorder %s45_s20, %s8712_s29  ;;  %p8717_p6 = scmp.lt.s32.totalorder %s45_s20, %s45_s20 }
  0x2c   :  { %p8718_p7 = scmp.lt.s32.totalorder %s8716_s1, %s8712_s29 }
  0x2e   :  { %p8719_p8 = por %p8718_p7, %p8717_p6 }
  0x30   :  { %p8720_p9 = pnand %p8719_p8, %p8713_p5 }
  0x32   :  { %8723 = shalt.err (!%p8720_p9)
}
  0x33   :  { %47 = dma.hbm_to_vmem [thread:$0]  %s11135_s4, 16, %s45_s20, [#allocation7]  }
  0x34   :  { %8724 = dma.done.wait [#allocation5], 768  }
  0x35   :  { %8725 = vsyncadd [#allocation5], 4294966528 }
  0x36   :  { %8726 = dma.done.wait [#allocation7], 32  }
  0x37   :  { %8727 = vsyncadd [#allocation7], 4294967264  ;;  %v8528_v0 = vld [vmem:[#allocation4] sm:$0xff]   ;;  %v8529_v1 = vld [vmem:[#allocation4 + $0x8] sm:$0xff]   ;;  %vm334_vm0 = vcmask 785408   ;;  %v849_v45 = vlaneseq  ;;  %vm2157_vm1 = vcmask 1041408  }
  0x38   :  { %8381 = vmatprep.subr.bf16.mxu0 %v8528_v0  ;;  %v8530_v2 = vld [vmem:[#allocation4 + $0x10] sm:$0xff]   ;;  %v8531_v4 = vld [vmem:[#allocation4 + $0x18] sm:$0xff]   ;;  %v8532_v5 = vld [vmem:[#allocation4 + $0x20] sm:$0xff]   ;;  %v8733_v43 = vmov 1983009808   ;;  %vm4158_vm2 = vcmask 1041409  }
  0x39   :  { %8382 = vmatpush3.bf16.msra.mxu0 %v8528_v0  ;;  %v8534_v3 = vld [vmem:[%s11131_s0] sm:$0xff]   ;;  %v8533_v6 = vld [vmem:[#allocation4 + $0x28] sm:$0xff]   ;;  %v8535_v7 = vld [vmem:[%s11131_s0 + $0x8] sm:$0xff]   ;;  %v847_v44 = vunpack.c.l.s4 %v8733_v43  ;;  %v850_v48 = vshrl.u32 %v849_v45, 7  ;;  %vm4160_vm3 = vcmask 1042434   ;;  %vm4162_vm4 = vcmask 1043459  }
  0x3a   :  { %8383 = vmatprep.subr.bf16.mxu0 %v8529_v1  ;;  %8393 = vmatprep.mubr.msk.bf16.mxu0 %vm334_vm0, %v8534_v3  ;;  %v8536_v8 = vld [vmem:[%s11131_s0 + $0x10] sm:$0xff]   ;;  %v8537_v9 = vld [vmem:[%s11131_s0 + $0x18] sm:$0xff]   ;;  %v8538_v10 = vld [vmem:[%s11131_s0 + $0x20] sm:$0xff]   ;;  %vm4164_vm5 = vcmask 1044484   ;;  %vm4166_vm6 = vcmask 1045509   ;;  %vm4168_vm7 = vcmask 1046534  }
  0x3b   :  { %v8539_v11 = vld [vmem:[%s11131_s0 + $0x28] sm:$0xff]   ;;  %v8540_v12 = vld [vmem:[%s11131_s0 + $0x30] sm:$0xff]   ;;  %v8541_v13 = vld [vmem:[%s11131_s0 + $0x38] sm:$0xff]   ;;  %v848_v47 = vunpack.c.0.s8 %v847_v44  ;;  %vm4170_vm8 = vcmask 1047559   ;;  %vm4481_vm9 = vcmask 261120   ;;  %vm5625_vm10 = vcmask 254976  }
  0x3c   :  { %v8542_v14 = vld [vmem:[%s11131_s0 + $0x40] sm:$0xff]   ;;  %v8543_v15 = vld [vmem:[%s11131_s0 + $0x48] sm:$0xff]   ;;  %v8544_v16 = vld [vmem:[%s11131_s0 + $0x50] sm:$0xff]   ;;  %vm6191_vm11 = vcmask 259072  }
  0x3d   :  { %8384 = vmatpush3.bf16.msra.mxu0 %v8529_v1  ;;  %v8545_v17 = vld [vmem:[%s11131_s0 + $0x58] sm:$0xff]   ;;  %v8546_v18 = vld [vmem:[%s11131_s0 + $0x60] sm:$0xff]   ;;  %v8547_v19 = vld [vmem:[%s11131_s0 + $0x68] sm:$0xff]   ;;  %v8957_v52 = vsub.s32 %v848_v47, %v850_v48 }
  0x3e   :  { %8385 = vmatprep.subr.bf16.mxu0 %v8530_v2  ;;  %v8548_v20 = vld [vmem:[%s11131_s0 + $0x70] sm:$0xff]   ;;  %v8549_v21 = vld [vmem:[%s11131_s0 + $0x78] sm:$0xff]   ;;  %v8550_v22 = vld [vmem:[%s11131_s0 + $0x80] sm:$0xff]  }
  0x3f   :  { %v8551_v23 = vld [vmem:[%s11131_s0 + $0x88] sm:$0xff]   ;;  %v8552_v24 = vld [vmem:[%s11131_s0 + $0x90] sm:$0xff]   ;;  %v8553_v25 = vld [vmem:[%s11131_s0 + $0x98] sm:$0xff]   ;;  %11141 = vst [vmem:[#allocation11_spill] sm:$0xff] %v8957_v52 }
  0x40   :  { %v8554_v26 = vld [vmem:[%s11131_s0 + $0xa0] sm:$0xff]   ;;  %v8555_v27 = vld [vmem:[%s11131_s0 + $0xa8] sm:$0xff]   ;;  %v8556_v28 = vld [vmem:[%s11131_s0 + $0xb0] sm:$0xff]  }
  0x41   :  { %8386 = vmatpush3.bf16.msra.mxu0 %v8530_v2  ;;  %v8557_v29 = vld [vmem:[%s11131_s0 + $0xb8] sm:$0xff]   ;;  %v8558_v30 = vld [vmem:[%s11131_s0 + $0xc0] sm:$0xff]   ;;  %v8559_v31 = vld [vmem:[%s11131_s0 + $0xc8] sm:$0xff]  }
  0x42   :  { %8387 = vmatprep.subr.bf16.mxu0 %v8531_v4  ;;  %v8560_v32 = vld [vmem:[%s11131_s0 + $0xd0] sm:$0xff]   ;;  %v8561_v33 = vld [vmem:[%s11131_s0 + $0xd8] sm:$0xff]   ;;  %v8562_v34 = vld [vmem:[%s11131_s0 + $0xe0] sm:$0xff]  }
  0x43   :  { %v8563_v35 = vld [vmem:[%s11131_s0 + $0xe8] sm:$0xff]   ;;  %v8564_v36 = vld [vmem:[%s11131_s0 + $0xf0] sm:$0xff]   ;;  %v8565_v37 = vld [vmem:[%s11131_s0 + $0xf8] ss:$0 sps:$4 sm:$0x33]  }
  0x44   :  { %v8566_v38 = vld [vmem:[%s11134_s3 + $0x40] sm:$0xff]   ;;  %v8568_v40 = vld [vmem:[%s11134_s3 + $0x48] sm:$0xff]   ;;  %v8570_v42 = vld [vmem:[%s11134_s3 + $0x50] sm:$0xff]  }
  0x45   :  { %8388 = vmatpush3.bf16.msra.mxu0 %v8531_v4  ;;  %8093 = vmatprep.subr.bf16.mxu1 %v8566_v38  ;;  %v8567_v39 = vld [vmem:[%s11134_s3] sm:$0xff]   ;;  %v8569_v41 = vld [vmem:[%s11134_s3 + $0x8] sm:$0xff]   ;;  %v8571_v46 = vld [vmem:[%s11134_s3 + $0x10] sm:$0xff]  }
  0x46   :  { %8389 = vmatprep.subr.bf16.mxu0 %v8532_v5  ;;  %8094 = vmatpush3.bf16.msra.mxu1 %v8567_v39  ;;  %v8954_v49 = vld [vmem:[#allocation6] ss:$0 sm:$0xff] }
  0x47   :  { %8095 = vmatprep.subr.bf16.mxu1 %v8568_v40 }
  0x49   :  { %8390 = vmatpush3.bf16.msra.mxu0 %v8532_v5 }
  0x4a   :  { %8391 = vmatprep.subr.bf16.mxu0 %v8533_v6  ;;  %8096 = vmatpush3.bf16.msra.mxu1 %v8569_v41 }
  0x4b   :  { %8097 = vmatprep.subr.bf16.mxu1 %v8570_v42 }
  0x4d   :  { %8392 = vmatpush3.bf16.msra.mxu0 %v8533_v6 }
  0x4e   :  { %8098 = vmatpush3.bf16.msra.mxu1 %v8571_v46 }
  0x50   :  { %8394 = vmatmul.mubr.msk.bf16.vlgmr.msra.gmra.mrb[0].mxu0 %vm334_vm0, %v8535_v7 }
  0x51   :  { %8397 = vmatprep.mubr.msk.bf16.mxu0 %vm334_vm0, %v8536_v8 }
  0x58   :  { %8398 = vmatmul.mubr.msk.bf16.gmra.mrb[4].mxu0 %vm334_vm0, %v8537_v9 }
  0x59   :  { %8401 = vmatprep.mubr.msk.bf16.mxu0 %vm334_vm0, %v8538_v10 }
  0x60   :  { %8402 = vmatmul.mubr.msk.bf16.gmra.mrb[8].mxu0 %vm334_vm0, %v8539_v11 }
  0x61   :  { %8405 = vmatprep.mubr.msk.bf16.mxu0 %vm334_vm0, %v8540_v12 }
  0x68   :  { %8406 = vmatmul.mubr.msk.bf16.gmra.mrb[12].mxu0 %vm334_vm0, %v8541_v13 }
  0x69   :  { %8409 = vmatprep.mubr.msk.bf16.mxu0 %vm334_vm0, %v8542_v14 }
  0x70   :  { %8410 = vmatmul.mubr.msk.bf16.gmra.mrb[16].mxu0 %vm334_vm0, %v8543_v15 }
  0x71   :  { %8413 = vmatprep.mubr.msk.bf16.mxu0 %vm334_vm0, %v8544_v16 }
  0x78   :  { %8414 = vmatmul.mubr.msk.bf16.gmra.mrb[20].mxu0 %vm334_vm0, %v8545_v17 }
  0x79   :  { %8417 = vmatprep.mubr.msk.bf16.mxu0 %vm334_vm0, %v8546_v18 }
  0x80   :  { %8418 = vmatmul.mubr.msk.bf16.gmra.mrb[24].mxu0 %vm334_vm0, %v8547_v19 }
  0x81   :  { %8421 = vmatprep.mubr.msk.bf16.mxu0 %vm334_vm0, %v8548_v20 }
  0x88   :  { %8422 = vmatmul.mubr.msk.bf16.gmra.mrb[28].mxu0 %vm334_vm0, %v8549_v21 }
  0x89   :  { %8425 = vmatprep.mubr.msk.bf16.mxu0 %vm334_vm0, %v8550_v22 }
  0x90   :  { %8426 = vmatmul.mubr.msk.bf16.gmra.mrb[32].mxu0 %vm334_vm0, %v8551_v23 }
  0x91   :  { %8429 = vmatprep.mubr.msk.bf16.mxu0 %vm334_vm0, %v8552_v24 }
  0x98   :  { %8430 = vmatmul.mubr.msk.bf16.gmra.mrb[36].mxu0 %vm334_vm0, %v8553_v25 }
  0x99   :  { %8433 = vmatprep.mubr.msk.bf16.mxu0 %vm334_vm0, %v8554_v26 }
  0xa0   :  { %8434 = vmatmul.mubr.msk.bf16.gmra.mrb[40].mxu0 %vm334_vm0, %v8555_v27 }
  0xa1   :  { %8437 = vmatprep.mubr.msk.bf16.mxu0 %vm334_vm0, %v8556_v28 }
  0xa8   :  { %8438 = vmatmul.mubr.msk.bf16.gmra.mrb[44].mxu0 %vm334_vm0, %v8557_v29 }
  0xa9   :  { %8441 = vmatprep.mubr.msk.bf16.mxu0 %vm334_vm0, %v8558_v30 }
  0xb0   :  { %8442 = vmatmul.mubr.msk.bf16.gmra.mrb[48].mxu0 %vm334_vm0, %v8559_v31  ;;  %v8572_v31 = vld [vmem:[%s11134_s3 + $0x58] sm:$0xff]  }
  0xb1   :  { %8445 = vmatprep.mubr.msk.bf16.mxu0 %vm334_vm0, %v8560_v32  ;;  %8099 = vmatprep.subr.bf16.mxu1 %v8572_v31 }
  0xb8   :  { %8446 = vmatmul.mubr.msk.bf16.gmra.mrb[52].mxu0 %vm334_vm0, %v8561_v33 }
  0xb9   :  { %8449 = vmatprep.mubr.msk.bf16.mxu0 %vm334_vm0, %v8562_v34 }
  0xc0   :  { %8450 = vmatmul.mubr.msk.bf16.gmra.mrb[56].mxu0 %vm334_vm0, %v8563_v35 }
  0xc1   :  { %8453 = vmatprep.mubr.msk.bf16.mxu0 %vm334_vm0, %v8564_v36  ;;  %v8573_v36 = vld [vmem:[%s11134_s3 + $0x18] sm:$0xff]  }
  0xc2   :  { %8100 = vmatpush3.bf16.msra.mxu1 %v8573_v36 }
  0xc8   :  { %8454 = vmatmul.mubr.msk.bf16.gmra.mrb[60].mxu0 %vm334_vm0, %v8565_v37 }
 0x123   :  { %v8395_v50 = vpop.f32.mrb[0].mxu0 }
 0x124   :  { %v474_v51 = vadd.f32 %v8395_v50, %v8954_v49  ;;  %v465_v53 = vpop.f32.mrb[1].mxu0 }
 0x125   :  { %v466_v54 = vadd.f32 %v8954_v49, %v465_v53  ;;  %v8396_v55 = vpop.f32.mrb[2].mxu0 }
 0x126   :  { %v721_v56 = vmax.f32 %v474_v51, 0.0  ;;  %v477_v57 = vadd.f32 %v8396_v55, %v8954_v49  ;;  %v468_v58 = vpop.f32.mrb[3].mxu0 }
 0x127   :  { %v719_v59 = vmax.f32 %v466_v54, 0.0  ;;  %v469_v60 = vadd.f32 %v8954_v49, %v468_v58 }
 0x128   :  { %v879_v61 = vcombine.high %v721_v56, %v721_v56  ;;  %v886_v62 = vrot.slane %v721_v56, %v8957_v52  ;;  %v8963_v63 = vmax.f32 %v477_v57, 0.0 }
 0x129   :  { %v845_v0 = vcombine.high %v719_v59, %v719_v59  ;;  %v852_v1 = vrot.slane %v719_v59, %v8957_v52  ;;  %v8966_v2 = vmax.f32 %v469_v60, 0.0 }
 0x12a   :  { %v893_v3 = vrot.slane %v879_v61, %v8957_v52  ;;  %v894_v4 = vcombine.high %v886_v62, %v886_v62  ;;  %v2214_v5 = vsel %vm2157_vm1, %v886_v62, -inf  ;;  %v896_v6 = vcombine.high %v8963_v63, %v8963_v63 }
 0x12b   :  { %v2215_v7 = vrot.slane %v2214_v5, 4  ;;  %v859_v8 = vrot.slane %v845_v0, %v8957_v52  ;;  %v860_v9 = vcombine.high %v852_v1, %v852_v1  ;;  %v2158_v10 = vsel %vm2157_vm1, %v852_v1, -inf  ;;  %v8974_v11 = vpop.f32.mrb[4].mxu0 }
 0x12c   :  { %v895_v12 = vcombine.high %v893_v3, %v893_v3  ;;  %v2221_v13 = vsel %vm2157_vm1, %v894_v4, -inf  ;;  %v2228_v14 = vsel %vm2157_vm1, %v893_v3, -inf  ;;  %v2159_v15 = vrot.slane %v2158_v10, 4  ;;  %v8978_v16 = vpop.f32.mrb[5].mxu0 }
 0x12d   :  { %v2216_v17 = vmax.f32 %v2214_v5, %v2215_v7  ;;  %v2222_v18 = vrot.slane %v2221_v13, 4  ;;  %v2229_v19 = vrot.slane %v2228_v14, 4  ;;  %v861_v20 = vcombine.high %v859_v8, %v859_v8  ;;  %v8980_v21 = vpop.f32.mrb[6].mxu0 }
 0x12e   :  { %v2235_v22 = vsel %vm2157_vm1, %v895_v12, -inf  ;;  %v2160_v23 = vmax.f32 %v2158_v10, %v2159_v15  ;;  %v2165_v24 = vsel %vm2157_vm1, %v860_v9, -inf  ;;  %v2172_v25 = vsel %vm2157_vm1, %v859_v8, -inf  ;;  %v8985_v26 = vpop.f32.mrb[7].mxu0 }
 0x12f   :  { %v2217_v27 = vrot.slane %v2216_v17, 2  ;;  %v2223_v28 = vmax.f32 %v2221_v13, %v2222_v18  ;;  %v2230_v29 = vmax.f32 %v2228_v14, %v2229_v19  ;;  %v2236_v30 = vrot.slane %v2235_v22, 4 }
 0x130   :  { %v2161_v32 = vrot.slane %v2160_v23, 2  ;;  %v2166_v33 = vrot.slane %v2165_v24, 4  ;;  %v2173_v34 = vrot.slane %v2172_v25, 4  ;;  %v2179_v35 = vsel %vm2157_vm1, %v861_v20, -inf  ;;  %v8575_v20 = vld [vmem:[%s11134_s3 + $0x100] sm:$0xff]  }
 0x131   :  { %v2218_v37 = vmax.f32 %v2216_v17, %v2217_v27  ;;  %v2224_v38 = vrot.slane %v2223_v28, 2  ;;  %v2231_v39 = vrot.slane %v2230_v29, 2  ;;  %v2237_v40 = vmax.f32 %v2235_v22, %v2236_v30  ;;  %8457 = vmatprep.subr.bf16.mxu0 %v8575_v20 }
 0x132   :  { %v2162_v41 = vmax.f32 %v2160_v23, %v2161_v32  ;;  %v2167_v42 = vmax.f32 %v2165_v24, %v2166_v33  ;;  %v2174_v43 = vmax.f32 %v2172_v25, %v2173_v34  ;;  %v2180_v44 = vrot.slane %v2179_v35, 4  ;;  %8458 = vmatpush3.bf16.msra.mxu0 %v8575_v20 }
 0x133   :  { %v2219_v45 = vrot.slane %v2218_v37, 1  ;;  %v2225_v46 = vmax.f32 %v2223_v28, %v2224_v38  ;;  %v2232_v47 = vmax.f32 %v2230_v29, %v2231_v39  ;;  %v2238_v48 = vrot.slane %v2237_v40, 2  ;;  %v8994_v50 = vpop.f32.mrb[8].mxu0 }
 0x134   :  { %v2163_v51 = vrot.slane %v2162_v41, 1  ;;  %v2168_v53 = vrot.slane %v2167_v42, 2  ;;  %v2175_v54 = vrot.slane %v2174_v43, 2  ;;  %v2181_v55 = vmax.f32 %v2179_v35, %v2180_v44  ;;  %v8996_v56 = vpop.f32.mrb[9].mxu0 }
 0x135   :  { %v2220_v57 = vmax.f32 %v2218_v37, %v2219_v45  ;;  %v2226_v58 = vrot.slane %v2225_v46, 1  ;;  %v2233_v59 = vrot.slane %v2232_v47, 1  ;;  %v2239_v60 = vmax.f32 %v2237_v40, %v2238_v48  ;;  %v8998_v61 = vpop.f32.mrb[10].mxu0 }
 0x136   :  { %v2164_v62 = vmax.f32 %v2162_v41, %v2163_v51  ;;  %v2169_v0 = vmax.f32 %v2167_v42, %v2168_v53  ;;  %v2176_v1 = vmax.f32 %v2174_v43, %v2175_v54  ;;  %v2182_v3 = vrot.slane %v2181_v55, 2  ;;  %v9000_v4 = vpop.f32.mrb[11].mxu0 }
 0x137   :  { %v2227_v5 = vmax.f32 %v2225_v46, %v2226_v58  ;;  %v2234_v7 = vmax.f32 %v2232_v47, %v2233_v59  ;;  %v2240_v8 = vrot.slane %v2239_v60, 1  ;;  %v903_v9 = vrot.slane %v8963_v63, %v8957_v52  ;;  %v8574_v63 = vld [vmem:[%s11134_s3 + $0x60] sm:$0xff]  }
 0x138   :  { %v2170_v10 = vrot.slane %v2169_v0, 1  ;;  %v2177_v12 = vrot.slane %v2176_v1, 1  ;;  %v2183_v13 = vmax.f32 %v2181_v55, %v2182_v3  ;;  %v910_v14 = vrot.slane %v896_v6, %v8957_v52  ;;  %8101 = vmatprep.subr.bf16.mxu1 %v8574_v63 }
 0x139   :  { %v2241_v15 = vmax.f32 %v2239_v60, %v2240_v8  ;;  %v4172_v17 = vsel %vm4158_vm2, %v2227_v5, %v2220_v57  ;;  %v911_v18 = vcombine.high %v903_v9, %v903_v9  ;;  %v2242_v19 = vsel %vm2157_vm1, %v903_v9, -inf }
 0x13a   :  { %v4173_v22 = vsel %vm4160_vm3, %v2234_v7, %v4172_v17  ;;  %v2171_v23 = vmax.f32 %v2169_v0, %v2170_v10  ;;  %v2178_v24 = vmax.f32 %v2176_v1, %v2177_v12  ;;  %v2184_v25 = vrot.slane %v2183_v13, 1 }
 0x13b   :  { %v912_v6 = vcombine.high %v910_v14, %v910_v14  ;;  %v2243_v27 = vrot.slane %v2242_v19, 4  ;;  %v2249_v28 = vsel %vm2157_vm1, %v911_v18, -inf  ;;  %v2256_v29 = vsel %vm2157_vm1, %v910_v14, -inf  ;;  %v9019_v30 = vpop.f32.mrb[12].mxu0 }
 0x13c   :  { %v2185_v31 = vmax.f32 %v2183_v13, %v2184_v25  ;;  %v4159_v32 = vsel %vm4158_vm2, %v2171_v23, %v2164_v62  ;;  %v2250_v33 = vrot.slane %v2249_v28, 4  ;;  %v2257_v34 = vrot.slane %v2256_v29, 4  ;;  %v9022_v35 = vpop.f32.mrb[13].mxu0 }
 0x13d   :  { %v4161_v36 = vsel %vm4160_vm3, %v2178_v24, %v4159_v32  ;;  %v2244_v37 = vmax.f32 %v2242_v19, %v2243_v27  ;;  %v2263_v38 = vsel %vm2157_vm1, %v912_v6, -inf  ;;  %v4174_v39 = vsel %vm4162_vm4, %v2241_v15, %v4173_v22  ;;  %v9027_v40 = vpop.f32.mrb[14].mxu0 }
 0x13e   :  { %v2251_v41 = vmax.f32 %v2249_v28, %v2250_v33  ;;  %v2258_v42 = vmax.f32 %v2256_v29, %v2257_v34  ;;  %v2264_v43 = vrot.slane %v2263_v38, 4  ;;  %v862_v44 = vcombine.high %v8966_v2, %v8966_v2  ;;  %v9031_v45 = vpop.f32.mrb[15].mxu0 }
 0x13f   :  { %v2245_v46 = vrot.slane %v2244_v37, 2  ;;  %v869_v47 = vrot.slane %v8966_v2, %v8957_v52  ;;  %v9036_v48 = vsel %vm4162_vm4, %v2185_v31, %v4161_v36  ;;  %v490_v51 = vadd.f32 %v8974_v11, %v8954_v49  ;;  %v8576_v2 = vld [vmem:[%s11134_s3 + $0x20] sm:$0xff]  }
 0x140   :  { %v2252_v53 = vrot.slane %v2251_v41, 2  ;;  %v2259_v54 = vrot.slane %v2258_v42, 2  ;;  %v2265_v55 = vmax.f32 %v2263_v38, %v2264_v43  ;;  %v876_v57 = vrot.slane %v862_v44, %v8957_v52  ;;  %8102 = vmatpush3.bf16.msra.mxu1 %v8576_v2 }
 0x141   :  { %v2246_v58 = vmax.f32 %v2244_v37, %v2245_v46  ;;  %v877_v59 = vcombine.high %v869_v47, %v869_v47  ;;  %v2186_v60 = vsel %vm2157_vm1, %v869_v47, -inf  ;;  %v725_v62 = vmax.f32 %v490_v51, 0.0 }
 0x142   :  { %v2253_v0 = vmax.f32 %v2251_v41, %v2252_v53  ;;  %v2260_v1 = vmax.f32 %v2258_v42, %v2259_v54  ;;  %v2266_v3 = vrot.slane %v2265_v55, 2  ;;  %v878_v5 = vcombine.high %v876_v57, %v876_v57 }
 0x143   :  { %v2247_v7 = vrot.slane %v2246_v58, 1  ;;  %v2187_v11 = vrot.slane %v2186_v60, 4  ;;  %v2193_v8 = vsel %vm2157_vm1, %v877_v59, -inf  ;;  %v2200_v9 = vsel %vm2157_vm1, %v876_v57, -inf  ;;  %v9047_v10 = vpop.f32.mrb[16].mxu0 }
 0x144   :  { %v2254_v12 = vrot.slane %v2253_v0, 1  ;;  %v2261_v13 = vrot.slane %v2260_v1, 1  ;;  %v2267_v14 = vmax.f32 %v2265_v55, %v2266_v3  ;;  %v2194_v15 = vrot.slane %v2193_v8, 4  ;;  %v9049_v17 = vpop.f32.mrb[17].mxu0 }
 0x145   :  { %v2248_v18 = vmax.f32 %v2246_v58, %v2247_v7  ;;  %v2188_v19 = vmax.f32 %v2186_v60, %v2187_v11  ;;  %v2201_v20 = vrot.slane %v2200_v9, 4  ;;  %v2207_v22 = vsel %vm2157_vm1, %v878_v5, -inf  ;;  %v9052_v23 = vpop.f32.mrb[18].mxu0 }
 0x146   :  { %v2255_v24 = vmax.f32 %v2253_v0, %v2254_v12  ;;  %v2262_v25 = vmax.f32 %v2260_v1, %v2261_v13  ;;  %v2268_v63 = vrot.slane %v2267_v14, 1  ;;  %v2195_v6 = vmax.f32 %v2193_v8, %v2194_v15  ;;  %v9063_v3 = vpop.f32.mrb[19].mxu0 }
 0x147   :  { %v4175_v27 = vsel %vm4164_vm5, %v2248_v18, %v4174_v39  ;;  %v2189_v28 = vrot.slane %v2188_v19, 2  ;;  %v2202_v29 = vmax.f32 %v2200_v9, %v2201_v20  ;;  %v2208_v31 = vrot.slane %v2207_v22, 4 }
 0x148   :  { %v2269_v32 = vmax.f32 %v2267_v14, %v2268_v63  ;;  %v4176_v33 = vsel %vm4166_vm6, %v2255_v24, %v4175_v27  ;;  %v2196_v34 = vrot.slane %v2195_v6, 2  ;;  %v947_v36 = vcombine.high %v725_v62, %v725_v62 }
 0x149   :  { %v4177_v37 = vsel %vm4168_vm7, %v2262_v25, %v4176_v33  ;;  %v2190_v38 = vmax.f32 %v2188_v19, %v2189_v28  ;;  %v2203_v41 = vrot.slane %v2202_v29, 2  ;;  %v2209_v42 = vmax.f32 %v2207_v22, %v2208_v31 }
 0x14a   :  { %v4178_v43 = vsel %vm4170_vm8, %v2269_v32, %v4177_v37  ;;  %v2197_v44 = vmax.f32 %v2195_v6, %v2196_v34  ;;  %v954_v46 = vrot.slane %v725_v62, %v8957_v52  ;;  %v961_v39 = vrot.slane %v947_v36, %v8957_v52 }
 0x14b   :  { %4416 = vst [vmem:[#allocation2 + $0x8] sm:$0xff] %v4178_v43  ;;  %v2191_v47 = vrot.slane %v2190_v38, 1  ;;  %v2204_v51 = vmax.f32 %v2202_v29, %v2203_v41  ;;  %v2210_v53 = vrot.slane %v2209_v42, 2  ;;  %v482_v54 = vadd.f32 %v8954_v49, %v8978_v16 }
 0x14c   :  { %v2198_v55 = vrot.slane %v2197_v44, 1  ;;  %v962_v57 = vcombine.high %v954_v46, %v954_v46  ;;  %v963_v58 = vcombine.high %v961_v39, %v961_v39  ;;  %v2326_v59 = vsel %vm2157_vm1, %v954_v46, -inf }
 0x14d   :  { %v2192_v60 = vmax.f32 %v2190_v38, %v2191_v47  ;;  %v2205_v2 = vrot.slane %v2204_v51, 1  ;;  %v2211_v0 = vmax.f32 %v2209_v42, %v2210_v53  ;;  %v2327_v1 = vrot.slane %v2326_v59, 4 }
 0x14e   :  { %v2199_v62 = vmax.f32 %v2197_v44, %v2198_v55  ;;  %v2333_v5 = vsel %vm2157_vm1, %v962_v57, -inf  ;;  %v2340_v7 = vsel %vm2157_vm1, %v961_v39, -inf  ;;  %v2347_v11 = vsel %vm2157_vm1, %v963_v58, -inf }
 0x14f   :  { %v2206_v8 = vmax.f32 %v2204_v51, %v2205_v2  ;;  %v2212_v16 = vrot.slane %v2211_v0, 1  ;;  %v4165_v9 = vsel %vm4164_vm5, %v2192_v60, %v9036_v48  ;;  %v2328_v12 = vmax.f32 %v2326_v59, %v2327_v1  ;;  %v8577_v60 = vld [vmem:[%s11134_s3 + $0x68] sm:$0xff]  }
 0x150   :  { %v4167_v13 = vsel %vm4166_vm6, %v2199_v62, %v4165_v9  ;;  %v2334_v14 = vrot.slane %v2333_v5, 4  ;;  %v2341_v15 = vrot.slane %v2340_v7, 4  ;;  %v2348_v18 = vrot.slane %v2347_v11, 4  ;;  %8103 = vmatprep.subr.bf16.mxu1 %v8577_v60 }
 0x151   :  { %v2213_v19 = vmax.f32 %v2211_v0, %v2212_v16  ;;  %v4169_v20 = vsel %vm4168_vm7, %v2206_v8, %v4167_v13  ;;  %v2329_v22 = vrot.slane %v2328_v12, 2  ;;  %v723_v24 = vmax.f32 %v482_v54, 0.0  ;;  %v8578_v54 = vld [vmem:[%s11134_s3 + $0x108] sm:$0xff]  }
 0x152   :  { %v2335_v25 = vmax.f32 %v2333_v5, %v2334_v14  ;;  %v2342_v63 = vmax.f32 %v2340_v7, %v2341_v15  ;;  %v2349_v6 = vmax.f32 %v2347_v11, %v2348_v18  ;;  %v493_v27 = vadd.f32 %v8980_v21, %v8954_v49  ;;  %8459 = vmatprep.subr.bf16.mxu0 %v8578_v54  ;;  %v8579_v5 = vld [vmem:[%s11134_s3 + $0x28] sm:$0xff]   ;;  %v8581_v15 = vld [vmem:[%s11134_s3 + $0x110] sm:$0xff]  }
 0x153   :  { %v4171_v28 = vsel %vm4170_vm8, %v2213_v19, %v4169_v20  ;;  %v2330_v48 = vmax.f32 %v2328_v12, %v2329_v22  ;;  %v913_v29 = vcombine.high %v723_v24, %v723_v24  ;;  %v920_v31 = vrot.slane %v723_v24, %v8957_v52  ;;  %8460 = vmatpush3.bf16.msra.mxu0 %v8578_v54  ;;  %v8580_v24 = vld [vmem:[%s11134_s3 + $0x70] sm:$0xff]  }
 0x154   :  { %4415 = vst [vmem:[#allocation2] sm:$0xff] %v4171_v28  ;;  %v2336_v32 = vrot.slane %v2335_v25, 2  ;;  %v2343_v33 = vrot.slane %v2342_v63, 2  ;;  %v2350_v34 = vrot.slane %v2349_v6, 2  ;;  %v726_v36 = vmax.f32 %v493_v27, 0.0  ;;  %8104 = vmatpush3.bf16.msra.mxu1 %v8579_v5  ;;  %v9102_v28 = vpop.f32.mrb[20].mxu0  ;;  %8461 = vmatprep.subr.bf16.mxu0 %v8581_v15 }
 0x155   :  { %v2331_v37 = vrot.slane %v2330_v48, 1  ;;  %v927_v38 = vrot.slane %v913_v29, %v8957_v52  ;;  %v928_v41 = vcombine.high %v920_v31, %v920_v31  ;;  %v2270_v42 = vsel %vm2157_vm1, %v920_v31, -inf  ;;  %8105 = vmatprep.subr.bf16.mxu1 %v8580_v24 }
 0x156   :  { %v2337_v43 = vmax.f32 %v2335_v25, %v2336_v32  ;;  %v2344_v44 = vmax.f32 %v2342_v63, %v2343_v33  ;;  %v2351_v21 = vmax.f32 %v2349_v6, %v2350_v34  ;;  %v2271_v46 = vrot.slane %v2270_v42, 4  ;;  %v9105_v33 = vpop.f32.mrb[21].mxu0 }
 0x157   :  { %v2332_v39 = vmax.f32 %v2330_v48, %v2331_v37  ;;  %v929_v47 = vcombine.high %v927_v38, %v927_v38  ;;  %v2277_v51 = vsel %vm2157_vm1, %v928_v41, -inf  ;;  %v2284_v53 = vsel %vm2157_vm1, %v927_v38, -inf  ;;  %8462 = vmatpush3.bf16.msra.mxu0 %v8581_v15 }
 0x158   :  { %v2338_v55 = vrot.slane %v2337_v43, 1  ;;  %v2345_v57 = vrot.slane %v2344_v44, 1  ;;  %v2352_v58 = vrot.slane %v2351_v21, 1  ;;  %v2272_v59 = vmax.f32 %v2270_v42, %v2271_v46 }
 0x159   :  { %v2278_v2 = vrot.slane %v2277_v51, 4  ;;  %v2285_v0 = vrot.slane %v2284_v53, 4  ;;  %v2291_v1 = vsel %vm2157_vm1, %v929_v47, -inf  ;;  %v964_v62 = vcombine.high %v726_v36, %v726_v36 }
 0x15a   :  { %v2339_v7 = vmax.f32 %v2337_v43, %v2338_v55  ;;  %v2346_v11 = vmax.f32 %v2344_v44, %v2345_v57  ;;  %v2353_v8 = vmax.f32 %v2351_v21, %v2352_v58  ;;  %v2273_v16 = vrot.slane %v2272_v59, 2 }
 0x15b   :  { %v2279_v9 = vmax.f32 %v2277_v51, %v2278_v2  ;;  %v2286_v12 = vmax.f32 %v2284_v53, %v2285_v0  ;;  %v2292_v13 = vrot.slane %v2291_v1, 4  ;;  %v971_v14 = vrot.slane %v726_v36, %v8957_v52 }
 0x15c   :  { %v4186_v18 = vsel %vm4158_vm2, %v2339_v7, %v2332_v39  ;;  %v2274_v19 = vmax.f32 %v2272_v59, %v2273_v16  ;;  %v978_v20 = vrot.slane %v964_v62, %v8957_v52  ;;  %v485_v22 = vadd.f32 %v8954_v49, %v8985_v26 }
 0x15d   :  { %v4187_v25 = vsel %vm4160_vm3, %v2346_v11, %v4186_v18  ;;  %v2280_v63 = vrot.slane %v2279_v9, 2  ;;  %v2287_v6 = vrot.slane %v2286_v12, 2  ;;  %v2293_v27 = vmax.f32 %v2291_v1, %v2292_v13 }
 0x15e   :  { %v2275_v48 = vrot.slane %v2274_v19, 1  ;;  %v979_v29 = vcombine.high %v971_v14, %v971_v14  ;;  %v980_v31 = vcombine.high %v978_v20, %v978_v20  ;;  %v2354_v32 = vsel %vm2157_vm1, %v971_v14, -inf }
 0x15f   :  { %v2281_v26 = vmax.f32 %v2279_v9, %v2280_v63  ;;  %v2288_v34 = vmax.f32 %v2286_v12, %v2287_v6  ;;  %v2294_v36 = vrot.slane %v2293_v27, 2  ;;  %v2355_v37 = vrot.slane %v2354_v32, 4 }
 0x160   :  { %v2276_v38 = vmax.f32 %v2274_v19, %v2275_v48  ;;  %v2361_v41 = vsel %vm2157_vm1, %v979_v29, -inf  ;;  %v2368_v42 = vsel %vm2157_vm1, %v978_v20, -inf  ;;  %v2375_v43 = vsel %vm2157_vm1, %v980_v31, -inf }
 0x161   :  { %v2282_v44 = vrot.slane %v2281_v26, 1  ;;  %v2289_v21 = vrot.slane %v2288_v34, 1  ;;  %v2295_v46 = vmax.f32 %v2293_v27, %v2294_v36  ;;  %v2356_v39 = vmax.f32 %v2354_v32, %v2355_v37  ;;  %v8582_v27 = vld [vmem:[%s11134_s3 + $0x30] sm:$0xff]  }
 0x162   :  { %v2362_v47 = vrot.slane %v2361_v41, 4  ;;  %v2369_v51 = vrot.slane %v2368_v42, 4  ;;  %v2376_v53 = vrot.slane %v2375_v43, 4  ;;  %v4188_v54 = vsel %vm4162_vm4, %v2353_v8, %v4187_v25  ;;  %8106 = vmatpush3.bf16.msra.mxu1 %v8582_v27 }
 0x163   :  { %v2283_v55 = vmax.f32 %v2281_v26, %v2282_v44  ;;  %v2290_v57 = vmax.f32 %v2288_v34, %v2289_v21  ;;  %v2296_v58 = vrot.slane %v2295_v46, 1  ;;  %v2357_v59 = vrot.slane %v2356_v39, 2 }
 0x164   :  { %v2363_v60 = vmax.f32 %v2361_v41, %v2362_v47  ;;  %v2370_v2 = vmax.f32 %v2368_v42, %v2369_v51  ;;  %v2377_v0 = vmax.f32 %v2375_v43, %v2376_v53  ;;  %v724_v1 = vmax.f32 %v485_v22, 0.0 }
 0x165   :  { %v2297_v62 = vmax.f32 %v2295_v46, %v2296_v58  ;;  %v4179_v5 = vsel %vm4158_vm2, %v2283_v55, %v2276_v38  ;;  %v2358_v7 = vmax.f32 %v2356_v39, %v2357_v59  ;;  %v506_v11 = vadd.f32 %v8994_v50, %v8954_v49  ;;  %v9127_v38 = vpop.f32.mrb[22].mxu0 }
 0x166   :  { %v4180_v16 = vsel %vm4160_vm3, %v2290_v57, %v4179_v5  ;;  %v2364_v9 = vrot.slane %v2363_v60, 2  ;;  %v2371_v12 = vrot.slane %v2370_v2, 2  ;;  %v2378_v8 = vrot.slane %v2377_v0, 2 }
 0x167   :  { %v2359_v13 = vrot.slane %v2358_v7, 1  ;;  %v930_v14 = vcombine.high %v724_v1, %v724_v1  ;;  %v937_v15 = vrot.slane %v724_v1, %v8957_v52  ;;  %v9117_v18 = vsel %vm4162_vm4, %v2297_v62, %v4180_v16 }
 0x168   :  { %v2365_v19 = vmax.f32 %v2363_v60, %v2364_v9  ;;  %v2372_v20 = vmax.f32 %v2370_v2, %v2371_v12  ;;  %v2379_v22 = vmax.f32 %v2377_v0, %v2378_v8  ;;  %v729_v24 = vmax.f32 %v506_v11, 0.0 }
 0x169   :  { %v2360_v25 = vmax.f32 %v2358_v7, %v2359_v13  ;;  %v944_v63 = vrot.slane %v930_v14, %v8957_v52  ;;  %v945_v50 = vcombine.high %v937_v15, %v937_v15  ;;  %v2298_v6 = vsel %vm2157_vm1, %v937_v15, -inf }
 0x16a   :  { %v2366_v48 = vrot.slane %v2365_v19, 1  ;;  %v2373_v29 = vrot.slane %v2372_v20, 1  ;;  %v2380_v31 = vrot.slane %v2379_v22, 1  ;;  %v2299_v32 = vrot.slane %v2298_v6, 4 }
 0x16b   :  { %v4189_v26 = vsel %vm4164_vm5, %v2360_v25, %v4188_v54  ;;  %v946_v34 = vcombine.high %v944_v63, %v944_v63  ;;  %v2305_v36 = vsel %vm2157_vm1, %v945_v50, -inf  ;;  %v2312_v37 = vsel %vm2157_vm1, %v944_v63, -inf }
 0x16c   :  { %v2367_v41 = vmax.f32 %v2365_v19, %v2366_v48  ;;  %v2374_v42 = vmax.f32 %v2372_v20, %v2373_v29  ;;  %v2381_v43 = vmax.f32 %v2379_v22, %v2380_v31  ;;  %v2300_v44 = vmax.f32 %v2298_v6, %v2299_v32  ;;  %v9138_v22 = vpop.f32.mrb[23].mxu0 }
 0x16d   :  { %v2306_v21 = vrot.slane %v2305_v36, 4  ;;  %v2313_v46 = vrot.slane %v2312_v37, 4  ;;  %v2319_v39 = vsel %vm2157_vm1, %v946_v34, -inf  ;;  %v1015_v47 = vcombine.high %v729_v24, %v729_v24 }
 0x16e   :  { %v4190_v51 = vsel %vm4166_vm6, %v2367_v41, %v4189_v26  ;;  %v2301_v53 = vrot.slane %v2300_v44, 2  ;;  %v2320_v54 = vrot.slane %v2319_v39, 4  ;;  %v1022_v55 = vrot.slane %v729_v24, %v8957_v52 }
 0x16f   :  { %v4191_v57 = vsel %vm4168_vm7, %v2374_v42, %v4190_v51  ;;  %v2307_v58 = vmax.f32 %v2305_v36, %v2306_v21  ;;  %v2314_v59 = vmax.f32 %v2312_v37, %v2313_v46  ;;  %v1029_v60 = vrot.slane %v1015_v47, %v8957_v52 }
 0x170   :  { %v4192_v2 = vsel %vm4170_vm8, %v2381_v43, %v4191_v57  ;;  %v2302_v0 = vmax.f32 %v2300_v44, %v2301_v53  ;;  %v2321_v1 = vmax.f32 %v2319_v39, %v2320_v54  ;;  %v1030_v62 = vcombine.high %v1022_v55, %v1022_v55 }
 0x171   :  { %4418 = vst [vmem:[#allocation2 + $0x18] sm:$0xff] %v4192_v2  ;;  %v2308_v5 = vrot.slane %v2307_v58, 2  ;;  %v2315_v7 = vrot.slane %v2314_v59, 2  ;;  %v1031_v11 = vcombine.high %v1029_v60, %v1029_v60  ;;  %v2438_v16 = vsel %vm2157_vm1, %v1022_v55, -inf }
 0x172   :  { %v2303_v9 = vrot.slane %v2302_v0, 1  ;;  %v2322_v12 = vrot.slane %v2321_v1, 2  ;;  %v2439_v8 = vrot.slane %v2438_v16, 4  ;;  %v2445_v13 = vsel %vm2157_vm1, %v1030_v62, -inf }
 0x173   :  { %v2309_v14 = vmax.f32 %v2307_v58, %v2308_v5  ;;  %v2316_v15 = vmax.f32 %v2314_v59, %v2315_v7  ;;  %v2446_v19 = vrot.slane %v2445_v13, 4  ;;  %v2452_v20 = vsel %vm2157_vm1, %v1029_v60, -inf  ;;  %v8583_v5 = vld [vmem:[%s11134_s3 + $0x78] sm:$0xff]  }
 0x174   :  { %v2304_v24 = vmax.f32 %v2302_v0, %v2303_v9  ;;  %v2323_v25 = vmax.f32 %v2321_v1, %v2322_v12  ;;  %v2440_v63 = vmax.f32 %v2438_v16, %v2439_v8  ;;  %v2453_v50 = vrot.slane %v2452_v20, 4  ;;  %v8585_v12 = vld [vmem:[%s11134_s3 + $0x38] sm:$0xff]   ;;  %8107 = vmatprep.subr.bf16.mxu1 %v8583_v5 }
 0x175   :  { %v2310_v6 = vrot.slane %v2309_v14, 1  ;;  %v2317_v27 = vrot.slane %v2316_v15, 1  ;;  %v2447_v48 = vmax.f32 %v2445_v13, %v2446_v19  ;;  %v2459_v29 = vsel %vm2157_vm1, %v1031_v11, -inf  ;;  %8108 = vmatpush3.bf16.msra.mxu1 %v8585_v12 }
 0x176   :  { %v2324_v31 = vrot.slane %v2323_v25, 1  ;;  %v4182_v32 = vsel %vm4164_vm5, %v2304_v24, %v9117_v18  ;;  %v2441_v26 = vrot.slane %v2440_v63, 2  ;;  %v2454_v34 = vmax.f32 %v2452_v20, %v2453_v50 }
 0x177   :  { %v2311_v36 = vmax.f32 %v2309_v14, %v2310_v6  ;;  %v2318_v37 = vmax.f32 %v2316_v15, %v2317_v27  ;;  %v2448_v41 = vrot.slane %v2447_v48, 2  ;;  %v2460_v42 = vrot.slane %v2459_v29, 4 }
 0x178   :  { %v2325_v43 = vmax.f32 %v2323_v25, %v2324_v31  ;;  %v2442_v44 = vmax.f32 %v2440_v63, %v2441_v26  ;;  %v2455_v21 = vrot.slane %v2454_v34, 2  ;;  %v498_v46 = vadd.f32 %v8954_v49, %v8996_v56  ;;  %v8584_v56 = vld [vmem:[%s11134_s3 + $0x118] sm:$0xff]   ;;  %v9168_v26 = vpop.f32.mrb[24].mxu0 }
 0x179   :  { %v4183_v39 = vsel %vm4166_vm6, %v2311_v36, %v4182_v32  ;;  %v2449_v47 = vmax.f32 %v2447_v48, %v2448_v41  ;;  %v2461_v51 = vmax.f32 %v2459_v29, %v2460_v42  ;;  %v509_v53 = vadd.f32 %v8998_v61, %v8954_v49  ;;  %8463 = vmatprep.subr.bf16.mxu0 %v8584_v56 }
 0x17a   :  { %v4184_v18 = vsel %vm4168_vm7, %v2318_v37, %v4183_v39  ;;  %v2443_v54 = vrot.slane %v2442_v44, 1  ;;  %v2456_v55 = vmax.f32 %v2454_v34, %v2455_v21  ;;  %v727_v57 = vmax.f32 %v498_v46, 0.0  ;;  %8464 = vmatpush3.bf16.msra.mxu0 %v8584_v56 }
 0x17b   :  { %v4185_v58 = vsel %vm4170_vm8, %v2325_v43, %v4184_v18  ;;  %v2450_v59 = vrot.slane %v2449_v47, 1  ;;  %v2462_v60 = vrot.slane %v2461_v51, 2  ;;  %v730_v2 = vmax.f32 %v509_v53, 0.0 }
 0x17c   :  { %4417 = vst [vmem:[#allocation2 + $0x10] sm:$0xff] %v4185_v58  ;;  %v2444_v0 = vmax.f32 %v2442_v44, %v2443_v54  ;;  %v2457_v1 = vrot.slane %v2456_v55, 1  ;;  %v981_v62 = vcombine.high %v727_v57, %v727_v57  ;;  %v988_v61 = vrot.slane %v727_v57, %v8957_v52 }
 0x17d   :  { %v2451_v7 = vmax.f32 %v2449_v47, %v2450_v59  ;;  %v2463_v11 = vmax.f32 %v2461_v51, %v2462_v60  ;;  %v1032_v16 = vcombine.high %v730_v2, %v730_v2  ;;  %v1039_v9 = vrot.slane %v730_v2, %v8957_v52 }
 0x17e   :  { %v2458_v8 = vmax.f32 %v2456_v55, %v2457_v1  ;;  %v995_v13 = vrot.slane %v981_v62, %v8957_v52  ;;  %v996_v14 = vcombine.high %v988_v61, %v988_v61  ;;  %v2382_v15 = vsel %vm2157_vm1, %v988_v61, -inf }
 0x17f   :  { %v2464_v19 = vrot.slane %v2463_v11, 1  ;;  %v4200_v20 = vsel %vm4158_vm2, %v2451_v7, %v2444_v0  ;;  %v2383_v24 = vrot.slane %v2382_v15, 4  ;;  %v1046_v25 = vrot.slane %v1032_v16, %v8957_v52 }
 0x180   :  { %v4201_v63 = vsel %vm4160_vm3, %v2458_v8, %v4200_v20  ;;  %v997_v50 = vcombine.high %v995_v13, %v995_v13  ;;  %v2389_v6 = vsel %vm2157_vm1, %v996_v14, -inf  ;;  %v2396_v27 = vsel %vm2157_vm1, %v995_v13, -inf  ;;  %v4498_v13 = vld [vmem:[#allocation2] sm:$0xff] }
 0x181   :  { %v2465_v48 = vmax.f32 %v2463_v11, %v2464_v19  ;;  %v2384_v29 = vmax.f32 %v2382_v15, %v2383_v24  ;;  %v2390_v31 = vrot.slane %v2389_v6, 4  ;;  %v2397_v32 = vrot.slane %v2396_v27, 4  ;;  %v4499_v11 = vld [vmem:[#allocation2 + $0x8] sm:$0xff]  ;;  %4514 = vst [vmem:[#allocation3 + $0x8] sm:$0xff] %v4498_v13 }
 0x182   :  { %v2403_v34 = vsel %vm2157_vm1, %v997_v50, -inf  ;;  %v1047_v36 = vcombine.high %v1039_v9, %v1039_v9  ;;  %v1048_v37 = vcombine.high %v1046_v25, %v1046_v25  ;;  %v2466_v41 = vsel %vm2157_vm1, %v1039_v9, -inf  ;;  %4515 = vst [vmem:[#allocation3 + $0x10] sm:$0xff] %v4499_v11 }
 0x183   :  { %v2385_v42 = vrot.slane %v2384_v29, 2  ;;  %v2391_v43 = vmax.f32 %v2389_v6, %v2390_v31  ;;  %v2398_v44 = vmax.f32 %v2396_v27, %v2397_v32  ;;  %v2404_v21 = vrot.slane %v2403_v34, 4 }
 0x184   :  { %v2467_v46 = vrot.slane %v2466_v41, 4  ;;  %v2473_v39 = vsel %vm2157_vm1, %v1047_v36, -inf  ;;  %v2480_v47 = vsel %vm2157_vm1, %v1046_v25, -inf  ;;  %v2487_v51 = vsel %vm2157_vm1, %v1048_v37, -inf }
 0x185   :  { %v2386_v53 = vmax.f32 %v2384_v29, %v2385_v42  ;;  %v2392_v18 = vrot.slane %v2391_v43, 2  ;;  %v2399_v54 = vrot.slane %v2398_v44, 2  ;;  %v2405_v55 = vmax.f32 %v2403_v34, %v2404_v21 }
 0x186   :  { %v2468_v57 = vmax.f32 %v2466_v41, %v2467_v46  ;;  %v2474_v58 = vrot.slane %v2473_v39, 4  ;;  %v2481_v59 = vrot.slane %v2480_v47, 4  ;;  %v2488_v60 = vrot.slane %v2487_v51, 4 }
 0x187   :  { %v2387_v2 = vrot.slane %v2386_v53, 1  ;;  %v2393_v56 = vmax.f32 %v2391_v43, %v2392_v18  ;;  %v2400_v0 = vmax.f32 %v2398_v44, %v2399_v54  ;;  %v2406_v1 = vrot.slane %v2405_v55, 2 }
 0x188   :  { %v2469_v62 = vrot.slane %v2468_v57, 2  ;;  %v2475_v61 = vmax.f32 %v2473_v39, %v2474_v58  ;;  %v2482_v5 = vmax.f32 %v2480_v47, %v2481_v59  ;;  %v2489_v7 = vmax.f32 %v2487_v51, %v2488_v60 }
 0x189   :  { %v2388_v16 = vmax.f32 %v2386_v53, %v2387_v2  ;;  %v2394_v9 = vrot.slane %v2393_v56, 1  ;;  %v2401_v12 = vrot.slane %v2400_v0, 1  ;;  %v2407_v8 = vmax.f32 %v2405_v55, %v2406_v1  ;;  %v8587_v2 = vld [vmem:[%s11134_s3 + $0x120] sm:$0xff]  }
 0x18a   :  { %v2470_v14 = vmax.f32 %v2468_v57, %v2469_v62  ;;  %v2476_v15 = vrot.slane %v2475_v61, 2  ;;  %v2483_v19 = vrot.slane %v2482_v5, 2  ;;  %v2490_v20 = vrot.slane %v2489_v7, 2  ;;  %8465 = vmatprep.subr.bf16.mxu0 %v8587_v2 }
 0x18b   :  { %v2395_v24 = vmax.f32 %v2393_v56, %v2394_v9  ;;  %v2402_v25 = vmax.f32 %v2400_v0, %v2401_v12  ;;  %v2408_v50 = vrot.slane %v2407_v8, 1  ;;  %v4202_v6 = vsel %vm4162_vm4, %v2465_v48, %v4201_v63  ;;  %v9208_v9 = vpop.f32.mrb[25].mxu0  ;;  %8466 = vmatpush3.bf16.msra.mxu0 %v8587_v2 }
 0x18c   :  { %v2471_v27 = vrot.slane %v2470_v14, 1  ;;  %v2477_v29 = vmax.f32 %v2475_v61, %v2476_v15  ;;  %v2484_v31 = vmax.f32 %v2482_v5, %v2483_v19  ;;  %v2491_v32 = vmax.f32 %v2489_v7, %v2490_v20 }
 0x18d   :  { %v2409_v34 = vmax.f32 %v2407_v8, %v2408_v50  ;;  %v4193_v36 = vsel %vm4158_vm2, %v2395_v24, %v2388_v16  ;;  %v501_v37 = vadd.f32 %v8954_v49, %v9000_v4  ;;  %v522_v41 = vadd.f32 %v9019_v30, %v8954_v49 }
 0x18e   :  { %v4194_v42 = vsel %vm4160_vm3, %v2402_v25, %v4193_v36  ;;  %v2472_v43 = vmax.f32 %v2470_v14, %v2471_v27  ;;  %v2478_v44 = vrot.slane %v2477_v29, 1  ;;  %v2485_v21 = vrot.slane %v2484_v31, 1 }
 0x18f   :  { %v2492_v46 = vrot.slane %v2491_v32, 1  ;;  %v728_v63 = vmax.f32 %v501_v37, 0.0  ;;  %v9183_v48 = vsel %vm4162_vm4, %v2409_v34, %v4194_v42  ;;  %v733_v39 = vmax.f32 %v522_v41, 0.0 }
 0x190   :  { %v2479_v47 = vmax.f32 %v2477_v29, %v2478_v44  ;;  %v2486_v51 = vmax.f32 %v2484_v31, %v2485_v21  ;;  %v4203_v53 = vsel %vm4164_vm5, %v2472_v43, %v4202_v6  ;;  %v514_v4 = vadd.f32 %v8954_v49, %v9022_v35  ;;  %v9213_v29 = vpop.f32.mrb[26].mxu0 }
 0x191   :  { %v2493_v18 = vmax.f32 %v2491_v32, %v2492_v46  ;;  %v998_v30 = vcombine.high %v728_v63, %v728_v63  ;;  %v1005_v54 = vrot.slane %v728_v63, %v8957_v52  ;;  %v1083_v55 = vcombine.high %v733_v39, %v733_v39  ;;  %v9216_v44 = vpop.f32.mrb[27].mxu0 }
 0x192   :  { %v4204_v57 = vsel %vm4166_vm6, %v2479_v47, %v4203_v53  ;;  %v1090_v58 = vrot.slane %v733_v39, %v8957_v52  ;;  %v9191_v59 = vmax.f32 %v514_v4, 0.0  ;;  %v9195_v60 = vadd.f32 %v9027_v40, %v8954_v49 }
 0x193   :  { %v4205_v35 = vsel %vm4168_vm7, %v2486_v51, %v4204_v57  ;;  %v1012_v56 = vrot.slane %v998_v30, %v8957_v52  ;;  %v1013_v0 = vcombine.high %v1005_v54, %v1005_v54  ;;  %v2410_v1 = vsel %vm2157_vm1, %v1005_v54, -inf }
 0x194   :  { %v4206_v62 = vsel %vm4170_vm8, %v2493_v18, %v4205_v35  ;;  %v2411_v61 = vrot.slane %v2410_v1, 4  ;;  %v1097_v5 = vrot.slane %v1083_v55, %v8957_v52  ;;  %v1098_v7 = vcombine.high %v1090_v58, %v1090_v58 }
 0x195   :  { %4420 = vst [vmem:[#allocation2 + $0x28] sm:$0xff] %v4206_v62  ;;  %v1014_v49 = vcombine.high %v1012_v56, %v1012_v56  ;;  %v2417_v40 = vsel %vm2157_vm1, %v1013_v0, -inf  ;;  %v2424_v11 = vsel %vm2157_vm1, %v1012_v56, -inf  ;;  %v2550_v16 = vsel %vm2157_vm1, %v1090_v58, -inf  ;;  %v8586_v56 = vld [vmem:[%s11134_s3 + $0xc0] sm:$0xff]  }
 0x196   :  { %v2412_v12 = vmax.f32 %v2410_v1, %v2411_v61  ;;  %v2418_v8 = vrot.slane %v2417_v40, 4  ;;  %v2425_v13 = vrot.slane %v2424_v11, 4  ;;  %v1099_v14 = vcombine.high %v1097_v5, %v1097_v5  ;;  %8157 = vmatprep.subr.bf16.mxu1 %v8586_v56 }
 0x197   :  { %v2431_v15 = vsel %vm2157_vm1, %v1014_v49, -inf  ;;  %v2551_v19 = vrot.slane %v2550_v16, 4  ;;  %v2557_v20 = vsel %vm2157_vm1, %v1098_v7, -inf  ;;  %v2564_v24 = vsel %vm2157_vm1, %v1097_v5, -inf  ;;  %v4501_v5 = vld [vmem:[#allocation2 + $0x18] sm:$0xff] }
 0x198   :  { %v2413_v25 = vrot.slane %v2412_v12, 2  ;;  %v2419_v50 = vmax.f32 %v2417_v40, %v2418_v8  ;;  %v2426_v6 = vmax.f32 %v2424_v11, %v2425_v13  ;;  %v2432_v27 = vrot.slane %v2431_v15, 4  ;;  %4517 = vst [vmem:[#allocation3 + $0x20] sm:$0xff] %v4501_v5 }
 0x199   :  { %v2552_v31 = vmax.f32 %v2550_v16, %v2551_v19  ;;  %v2558_v32 = vrot.slane %v2557_v20, 4  ;;  %v2565_v34 = vrot.slane %v2564_v24, 4  ;;  %v2571_v36 = vsel %vm2157_vm1, %v1099_v14, -inf  ;;  %v4500_v16 = vld [vmem:[#allocation2 + $0x10] sm:$0xff] }
 0x19a   :  { %v2414_v37 = vmax.f32 %v2412_v12, %v2413_v25  ;;  %v2420_v41 = vrot.slane %v2419_v50, 2  ;;  %v2427_v42 = vrot.slane %v2426_v6, 2  ;;  %v2433_v43 = vmax.f32 %v2431_v15, %v2432_v27  ;;  %4516 = vst [vmem:[#allocation3 + $0x18] sm:$0xff] %v4500_v16 }
 0x19b   :  { %v2553_v21 = vrot.slane %v2552_v31, 2  ;;  %v2559_v46 = vmax.f32 %v2557_v20, %v2558_v32  ;;  %v2566_v63 = vmax.f32 %v2564_v24, %v2565_v34  ;;  %v2572_v39 = vrot.slane %v2571_v36, 4 }
 0x19c   :  { %v2415_v47 = vrot.slane %v2414_v37, 1  ;;  %v2421_v51 = vmax.f32 %v2419_v50, %v2420_v41  ;;  %v2428_v53 = vmax.f32 %v2426_v6, %v2427_v42  ;;  %v2434_v4 = vrot.slane %v2433_v43, 2 }
 0x19d   :  { %v2554_v18 = vmax.f32 %v2552_v31, %v2553_v21  ;;  %v2560_v30 = vrot.slane %v2559_v46, 2  ;;  %v2567_v54 = vrot.slane %v2566_v63, 2  ;;  %v2573_v55 = vmax.f32 %v2571_v36, %v2572_v39 }
 0x19e   :  { %v2416_v57 = vmax.f32 %v2414_v37, %v2415_v47  ;;  %v2422_v58 = vrot.slane %v2421_v51, 1  ;;  %v2429_v2 = vrot.slane %v2428_v53, 1  ;;  %v2435_v35 = vmax.f32 %v2433_v43, %v2434_v4 }
 0x19f   :  { %v2555_v0 = vrot.slane %v2554_v18, 1  ;;  %v2561_v1 = vmax.f32 %v2559_v46, %v2560_v30  ;;  %v2568_v62 = vmax.f32 %v2566_v63, %v2567_v54  ;;  %v2574_v61 = vrot.slane %v2573_v55, 2  ;;  %v9245_v30 = vld [vmem:[#allocation6] ss:$0 sm:$0xff] }
 0x1a0   :  { %v2423_v7 = vmax.f32 %v2421_v51, %v2422_v58  ;;  %v2430_v49 = vmax.f32 %v2428_v53, %v2429_v2  ;;  %v2436_v40 = vrot.slane %v2435_v35, 1  ;;  %v4196_v11 = vsel %vm4164_vm5, %v2416_v57, %v9183_v48 }
 0x1a1   :  { %v2556_v12 = vmax.f32 %v2554_v18, %v2555_v0  ;;  %v2562_v8 = vrot.slane %v2561_v1, 1  ;;  %v2569_v13 = vrot.slane %v2568_v62, 1  ;;  %v2575_v14 = vmax.f32 %v2573_v55, %v2574_v61 }
 0x1a2   :  { %v2437_v15 = vmax.f32 %v2435_v35, %v2436_v40  ;;  %v4197_v19 = vsel %vm4166_vm6, %v2423_v7, %v4196_v11  ;;  %v1049_v20 = vcombine.high %v9191_v59, %v9191_v59  ;;  %v1056_v24 = vrot.slane %v9191_v59, %v8957_v52  ;;  %v8589_v59 = vld [vmem:[%s11134_s3 + $0x128] sm:$0xff]  }
 0x1a3   :  { %v4198_v25 = vsel %vm4168_vm7, %v2430_v49, %v4197_v19  ;;  %v2563_v48 = vmax.f32 %v2561_v1, %v2562_v8  ;;  %v2570_v50 = vmax.f32 %v2568_v62, %v2569_v13  ;;  %v2576_v6 = vrot.slane %v2575_v14, 1  ;;  %8467 = vmatprep.subr.bf16.mxu0 %v8589_v59  ;;  %v9251_v49 = vpop.f32.mrb[28].mxu0 }
 0x1a4   :  { %v4199_v27 = vsel %vm4170_vm8, %v2437_v15, %v4198_v25  ;;  %v1063_v31 = vrot.slane %v1049_v20, %v8957_v52  ;;  %v1064_v32 = vcombine.high %v1056_v24, %v1056_v24  ;;  %v2494_v34 = vsel %vm2157_vm1, %v1056_v24, -inf  ;;  %8468 = vmatpush3.bf16.msra.mxu0 %v8589_v59 }
 0x1a5   :  { %4419 = vst [vmem:[#allocation2 + $0x20] sm:$0xff] %v4199_v27  ;;  %v2577_v36 = vmax.f32 %v2575_v14, %v2576_v6  ;;  %v4214_v37 = vsel %vm4158_vm2, %v2563_v48, %v2556_v12  ;;  %v2495_v41 = vrot.slane %v2494_v34, 4  ;;  %v734_v42 = vmax.f32 %v9195_v60, 0.0 }
 0x1a6   :  { %v4215_v43 = vsel %vm4160_vm3, %v2570_v50, %v4214_v37  ;;  %v1065_v21 = vcombine.high %v1063_v31, %v1063_v31  ;;  %v2501_v46 = vsel %vm2157_vm1, %v1064_v32, -inf  ;;  %v2508_v63 = vsel %vm2157_vm1, %v1063_v31, -inf }
 0x1a7   :  { %v2496_v39 = vmax.f32 %v2494_v34, %v2495_v41  ;;  %v2502_v47 = vrot.slane %v2501_v46, 4  ;;  %v2509_v51 = vrot.slane %v2508_v63, 4  ;;  %v1100_v53 = vcombine.high %v734_v42, %v734_v42 }
 0x1a8   :  { %v2515_v4 = vsel %vm2157_vm1, %v1065_v21, -inf  ;;  %v1107_v60 = vrot.slane %v734_v42, %v8957_v52  ;;  %v9243_v18 = vsel %vm4162_vm4, %v2577_v36, %v4215_v43  ;;  %v517_v54 = vadd.f32 %v9245_v30, %v9031_v45 }
 0x1a9   :  { %v2497_v55 = vrot.slane %v2496_v39, 2  ;;  %v2503_v57 = vmax.f32 %v2501_v46, %v2502_v47  ;;  %v2510_v58 = vmax.f32 %v2508_v63, %v2509_v51  ;;  %v2516_v2 = vrot.slane %v2515_v4, 4 }
 0x1aa   :  { %v1114_v35 = vrot.slane %v1100_v53, %v8957_v52  ;;  %v1115_v56 = vcombine.high %v1107_v60, %v1107_v60  ;;  %v2578_v0 = vsel %vm2157_vm1, %v1107_v60, -inf  ;;  %v732_v1 = vmax.f32 %v517_v54, 0.0 }
 0x1ab   :  { %v2498_v62 = vmax.f32 %v2496_v39, %v2497_v55  ;;  %v2504_v61 = vrot.slane %v2503_v57, 2  ;;  %v2511_v5 = vrot.slane %v2510_v58, 2  ;;  %v2517_v7 = vmax.f32 %v2515_v4, %v2516_v2 }
 0x1ac   :  { %v1116_v40 = vcombine.high %v1114_v35, %v1114_v35  ;;  %v2579_v11 = vrot.slane %v2578_v0, 4  ;;  %v2585_v45 = vsel %vm2157_vm1, %v1115_v56, -inf  ;;  %v2592_v16 = vsel %vm2157_vm1, %v1114_v35, -inf }
 0x1ad   :  { %v2499_v12 = vrot.slane %v2498_v62, 1  ;;  %v2505_v8 = vmax.f32 %v2503_v57, %v2504_v61  ;;  %v2512_v13 = vmax.f32 %v2510_v58, %v2511_v5  ;;  %v2518_v14 = vrot.slane %v2517_v7, 2 }
 0x1ae   :  { %v2580_v15 = vmax.f32 %v2578_v0, %v2579_v11  ;;  %v2586_v19 = vrot.slane %v2585_v45, 4  ;;  %v2593_v20 = vrot.slane %v2592_v16, 4  ;;  %v2599_v24 = vsel %vm2157_vm1, %v1116_v40, -inf }
 0x1af   :  { %v2500_v25 = vmax.f32 %v2498_v62, %v2499_v12  ;;  %v2506_v48 = vrot.slane %v2505_v8, 1  ;;  %v2513_v50 = vrot.slane %v2512_v13, 1  ;;  %v2519_v6 = vmax.f32 %v2517_v7, %v2518_v14 }
 0x1b0   :  { %v2581_v27 = vrot.slane %v2580_v15, 2  ;;  %v2587_v31 = vmax.f32 %v2585_v45, %v2586_v19  ;;  %v2594_v32 = vmax.f32 %v2592_v16, %v2593_v20  ;;  %v2600_v34 = vrot.slane %v2599_v24, 4 }
 0x1b1   :  { %v2507_v36 = vmax.f32 %v2505_v8, %v2506_v48  ;;  %v2514_v37 = vmax.f32 %v2512_v13, %v2513_v50  ;;  %v2520_v41 = vrot.slane %v2519_v6, 1  ;;  %v1066_v42 = vcombine.high %v732_v1, %v732_v1 }
 0x1b2   :  { %v2582_v59 = vmax.f32 %v2580_v15, %v2581_v27  ;;  %v2588_v43 = vrot.slane %v2587_v31, 2  ;;  %v2595_v21 = vrot.slane %v2594_v32, 2  ;;  %v2601_v46 = vmax.f32 %v2599_v24, %v2600_v34 }
 0x1b3   :  { %v2521_v63 = vmax.f32 %v2519_v6, %v2520_v41  ;;  %v4207_v39 = vsel %vm4158_vm2, %v2507_v36, %v2500_v25  ;;  %v1073_v47 = vrot.slane %v732_v1, %v8957_v52  ;;  %v1080_v51 = vrot.slane %v1066_v42, %v8957_v52 }
 0x1b4   :  { %v4208_v53 = vsel %vm4160_vm3, %v2514_v37, %v4207_v39  ;;  %v2583_v4 = vrot.slane %v2582_v59, 1  ;;  %v2589_v60 = vmax.f32 %v2587_v31, %v2588_v43  ;;  %v2596_v54 = vmax.f32 %v2594_v32, %v2595_v21 }
 0x1b5   :  { %v2602_v55 = vrot.slane %v2601_v46, 2  ;;  %v1081_v57 = vcombine.high %v1073_v47, %v1073_v47  ;;  %v1082_v58 = vcombine.high %v1080_v51, %v1080_v51  ;;  %v2522_v2 = vsel %vm2157_vm1, %v1073_v47, -inf }
 0x1b6   :  { %v2584_v35 = vmax.f32 %v2582_v59, %v2583_v4  ;;  %v2590_v56 = vrot.slane %v2589_v60, 1  ;;  %v2597_v0 = vrot.slane %v2596_v54, 1  ;;  %v2523_v62 = vrot.slane %v2522_v2, 4 }
 0x1b7   :  { %v2603_v61 = vmax.f32 %v2601_v46, %v2602_v55  ;;  %v2529_v5 = vsel %vm2157_vm1, %v1081_v57, -inf  ;;  %v2536_v1 = vsel %vm2157_vm1, %v1080_v51, -inf  ;;  %v2543_v7 = vsel %vm2157_vm1, %v1082_v58, -inf }
 0x1b8   :  { %v2591_v40 = vmax.f32 %v2589_v60, %v2590_v56  ;;  %v2598_v11 = vmax.f32 %v2596_v54, %v2597_v0  ;;  %v4217_v45 = vsel %vm4164_vm5, %v2584_v35, %v9243_v18  ;;  %v2524_v16 = vmax.f32 %v2522_v2, %v2523_v62  ;;  %v8591_v18 = vld [vmem:[%s11134_s3 + $0x130] sm:$0xff]   ;;  %v9283_v60 = vpop.f32.mrb[29].mxu0 }
 0x1b9   :  { %v2604_v12 = vrot.slane %v2603_v61, 1  ;;  %v2530_v8 = vrot.slane %v2529_v5, 4  ;;  %v2537_v13 = vrot.slane %v2536_v1, 4  ;;  %v2544_v14 = vrot.slane %v2543_v7, 4  ;;  %8469 = vmatprep.subr.bf16.mxu0 %v8591_v18  ;;  %v9287_v0 = vpop.f32.mrb[30].mxu0 }
 0x1ba   :  { %v4218_v15 = vsel %vm4166_vm6, %v2591_v40, %v4217_v45  ;;  %v2525_v19 = vrot.slane %v2524_v16, 2  ;;  %v4209_v20 = vsel %vm4162_vm4, %v2521_v63, %v4208_v53  ;;  %v538_v24 = vadd.f32 %v9245_v30, %v9047_v10  ;;  %8470 = vmatpush3.bf16.msra.mxu0 %v8591_v18  ;;  %v4503_v18 = vld [vmem:[#allocation2 + $0x28] sm:$0xff] }
 0x1bb   :  { %v2605_v25 = vmax.f32 %v2603_v61, %v2604_v12  ;;  %v4219_v48 = vsel %vm4168_vm7, %v2598_v11, %v4218_v15  ;;  %v2531_v50 = vmax.f32 %v2529_v5, %v2530_v8  ;;  %v2538_v6 = vmax.f32 %v2536_v1, %v2537_v13  ;;  %4519 = vst [vmem:[#allocation3 + $0x30] sm:$0xff] %v4503_v18 }
 0x1bc   :  { %v2526_v27 = vmax.f32 %v2524_v16, %v2525_v19  ;;  %v2545_v31 = vmax.f32 %v2543_v7, %v2544_v14  ;;  %v737_v32 = vmax.f32 %v538_v24, 0.0  ;;  %v530_v34 = vadd.f32 %v9245_v30, %v9049_v17  ;;  %v9291_v7 = vpop.f32.mrb[31].mxu0 }
 0x1bd   :  { %v4220_v36 = vsel %vm4170_vm8, %v2605_v25, %v4219_v48  ;;  %v2532_v37 = vrot.slane %v2531_v50, 2  ;;  %v2539_v41 = vrot.slane %v2538_v6, 2  ;;  %v541_v10 = vadd.f32 %v9245_v30, %v9052_v23 }
 0x1be   :  { %4422 = vst [vmem:[#allocation2 + $0x38] sm:$0xff] %v4220_v36  ;;  %v2527_v42 = vrot.slane %v2526_v27, 1  ;;  %v2546_v59 = vrot.slane %v2545_v31, 2  ;;  %v1151_v43 = vcombine.high %v737_v32, %v737_v32  ;;  %v1158_v21 = vrot.slane %v737_v32, %v8957_v52  ;;  %v4502_v36 = vld [vmem:[#allocation2 + $0x20] sm:$0xff] }
 0x1bf   :  { %v2533_v46 = vmax.f32 %v2531_v50, %v2532_v37  ;;  %v2540_v63 = vmax.f32 %v2538_v6, %v2539_v41  ;;  %v735_v39 = vmax.f32 %v530_v34, 0.0  ;;  %v9280_v47 = vmax.f32 %v541_v10, 0.0  ;;  %4518 = vst [vmem:[#allocation3 + $0x28] sm:$0xff] %v4502_v36 }
 0x1c0   :  { %v2528_v17 = vmax.f32 %v2526_v27, %v2527_v42  ;;  %v2547_v51 = vmax.f32 %v2545_v31, %v2546_v59  ;;  %v1165_v53 = vrot.slane %v1151_v43, %v8957_v52  ;;  %v1166_v4 = vcombine.high %v1158_v21, %v1158_v21 }
 0x1c1   :  { %v2534_v23 = vrot.slane %v2533_v46, 1  ;;  %v2541_v54 = vrot.slane %v2540_v63, 1  ;;  %v2662_v55 = vsel %vm2157_vm1, %v1158_v21, -inf  ;;  %v1117_v57 = vcombine.high %v735_v39, %v735_v39 }
 0x1c2   :  { %v2548_v58 = vrot.slane %v2547_v51, 1  ;;  %v4210_v2 = vsel %vm4164_vm5, %v2528_v17, %v4209_v20  ;;  %v1167_v35 = vcombine.high %v1165_v53, %v1165_v53  ;;  %v2663_v56 = vrot.slane %v2662_v55, 4 }
 0x1c3   :  { %v2535_v62 = vmax.f32 %v2533_v46, %v2534_v23  ;;  %v2542_v61 = vmax.f32 %v2540_v63, %v2541_v54  ;;  %v2669_v5 = vsel %vm2157_vm1, %v1166_v4, -inf  ;;  %v2676_v1 = vsel %vm2157_vm1, %v1165_v53, -inf }
 0x1c4   :  { %v2549_v40 = vmax.f32 %v2547_v51, %v2548_v58  ;;  %v2664_v11 = vmax.f32 %v2662_v55, %v2663_v56  ;;  %v2670_v45 = vrot.slane %v2669_v5, 4  ;;  %v2677_v16 = vrot.slane %v2676_v1, 4  ;;  %v8593_v55 = vld [vmem:[%s11134_s3 + $0x138] sm:$0xff]  }
 0x1c5   :  { %v4211_v12 = vsel %vm4166_vm6, %v2535_v62, %v4210_v2  ;;  %v2683_v8 = vsel %vm2157_vm1, %v1167_v35, -inf  ;;  %v1124_v13 = vrot.slane %v735_v39, %v8957_v52  ;;  %v1131_v14 = vrot.slane %v1117_v57, %v8957_v52  ;;  %8471 = vmatprep.subr.bf16.mxu0 %v8593_v55 }
 0x1c6   :  { %v4212_v15 = vsel %vm4168_vm7, %v2542_v61, %v4211_v12  ;;  %v2665_v19 = vrot.slane %v2664_v11, 2  ;;  %v2671_v20 = vmax.f32 %v2669_v5, %v2670_v45  ;;  %v2678_v24 = vmax.f32 %v2676_v1, %v2677_v16  ;;  %8472 = vmatpush3.bf16.msra.mxu0 %v8593_v55 }
 0x1c7   :  { %v4213_v25 = vsel %vm4170_vm8, %v2549_v40, %v4212_v15  ;;  %v2684_v48 = vrot.slane %v2683_v8, 4  ;;  %v1132_v50 = vcombine.high %v1124_v13, %v1124_v13  ;;  %v1133_v6 = vcombine.high %v1131_v14, %v1131_v14 }
 0x1c8   :  { %4421 = vst [vmem:[#allocation2 + $0x30] sm:$0xff] %v4213_v25  ;;  %v2666_v27 = vmax.f32 %v2664_v11, %v2665_v19  ;;  %v2672_v31 = vrot.slane %v2671_v20, 2  ;;  %v2679_v32 = vrot.slane %v2678_v24, 2  ;;  %v2606_v34 = vsel %vm2157_vm1, %v1124_v13, -inf }
 0x1c9   :  { %v2685_v37 = vmax.f32 %v2683_v8, %v2684_v48  ;;  %v2607_v41 = vrot.slane %v2606_v34, 4  ;;  %v2613_v10 = vsel %vm2157_vm1, %v1132_v50, -inf  ;;  %v2620_v42 = vsel %vm2157_vm1, %v1131_v14, -inf }
 0x1ca   :  { %v2667_v59 = vrot.slane %v2666_v27, 1  ;;  %v2673_v43 = vmax.f32 %v2671_v20, %v2672_v31  ;;  %v2680_v21 = vmax.f32 %v2678_v24, %v2679_v32  ;;  %v2614_v46 = vrot.slane %v2613_v10, 4 }
 0x1cb   :  { %v2686_v63 = vrot.slane %v2685_v37, 2  ;;  %v2608_v39 = vmax.f32 %v2606_v34, %v2607_v41  ;;  %v2621_v17 = vrot.slane %v2620_v42, 4  ;;  %v2627_v51 = vsel %vm2157_vm1, %v1133_v6, -inf  ;;  %v9313_v6 = vpop.f32.mrb[32].mxu0 }
 0x1cc   :  { %v2668_v53 = vmax.f32 %v2666_v27, %v2667_v59  ;;  %v2674_v4 = vrot.slane %v2673_v43, 1  ;;  %v2681_v23 = vrot.slane %v2680_v21, 1  ;;  %v2615_v54 = vmax.f32 %v2613_v10, %v2614_v46  ;;  %v9318_v41 = vpop.f32.mrb[33].mxu0 }
 0x1cd   :  { %v2687_v57 = vmax.f32 %v2685_v37, %v2686_v63  ;;  %v2609_v58 = vrot.slane %v2608_v39, 2  ;;  %v2622_v2 = vmax.f32 %v2620_v42, %v2621_v17  ;;  %v2628_v35 = vrot.slane %v2627_v51, 4 }
 0x1ce   :  { %v2675_v56 = vmax.f32 %v2673_v43, %v2674_v4  ;;  %v2682_v62 = vmax.f32 %v2680_v21, %v2681_v23  ;;  %v2616_v61 = vrot.slane %v2615_v54, 2  ;;  %v1168_v5 = vcombine.high %v9280_v47, %v9280_v47 }
 0x1cf   :  { %v2688_v1 = vrot.slane %v2687_v57, 1  ;;  %v2610_v40 = vmax.f32 %v2608_v39, %v2609_v58  ;;  %v2623_v11 = vrot.slane %v2622_v2, 2  ;;  %v2629_v45 = vmax.f32 %v2627_v51, %v2628_v35 }
 0x1d0   :  { %v4228_v16 = vsel %vm4158_vm2, %v2675_v56, %v2668_v53  ;;  %v2617_v12 = vmax.f32 %v2615_v54, %v2616_v61  ;;  %v1175_v8 = vrot.slane %v9280_v47, %v8957_v52  ;;  %v1182_v13 = vrot.slane %v1168_v5, %v8957_v52 }
 0x1d1   :  { %v2689_v14 = vmax.f32 %v2687_v57, %v2688_v1  ;;  %v4229_v15 = vsel %vm4160_vm3, %v2682_v62, %v4228_v16  ;;  %v2611_v19 = vrot.slane %v2610_v40, 1  ;;  %v2624_v20 = vmax.f32 %v2622_v2, %v2623_v11 }
 0x1d2   :  { %v2618_v24 = vrot.slane %v2617_v12, 1  ;;  %v2630_v25 = vrot.slane %v2629_v45, 2  ;;  %v1183_v48 = vcombine.high %v1175_v8, %v1175_v8  ;;  %v1184_v50 = vcombine.high %v1182_v13, %v1182_v13 }
 0x1d3   :  { %v2612_v18 = vmax.f32 %v2610_v40, %v2611_v19  ;;  %v2625_v27 = vrot.slane %v2624_v20, 1  ;;  %v2690_v31 = vsel %vm2157_vm1, %v1175_v8, -inf  ;;  %v2704_v32 = vsel %vm2157_vm1, %v1182_v13, -inf }
 0x1d4   :  { %v2619_v47 = vmax.f32 %v2617_v12, %v2618_v24  ;;  %v2631_v34 = vmax.f32 %v2629_v45, %v2630_v25  ;;  %v2691_v36 = vrot.slane %v2690_v31, 4  ;;  %v2697_v37 = vsel %vm2157_vm1, %v1183_v48, -inf }
 0x1d5   :  { %v2626_v10 = vmax.f32 %v2624_v20, %v2625_v27  ;;  %v2698_v42 = vrot.slane %v2697_v37, 4  ;;  %v2705_v59 = vrot.slane %v2704_v32, 4  ;;  %v2711_v43 = vsel %vm2157_vm1, %v1184_v50, -inf }
 0x1d6   :  { %v2632_v21 = vrot.slane %v2631_v34, 1  ;;  %v4221_v46 = vsel %vm4158_vm2, %v2619_v47, %v2612_v18  ;;  %v2692_v63 = vmax.f32 %v2690_v31, %v2691_v36  ;;  %v2712_v39 = vrot.slane %v2711_v43, 4 }
 0x1d7   :  { %v4222_v17 = vsel %vm4160_vm3, %v2626_v10, %v4221_v46  ;;  %v2699_v51 = vmax.f32 %v2697_v37, %v2698_v42  ;;  %v2706_v53 = vmax.f32 %v2704_v32, %v2705_v59  ;;  %v4230_v4 = vsel %vm4162_vm4, %v2689_v14, %v4229_v15 }
 0x1d8   :  { %v2633_v23 = vmax.f32 %v2631_v34, %v2632_v21  ;;  %v2693_v54 = vrot.slane %v2692_v63, 2  ;;  %v2713_v55 = vmax.f32 %v2711_v43, %v2712_v39  ;;  %v533_v57 = vadd.f32 %v9245_v30, %v9063_v3 }
 0x1d9   :  { %v2700_v58 = vrot.slane %v2699_v51, 2  ;;  %v2707_v2 = vrot.slane %v2706_v53, 2  ;;  %v554_v35 = vadd.f32 %v9245_v30, %v9102_v28  ;;  %v546_v56 = vadd.f32 %v9245_v30, %v9105_v33 }
 0x1da   :  { %v2694_v62 = vmax.f32 %v2692_v63, %v2693_v54  ;;  %v2714_v61 = vrot.slane %v2713_v55, 2  ;;  %v736_v5 = vmax.f32 %v533_v57, 0.0  ;;  %v9331_v1 = vsel %vm4162_vm4, %v2633_v23, %v4222_v17  ;;  %v9345_v63 = vpop.f32.mrb[34].mxu0 }
 0x1db   :  { %v2701_v40 = vmax.f32 %v2699_v51, %v2700_v58  ;;  %v2708_v11 = vmax.f32 %v2706_v53, %v2707_v2  ;;  %v741_v45 = vmax.f32 %v554_v35, 0.0  ;;  %v9333_v16 = vmax.f32 %v546_v56, 0.0 }
 0x1dc   :  { %v2695_v3 = vrot.slane %v2694_v62, 1  ;;  %v2715_v12 = vmax.f32 %v2713_v55, %v2714_v61  ;;  %v1134_v8 = vcombine.high %v736_v5, %v736_v5  ;;  %v1141_v13 = vrot.slane %v736_v5, %v8957_v52 }
 0x1dd   :  { %v2702_v28 = vrot.slane %v2701_v40, 1  ;;  %v2709_v14 = vrot.slane %v2708_v11, 1  ;;  %v1219_v15 = vcombine.high %v741_v45, %v741_v45  ;;  %v1226_v33 = vrot.slane %v741_v45, %v8957_v52 }
 0x1de   :  { %v2696_v19 = vmax.f32 %v2694_v62, %v2695_v3  ;;  %v2716_v20 = vrot.slane %v2715_v12, 1  ;;  %v1148_v24 = vrot.slane %v1134_v8, %v8957_v52  ;;  %v1149_v25 = vcombine.high %v1141_v13, %v1141_v13 }
 0x1df   :  { %v2703_v48 = vmax.f32 %v2701_v40, %v2702_v28  ;;  %v2710_v50 = vmax.f32 %v2708_v11, %v2709_v14  ;;  %v2634_v18 = vsel %vm2157_vm1, %v1141_v13, -inf  ;;  %v1233_v27 = vrot.slane %v1219_v15, %v8957_v52  ;;  %v9353_v14 = vpop.f32.mrb[35].mxu0  ;;  %v4505_v15 = vld [vmem:[#allocation2 + $0x38] sm:$0xff] }
 0x1e0   :  { %v2717_v31 = vmax.f32 %v2715_v12, %v2716_v20  ;;  %v4231_v32 = vsel %vm4164_vm5, %v2696_v19, %v4230_v4  ;;  %v1150_v47 = vcombine.high %v1148_v24, %v1148_v24  ;;  %v2635_v34 = vrot.slane %v2634_v18, 4  ;;  %4521 = vst [vmem:[#allocation3 + $0x40] sm:$0xff] %v4505_v15 }
 0x1e1   :  { %v4232_v36 = vsel %vm4166_vm6, %v2703_v48, %v4231_v32  ;;  %v2641_v37 = vsel %vm2157_vm1, %v1149_v25, -inf  ;;  %v2648_v10 = vsel %vm2157_vm1, %v1148_v24, -inf  ;;  %v1234_v42 = vcombine.high %v1226_v33, %v1226_v33  ;;  %v4504_v25 = vld [vmem:[#allocation2 + $0x30] sm:$0xff] }
 0x1e2   :  { %v4233_v59 = vsel %vm4168_vm7, %v2710_v50, %v4232_v36  ;;  %v2636_v43 = vmax.f32 %v2634_v18, %v2635_v34  ;;  %v2642_v21 = vrot.slane %v2641_v37, 4  ;;  %v2649_v46 = vrot.slane %v2648_v10, 4  ;;  %4520 = vst [vmem:[#allocation3 + $0x38] sm:$0xff] %v4504_v25 }
 0x1e3   :  { %v4234_v39 = vsel %vm4170_vm8, %v2717_v31, %v4233_v59  ;;  %v2655_v17 = vsel %vm2157_vm1, %v1150_v47, -inf  ;;  %v1235_v51 = vcombine.high %v1233_v27, %v1233_v27  ;;  %v2774_v53 = vsel %vm2157_vm1, %v1226_v33, -inf }
 0x1e4   :  { %4424 = vst [vmem:[#allocation2 + $0x48] sm:$0xff] %v4234_v39  ;;  %v2637_v4 = vrot.slane %v2636_v43, 2  ;;  %v2643_v23 = vmax.f32 %v2641_v37, %v2642_v21  ;;  %v2650_v54 = vmax.f32 %v2648_v10, %v2649_v46  ;;  %v2656_v55 = vrot.slane %v2655_v17, 4 }
 0x1e5   :  { %v2775_v57 = vrot.slane %v2774_v53, 4  ;;  %v2781_v58 = vsel %vm2157_vm1, %v1234_v42, -inf  ;;  %v2788_v2 = vsel %vm2157_vm1, %v1233_v27, -inf  ;;  %v2795_v35 = vsel %vm2157_vm1, %v1235_v51, -inf }
 0x1e6   :  { %v2638_v56 = vmax.f32 %v2636_v43, %v2637_v4  ;;  %v2644_v62 = vrot.slane %v2643_v23, 2  ;;  %v2651_v61 = vrot.slane %v2650_v54, 2  ;;  %v2657_v5 = vmax.f32 %v2655_v17, %v2656_v55 }
 0x1e7   :  { %v2776_v40 = vmax.f32 %v2774_v53, %v2775_v57  ;;  %v2782_v11 = vrot.slane %v2781_v58, 4  ;;  %v2789_v45 = vrot.slane %v2788_v2, 4  ;;  %v2796_v3 = vrot.slane %v2795_v35, 4 }
 0x1e8   :  { %v2639_v12 = vrot.slane %v2638_v56, 1  ;;  %v2645_v8 = vmax.f32 %v2643_v23, %v2644_v62  ;;  %v2652_v13 = vmax.f32 %v2650_v54, %v2651_v61  ;;  %v2658_v28 = vrot.slane %v2657_v5, 2 }
 0x1e9   :  { %v2777_v33 = vrot.slane %v2776_v40, 2  ;;  %v2783_v19 = vmax.f32 %v2781_v58, %v2782_v11  ;;  %v2790_v20 = vmax.f32 %v2788_v2, %v2789_v45  ;;  %v2797_v24 = vmax.f32 %v2795_v35, %v2796_v3 }
 0x1ea   :  { %v2640_v48 = vmax.f32 %v2638_v56, %v2639_v12  ;;  %v2646_v50 = vrot.slane %v2645_v8, 1  ;;  %v2653_v18 = vrot.slane %v2652_v13, 1  ;;  %v2659_v27 = vmax.f32 %v2657_v5, %v2658_v28 }
 0x1eb   :  { %v2778_v31 = vmax.f32 %v2776_v40, %v2777_v33  ;;  %v2784_v32 = vrot.slane %v2783_v19, 2  ;;  %v2791_v47 = vrot.slane %v2790_v20, 2  ;;  %v2798_v34 = vrot.slane %v2797_v24, 2 }
 0x1ec   :  { %v2647_v36 = vmax.f32 %v2645_v8, %v2646_v50  ;;  %v2654_v37 = vmax.f32 %v2652_v13, %v2653_v18  ;;  %v2660_v10 = vrot.slane %v2659_v27, 1  ;;  %v4224_v42 = vsel %vm4164_vm5, %v2640_v48, %v9331_v1 }
 0x1ed   :  { %v2779_v59 = vrot.slane %v2778_v31, 1  ;;  %v2785_v43 = vmax.f32 %v2783_v19, %v2784_v32  ;;  %v2792_v21 = vmax.f32 %v2790_v20, %v2791_v47  ;;  %v2799_v46 = vmax.f32 %v2797_v24, %v2798_v34  ;;  %v9373_v19 = vpop.f32.mrb[36].mxu0 }
 0x1ee   :  { %v2661_v39 = vmax.f32 %v2659_v27, %v2660_v10  ;;  %v4225_v17 = vsel %vm4166_vm6, %v2647_v36, %v4224_v42  ;;  %v1185_v51 = vcombine.high %v9333_v16, %v9333_v16  ;;  %v1192_v53 = vrot.slane %v9333_v16, %v8957_v52 }
 0x1ef   :  { %v4226_v4 = vsel %vm4168_vm7, %v2654_v37, %v4225_v17  ;;  %v2780_v23 = vmax.f32 %v2778_v31, %v2779_v59  ;;  %v2786_v54 = vrot.slane %v2785_v43, 1  ;;  %v2793_v55 = vrot.slane %v2792_v21, 1 }
 0x1f0   :  { %v4227_v1 = vsel %vm4170_vm8, %v2661_v39, %v4226_v4  ;;  %v2800_v57 = vrot.slane %v2799_v46, 1  ;;  %v1199_v58 = vrot.slane %v1185_v51, %v8957_v52  ;;  %v1200_v2 = vcombine.high %v1192_v53, %v1192_v53 }
 0x1f1   :  { %4423 = vst [vmem:[#allocation2 + $0x40] sm:$0xff] %v4227_v1  ;;  %v2787_v35 = vmax.f32 %v2785_v43, %v2786_v54  ;;  %v2794_v56 = vmax.f32 %v2792_v21, %v2793_v55  ;;  %v2718_v62 = vsel %vm2157_vm1, %v1192_v53, -inf  ;;  %v557_v61 = vadd.f32 %v9245_v30, %v9127_v38 }
 0x1f2   :  { %v2801_v16 = vmax.f32 %v2799_v46, %v2800_v57  ;;  %v1201_v5 = vcombine.high %v1199_v58, %v1199_v58  ;;  %v2719_v40 = vrot.slane %v2718_v62, 4  ;;  %v2725_v11 = vsel %vm2157_vm1, %v1200_v2, -inf }
 0x1f3   :  { %v4242_v45 = vsel %vm4158_vm2, %v2787_v35, %v2780_v23  ;;  %v2726_v3 = vrot.slane %v2725_v11, 4  ;;  %v2732_v12 = vsel %vm2157_vm1, %v1199_v58, -inf  ;;  %v742_v8 = vmax.f32 %v557_v61, 0.0 }
 0x1f4   :  { %v4243_v13 = vsel %vm4160_vm3, %v2794_v56, %v4242_v45  ;;  %v2720_v28 = vmax.f32 %v2718_v62, %v2719_v40  ;;  %v2733_v15 = vrot.slane %v2732_v12, 4  ;;  %v2739_v33 = vsel %vm2157_vm1, %v1201_v5, -inf }
 0x1f5   :  { %v2727_v38 = vmax.f32 %v2725_v11, %v2726_v3  ;;  %v2740_v20 = vrot.slane %v2739_v33, 4  ;;  %v1236_v24 = vcombine.high %v742_v8, %v742_v8  ;;  %v1243_v25 = vrot.slane %v742_v8, %v8957_v52 }
 0x1f6   :  { %v2721_v48 = vrot.slane %v2720_v28, 2  ;;  %v2734_v50 = vmax.f32 %v2732_v12, %v2733_v15  ;;  %v4244_v18 = vsel %vm4162_vm4, %v2801_v16, %v4243_v13  ;;  %v549_v27 = vadd.f32 %v9245_v30, %v9138_v22 }
 0x1f7   :  { %v2728_v31 = vrot.slane %v2727_v38, 2  ;;  %v2741_v32 = vmax.f32 %v2739_v33, %v2740_v20  ;;  %v1250_v47 = vrot.slane %v1236_v24, %v8957_v52  ;;  %v1251_v34 = vcombine.high %v1243_v25, %v1243_v25 }
 0x1f8   :  { %v2722_v36 = vmax.f32 %v2720_v28, %v2721_v48  ;;  %v2735_v37 = vrot.slane %v2734_v50, 2  ;;  %v2802_v10 = vsel %vm2157_vm1, %v1243_v25, -inf  ;;  %v740_v42 = vmax.f32 %v549_v27, 0.0 }
 0x1f9   :  { %v2729_v59 = vmax.f32 %v2727_v38, %v2728_v31  ;;  %v2742_v43 = vrot.slane %v2741_v32, 2  ;;  %v1252_v21 = vcombine.high %v1250_v47, %v1250_v47  ;;  %v2803_v46 = vrot.slane %v2802_v10, 4 }
 0x1fa   :  { %v2723_v39 = vrot.slane %v2722_v36, 1  ;;  %v2736_v17 = vmax.f32 %v2734_v50, %v2735_v37  ;;  %v2809_v51 = vsel %vm2157_vm1, %v1251_v34, -inf  ;;  %v2816_v22 = vsel %vm2157_vm1, %v1250_v47, -inf }
 0x1fb   :  { %v2730_v53 = vrot.slane %v2729_v59, 1  ;;  %v2743_v4 = vmax.f32 %v2741_v32, %v2742_v43  ;;  %v2804_v23 = vmax.f32 %v2802_v10, %v2803_v46  ;;  %v2810_v54 = vrot.slane %v2809_v51, 4 }
 0x1fc   :  { %v2724_v55 = vmax.f32 %v2722_v36, %v2723_v39  ;;  %v2737_v1 = vrot.slane %v2736_v17, 1  ;;  %v2817_v57 = vrot.slane %v2816_v22, 4  ;;  %v2823_v58 = vsel %vm2157_vm1, %v1252_v21, -inf  ;;  %v9392_v36 = vpop.f32.mrb[37].mxu0 }
 0x1fd   :  { %v2731_v2 = vmax.f32 %v2729_v59, %v2730_v53  ;;  %v2744_v35 = vrot.slane %v2743_v4, 1  ;;  %v2805_v56 = vrot.slane %v2804_v23, 2  ;;  %v2811_v62 = vmax.f32 %v2809_v51, %v2810_v54 }
 0x1fe   :  { %v2738_v61 = vmax.f32 %v2736_v17, %v2737_v1  ;;  %v2818_v16 = vmax.f32 %v2816_v22, %v2817_v57  ;;  %v2824_v5 = vrot.slane %v2823_v58, 4  ;;  %v1202_v40 = vcombine.high %v740_v42, %v740_v42 }
 0x1ff   :  { %v2745_v11 = vmax.f32 %v2743_v4, %v2744_v35  ;;  %v4235_v45 = vsel %vm4158_vm2, %v2731_v2, %v2724_v55  ;;  %v2806_v3 = vmax.f32 %v2804_v23, %v2805_v56  ;;  %v2812_v12 = vrot.slane %v2811_v62, 2 }
 0x200   :  { %v4236_v8 = vsel %vm4160_vm3, %v2738_v61, %v4235_v45  ;;  %v2819_v13 = vrot.slane %v2818_v16, 2  ;;  %v2825_v28 = vmax.f32 %v2823_v58, %v2824_v5  ;;  %v1209_v15 = vrot.slane %v740_v42, %v8957_v52 }
 0x201   :  { %v2807_v33 = vrot.slane %v2806_v3, 1  ;;  %v2813_v38 = vmax.f32 %v2811_v62, %v2812_v12  ;;  %v1216_v20 = vrot.slane %v1202_v40, %v8957_v52  ;;  %v9389_v24 = vsel %vm4162_vm4, %v2745_v11, %v4236_v8 }
 0x202   :  { %v2820_v25 = vmax.f32 %v2818_v16, %v2819_v13  ;;  %v2826_v48 = vrot.slane %v2825_v28, 2  ;;  %v1217_v50 = vcombine.high %v1209_v15, %v1209_v15  ;;  %v2746_v27 = vsel %vm2157_vm1, %v1209_v15, -inf }
 0x203   :  { %v2808_v31 = vmax.f32 %v2806_v3, %v2807_v33  ;;  %v2814_v32 = vrot.slane %v2813_v38, 1  ;;  %v1218_v47 = vcombine.high %v1216_v20, %v1216_v20  ;;  %v2747_v34 = vrot.slane %v2746_v27, 4 }
 0x204   :  { %v2821_v37 = vrot.slane %v2820_v25, 1  ;;  %v2827_v10 = vmax.f32 %v2825_v28, %v2826_v48  ;;  %v2753_v42 = vsel %vm2157_vm1, %v1217_v50, -inf  ;;  %v2760_v59 = vsel %vm2157_vm1, %v1216_v20, -inf }
 0x205   :  { %v2815_v43 = vmax.f32 %v2813_v38, %v2814_v32  ;;  %v4245_v21 = vsel %vm4164_vm5, %v2808_v31, %v4244_v18  ;;  %v2748_v46 = vmax.f32 %v2746_v27, %v2747_v34  ;;  %v2754_v39 = vrot.slane %v2753_v42, 4  ;;  %v9402_v18 = vpop.f32.mrb[38].mxu0  ;;  %v4547_v34 = vld [vmem:[#allocation3 + $0xf] sm:$0xff] }
 0x206   :  { %v2822_v17 = vmax.f32 %v2820_v25, %v2821_v37  ;;  %v2828_v51 = vrot.slane %v2827_v10, 1  ;;  %v2761_v22 = vrot.slane %v2760_v59, 4  ;;  %v2767_v53 = vsel %vm2157_vm1, %v1218_v47, -inf  ;;  %v9404_v61 = vpop.f32.mrb[39].mxu0 }
 0x207   :  { %v4246_v4 = vsel %vm4166_vm6, %v2815_v43, %v4245_v21  ;;  %v2749_v23 = vrot.slane %v2748_v46, 2  ;;  %v2755_v54 = vmax.f32 %v2753_v42, %v2754_v39  ;;  %v2768_v55 = vrot.slane %v2767_v53, 4 }
 0x208   :  { %v2829_v1 = vmax.f32 %v2827_v10, %v2828_v51  ;;  %v4247_v57 = vsel %vm4168_vm7, %v2822_v17, %v4246_v4  ;;  %v2762_v58 = vmax.f32 %v2760_v59, %v2761_v22  ;;  %v570_v2 = vadd.f32 %v9245_v30, %v9168_v26  ;;  %v4531_v22 = vld [vmem:[#allocation3 + $0xe] sm:$0xff] }
 0x209   :  { %v2750_v35 = vmax.f32 %v2748_v46, %v2749_v23  ;;  %v2756_v56 = vrot.slane %v2755_v54, 2  ;;  %v2769_v62 = vmax.f32 %v2767_v53, %v2768_v55  ;;  %v8734_v11 = vmov 0.0  }
 0x20a   :  { %v4248_v16 = vsel %vm4170_vm8, %v2829_v1, %v4247_v57  ;;  %v2763_v5 = vrot.slane %v2762_v58, 2  ;;  %v745_v40 = vmax.f32 %v570_v2, 0.0  ;;  %4447 = vst [vmem:[#allocation3] sm:$0xff] %v8734_v11  ;;  %4463 = vst [vmem:[#allocation3 + $0x80] sm:$0xff] %v8734_v11  ;;  %v562_v45 = vadd.f32 %v9245_v30, %v9208_v9  ;;  %v8588_v2 = vld [vmem:[%s11134_s3 + $0x80] sm:$0xff]  }
 0x20b   :  { %4464 = vst [vmem:[#allocation3 + $0x88] sm:$0xff] %v8734_v11  ;;  %4480 = vst [vmem:[#allocation3 + $0x108] sm:$0xff] %v8734_v11  ;;  %v2751_v26 = vrot.slane %v2750_v35, 1  ;;  %v2757_v3 = vmax.f32 %v2755_v54, %v2756_v56  ;;  %v2770_v12 = vrot.slane %v2769_v62, 2  ;;  %v573_v8 = vadd.f32 %v9245_v30, %v9213_v29  ;;  %v4507_v54 = vld [vmem:[#allocation2 + $0x48] sm:$0xff] }
 0x20c   :  { %4426 = vst [vmem:[#allocation2 + $0x58] sm:$0xff] %v4248_v16  ;;  %v2764_v13 = vmax.f32 %v2762_v58, %v2763_v5  ;;  %v1287_v28 = vcombine.high %v745_v40, %v745_v40  ;;  %v1294_v15 = vrot.slane %v745_v40, %v8957_v52  ;;  %v743_v33 = vmax.f32 %v562_v45, 0.0  ;;  %4523 = vst [vmem:[#allocation3 + $0x50] sm:$0xff] %v4507_v54  ;;  %v8590_v40 = vld [vmem:[%s11134_s3 + $0xc8] sm:$0xff]  }
 0x20d   :  { %v2752_v38 = vmax.f32 %v2750_v35, %v2751_v26  ;;  %v2758_v20 = vrot.slane %v2757_v3, 1  ;;  %v2771_v25 = vmax.f32 %v2769_v62, %v2770_v12  ;;  %v9412_v48 = vmax.f32 %v573_v8, 0.0  ;;  %v4506_v35 = vld [vmem:[#allocation2 + $0x40] sm:$0xff] }
 0x20e   :  { %v2765_v50 = vrot.slane %v2764_v13, 1  ;;  %v1301_v9 = vrot.slane %v1287_v28, %v8957_v52  ;;  %v1302_v27 = vcombine.high %v1294_v15, %v1294_v15  ;;  %v2886_v31 = vsel %vm2157_vm1, %v1294_v15, -inf  ;;  %4522 = vst [vmem:[#allocation3 + $0x48] sm:$0xff] %v4506_v35 }
 0x20f   :  { %v2759_v32 = vmax.f32 %v2757_v3, %v2758_v20  ;;  %v2772_v47 = vrot.slane %v2771_v25, 1  ;;  %v4238_v29 = vsel %vm4164_vm5, %v2752_v38, %v9389_v24  ;;  %v2887_v30 = vrot.slane %v2886_v31, 4 }
 0x210   :  { %v2766_v37 = vmax.f32 %v2764_v13, %v2765_v50  ;;  %v1303_v10 = vcombine.high %v1301_v9, %v1301_v9  ;;  %v2893_v42 = vsel %vm2157_vm1, %v1302_v27, -inf  ;;  %v2900_v59 = vsel %vm2157_vm1, %v1301_v9, -inf }
 0x211   :  { %v2773_v43 = vmax.f32 %v2771_v25, %v2772_v47  ;;  %v4239_v21 = vsel %vm4166_vm6, %v2759_v32, %v4238_v29  ;;  %v2888_v46 = vmax.f32 %v2886_v31, %v2887_v30  ;;  %v2894_v39 = vrot.slane %v2893_v42, 4  ;;  %v4546_v17 = vld [vmem:[#allocation3 + $0x7] sm:$0xff]  ;;  %v8594_v32 = vld [vmem:[%s11134_s3 + $0xd0] sm:$0xff]  }
 0x212   :  { %v4530_v51 = vld [vmem:[#allocation3 + $0x6] sm:$0xff]  ;;  %v4240_v53 = vsel %vm4168_vm7, %v2766_v37, %v4239_v21  ;;  %v2901_v4 = vrot.slane %v2900_v59, 4  ;;  %v2907_v24 = vsel %vm2157_vm1, %v1303_v10, -inf  ;;  %v4611_v23 = vpack.c.bf16 %v4547_v34, %v4546_v17  ;;  %v8595_v17 = vld [vmem:[%s11134_s3 + $0x90] sm:$0xff]  }
 0x213   :  { %v4241_v55 = vsel %vm4170_vm8, %v2773_v43, %v4240_v53  ;;  %v2889_v1 = vrot.slane %v2888_v46, 2  ;;  %v2895_v57 = vmax.f32 %v2893_v42, %v2894_v39  ;;  %v2908_v58 = vrot.slane %v2907_v24, 4  ;;  %v8592_v25 = vld [vmem:[%s11134_s3 + $0x88] sm:$0xff]  }
 0x214   :  { %4425 = vst [vmem:[#allocation2 + $0x50] sm:$0xff] %v4241_v55  ;;  %v2902_v56 = vmax.f32 %v2900_v59, %v2901_v4  ;;  %5009 = vmatprep.mubr.bf16.mxu1 %v4611_v23  ;;  %v1253_v62 = vcombine.high %v743_v33, %v743_v33  ;;  %v1260_v16 = vrot.slane %v743_v33, %v8957_v52 }
 0x215   :  { %v4610_v5 = vpack.c.bf16 %v4531_v22, %v4530_v51  ;;  %v2890_v11 = vmax.f32 %v2888_v46, %v2889_v1  ;;  %v2896_v45 = vrot.slane %v2895_v57, 2  ;;  %v2909_v26 = vmax.f32 %v2907_v24, %v2908_v58  ;;  %v8596_v24 = vld [vmem:[%s11134_s3 + $0xd8] sm:$0xff]  }
 0x216   :  { %v1304_v3 = vcombine.high %v9412_v48, %v9412_v48  ;;  %v2903_v12 = vrot.slane %v2902_v56, 2  ;;  %v1267_v8 = vrot.slane %v1253_v62, %v8957_v52  ;;  %v1268_v13 = vcombine.high %v1260_v16, %v1260_v16  ;;  %v4509_v58 = vld [vmem:[#allocation2 + $0x58] sm:$0xff] }
 0x217   :  { %v2830_v28 = vsel %vm2157_vm1, %v1260_v16, -inf  ;;  %5010 = vmatmul.mubr.bf16.vlgmr.msra.gmra.mrb[0].mxu1 %v4610_v5  ;;  %v2891_v15 = vrot.slane %v2890_v11, 1  ;;  %v2897_v33 = vmax.f32 %v2895_v57, %v2896_v45  ;;  %v2910_v38 = vrot.slane %v2909_v26, 2  ;;  %4525 = vst [vmem:[#allocation3 + $0x60] sm:$0xff] %v4509_v58 }
 0x218   :  { %v2831_v20 = vrot.slane %v2830_v28, 4  ;;  %8158 = vmatpush3.bf16.msra.mxu1 %v8588_v2  ;;  %v2904_v50 = vmax.f32 %v2902_v56, %v2903_v12  ;;  %v1269_v9 = vcombine.high %v1267_v8, %v1267_v8  ;;  %v2837_v27 = vsel %vm2157_vm1, %v1268_v13, -inf }
 0x219   :  { %v2844_v31 = vsel %vm2157_vm1, %v1267_v8, -inf  ;;  %8159 = vmatprep.subr.bf16.mxu1 %v8590_v40  ;;  %v2892_v47 = vmax.f32 %v2890_v11, %v2891_v15  ;;  %v2898_v29 = vrot.slane %v2897_v33, 1  ;;  %v2911_v30 = vmax.f32 %v2909_v26, %v2910_v38  ;;  %v8597_v11 = vld [vmem:[%s11134_s3 + $0x98] sm:$0xff]  }
 0x21a   :  { %v2832_v34 = vmax.f32 %v2830_v28, %v2831_v20  ;;  %v2905_v37 = vrot.slane %v2904_v50, 1  ;;  %v2838_v10 = vrot.slane %v2837_v27, 4  ;;  %v2845_v42 = vrot.slane %v2844_v31, 4 }
 0x21b   :  { %v2851_v59 = vsel %vm2157_vm1, %v1269_v9, -inf  ;;  %v2899_v43 = vmax.f32 %v2897_v33, %v2898_v29  ;;  %v2912_v21 = vrot.slane %v2911_v30, 1  ;;  %v1311_v4 = vrot.slane %v9412_v48, %v8957_v52  ;;  %v4508_v23 = vld [vmem:[#allocation2 + $0x50] sm:$0xff] }
 0x21c   :  { %v2833_v46 = vrot.slane %v2832_v34, 2  ;;  %v2852_v39 = vrot.slane %v2851_v59, 4  ;;  %8160 = vmatpush3.bf16.msra.mxu1 %v8592_v25  ;;  %v2906_v51 = vmax.f32 %v2904_v50, %v2905_v37  ;;  %v2839_v22 = vmax.f32 %v2837_v27, %v2838_v10  ;;  %4524 = vst [vmem:[#allocation3 + $0x58] sm:$0xff] %v4508_v23 }
 0x21d   :  { %v2846_v53 = vmax.f32 %v2844_v31, %v2845_v42  ;;  %8161 = vmatprep.subr.bf16.mxu1 %v8594_v32  ;;  %v2913_v54 = vmax.f32 %v2911_v30, %v2912_v21  ;;  %v4256_v55 = vsel %vm4158_vm2, %v2899_v43, %v2892_v47  ;;  %v1318_v62 = vrot.slane %v1304_v3, %v8957_v52  ;;  %v9463_v42 = vld [vmem:[#allocation6] ss:$0 sm:$0xff] }
 0x21e   :  { %v2834_v1 = vmax.f32 %v2832_v34, %v2833_v46  ;;  %v2853_v57 = vmax.f32 %v2851_v59, %v2852_v39  ;;  %v4257_v2 = vsel %vm4160_vm3, %v2906_v51, %v4256_v55  ;;  %v2840_v35 = vrot.slane %v2839_v22, 2 }
 0x21f   :  { %v2847_v56 = vrot.slane %v2846_v53, 2  ;;  %v1319_v5 = vcombine.high %v1311_v4, %v1311_v4  ;;  %v2914_v40 = vsel %vm2157_vm1, %v1311_v4, -inf  ;;  %v1320_v12 = vcombine.high %v1318_v62, %v1318_v62 }
 0x220   :  { %v2835_v48 = vrot.slane %v2834_v1, 1  ;;  %v2854_v16 = vrot.slane %v2853_v57, 2  ;;  %8162 = vmatpush3.bf16.msra.mxu1 %v8595_v17  ;;  %v2841_v45 = vmax.f32 %v2839_v22, %v2840_v35  ;;  %v2915_v8 = vrot.slane %v2914_v40, 4  ;;  %v8602_v17 = vld [vmem:[%s11134_s3 + $0xc0] sm:$0xff]  }
 0x221   :  { %v2848_v26 = vmax.f32 %v2846_v53, %v2847_v56  ;;  %8163 = vmatprep.subr.bf16.mxu1 %v8596_v24  ;;  %v2921_v3 = vsel %vm2157_vm1, %v1319_v5, -inf  ;;  %v2928_v15 = vsel %vm2157_vm1, %v1318_v62, -inf  ;;  %v2935_v27 = vsel %vm2157_vm1, %v1320_v12, -inf  ;;  %8301 = vmatprep.subr.bf16.mxu0 %v8602_v17  ;;  %v8600_v17 = vld [vmem:[%s11134_s3 + $0xe8] sm:$0xff]  }
 0x222   :  { %v2836_v13 = vmax.f32 %v2834_v1, %v2835_v48  ;;  %v2855_v28 = vmax.f32 %v2853_v57, %v2854_v16  ;;  %v2842_v33 = vrot.slane %v2841_v45, 1  ;;  %v2916_v20 = vmax.f32 %v2914_v40, %v2915_v8 }
 0x223   :  { %v2849_v38 = vrot.slane %v2848_v26, 1  ;;  %v2922_v25 = vrot.slane %v2921_v3, 4  ;;  %v2929_v9 = vrot.slane %v2928_v15, 4  ;;  %v4258_v31 = vsel %vm4162_vm4, %v2913_v54, %v4257_v2 }
 0x224   :  { %v2856_v50 = vrot.slane %v2855_v28, 1  ;;  %8164 = vmatpush3.bf16.msra.mxu1 %v8597_v11  ;;  %v2843_v32 = vmax.f32 %v2841_v45, %v2842_v33  ;;  %v2917_v29 = vrot.slane %v2916_v20, 2  ;;  %v2936_v10 = vrot.slane %v2935_v27, 4 }
 0x225   :  { %v2850_v47 = vmax.f32 %v2848_v26, %v2849_v38  ;;  %v2923_v30 = vmax.f32 %v2921_v3, %v2922_v25  ;;  %v2930_v37 = vmax.f32 %v2928_v15, %v2929_v9  ;;  %v565_v59 = vadd.f32 %v9463_v42, %v9216_v44  ;;  %v8598_v3 = vld [vmem:[%s11134_s3 + $0xe0] sm:$0xff]  }
 0x226   :  { %v2857_v34 = vmax.f32 %v2855_v28, %v2856_v50  ;;  %v4249_v43 = vsel %vm4158_vm2, %v2843_v32, %v2836_v13  ;;  %v2918_v21 = vmax.f32 %v2916_v20, %v2917_v29  ;;  %v586_v39 = vadd.f32 %v9463_v42, %v9251_v49  ;;  %8165 = vmatprep.subr.bf16.mxu1 %v8598_v3 }
 0x227   :  { %v2924_v46 = vrot.slane %v2923_v30, 2  ;;  %v4250_v51 = vsel %vm4160_vm3, %v2850_v47, %v4249_v43  ;;  %v2931_v22 = vrot.slane %v2930_v37, 2  ;;  %v2937_v53 = vmax.f32 %v2935_v27, %v2936_v10 }
 0x228   :  { %v744_v4 = vmax.f32 %v565_v59, 0.0  ;;  %v2919_v24 = vrot.slane %v2918_v21, 1  ;;  %v9475_v44 = vsel %vm4162_vm4, %v2857_v34, %v4250_v51  ;;  %v749_v54 = vmax.f32 %v586_v39, 0.0 }
 0x229   :  { %v2925_v23 = vmax.f32 %v2923_v30, %v2924_v46  ;;  %v2932_v55 = vmax.f32 %v2930_v37, %v2931_v22  ;;  %v2938_v1 = vrot.slane %v2937_v53, 2 }
 0x22a   :  { %v1270_v57 = vcombine.high %v744_v4, %v744_v4  ;;  %v1277_v49 = vrot.slane %v744_v4, %v8957_v52  ;;  %v2920_v58 = vmax.f32 %v2918_v21, %v2919_v24  ;;  %v1355_v35 = vcombine.high %v749_v54, %v749_v54  ;;  %v8601_v24 = vld [vmem:[%s11134_s3 + $0xa8] sm:$0xff]  }
 0x22b   :  { %v2926_v2 = vrot.slane %v2925_v23, 1  ;;  %v1362_v56 = vrot.slane %v749_v54, %v8957_v52  ;;  %v2933_v62 = vrot.slane %v2932_v55, 1  ;;  %v2939_v48 = vmax.f32 %v2937_v53, %v2938_v1 }
 0x22c   :  { %v1284_v16 = vrot.slane %v1270_v57, %v8957_v52  ;;  %v1285_v5 = vcombine.high %v1277_v49, %v1277_v49  ;;  %v4259_v11 = vsel %vm4164_vm5, %v2920_v58, %v4258_v31  ;;  %v2858_v45 = vsel %vm2157_vm1, %v1277_v49, -inf  ;;  %v8599_v31 = vld [vmem:[%s11134_s3 + $0xa0] sm:$0xff]   ;;  %v8606_v57 = vld [vmem:[%s11134_s3 + $0xf0] sm:$0xff]  }
 0x22d   :  { %v2927_v40 = vmax.f32 %v2925_v23, %v2926_v2  ;;  %v1369_v26 = vrot.slane %v1355_v35, %v8957_v52  ;;  %v2934_v12 = vmax.f32 %v2932_v55, %v2933_v62  ;;  %v2940_v8 = vrot.slane %v2939_v48, 1  ;;  %8166 = vmatpush3.bf16.msra.mxu1 %v8599_v31 }
 0x22e   :  { %v1286_v13 = vcombine.high %v1284_v16, %v1284_v16  ;;  %v2859_v28 = vrot.slane %v2858_v45, 4  ;;  %v2865_v33 = vsel %vm2157_vm1, %v1285_v5, -inf  ;;  %v2872_v38 = vsel %vm2157_vm1, %v1284_v16, -inf  ;;  %8167 = vmatprep.subr.bf16.mxu1 %v8600_v17 }
 0x22f   :  { %v4260_v15 = vsel %vm4166_vm6, %v2927_v40, %v4259_v11  ;;  %v1370_v20 = vcombine.high %v1362_v56, %v1362_v56  ;;  %v2941_v25 = vmax.f32 %v2939_v48, %v2940_v8  ;;  %v2866_v27 = vrot.slane %v2865_v33, 4  ;;  %v8612_v40 = vld [vmem:[%s11134_s3 + $0xf8] sm:$0xff]  }
 0x230   :  { %v4261_v50 = vsel %vm4168_vm7, %v2934_v12, %v4260_v15  ;;  %v2860_v9 = vmax.f32 %v2858_v45, %v2859_v28  ;;  %v2873_v32 = vrot.slane %v2872_v38, 4  ;;  %v2879_v47 = vsel %vm2157_vm1, %v1286_v13, -inf  ;;  %v4548_v15 = vld [vmem:[#allocation3 + $0x17] sm:$0xff] }
 0x231   :  { %v1371_v29 = vcombine.high %v1369_v26, %v1369_v26  ;;  %v2998_v30 = vsel %vm2157_vm1, %v1362_v56, -inf  ;;  %v4262_v34 = vsel %vm4170_vm8, %v2941_v25, %v4261_v50  ;;  %v2867_v10 = vmax.f32 %v2865_v33, %v2866_v27  ;;  %8168 = vmatpush3.bf16.msra.mxu1 %v8601_v24  ;;  %v8607_v56 = vld [vmem:[%s11134_s3 + $0xb0] sm:$0xff]   ;;  %v4549_v33 = vld [vmem:[#allocation3 + $0x1f] sm:$0xff] }
 0x232   :  { %v2861_v37 = vrot.slane %v2860_v9, 2  ;;  %v2880_v59 = vrot.slane %v2879_v47, 4  ;;  %4428 = vst [vmem:[#allocation2 + $0x68] sm:$0xff] %v4262_v34  ;;  %v2874_v43 = vmax.f32 %v2872_v38, %v2873_v32  ;;  %v2999_v21 = vrot.slane %v2998_v30, 4  ;;  %8169 = vmatprep.subr.bf16.mxu1 %v8606_v57  ;;  %v9514_v38 = vpop.f32.mrb[40].mxu0  ;;  %v8613_v34 = vld [vmem:[%s11134_s3 + $0xb8] sm:$0xff]  }
 0x233   :  { %v3005_v46 = vsel %vm2157_vm1, %v1370_v20, -inf  ;;  %v3012_v39 = vsel %vm2157_vm1, %v1369_v26, -inf  ;;  %v2868_v22 = vrot.slane %v2867_v10, 2  ;;  %v3019_v1 = vsel %vm2157_vm1, %v1371_v29, -inf }
 0x234   :  { %v2862_v51 = vmax.f32 %v2860_v9, %v2861_v37  ;;  %v2881_v53 = vmax.f32 %v2879_v47, %v2880_v59  ;;  %v3006_v4 = vrot.slane %v3005_v46, 4  ;;  %v2875_v23 = vrot.slane %v2874_v43, 2 }
 0x235   :  { %v3000_v54 = vmax.f32 %v2998_v30, %v2999_v21  ;;  %v3013_v55 = vrot.slane %v3012_v39, 4  ;;  %v2869_v58 = vmax.f32 %v2867_v10, %v2868_v22  ;;  %v3020_v5 = vrot.slane %v3019_v1, 4  ;;  %8170 = vmatpush3.bf16.msra.mxu1 %v8607_v56  ;;  %v4595_v30 = vld [vmem:[#allocation3 + $0x12] sm:$0xff]  ;;  %v4533_v21 = vld [vmem:[#allocation3 + $0x1e] sm:$0xff]  ;;  %v4594_v22 = vld [vmem:[#allocation3 + $0xa] sm:$0xff] }
 0x236   :  { %v2863_v49 = vrot.slane %v2862_v51, 1  ;;  %v2882_v2 = vrot.slane %v2881_v53, 2  ;;  %v3007_v35 = vmax.f32 %v3005_v46, %v3006_v4  ;;  %v2876_v62 = vmax.f32 %v2874_v43, %v2875_v23  ;;  %8171 = vmatprep.subr.bf16.mxu1 %v8612_v40 }
 0x237   :  { %v3001_v48 = vrot.slane %v3000_v54, 2  ;;  %v3014_v16 = vmax.f32 %v3012_v39, %v3013_v55  ;;  %v2870_v45 = vrot.slane %v2869_v58, 1  ;;  %v3021_v3 = vmax.f32 %v3019_v1, %v3020_v5  ;;  %v4551_v55 = vld [vmem:[#allocation3 + $0x2f] sm:$0xff] }
 0x238   :  { %v2864_v11 = vmax.f32 %v2862_v51, %v2863_v49  ;;  %v2883_v26 = vmax.f32 %v2881_v53, %v2882_v2  ;;  %v3008_v12 = vrot.slane %v3007_v35, 2  ;;  %v2877_v8 = vrot.slane %v2876_v62, 1 }
 0x239   :  { %v3002_v13 = vmax.f32 %v3000_v54, %v3001_v48  ;;  %v3015_v28 = vrot.slane %v3014_v16, 2  ;;  %v2871_v20 = vmax.f32 %v2869_v58, %v2870_v45  ;;  %v4511_v27 = vld [vmem:[#allocation2 + $0x68] sm:$0xff]  ;;  %v3022_v29 = vrot.slane %v3021_v3, 2  ;;  %8172 = vmatpush3.bf16.msra.mxu1 %v8613_v34 }
 0x23a   :  { %v2884_v25 = vrot.slane %v2883_v26, 1  ;;  %v4252_v50 = vsel %vm4164_vm5, %v2864_v11, %v9475_v44  ;;  %v3009_v9 = vmax.f32 %v3007_v35, %v3008_v12  ;;  %v2878_v31 = vmax.f32 %v2876_v62, %v2877_v8  ;;  %4527 = vst [vmem:[#allocation3 + $0x70] sm:$0xff] %v4511_v27  ;;  %v4532_v44 = vld [vmem:[#allocation3 + $0x16] sm:$0xff]  ;;  %v4550_v54 = vld [vmem:[#allocation3 + $0x27] sm:$0xff]  ;;  %v9545_v8 = vpop.f32.mrb[41].mxu0 }
 0x23b   :  { %v3003_v32 = vrot.slane %v3002_v13, 1  ;;  %v3016_v47 = vmax.f32 %v3014_v16, %v3015_v28  ;;  %v4253_v10 = vsel %vm4166_vm6, %v2871_v20, %v4252_v50  ;;  %v4616_v43 = vpack.c.bf16 %v4549_v33, %v4548_v15  ;;  %v4597_v62 = vld [vmem:[#allocation3 + $0x22] sm:$0xff]  ;;  %v4596_v12 = vld [vmem:[#allocation3 + $0x1a] sm:$0xff] }
 0x23c   :  { %v2885_v37 = vmax.f32 %v2883_v26, %v2884_v25  ;;  %v3010_v59 = vrot.slane %v3009_v9, 1  ;;  %v4254_v46 = vsel %vm4168_vm7, %v2878_v31, %v4253_v10  ;;  %v3023_v51 = vmax.f32 %v3021_v3, %v3022_v29  ;;  %v8604_v33 = vld [vmem:[%s11134_s3 + $0xc8] sm:$0xff]   ;;  %v9560_v29 = vpop.f32.mrb[42].mxu0 }
 0x23d   :  { %v3004_v39 = vmax.f32 %v3002_v13, %v3003_v32  ;;  %v3017_v17 = vrot.slane %v3016_v47, 1  ;;  %5017 = vmatprep.mubr.bf16.mxu1 %v4616_v43  ;;  %v4614_v24 = vpack.c.bf16 %v4595_v30, %v4594_v22  ;;  %v578_v23 = vadd.f32 %v9463_v42, %v9283_v60 }
 0x23e   :  { %v4255_v53 = vsel %vm4170_vm8, %v2885_v37, %v4254_v46  ;;  %v3011_v4 = vmax.f32 %v3009_v9, %v3010_v59  ;;  %v3024_v57 = vrot.slane %v3023_v51, 1  ;;  %v4615_v49 = vpack.c.bf16 %v4533_v21, %v4532_v44  ;;  %v8605_v59 = vld [vmem:[%s11134_s3 + $0x88] sm:$0xff]  }
 0x23f   :  { %4427 = vst [vmem:[#allocation2 + $0x60] sm:$0xff] %v4255_v53  ;;  %v3018_v1 = vmax.f32 %v3016_v47, %v3017_v17  ;;  %v589_v58 = vadd.f32 %v9463_v42, %v9287_v0  ;;  %8473 = vmatprep.mubr.bf16.mxu0 %v4614_v24  ;;  %v747_v35 = vmax.f32 %v578_v23, 0.0  ;;  %v581_v56 = vadd.f32 %v9463_v42, %v9291_v7  ;;  %v8603_v7 = vld [vmem:[%s11134_s3 + $0x80] sm:$0xff]   ;;  %v8608_v17 = vld [vmem:[%s11134_s3 + $0xd0] sm:$0xff]  }
 0x240   :  { %v4270_v2 = vsel %vm4158_vm2, %v3011_v4, %v3004_v39  ;;  %v602_v60 = vadd.f32 %v9463_v42, %v9313_v6  ;;  %v3025_v48 = vmax.f32 %v3023_v51, %v3024_v57  ;;  %5018 = vmatmul.mubr.bf16.gmra.mrb[4].mxu1 %v4615_v49  ;;  %v4621_v40 = vpack.c.bf16 %v4551_v55, %v4550_v54  ;;  %v8618_v6 = vld [vmem:[%s11134_s3 + $0x40] sm:$0xff]  }
 0x241   :  { %v4271_v16 = vsel %vm4160_vm3, %v3018_v1, %v4270_v2  ;;  %v750_v5 = vmax.f32 %v589_v58, 0.0  ;;  %v1321_v11 = vcombine.high %v747_v35, %v747_v35  ;;  %v1328_v0 = vrot.slane %v747_v35, %v8957_v52  ;;  %8237 = vmatprep.subr.bf16.mxu1 %v8618_v6  ;;  %v8609_v2 = vld [vmem:[%s11134_s3 + $0x90] sm:$0xff]  }
 0x242   :  { %v9535_v45 = vmax.f32 %v581_v56, 0.0  ;;  %v9537_v26 = vmax.f32 %v602_v60, 0.0  ;;  %v9549_v3 = vsel %vm4162_vm4, %v3025_v48, %v4271_v16  ;;  %5025 = vmatprep.mubr.bf16.mxu1 %v4621_v40  ;;  %v4619_v15 = vpack.c.bf16 %v4597_v62, %v4596_v12  ;;  %v8610_v48 = vld [vmem:[%s11134_s3 + $0xd8] sm:$0xff]  }
 0x243   :  { %v1372_v13 = vcombine.high %v750_v5, %v750_v5  ;;  %v1379_v28 = vrot.slane %v750_v5, %v8957_v52  ;;  %v1335_v20 = vrot.slane %v1321_v11, %v8957_v52  ;;  %v1336_v25 = vcombine.high %v1328_v0, %v1328_v0 }
 0x244   :  { %v2942_v50 = vsel %vm2157_vm1, %v1328_v0, -inf  ;;  %v1338_v9 = vcombine.high %v9535_v45, %v9535_v45  ;;  %8474 = vmatmul.mubr.bf16.vlgmr.msra.gmra.mrb[64].mxu0 %v4619_v15 }
 0x245   :  { %v2943_v27 = vrot.slane %v2942_v50, 4  ;;  %v1386_v31 = vrot.slane %v1372_v13, %v8957_v52  ;;  %v1387_v32 = vcombine.high %v1379_v28, %v1379_v28  ;;  %v3026_v47 = vsel %vm2157_vm1, %v1379_v28, -inf  ;;  %8302 = vmatpush3.bf16.msra.mxu0 %v8603_v7 }
 0x246   :  { %v1337_v30 = vcombine.high %v1335_v20, %v1335_v20  ;;  %v2949_v34 = vsel %vm2157_vm1, %v1336_v25, -inf  ;;  %v2956_v37 = vsel %vm2157_vm1, %v1335_v20, -inf  ;;  %v3027_v10 = vrot.slane %v3026_v47, 4  ;;  %v4510_v43 = vld [vmem:[#allocation2 + $0x60] sm:$0xff]  ;;  %8303 = vmatprep.subr.bf16.mxu0 %v8604_v33  ;;  %v8611_v20 = vld [vmem:[%s11134_s3 + $0x98] sm:$0xff]  }
 0x247   :  { %v2944_v44 = vmax.f32 %v2942_v50, %v2943_v27  ;;  %v2950_v21 = vrot.slane %v2949_v34, 4  ;;  %v2957_v46 = vrot.slane %v2956_v37, 4  ;;  %v1388_v39 = vcombine.high %v1386_v31, %v1386_v31  ;;  %4526 = vst [vmem:[#allocation3 + $0x68] sm:$0xff] %v4510_v43 }
 0x248   :  { %v2963_v51 = vsel %vm2157_vm1, %v1337_v30, -inf  ;;  %v3028_v22 = vmax.f32 %v3026_v47, %v3027_v10  ;;  %v3033_v53 = vsel %vm2157_vm1, %v1387_v32, -inf  ;;  %v3040_v4 = vsel %vm2157_vm1, %v1386_v31, -inf  ;;  %v8614_v32 = vld [vmem:[%s11134_s3 + $0xe0] sm:$0xff]  }
 0x249   :  { %v2945_v24 = vrot.slane %v2944_v44, 2  ;;  %v2951_v23 = vmax.f32 %v2949_v34, %v2950_v21  ;;  %v2958_v54 = vmax.f32 %v2956_v37, %v2957_v46  ;;  %v2964_v55 = vrot.slane %v2963_v51, 4  ;;  %8304 = vmatpush3.bf16.msra.mxu0 %v8605_v59 }
 0x24a   :  { %v3029_v1 = vrot.slane %v3028_v22, 2  ;;  %v3034_v57 = vrot.slane %v3033_v53, 4  ;;  %v3041_v49 = vrot.slane %v3040_v4, 4  ;;  %v3047_v58 = vsel %vm2157_vm1, %v1388_v39, -inf  ;;  %8305 = vmatprep.subr.bf16.mxu0 %v8608_v17 }
 0x24b   :  { %v2946_v35 = vmax.f32 %v2944_v44, %v2945_v24  ;;  %v2952_v56 = vrot.slane %v2951_v23, 2  ;;  %v2959_v60 = vrot.slane %v2958_v54, 2  ;;  %v2965_v62 = vmax.f32 %v2963_v51, %v2964_v55  ;;  %v8615_v51 = vld [vmem:[%s11134_s3 + $0xa0] sm:$0xff]  }
 0x24c   :  { %v3030_v16 = vmax.f32 %v3028_v22, %v3029_v1  ;;  %v3035_v5 = vmax.f32 %v3033_v53, %v3034_v57  ;;  %v3042_v40 = vmax.f32 %v3040_v4, %v3041_v49  ;;  %v3048_v11 = vrot.slane %v3047_v58, 4 }
 0x24d   :  { %v2947_v0 = vrot.slane %v2946_v35, 1  ;;  %v2953_v12 = vmax.f32 %v2951_v23, %v2952_v56  ;;  %v2960_v7 = vmax.f32 %v2958_v54, %v2959_v60  ;;  %v2966_v6 = vrot.slane %v2965_v62, 2  ;;  %8306 = vmatpush3.bf16.msra.mxu0 %v8609_v2  ;;  %v8616_v23 = vld [vmem:[%s11134_s3 + $0xe8] sm:$0xff]  }
 0x24e   :  { %v3031_v13 = vrot.slane %v3030_v16, 1  ;;  %v3036_v28 = vrot.slane %v3035_v5, 2  ;;  %v3043_v15 = vrot.slane %v3042_v40, 2  ;;  %v3049_v33 = vmax.f32 %v3047_v58, %v3048_v11  ;;  %8307 = vmatprep.subr.bf16.mxu0 %v8610_v48  ;;  %v4534_v11 = vld [vmem:[#allocation3 + $0x26] sm:$0xff] }
 0x24f   :  { %v2948_v25 = vmax.f32 %v2946_v35, %v2947_v0  ;;  %v2954_v50 = vrot.slane %v2953_v12, 1  ;;  %v2961_v27 = vrot.slane %v2960_v7, 1  ;;  %v2967_v31 = vmax.f32 %v2965_v62, %v2966_v6  ;;  %v8617_v62 = vld [vmem:[%s11134_s3 + $0xa8] sm:$0xff]  }
 0x250   :  { %v3032_v47 = vmax.f32 %v3030_v16, %v3031_v13  ;;  %v3037_v30 = vmax.f32 %v3035_v5, %v3036_v28  ;;  %v3044_v34 = vmax.f32 %v3042_v40, %v3043_v15  ;;  %v3050_v37 = vrot.slane %v3049_v33, 2  ;;  %v4535_v0 = vld [vmem:[#allocation3 + $0x2e] sm:$0xff] }
 0x251   :  { %v2955_v10 = vmax.f32 %v2953_v12, %v2954_v50  ;;  %v2962_v59 = vmax.f32 %v2960_v7, %v2961_v27  ;;  %v2968_v43 = vrot.slane %v2967_v31, 1  ;;  %v1345_v44 = vrot.slane %v9535_v45, %v8957_v52  ;;  %8308 = vmatpush3.bf16.msra.mxu0 %v8611_v20  ;;  %v9605_v45 = vpop.f32.mrb[43].mxu0  ;;  %v8620_v12 = vld [vmem:[%s11134_s3 + $0xf0] sm:$0xff]  }
 0x252   :  { %v3038_v21 = vrot.slane %v3037_v30, 1  ;;  %v3045_v46 = vrot.slane %v3044_v34, 1  ;;  %v3051_v39 = vmax.f32 %v3049_v33, %v3050_v37  ;;  %v4273_v17 = vsel %vm4164_vm5, %v3032_v47, %v9549_v3  ;;  %8309 = vmatprep.subr.bf16.mxu0 %v8614_v32  ;;  %v8621_v47 = vld [vmem:[%s11134_s3 + $0xb0] sm:$0xff]  }
 0x253   :  { %v2969_v22 = vmax.f32 %v2967_v31, %v2968_v43  ;;  %v4263_v53 = vsel %vm4158_vm2, %v2955_v10, %v2948_v25  ;;  %v1352_v4 = vrot.slane %v1338_v9, %v8957_v52  ;;  %v1353_v24 = vcombine.high %v1345_v44, %v1345_v44 }
 0x254   :  { %v4264_v3 = vsel %vm4160_vm3, %v2962_v59, %v4263_v53  ;;  %v3039_v54 = vmax.f32 %v3037_v30, %v3038_v21  ;;  %v3046_v55 = vmax.f32 %v3044_v34, %v3045_v46  ;;  %v3052_v1 = vrot.slane %v3051_v39, 1 }
 0x255   :  { %v1354_v57 = vcombine.high %v1352_v4, %v1352_v4  ;;  %v2970_v49 = vsel %vm2157_vm1, %v1345_v44, -inf  ;;  %v2977_v58 = vsel %vm2157_vm1, %v1353_v24, -inf  ;;  %v2984_v2 = vsel %vm2157_vm1, %v1352_v4, -inf  ;;  %8310 = vmatpush3.bf16.msra.mxu0 %v8615_v51  ;;  %v8622_v4 = vld [vmem:[%s11134_s3 + $0xf8] sm:$0xff]  }
 0x256   :  { %v3053_v9 = vmax.f32 %v3051_v39, %v3052_v1  ;;  %v4274_v35 = vsel %vm4166_vm6, %v3039_v54, %v4273_v17  ;;  %v2971_v56 = vrot.slane %v2970_v49, 4  ;;  %v2978_v60 = vrot.slane %v2977_v58, 4  ;;  %8311 = vmatprep.subr.bf16.mxu0 %v8616_v23  ;;  %v8623_v24 = vld [vmem:[%s11134_s3 + $0xb8] sm:$0xff]   ;;  %v9637_v23 = vpop.f32.mrb[44].mxu0 }
 0x257   :  { %v4275_v48 = vsel %vm4168_vm7, %v3046_v55, %v4274_v35  ;;  %v2985_v16 = vrot.slane %v2984_v2, 4  ;;  %v2991_v5 = vsel %vm2157_vm1, %v1354_v57, -inf  ;;  %v4265_v40 = vsel %vm4162_vm4, %v2969_v22, %v4264_v3 }
 0x258   :  { %v4276_v7 = vsel %vm4170_vm8, %v3053_v9, %v4275_v48  ;;  %v2972_v6 = vmax.f32 %v2970_v49, %v2971_v56  ;;  %v2979_v13 = vmax.f32 %v2977_v58, %v2978_v60  ;;  %v2992_v28 = vrot.slane %v2991_v5, 4 }
 0x259   :  { %4430 = vst [vmem:[#allocation2 + $0x78] sm:$0xff] %v4276_v7  ;;  %v2986_v15 = vmax.f32 %v2984_v2, %v2985_v16  ;;  %v1423_v33 = vcombine.high %v9537_v26, %v9537_v26  ;;  %v1430_v20 = vrot.slane %v9537_v26, %v8957_v52  ;;  %v594_v25 = vadd.f32 %v9463_v42, %v9318_v41 }
 0x25a   :  { %v2973_v50 = vrot.slane %v2972_v6, 2  ;;  %v2980_v27 = vrot.slane %v2979_v13, 2  ;;  %v2993_v31 = vmax.f32 %v2991_v5, %v2992_v28  ;;  %v4620_v32 = vpack.c.bf16 %v4535_v0, %v4534_v11  ;;  %8312 = vmatpush3.bf16.msra.mxu0 %v8617_v62 }
 0x25b   :  { %v2987_v30 = vrot.slane %v2986_v15, 2  ;;  %v1437_v34 = vrot.slane %v1423_v33, %v8957_v52  ;;  %v1438_v37 = vcombine.high %v1430_v20, %v1430_v20  ;;  %v3110_v10 = vsel %vm2157_vm1, %v1430_v20, -inf  ;;  %8313 = vmatprep.subr.bf16.mxu0 %v8620_v12 }
 0x25c   :  { %v2974_v26 = vmax.f32 %v2972_v6, %v2973_v50  ;;  %v2981_v59 = vmax.f32 %v2979_v13, %v2980_v27  ;;  %v2994_v43 = vrot.slane %v2993_v31, 2  ;;  %v3111_v41 = vrot.slane %v3110_v10, 4  ;;  %5026 = vmatmul.mubr.bf16.gmra.mrb[8].mxu1 %v4620_v32 }
 0x25d   :  { %v2988_v44 = vmax.f32 %v2986_v15, %v2987_v30  ;;  %v1439_v21 = vcombine.high %v1437_v34, %v1437_v34  ;;  %v3117_v46 = vsel %vm2157_vm1, %v1438_v37, -inf  ;;  %v3124_v39 = vsel %vm2157_vm1, %v1437_v34, -inf  ;;  %v9647_v30 = vpop.f32.mrb[45].mxu0 }
 0x25e   :  { %v2975_v17 = vrot.slane %v2974_v26, 1  ;;  %v2982_v51 = vrot.slane %v2981_v59, 1  ;;  %v2995_v22 = vmax.f32 %v2993_v31, %v2994_v43  ;;  %v3112_v53 = vmax.f32 %v3110_v10, %v3111_v41  ;;  %8314 = vmatpush3.bf16.msra.mxu0 %v8621_v47 }
 0x25f   :  { %v2989_v3 = vrot.slane %v2988_v44, 1  ;;  %v3118_v54 = vrot.slane %v3117_v46, 4  ;;  %v3125_v55 = vrot.slane %v3124_v39, 4  ;;  %v3131_v1 = vsel %vm2157_vm1, %v1439_v21, -inf  ;;  %8315 = vmatprep.subr.bf16.mxu0 %v8622_v4 }
 0x260   :  { %v2976_v57 = vmax.f32 %v2974_v26, %v2975_v17  ;;  %v2983_v49 = vmax.f32 %v2981_v59, %v2982_v51  ;;  %v2996_v58 = vrot.slane %v2995_v22, 1  ;;  %v3113_v2 = vrot.slane %v3112_v53, 2  ;;  %v4513_v9 = vld [vmem:[#allocation2 + $0x78] sm:$0x1f] }
 0x261   :  { %v2990_v35 = vmax.f32 %v2988_v44, %v2989_v3  ;;  %v3119_v56 = vmax.f32 %v3117_v46, %v3118_v54  ;;  %v3126_v60 = vmax.f32 %v3124_v39, %v3125_v55  ;;  %v3132_v62 = vrot.slane %v3131_v1, 4  ;;  %4529 = vst [vmem:[#allocation3 + $0x80] sm:$0x1f] %v4513_v9 }
 0x262   :  { %v2997_v48 = vmax.f32 %v2995_v22, %v2996_v58  ;;  %v4266_v16 = vsel %vm4164_vm5, %v2976_v57, %v4265_v40  ;;  %v3114_v5 = vmax.f32 %v3112_v53, %v3113_v2  ;;  %v751_v11 = vmax.f32 %v594_v25, 0.0  ;;  %8316 = vmatpush3.bf16.msra.mxu0 %v8623_v24 }
 0x263   :  { %v4267_v0 = vsel %vm4166_vm6, %v2983_v49, %v4266_v16  ;;  %v3120_v12 = vrot.slane %v3119_v56, 2  ;;  %v3127_v7 = vrot.slane %v3126_v60, 2  ;;  %v3133_v6 = vmax.f32 %v3131_v1, %v3132_v62 }
 0x264   :  { %v4268_v13 = vsel %vm4168_vm7, %v2990_v35, %v4267_v0  ;;  %v3115_v28 = vrot.slane %v3114_v5, 1  ;;  %v1389_v15 = vcombine.high %v751_v11, %v751_v11  ;;  %v1396_v33 = vrot.slane %v751_v11, %v8957_v52 }
 0x265   :  { %v4269_v20 = vsel %vm4170_vm8, %v2997_v48, %v4268_v13  ;;  %v3121_v50 = vmax.f32 %v3119_v56, %v3120_v12  ;;  %v3128_v27 = vmax.f32 %v3126_v60, %v3127_v7  ;;  %v3134_v31 = vrot.slane %v3133_v6, 2 }
 0x266   :  { %v3116_v40 = vmax.f32 %v3114_v5, %v3115_v28  ;;  %v1403_v25 = vrot.slane %v1389_v15, %v8957_v52  ;;  %v1404_v32 = vcombine.high %v1396_v33, %v1396_v33  ;;  %v3054_v47 = vsel %vm2157_vm1, %v1396_v33, -inf  ;;  %4528 = vst [vmem:[#allocation3 + $0x78] sm:$0xff] %v4269_v20 }
 0x267   :  { %v3122_v34 = vrot.slane %v3121_v50, 1  ;;  %v3129_v37 = vrot.slane %v3128_v27, 1  ;;  %v3135_v10 = vmax.f32 %v3133_v6, %v3134_v31  ;;  %v3055_v26 = vrot.slane %v3054_v47, 4 }
 0x268   :  { %v1405_v59 = vcombine.high %v1403_v25, %v1403_v25  ;;  %v3061_v43 = vsel %vm2157_vm1, %v1404_v32, -inf  ;;  %v3068_v41 = vsel %vm2157_vm1, %v1403_v25, -inf  ;;  %v605_v44 = vadd.f32 %v9463_v42, %v9345_v63 }
 0x269   :  { %v3123_v21 = vmax.f32 %v3121_v50, %v3122_v34  ;;  %v3130_v46 = vmax.f32 %v3128_v27, %v3129_v37  ;;  %v3136_v39 = vrot.slane %v3135_v10, 1  ;;  %v3056_v17 = vmax.f32 %v3054_v47, %v3055_v26  ;;  %v9664_v50 = vpop.f32.mrb[46].mxu0 }
 0x26a   :  { %v3062_v51 = vrot.slane %v3061_v43, 4  ;;  %v3069_v22 = vrot.slane %v3068_v41, 4  ;;  %v3075_v53 = vsel %vm2157_vm1, %v1405_v59, -inf  ;;  %v754_v4 = vmax.f32 %v605_v44, 0.0 }
 0x26b   :  { %v3137_v24 = vmax.f32 %v3135_v10, %v3136_v39  ;;  %v4284_v3 = vsel %vm4158_vm2, %v3123_v21, %v3116_v40  ;;  %v3057_v54 = vrot.slane %v3056_v17, 2  ;;  %v3076_v55 = vrot.slane %v3075_v53, 4 }
 0x26c   :  { %v4285_v1 = vsel %vm4160_vm3, %v3130_v46, %v4284_v3  ;;  %v3063_v57 = vmax.f32 %v3061_v43, %v3062_v51  ;;  %v3070_v49 = vmax.f32 %v3068_v41, %v3069_v22  ;;  %v1440_v58 = vcombine.high %v754_v4, %v754_v4 }
 0x26d   :  { %v3058_v63 = vmax.f32 %v3056_v17, %v3057_v54  ;;  %v3077_v2 = vmax.f32 %v3075_v53, %v3076_v55  ;;  %v1447_v9 = vrot.slane %v754_v4, %v8957_v52  ;;  %v4286_v35 = vsel %vm4162_vm4, %v3137_v24, %v4285_v1 }
 0x26e   :  { %v3064_v56 = vrot.slane %v3063_v57, 2  ;;  %v3071_v60 = vrot.slane %v3070_v49, 2  ;;  %v1454_v62 = vrot.slane %v1440_v58, %v8957_v52  ;;  %v597_v48 = vadd.f32 %v9463_v42, %v9353_v14 }
 0x26f   :  { %v3059_v16 = vrot.slane %v3058_v63, 1  ;;  %v3078_v5 = vrot.slane %v3077_v2, 2  ;;  %v1455_v11 = vcombine.high %v1447_v9, %v1447_v9  ;;  %v3138_v0 = vsel %vm2157_vm1, %v1447_v9, -inf }
 0x270   :  { %v3065_v12 = vmax.f32 %v3063_v57, %v3064_v56  ;;  %v3072_v7 = vmax.f32 %v3070_v49, %v3071_v60  ;;  %v1456_v6 = vcombine.high %v1454_v62, %v1454_v62  ;;  %v3139_v13 = vrot.slane %v3138_v0, 4 }
 0x271   :  { %v3060_v28 = vmax.f32 %v3058_v63, %v3059_v16  ;;  %v3079_v15 = vmax.f32 %v3077_v2, %v3078_v5  ;;  %v3145_v33 = vsel %vm2157_vm1, %v1455_v11, -inf  ;;  %v3152_v20 = vsel %vm2157_vm1, %v1454_v62, -inf  ;;  %v9674_v62 = vpop.f32.mrb[47].mxu0 }
 0x272   :  { %v3066_v27 = vrot.slane %v3065_v12, 1  ;;  %v3073_v31 = vrot.slane %v3072_v7, 1  ;;  %v3140_v14 = vmax.f32 %v3138_v0, %v3139_v13  ;;  %v3146_v40 = vrot.slane %v3145_v33, 4 }
 0x273   :  { %v3080_v25 = vrot.slane %v3079_v15, 1  ;;  %v3153_v32 = vrot.slane %v3152_v20, 4  ;;  %v3159_v47 = vsel %vm2157_vm1, %v1456_v6, -inf  ;;  %v752_v34 = vmax.f32 %v597_v48, 0.0 }
 0x274   :  { %v3067_v37 = vmax.f32 %v3065_v12, %v3066_v27  ;;  %v3074_v10 = vmax.f32 %v3072_v7, %v3073_v31  ;;  %v3141_v26 = vrot.slane %v3140_v14, 2  ;;  %v3147_v59 = vmax.f32 %v3145_v33, %v3146_v40  ;;  %v4553_v27 = vld [vmem:[#allocation3 + $0x3f] sm:$0xff] }
 0x275   :  { %v3081_v43 = vmax.f32 %v3079_v15, %v3080_v25  ;;  %v3154_v41 = vmax.f32 %v3152_v20, %v3153_v32  ;;  %v3160_v44 = vrot.slane %v3159_v47, 4  ;;  %v1406_v21 = vcombine.high %v752_v34, %v752_v34  ;;  %v4552_v20 = vld [vmem:[#allocation3 + $0x37] sm:$0xff] }
 0x276   :  { %v4277_v46 = vsel %vm4158_vm2, %v3067_v37, %v3060_v28  ;;  %v3142_v39 = vmax.f32 %v3140_v14, %v3141_v26  ;;  %v3148_v17 = vrot.slane %v3147_v59, 2  ;;  %v1413_v51 = vrot.slane %v752_v34, %v8957_v52  ;;  %v4599_v32 = vld [vmem:[#allocation3 + $0x32] sm:$0xff] }
 0x277   :  { %v4278_v22 = vsel %vm4160_vm3, %v3074_v10, %v4277_v46  ;;  %v3155_v53 = vrot.slane %v3154_v41, 2  ;;  %v3161_v4 = vmax.f32 %v3159_v47, %v3160_v44  ;;  %v1420_v24 = vrot.slane %v1406_v21, %v8957_v52  ;;  %v4598_v44 = vld [vmem:[#allocation3 + $0x2a] sm:$0xff]  ;;  %v4536_v21 = vld [vmem:[#allocation3 + $0x36] sm:$0xff]  ;;  %v4537_v46 = vld [vmem:[#allocation3 + $0x3e] sm:$0xff] }
 0x278   :  { %v3143_v3 = vrot.slane %v3142_v39, 1  ;;  %v3149_v54 = vmax.f32 %v3147_v59, %v3148_v17  ;;  %v1421_v55 = vcombine.high %v1413_v51, %v1413_v51  ;;  %v3082_v1 = vsel %vm2157_vm1, %v1413_v51, -inf }
 0x279   :  { %v3156_v57 = vmax.f32 %v3154_v41, %v3155_v53  ;;  %v3162_v49 = vrot.slane %v3161_v4, 2  ;;  %v1422_v58 = vcombine.high %v1420_v24, %v1420_v24  ;;  %v3083_v63 = vrot.slane %v3082_v1, 4 }
 0x27a   :  { %v3144_v2 = vmax.f32 %v3142_v39, %v3143_v3  ;;  %v3150_v9 = vrot.slane %v3149_v54, 1  ;;  %v3089_v56 = vsel %vm2157_vm1, %v1421_v55, -inf  ;;  %v3096_v60 = vsel %vm2157_vm1, %v1420_v24, -inf }
 0x27b   :  { %v3157_v48 = vrot.slane %v3156_v57, 1  ;;  %v3163_v16 = vmax.f32 %v3161_v4, %v3162_v49  ;;  %v3084_v5 = vmax.f32 %v3082_v1, %v3083_v63  ;;  %v3090_v11 = vrot.slane %v3089_v56, 4 }
 0x27c   :  { %v3151_v0 = vmax.f32 %v3149_v54, %v3150_v9  ;;  %v4287_v12 = vsel %vm4164_vm5, %v3144_v2, %v4286_v35  ;;  %v3097_v7 = vrot.slane %v3096_v60, 4  ;;  %v3103_v6 = vsel %vm2157_vm1, %v1422_v58, -inf }
 0x27d   :  { %v3158_v13 = vmax.f32 %v3156_v57, %v3157_v48  ;;  %v3164_v28 = vrot.slane %v3163_v16, 1  ;;  %v3085_v15 = vrot.slane %v3084_v5, 2  ;;  %v3091_v33 = vmax.f32 %v3089_v56, %v3090_v11 }
 0x27e   :  { %v4288_v31 = vsel %vm4166_vm6, %v3151_v0, %v4287_v12  ;;  %v3098_v14 = vmax.f32 %v3096_v60, %v3097_v7  ;;  %v3104_v40 = vrot.slane %v3103_v6, 4  ;;  %v4279_v25 = vsel %vm4162_vm4, %v3081_v43, %v4278_v22 }
 0x27f   :  { %v3165_v47 = vmax.f32 %v3163_v16, %v3164_v28  ;;  %v4289_v34 = vsel %vm4168_vm7, %v3158_v13, %v4288_v31  ;;  %v3086_v35 = vmax.f32 %v3084_v5, %v3085_v15  ;;  %v3092_v37 = vrot.slane %v3091_v33, 2  ;;  %v9693_v5 = vpop.f32.mrb[48].mxu0 }
 0x280   :  { %v3099_v10 = vrot.slane %v3098_v14, 2  ;;  %v3105_v26 = vmax.f32 %v3103_v6, %v3104_v40  ;;  %v618_v59 = vadd.f32 %v9463_v42, %v9373_v19  ;;  %v4626_v41 = vpack.c.bf16 %v4553_v27, %v4552_v20 }
 0x281   :  { %v4290_v39 = vsel %vm4170_vm8, %v3165_v47, %v4289_v34  ;;  %v3087_v17 = vrot.slane %v3086_v35, 1  ;;  %v3093_v51 = vmax.f32 %v3091_v33, %v3092_v37  ;;  %v4624_v43 = vpack.c.bf16 %v4599_v32, %v4598_v44 }
 0x282   :  { %4432 = vst [vmem:[#allocation2 + $0x88] sm:$0xff] %v4290_v39  ;;  %v3100_v22 = vmax.f32 %v3098_v14, %v3099_v10  ;;  %v3106_v53 = vrot.slane %v3105_v26, 2  ;;  %v757_v4 = vmax.f32 %v618_v59, 0.0  ;;  %5033 = vmatprep.mubr.bf16.mxu1 %v4626_v41  ;;  %v610_v24 = vadd.f32 %v9463_v42, %v9392_v36 }
 0x283   :  { %v3088_v3 = vmax.f32 %v3086_v35, %v3087_v17  ;;  %v3094_v54 = vrot.slane %v3093_v51, 1  ;;  %8477 = vmatprep.mubr.bf16.mxu0 %v4624_v43  ;;  %v4625_v19 = vpack.c.bf16 %v4537_v46, %v4536_v21  ;;  %v621_v55 = vadd.f32 %v9463_v42, %v9402_v18  ;;  %v9708_v46 = vpop.f32.mrb[49].mxu0 }
 0x284   :  { %v3101_v1 = vrot.slane %v3100_v22, 1  ;;  %v3107_v57 = vmax.f32 %v3105_v26, %v3106_v53  ;;  %v1491_v49 = vcombine.high %v757_v4, %v757_v4  ;;  %v1498_v58 = vrot.slane %v757_v4, %v8957_v52 }
 0x285   :  { %v3095_v63 = vmax.f32 %v3093_v51, %v3094_v54  ;;  %v4280_v2 = vsel %vm4164_vm5, %v3088_v3, %v4279_v25  ;;  %v755_v9 = vmax.f32 %v610_v24, 0.0  ;;  %5034 = vmatmul.mubr.bf16.gmra.mrb[12].mxu1 %v4625_v19  ;;  %v9690_v56 = vmax.f32 %v621_v55, 0.0 }
 0x286   :  { %v3102_v36 = vmax.f32 %v3100_v22, %v3101_v1  ;;  %v3108_v60 = vrot.slane %v3107_v57, 1  ;;  %v1505_v48 = vrot.slane %v1491_v49, %v8957_v52  ;;  %v1506_v16 = vcombine.high %v1498_v58, %v1498_v58 }
 0x287   :  { %v4281_v18 = vsel %vm4166_vm6, %v3095_v63, %v4280_v2  ;;  %v3222_v42 = vsel %vm2157_vm1, %v1498_v58, -inf  ;;  %v1457_v11 = vcombine.high %v755_v9, %v755_v9  ;;  %v1464_v0 = vrot.slane %v755_v9, %v8957_v52 }
 0x288   :  { %v3109_v12 = vmax.f32 %v3107_v57, %v3108_v60  ;;  %v4282_v7 = vsel %vm4168_vm7, %v3102_v36, %v4281_v18  ;;  %v1507_v6 = vcombine.high %v1505_v48, %v1505_v48  ;;  %v3223_v13 = vrot.slane %v3222_v42, 4 }
 0x289   :  { %v3229_v28 = vsel %vm2157_vm1, %v1506_v16, -inf  ;;  %v3236_v15 = vsel %vm2157_vm1, %v1505_v48, -inf  ;;  %v1471_v33 = vrot.slane %v1457_v11, %v8957_v52  ;;  %v1472_v20 = vcombine.high %v1464_v0, %v1464_v0 }
 0x28a   :  { %v4283_v27 = vsel %vm4170_vm8, %v3109_v12, %v4282_v7  ;;  %v3224_v31 = vmax.f32 %v3222_v42, %v3223_v13  ;;  %v3230_v14 = vrot.slane %v3229_v28, 4  ;;  %v3237_v40 = vrot.slane %v3236_v15, 4 }
 0x28b   :  { %4431 = vst [vmem:[#allocation2 + $0x80] sm:$0xff] %v4283_v27  ;;  %v3243_v25 = vsel %vm2157_vm1, %v1507_v6, -inf  ;;  %v1473_v32 = vcombine.high %v1471_v33, %v1471_v33  ;;  %v3166_v47 = vsel %vm2157_vm1, %v1464_v0, -inf  ;;  %v3173_v34 = vsel %vm2157_vm1, %v1472_v20, -inf }
 0x28c   :  { %v3225_v35 = vrot.slane %v3224_v31, 2  ;;  %v3231_v37 = vmax.f32 %v3229_v28, %v3230_v14  ;;  %v3238_v10 = vmax.f32 %v3236_v15, %v3237_v40  ;;  %v3244_v26 = vrot.slane %v3243_v25, 4 }
 0x28d   :  { %v3167_v59 = vrot.slane %v3166_v47, 4  ;;  %v3174_v41 = vrot.slane %v3173_v34, 4  ;;  %v3180_v44 = vsel %vm2157_vm1, %v1471_v33, -inf  ;;  %v3187_v21 = vsel %vm2157_vm1, %v1473_v32, -inf }
 0x28e   :  { %v3226_v39 = vmax.f32 %v3224_v31, %v3225_v35  ;;  %v3232_v17 = vrot.slane %v3231_v37, 2  ;;  %v3239_v51 = vrot.slane %v3238_v10, 2  ;;  %v3245_v43 = vmax.f32 %v3243_v25, %v3244_v26  ;;  %v9724_v26 = vpop.f32.mrb[50].mxu0 }
 0x28f   :  { %v3168_v22 = vmax.f32 %v3166_v47, %v3167_v59  ;;  %v3175_v53 = vmax.f32 %v3173_v34, %v3174_v41  ;;  %v3181_v4 = vrot.slane %v3180_v44, 4  ;;  %v3188_v24 = vrot.slane %v3187_v21, 4 }
 0x290   :  { %v3227_v3 = vrot.slane %v3226_v39, 1  ;;  %v3233_v54 = vmax.f32 %v3231_v37, %v3232_v17  ;;  %v3240_v19 = vmax.f32 %v3238_v10, %v3239_v51  ;;  %v3246_v55 = vrot.slane %v3245_v43, 2 }
 0x291   :  { %v3169_v1 = vrot.slane %v3168_v22, 2  ;;  %v3176_v57 = vrot.slane %v3175_v53, 2  ;;  %v3182_v49 = vmax.f32 %v3180_v44, %v3181_v4  ;;  %v3189_v58 = vmax.f32 %v3187_v21, %v3188_v24 }
 0x292   :  { %v3228_v63 = vmax.f32 %v3226_v39, %v3227_v3  ;;  %v3234_v2 = vrot.slane %v3233_v54, 1  ;;  %v3241_v9 = vrot.slane %v3240_v19, 1  ;;  %v3247_v36 = vmax.f32 %v3245_v43, %v3246_v55  ;;  %v9710_v60 = vld [vmem:[#allocation2 + $0x7d] sm:$0xff]  ;;  %v9712_v48 = vld [vmem:[#allocation2 + $0x85] sm:$0xff]  ;;  %v4539_v55 = vld [vmem:[#allocation3 + $0x4e] sm:$0xff] }
 0x293   :  { %v3170_v16 = vmax.f32 %v3168_v22, %v3169_v1  ;;  %v3177_v18 = vmax.f32 %v3175_v53, %v3176_v57  ;;  %v3183_v42 = vrot.slane %v3182_v49, 2  ;;  %v3190_v11 = vrot.slane %v3189_v58, 2  ;;  %6210 = vst [vmem:[#allocation3 + $0x90] sm:$0xff] %v9710_v60  ;;  %6211 = vst [vmem:[#allocation3 + $0x98] sm:$0xff] %v9712_v48  ;;  %v4554_v43 = vld [vmem:[#allocation3 + $0x47] sm:$0xff]  ;;  %v4555_v22 = vld [vmem:[#allocation3 + $0x4f] sm:$0xff] }
 0x294   :  { %v3235_v0 = vmax.f32 %v3233_v54, %v3234_v2  ;;  %v3242_v12 = vmax.f32 %v3240_v19, %v3241_v9  ;;  %v3248_v7 = vrot.slane %v3247_v36, 1  ;;  %v1508_v6 = vcombine.high %v9690_v56, %v9690_v56  ;;  %v4601_v54 = vld [vmem:[#allocation3 + $0x42] sm:$0xff]  ;;  %v4556_v2 = vld [vmem:[#allocation3 + $0x57] sm:$0xff] }
 0x295   :  { %v3171_v13 = vrot.slane %v3170_v16, 1  ;;  %v3178_v28 = vrot.slane %v3177_v18, 1  ;;  %v3184_v15 = vmax.f32 %v3182_v49, %v3183_v42  ;;  %v3191_v33 = vmax.f32 %v3189_v58, %v3190_v11  ;;  %v4538_v19 = vld [vmem:[#allocation3 + $0x46] sm:$0xff]  ;;  %v9732_v49 = vld [vmem:[#allocation6] ss:$0 sm:$0xff] }
 0x296   :  { %v3249_v20 = vmax.f32 %v3247_v36, %v3248_v7  ;;  %v4298_v27 = vsel %vm4158_vm2, %v3235_v0, %v3228_v63  ;;  %v1515_v31 = vrot.slane %v9690_v56, %v8957_v52  ;;  %v1522_v14 = vrot.slane %v1508_v6, %v8957_v52  ;;  %v4557_v9 = vld [vmem:[#allocation3 + $0x5f] sm:$0xff] }
 0x297   :  { %v4299_v40 = vsel %vm4160_vm3, %v3242_v12, %v4298_v27  ;;  %v3172_v25 = vmax.f32 %v3170_v16, %v3171_v13  ;;  %v3179_v32 = vmax.f32 %v3177_v18, %v3178_v28  ;;  %v3185_v47 = vrot.slane %v3184_v15, 1  ;;  %v4600_v11 = vld [vmem:[#allocation3 + $0x3a] sm:$0xff]  ;;  %v4603_v13 = vld [vmem:[#allocation3 + $0x52] sm:$0xff] }
 0x298   :  { %v3192_v34 = vrot.slane %v3191_v33, 1  ;;  %v1523_v35 = vcombine.high %v1515_v31, %v1515_v31  ;;  %v1524_v37 = vcombine.high %v1522_v14, %v1522_v14  ;;  %v3250_v10 = vsel %vm2157_vm1, %v1515_v31, -inf }
 0x299   :  { %v3186_v59 = vmax.f32 %v3184_v15, %v3185_v47  ;;  %v4291_v41 = vsel %vm4158_vm2, %v3179_v32, %v3172_v25  ;;  %v3251_v44 = vrot.slane %v3250_v10, 4  ;;  %v3264_v56 = vsel %vm2157_vm1, %v1522_v14, -inf  ;;  %v4602_v14 = vld [vmem:[#allocation3 + $0x4a] sm:$0xff] }
 0x29a   :  { %v3193_v21 = vmax.f32 %v3191_v33, %v3192_v34  ;;  %v3257_v39 = vsel %vm2157_vm1, %v1523_v35, -inf  ;;  %v3265_v17 = vrot.slane %v3264_v56, 4  ;;  %v3271_v51 = vsel %vm2157_vm1, %v1524_v37, -inf }
 0x29b   :  { %v4292_v53 = vsel %vm4160_vm3, %v3186_v59, %v4291_v41  ;;  %v3252_v4 = vmax.f32 %v3250_v10, %v3251_v44  ;;  %v3258_v24 = vrot.slane %v3257_v39, 4  ;;  %v3272_v3 = vrot.slane %v3271_v51, 4 }
 0x29c   :  { %v3266_v1 = vmax.f32 %v3264_v56, %v3265_v17  ;;  %v4300_v57 = vsel %vm4162_vm4, %v3249_v20, %v4299_v40  ;;  %v613_v58 = vadd.f32 %v9732_v49, %v9404_v61  ;;  %v9737_v63 = vsel %vm4162_vm4, %v3193_v21, %v4292_v53  ;;  %v4540_v21 = vld [vmem:[#allocation3 + $0x56] sm:$0xff]  ;;  %v9742_v17 = vpop.f32.mrb[51].mxu0 }
 0x29d   :  { %v3253_v36 = vrot.slane %v3252_v4, 2  ;;  %v3259_v16 = vmax.f32 %v3257_v39, %v3258_v24  ;;  %v3273_v18 = vmax.f32 %v3271_v51, %v3272_v3  ;;  %v4631_v42 = vpack.c.bf16 %v4555_v22, %v4554_v43  ;;  %v4541_v39 = vld [vmem:[#allocation3 + $0x5e] sm:$0xff]  ;;  %v4559_v24 = vld [vmem:[#allocation3 + $0x6f] sm:$0xff] }
 0x29e   :  { %v3267_v0 = vrot.slane %v3266_v1, 2  ;;  %v756_v12 = vmax.f32 %v613_v58, 0.0  ;;  %v4629_v7 = vpack.c.bf16 %v4601_v54, %v4600_v11  ;;  %v4630_v6 = vpack.c.bf16 %v4539_v55, %v4538_v19 }
 0x29f   :  { %v3254_v28 = vmax.f32 %v3252_v4, %v3253_v36  ;;  %v3260_v15 = vrot.slane %v3259_v16, 2  ;;  %v3274_v33 = vrot.slane %v3273_v18, 2  ;;  %5041 = vmatprep.mubr.bf16.mxu1 %v4631_v42  ;;  %v4636_v61 = vpack.c.bf16 %v4557_v9, %v4556_v2  ;;  %v4558_v4 = vld [vmem:[#allocation3 + $0x67] sm:$0xff] }
 0x2a0   :  { %v3268_v20 = vmax.f32 %v3266_v1, %v3267_v0  ;;  %v1474_v27 = vcombine.high %v756_v12, %v756_v12  ;;  %v1481_v31 = vrot.slane %v756_v12, %v8957_v52  ;;  %8478 = vmatmul.mubr.bf16.gmra.mrb[68].mxu0 %v4629_v7  ;;  %5042 = vmatmul.mubr.bf16.gmra.mrb[16].mxu1 %v4630_v6  ;;  %v4605_v1 = vld [vmem:[#allocation3 + $0x62] sm:$0xff]  ;;  %v4543_v42 = vld [vmem:[#allocation3 + $0x6e] sm:$0xff] }
 0x2a1   :  { %v3255_v40 = vrot.slane %v3254_v28, 1  ;;  %v3261_v25 = vmax.f32 %v3259_v16, %v3260_v15  ;;  %v3275_v32 = vmax.f32 %v3273_v18, %v3274_v33  ;;  %5049 = vmatprep.mubr.bf16.mxu1 %v4636_v61  ;;  %v4634_v47 = vpack.c.bf16 %v4603_v13, %v4602_v14  ;;  %v4604_v16 = vld [vmem:[#allocation3 + $0x5a] sm:$0xff]  ;;  %v4542_v18 = vld [vmem:[#allocation3 + $0x66] sm:$0xff] }
 0x2a2   :  { %v3269_v34 = vrot.slane %v3268_v20, 1  ;;  %v1488_v35 = vrot.slane %v1474_v27, %v8957_v52  ;;  %v1489_v37 = vcombine.high %v1481_v31, %v1481_v31  ;;  %v3194_v10 = vsel %vm2157_vm1, %v1481_v31, -inf  ;;  %v4561_v6 = vld [vmem:[#allocation3 + $0x7f] sm:$0x1f]  ;;  %v4606_v13 = vld [vmem:[#allocation3 + $0x6a] sm:$0xff] }
 0x2a3   :  { %v3256_v59 = vmax.f32 %v3254_v28, %v3255_v40  ;;  %v3262_v41 = vrot.slane %v3261_v25, 1  ;;  %v3276_v44 = vrot.slane %v3275_v32, 1  ;;  %v3195_v56 = vrot.slane %v3194_v10, 4  ;;  %8481 = vmatprep.mubr.bf16.mxu0 %v4634_v47  ;;  %v4607_v28 = vld [vmem:[#allocation3 + $0x72] sm:$0xff]  ;;  %v4608_v27 = vld [vmem:[#allocation3 + $0x7a] sm:$0xff] }
 0x2a4   :  { %v3270_v51 = vmax.f32 %v3268_v20, %v3269_v34  ;;  %v1490_v43 = vcombine.high %v1488_v35, %v1488_v35  ;;  %v3201_v22 = vsel %vm2157_vm1, %v1489_v37, -inf  ;;  %v3208_v53 = vsel %vm2157_vm1, %v1488_v35, -inf  ;;  %v9750_v20 = vld [vmem:[#allocation3 + $0x7e] sm:$0x1f]  ;;  %v9753_v34 = vld [vmem:[#allocation3 + $0x11] sm:$0xff] }
 0x2a5   :  { %v3263_v3 = vmax.f32 %v3261_v25, %v3262_v41  ;;  %v3277_v54 = vmax.f32 %v3275_v32, %v3276_v44  ;;  %v4301_v19 = vsel %vm4164_vm5, %v3256_v59, %v4300_v57  ;;  %v3196_v55 = vmax.f32 %v3194_v10, %v3195_v56  ;;  %v4609_v31 = vld [vmem:[#allocation3 + $0x82] sm:$0x1f]  ;;  %v4560_v47 = vld [vmem:[#allocation3 + $0x77] sm:$0xff]  ;;  %v9757_v44 = vld [vmem:[#allocation3 + $0x8] sm:$0xff] }
 0x2a6   :  { %v3202_v58 = vrot.slane %v3201_v22, 4  ;;  %v3209_v2 = vrot.slane %v3208_v53, 4  ;;  %v3215_v9 = vsel %vm2157_vm1, %v1490_v43, -inf  ;;  %v4635_v36 = vpack.c.bf16 %v4541_v39, %v4540_v21  ;;  %v9755_v41 = vld [vmem:[#allocation3 + $0x76] sm:$0xff] }
 0x2a7   :  { %v4302_v11 = vsel %vm4166_vm6, %v3263_v3, %v4301_v19  ;;  %v3197_v0 = vrot.slane %v3196_v55, 2  ;;  %v3216_v12 = vrot.slane %v3215_v9, 4  ;;  %v4641_v7 = vpack.c.bf16 %v4559_v24, %v4558_v4  ;;  %v9759_v56 = vld [vmem:[#allocation3 + $0x10] sm:$0xff]  ;;  %v9771_v19 = vpop.f32.mrb[52].mxu0 }
 0x2a8   :  { %v4303_v57 = vsel %vm4168_vm7, %v3270_v51, %v4302_v11  ;;  %v3203_v15 = vmax.f32 %v3201_v22, %v3202_v58  ;;  %v3210_v33 = vmax.f32 %v3208_v53, %v3209_v2  ;;  %5050 = vmatmul.mubr.bf16.gmra.mrb[20].mxu1 %v4635_v36  ;;  %v4639_v61 = vpack.c.bf16 %v4605_v1, %v4604_v16  ;;  %v9763_v22 = vld [vmem:[#allocation3 + $0x9] sm:$0xff]  ;;  %v9765_v53 = vld [vmem:[#allocation3 + $0x21] sm:$0xff] }
 0x2a9   :  { %v4304_v14 = vsel %vm4170_vm8, %v3277_v54, %v4303_v57  ;;  %v3198_v40 = vmax.f32 %v3196_v55, %v3197_v0  ;;  %v3217_v25 = vmax.f32 %v3215_v9, %v3216_v12  ;;  %5057 = vmatprep.mubr.bf16.mxu1 %v4641_v7  ;;  %v4640_v32 = vpack.c.bf16 %v4543_v42, %v4542_v18  ;;  %v9777_v9 = vld [vmem:[#allocation3 + $0x19] sm:$0xff] }
 0x2aa   :  { %4434 = vst [vmem:[#allocation2 + $0x98] sm:$0xff] %v4304_v14  ;;  %v3204_v35 = vrot.slane %v3203_v15, 2  ;;  %v3211_v37 = vrot.slane %v3210_v33, 2  ;;  %8482 = vmatmul.mubr.bf16.gmra.mrb[72].mxu0 %v4639_v61  ;;  %v4646_v10 = vpack.c.bf16 %v4561_v6, %v4560_v47  ;;  %v4644_v59 = vpack.c.bf16 %v4607_v28, %v4606_v13 }
 0x2ab   :  { %v3199_v21 = vrot.slane %v3198_v40, 1  ;;  %v3218_v39 = vrot.slane %v3217_v25, 2  ;;  %v4645_v51 = vpack.c.bf16 %v9750_v20, %v9755_v41  ;;  %v4649_v43 = vpack.c.bf16 %v4609_v31, %v4608_v27 }
 0x2ac   :  { %v3205_v4 = vmax.f32 %v3203_v15, %v3204_v35  ;;  %v3212_v24 = vmax.f32 %v3210_v33, %v3211_v37  ;;  %8485 = vmatprep.mubr.bf16.mxu0 %v4644_v59  ;;  %v4613_v3 = vpack.c.bf16 %v9753_v34, %v9763_v22  ;;  %v634_v54 = vadd.f32 %v9732_v49, %v9514_v38 }
 0x2ad   :  { %v3200_v55 = vmax.f32 %v3198_v40, %v3199_v21  ;;  %v3219_v1 = vmax.f32 %v3217_v25, %v3218_v39  ;;  %v626_v58 = vadd.f32 %v9732_v49, %v9545_v8  ;;  %v4612_v2 = vpack.c.bf16 %v9759_v56, %v9757_v44 }
 0x2ae   :  { %v3206_v36 = vrot.slane %v3205_v4, 1  ;;  %v3213_v16 = vrot.slane %v3212_v24, 1  ;;  %v761_v18 = vmax.f32 %v634_v54, 0.0  ;;  %v4618_v42 = vpack.c.bf16 %v9765_v53, %v9777_v9 }
 0x2af   :  { %v3220_v11 = vrot.slane %v3219_v1, 1  ;;  %v4294_v38 = vsel %vm4164_vm5, %v3200_v55, %v9737_v63  ;;  %v759_v0 = vmax.f32 %v626_v58, 0.0  ;;  %v637_v12 = vadd.f32 %v9732_v49, %v9560_v29  ;;  %v9801_v55 = vpop.f32.mrb[53].mxu0 }
 0x2b0   :  { %v3207_v8 = vmax.f32 %v3205_v4, %v3206_v36  ;;  %v3214_v7 = vmax.f32 %v3212_v24, %v3213_v16  ;;  %5058 = vmatmul.mubr.bf16.gmra.mrb[24].mxu1 %v4640_v32  ;;  %v1559_v6 = vcombine.high %v761_v18, %v761_v18  ;;  %v1566_v13 = vrot.slane %v761_v18, %v8957_v52 }
 0x2b1   :  { %v3221_v28 = vmax.f32 %v3219_v1, %v3220_v11  ;;  %5065 = vmatprep.mubr.bf16.mxu1 %v4646_v10  ;;  %v1525_v57 = vcombine.high %v759_v0, %v759_v0  ;;  %v1532_v15 = vrot.slane %v759_v0, %v8957_v52  ;;  %v9787_v33 = vmax.f32 %v637_v12, 0.0 }
 0x2b2   :  { %v4295_v61 = vsel %vm4166_vm6, %v3207_v8, %v4294_v38  ;;  %8486 = vmatmul.mubr.bf16.gmra.mrb[76].mxu0 %v4649_v43  ;;  %v1573_v63 = vrot.slane %v1559_v6, %v8957_v52  ;;  %v1574_v20 = vcombine.high %v1566_v13, %v1566_v13  ;;  %v3334_v29 = vsel %vm2157_vm1, %v1566_v13, -inf }
 0x2b3   :  { %v4296_v27 = vsel %vm4168_vm7, %v3214_v7, %v4295_v61  ;;  %v3335_v31 = vrot.slane %v3334_v29, 4  ;;  %v1539_v14 = vrot.slane %v1525_v57, %v8957_v52  ;;  %v1540_v40 = vcombine.high %v1532_v15, %v1532_v15  ;;  %v9804_v61 = vpop.f32.mrb[54].mxu0 }
 0x2b4   :  { %v4297_v25 = vsel %vm4170_vm8, %v3221_v28, %v4296_v27  ;;  %v1575_v32 = vcombine.high %v1573_v63, %v1573_v63  ;;  %v3341_v47 = vsel %vm2157_vm1, %v1574_v20, -inf  ;;  %v3348_v34 = vsel %vm2157_vm1, %v1573_v63, -inf }
 0x2b5   :  { %4433 = vst [vmem:[#allocation2 + $0x90] sm:$0xff] %v4297_v25  ;;  %v3336_v35 = vmax.f32 %v3334_v29, %v3335_v31  ;;  %v3342_v37 = vrot.slane %v3341_v47, 4  ;;  %v3349_v10 = vrot.slane %v3348_v34, 4  ;;  %v1541_v59 = vcombine.high %v1539_v14, %v1539_v14  ;;  %v8619_v25 = vld [vmem:[%s11134_s3] sm:$0xff]  }
 0x2b6   :  { %v3355_v41 = vsel %vm2157_vm1, %v1575_v32, -inf  ;;  %v3278_v21 = vsel %vm2157_vm1, %v1532_v15, -inf  ;;  %v3285_v39 = vsel %vm2157_vm1, %v1540_v40, -inf  ;;  %v3292_v43 = vsel %vm2157_vm1, %v1539_v14, -inf }
 0x2b7   :  { %v3337_v22 = vrot.slane %v3336_v35, 2  ;;  %v3343_v4 = vmax.f32 %v3341_v47, %v3342_v37  ;;  %v3350_v24 = vmax.f32 %v3348_v34, %v3349_v10  ;;  %v3356_v54 = vrot.slane %v3355_v41, 4  ;;  %v8624_v37 = vld [vmem:[%s11134_s3 + $0x48] sm:$0xff]  }
 0x2b8   :  { %5066 = vmatmul.mubr.bf16.gmra.mrb[28].mxu1 %v4645_v51  ;;  %v3279_v1 = vrot.slane %v3278_v21, 4  ;;  %v3286_v58 = vrot.slane %v3285_v39, 4  ;;  %v3293_v36 = vrot.slane %v3292_v43, 4  ;;  %v3299_v16 = vsel %vm2157_vm1, %v1541_v59, -inf }
 0x2b9   :  { %5106 = vmatprep.mubr.bf16.mxu1 %v4613_v3  ;;  %v3338_v18 = vmax.f32 %v3336_v35, %v3337_v22  ;;  %v3344_v11 = vrot.slane %v3343_v4, 2  ;;  %v3351_v38 = vrot.slane %v3350_v24, 2  ;;  %v3357_v0 = vmax.f32 %v3355_v41, %v3356_v54 }
 0x2ba   :  { %v3280_v12 = vmax.f32 %v3278_v21, %v3279_v1  ;;  %v3287_v8 = vmax.f32 %v3285_v39, %v3286_v58  ;;  %v3294_v7 = vmax.f32 %v3292_v43, %v3293_v36  ;;  %v3300_v6 = vrot.slane %v3299_v16, 4  ;;  %v8625_v58 = vld [vmem:[%s11134_s3 + $0x8] sm:$0xff]  }
 0x2bb   :  { %v3339_v13 = vrot.slane %v3338_v18, 1  ;;  %v3345_v28 = vmax.f32 %v3343_v4, %v3344_v11  ;;  %v3352_v57 = vmax.f32 %v3350_v24, %v3351_v38  ;;  %v3358_v15 = vrot.slane %v3357_v0, 2 }
 0x2bc   :  { %v3281_v51 = vrot.slane %v3280_v12, 2  ;;  %v3288_v63 = vrot.slane %v3287_v8, 2  ;;  %v3295_v20 = vrot.slane %v3294_v7, 2  ;;  %v3301_v29 = vmax.f32 %v3299_v16, %v3300_v6  ;;  %v6195_v27 = vld [vmem:[#allocation2 + $0x8d] sm:$0xff] }
 0x2bd   :  { %v3340_v3 = vmax.f32 %v3338_v18, %v3339_v13  ;;  %v3346_v31 = vrot.slane %v3345_v28, 1  ;;  %v3353_v14 = vrot.slane %v3352_v57, 1  ;;  %v3359_v40 = vmax.f32 %v3357_v0, %v3358_v15  ;;  %6212 = vst [vmem:[#allocation3 + $0xa0] sm:$0xff] %v6195_v27  ;;  %v8627_v13 = vld [vmem:[%s11134_s3 + $0x10] sm:$0xff]  }
 0x2be   :  { %v3282_v32 = vmax.f32 %v3280_v12, %v3281_v51  ;;  %v3289_v47 = vmax.f32 %v3287_v8, %v3288_v63  ;;  %v3296_v34 = vmax.f32 %v3294_v7, %v3295_v20  ;;  %v3302_v35 = vrot.slane %v3301_v29, 2 }
 0x2bf   :  { %v3347_v10 = vmax.f32 %v3345_v28, %v3346_v31  ;;  %v3354_v59 = vmax.f32 %v3352_v57, %v3353_v14  ;;  %v3360_v41 = vrot.slane %v3359_v40, 1  ;;  %v1576_v21 = vcombine.high %v9787_v33, %v9787_v33 }
 0x2c0   :  { %v3283_v39 = vrot.slane %v3282_v32, 1  ;;  %v3290_v43 = vrot.slane %v3289_v47, 1  ;;  %v3297_v22 = vrot.slane %v3296_v34, 1  ;;  %v3303_v4 = vmax.f32 %v3301_v29, %v3302_v35  ;;  %5107 = vmatmul.mubr.bf16.vlgmr.msra.gmra.mrb[32].mxu1 %v4612_v2  ;;  %v8626_v2 = vld [vmem:[%s11134_s3 + $0x50] sm:$0xff]  }
 0x2c1   :  { %v3361_v24 = vmax.f32 %v3359_v40, %v3360_v41  ;;  %v4312_v54 = vsel %vm4158_vm2, %v3347_v10, %v3340_v3  ;;  %8238 = vmatpush3.bf16.msra.mxu1 %v8619_v25  ;;  %5114 = vmatprep.mubr.bf16.mxu1 %v4618_v42  ;;  %v1583_v1 = vrot.slane %v9787_v33, %v8957_v52  ;;  %v8629_v10 = vld [vmem:[%s11134_s3 + $0x18] sm:$0xff]  }
 0x2c2   :  { %v4313_v36 = vsel %vm4160_vm3, %v3354_v59, %v4312_v54  ;;  %v3284_v16 = vmax.f32 %v3282_v32, %v3283_v39  ;;  %v3291_v44 = vmax.f32 %v3289_v47, %v3290_v43  ;;  %v3298_v56 = vmax.f32 %v3296_v34, %v3297_v22  ;;  %8239 = vmatprep.subr.bf16.mxu1 %v8624_v37  ;;  %v6274_v32 = vld [vmem:[#allocation3 + $0x91] sm:$0xff] }
 0x2c3   :  { %v3304_v18 = vrot.slane %v3303_v4, 1  ;;  %v1590_v53 = vrot.slane %v1576_v21, %v8957_v52  ;;  %v1591_v9 = vcombine.high %v1583_v1, %v1583_v1  ;;  %v3362_v42 = vsel %vm2157_vm1, %v1583_v1, -inf }
 0x2c4   :  { %v4305_v33 = vsel %vm4158_vm2, %v3291_v44, %v3284_v16  ;;  %v3363_v11 = vrot.slane %v3362_v42, 4  ;;  %v4314_v38 = vsel %vm4162_vm4, %v3361_v24, %v4313_v36  ;;  %v629_v0 = vadd.f32 %v9732_v49, %v9605_v45  ;;  %v6275_v63 = vld [vmem:[#allocation3 + $0x99] sm:$0xff]  ;;  %v9857_v36 = vpop.f32.mrb[55].mxu0 }
 0x2c5   :  { %v3305_v12 = vmax.f32 %v3303_v4, %v3304_v18  ;;  %v4306_v8 = vsel %vm4160_vm3, %v3298_v56, %v4305_v33  ;;  %v1592_v7 = vcombine.high %v1590_v53, %v1590_v53  ;;  %v3369_v6 = vsel %vm2157_vm1, %v1591_v9, -inf  ;;  %8240 = vmatpush3.bf16.msra.mxu1 %v8625_v58  ;;  %v8628_v45 = vld [vmem:[%s11134_s3 + $0x58] sm:$0xff]  }
 0x2c6   :  { %v3364_v28 = vmax.f32 %v3362_v42, %v3363_v11  ;;  %v3370_v57 = vrot.slane %v3369_v6, 4  ;;  %v3376_v15 = vsel %vm2157_vm1, %v1590_v53, -inf  ;;  %v760_v51 = vmax.f32 %v629_v0, 0.0  ;;  %8241 = vmatprep.subr.bf16.mxu1 %v8626_v2 }
 0x2c7   :  { %v3377_v20 = vrot.slane %v3376_v15, 4  ;;  %v3383_v29 = vsel %vm2157_vm1, %v1592_v7, -inf  ;;  %v9847_v27 = vsel %vm4162_vm4, %v3305_v12, %v4306_v8  ;;  %v650_v3 = vadd.f32 %v9732_v49, %v9637_v23 }
 0x2c8   :  { %v3365_v31 = vrot.slane %v3364_v28, 2  ;;  %v3371_v14 = vmax.f32 %v3369_v6, %v3370_v57  ;;  %v3384_v40 = vrot.slane %v3383_v29, 4  ;;  %v1542_v25 = vcombine.high %v760_v51, %v760_v51 }
 0x2c9   :  { %v3378_v47 = vmax.f32 %v3376_v15, %v3377_v20  ;;  %v1549_v34 = vrot.slane %v760_v51, %v8957_v52  ;;  %v765_v35 = vmax.f32 %v650_v3, 0.0  ;;  %v6309_v37 = vpack.c.bf16 %v6275_v63, %v6274_v32  ;;  %8242 = vmatpush3.bf16.msra.mxu1 %v8627_v13  ;;  %v9865_v3 = vpop.f32.mrb[56].mxu0 }
 0x2ca   :  { %v3366_v59 = vmax.f32 %v3364_v28, %v3365_v31  ;;  %v3372_v41 = vrot.slane %v3371_v14, 2  ;;  %v3385_v21 = vmax.f32 %v3383_v29, %v3384_v40  ;;  %v1556_v23 = vrot.slane %v1542_v25, %v8957_v52  ;;  %8243 = vmatprep.subr.bf16.mxu1 %v8628_v45 }
 0x2cb   :  { %v3379_v39 = vrot.slane %v3378_v47, 2  ;;  %v1557_v43 = vcombine.high %v1549_v34, %v1549_v34  ;;  %v3306_v22 = vsel %vm2157_vm1, %v1549_v34, -inf  ;;  %v1627_v4 = vcombine.high %v765_v35, %v765_v35  ;;  %6802 = vmatprep.mubr.bf16.mxu0 %v6309_v37 }
 0x2cc   :  { %v3367_v24 = vrot.slane %v3366_v59, 1  ;;  %v3373_v54 = vmax.f32 %v3371_v14, %v3372_v41  ;;  %v3386_v1 = vrot.slane %v3385_v21, 2  ;;  %v1558_v58 = vcombine.high %v1556_v23, %v1556_v23 }
 0x2cd   :  { %v3380_v16 = vmax.f32 %v3378_v47, %v3379_v39  ;;  %v3307_v44 = vrot.slane %v3306_v22, 4  ;;  %v3313_v56 = vsel %vm2157_vm1, %v1557_v43, -inf  ;;  %v3320_v2 = vsel %vm2157_vm1, %v1556_v23, -inf  ;;  %8244 = vmatpush3.bf16.msra.mxu1 %v8629_v10 }
 0x2ce   :  { %v3368_v18 = vmax.f32 %v3366_v59, %v3367_v24  ;;  %v3374_v53 = vrot.slane %v3373_v54, 1  ;;  %v3387_v9 = vmax.f32 %v3385_v21, %v3386_v1  ;;  %v3314_v42 = vrot.slane %v3313_v56, 4 }
 0x2cf   :  { %v3381_v33 = vrot.slane %v3380_v16, 1  ;;  %v3308_v11 = vmax.f32 %v3306_v22, %v3307_v44  ;;  %v3321_v0 = vrot.slane %v3320_v2, 4  ;;  %v3327_v12 = vsel %vm2157_vm1, %v1558_v58, -inf }
 0x2d0   :  { %v3375_v8 = vmax.f32 %v3373_v54, %v3374_v53  ;;  %v3388_v7 = vrot.slane %v3387_v9, 1  ;;  %v4315_v6 = vsel %vm4164_vm5, %v3368_v18, %v4314_v38  ;;  %v3315_v13 = vmax.f32 %v3313_v56, %v3314_v42  ;;  %v4564_v53 = vld [vmem:[#allocation3 + $0x18] sm:$0xff] }
 0x2d1   :  { %v3382_v28 = vmax.f32 %v3380_v16, %v3381_v33  ;;  %v3309_v57 = vrot.slane %v3308_v11, 2  ;;  %v3322_v15 = vmax.f32 %v3320_v2, %v3321_v0  ;;  %v3328_v51 = vrot.slane %v3327_v12, 4 }
 0x2d2   :  { %v3389_v63 = vmax.f32 %v3387_v9, %v3388_v7  ;;  %v4316_v45 = vsel %vm4166_vm6, %v3375_v8, %v4315_v6  ;;  %v3316_v20 = vrot.slane %v3315_v13, 2  ;;  %v1634_v29 = vrot.slane %v765_v35, %v8957_v52  ;;  %v4565_v9 = vld [vmem:[#allocation3 + $0x20] sm:$0xff] }
 0x2d3   :  { %v4317_v31 = vsel %vm4168_vm7, %v3382_v28, %v4316_v45  ;;  %v3310_v14 = vmax.f32 %v3308_v11, %v3309_v57  ;;  %v3323_v40 = vrot.slane %v3322_v15, 2  ;;  %v3329_v25 = vmax.f32 %v3327_v12, %v3328_v51  ;;  %v9883_v28 = vpop.f32.mrb[57].mxu0 }
 0x2d4   :  { %v4318_v38 = vsel %vm4170_vm8, %v3389_v63, %v4317_v31  ;;  %v3317_v32 = vmax.f32 %v3315_v13, %v3316_v20  ;;  %v1641_v47 = vrot.slane %v1627_v4, %v8957_v52  ;;  %v1642_v34 = vcombine.high %v1634_v29, %v1634_v29  ;;  %v4583_v13 = vld [vmem:[#allocation3 + $0x31] sm:$0xff] }
 0x2d5   :  { %4436 = vst [vmem:[#allocation2 + $0xa8] sm:$0xff] %v4318_v38  ;;  %v3311_v37 = vrot.slane %v3310_v14, 1  ;;  %v3324_v10 = vmax.f32 %v3322_v15, %v3323_v40  ;;  %v3330_v59 = vrot.slane %v3329_v25, 2  ;;  %v3446_v41 = vsel %vm2157_vm1, %v1634_v29, -inf }
 0x2d6   :  { %v3318_v35 = vrot.slane %v3317_v32, 1  ;;  %v1643_v21 = vcombine.high %v1641_v47, %v1641_v47  ;;  %v3447_v23 = vrot.slane %v3446_v41, 4  ;;  %v3453_v39 = vsel %vm2157_vm1, %v1642_v34, -inf }
 0x2d7   :  { %v3312_v43 = vmax.f32 %v3310_v14, %v3311_v37  ;;  %v3325_v22 = vrot.slane %v3324_v10, 1  ;;  %v3331_v24 = vmax.f32 %v3329_v25, %v3330_v59  ;;  %v3454_v54 = vrot.slane %v3453_v39, 4  ;;  %v4582_v14 = vld [vmem:[#allocation3 + $0x29] sm:$0xff] }
 0x2d8   :  { %v3319_v1 = vmax.f32 %v3317_v32, %v3318_v35  ;;  %v3448_v58 = vmax.f32 %v3446_v41, %v3447_v23  ;;  %v3460_v4 = vsel %vm2157_vm1, %v1641_v47, -inf  ;;  %v3467_v16 = vsel %vm2157_vm1, %v1643_v21, -inf }
 0x2d9   :  { %v3326_v44 = vmax.f32 %v3324_v10, %v3325_v22  ;;  %v3332_v56 = vrot.slane %v3331_v24, 1  ;;  %v4308_v2 = vsel %vm4164_vm5, %v3312_v43, %v9847_v27  ;;  %v3455_v18 = vmax.f32 %v3453_v39, %v3454_v54  ;;  %v8630_v27 = vld [vmem:[%s11134_s3 + $0x60] sm:$0xff]  }
 0x2da   :  { %v4309_v42 = vsel %vm4166_vm6, %v3319_v1, %v4308_v2  ;;  %v3449_v33 = vrot.slane %v3448_v58, 2  ;;  %v3461_v11 = vrot.slane %v3460_v4, 4  ;;  %v3468_v0 = vrot.slane %v3467_v16, 4  ;;  %8245 = vmatprep.subr.bf16.mxu1 %v8630_v27 }
 0x2db   :  { %v3333_v12 = vmax.f32 %v3331_v24, %v3332_v56  ;;  %v4310_v8 = vsel %vm4168_vm7, %v3326_v44, %v4309_v42  ;;  %v3456_v7 = vrot.slane %v3455_v18, 2  ;;  %v642_v6 = vadd.f32 %v9732_v49, %v9647_v30 }
 0x2dc   :  { %v3450_v57 = vmax.f32 %v3448_v58, %v3449_v33  ;;  %v3462_v15 = vmax.f32 %v3460_v4, %v3461_v11  ;;  %v3469_v51 = vmax.f32 %v3467_v16, %v3468_v0  ;;  %v4617_v63 = vpack.c.bf16 %v4565_v9, %v4564_v53 }
 0x2dd   :  { %v4311_v45 = vsel %vm4170_vm8, %v3333_v12, %v4310_v8  ;;  %v3457_v20 = vmax.f32 %v3455_v18, %v3456_v7  ;;  %v763_v29 = vmax.f32 %v642_v6, 0.0  ;;  %v6308_v31 = vpack.c.bf16 %v9712_v48, %v9710_v60  ;;  %v8631_v6 = vld [vmem:[%s11134_s3 + $0x20] sm:$0xff]  }
 0x2de   :  { %4435 = vst [vmem:[#allocation2 + $0xa0] sm:$0xff] %v4311_v45  ;;  %v3451_v30 = vrot.slane %v3450_v57, 1  ;;  %v3463_v40 = vrot.slane %v3462_v15, 2  ;;  %v3470_v25 = vrot.slane %v3469_v51, 2  ;;  %5115 = vmatmul.mubr.bf16.gmra.mrb[36].mxu1 %v4617_v63  ;;  %v4623_v38 = vpack.c.bf16 %v4583_v13, %v4582_v14  ;;  %v9908_v13 = vpop.f32.mrb[58].mxu0 }
 0x2df   :  { %v3458_v32 = vrot.slane %v3457_v20, 1  ;;  %v1593_v47 = vcombine.high %v763_v29, %v763_v29  ;;  %v1600_v34 = vrot.slane %v763_v29, %v8957_v52  ;;  %6803 = vmatmul.mubr.bf16.vlgmr.msra.gmra.mrb[80].mxu0 %v6308_v31  ;;  %v653_v37 = vadd.f32 %v9732_v49, %v9664_v50  ;;  %8246 = vmatpush3.bf16.msra.mxu1 %v8631_v6 }
 0x2e0   :  { %v3452_v10 = vmax.f32 %v3450_v57, %v3451_v30  ;;  %v3464_v59 = vmax.f32 %v3462_v15, %v3463_v40  ;;  %v3471_v41 = vmax.f32 %v3469_v51, %v3470_v25  ;;  %5122 = vmatprep.mubr.bf16.mxu1 %v4623_v38  ;;  %v9893_v60 = vadd.f32 %v9732_v49, %v9674_v62 }
 0x2e1   :  { %v3459_v48 = vmax.f32 %v3457_v20, %v3458_v32  ;;  %v1607_v35 = vrot.slane %v1593_v47, %v8957_v52  ;;  %v1608_v21 = vcombine.high %v1600_v34, %v1600_v34  ;;  %v3390_v23 = vsel %vm2157_vm1, %v1600_v34, -inf }
 0x2e2   :  { %v3465_v39 = vrot.slane %v3464_v59, 1  ;;  %v3472_v43 = vrot.slane %v3471_v41, 1  ;;  %v3391_v22 = vrot.slane %v3390_v23, 4  ;;  %v766_v24 = vmax.f32 %v653_v37, 0.0 }
 0x2e3   :  { %v4326_v50 = vsel %vm4158_vm2, %v3459_v48, %v3452_v10  ;;  %v1609_v54 = vcombine.high %v1607_v35, %v1607_v35  ;;  %v3397_v1 = vsel %vm2157_vm1, %v1608_v21, -inf  ;;  %v3404_v58 = vsel %vm2157_vm1, %v1607_v35, -inf }
 0x2e4   :  { %v3466_v4 = vmax.f32 %v3464_v59, %v3465_v39  ;;  %v3473_v62 = vmax.f32 %v3471_v41, %v3472_v43  ;;  %v3392_v16 = vmax.f32 %v3390_v23, %v3391_v22  ;;  %v3398_v44 = vrot.slane %v3397_v1, 4 }
 0x2e5   :  { %v3405_v56 = vrot.slane %v3404_v58, 4  ;;  %v3411_v2 = vsel %vm2157_vm1, %v1609_v54, -inf  ;;  %v1644_v18 = vcombine.high %v766_v24, %v766_v24  ;;  %v1651_v53 = vrot.slane %v766_v24, %v8957_v52 }
 0x2e6   :  { %v4327_v9 = vsel %vm4160_vm3, %v3466_v4, %v4326_v50  ;;  %v3393_v42 = vrot.slane %v3392_v16, 2  ;;  %v3399_v33 = vmax.f32 %v3397_v1, %v3398_v44  ;;  %v3412_v11 = vrot.slane %v3411_v2, 4 }
 0x2e7   :  { %v3406_v0 = vmax.f32 %v3404_v58, %v3405_v56  ;;  %v1658_v12 = vrot.slane %v1644_v18, %v8957_v52  ;;  %v1659_v8 = vcombine.high %v1651_v53, %v1651_v53  ;;  %v3474_v7 = vsel %vm2157_vm1, %v1651_v53, -inf  ;;  %v9916_v56 = vpop.f32.mrb[59].mxu0 }
 0x2e8   :  { %v3394_v27 = vmax.f32 %v3392_v16, %v3393_v42  ;;  %v3400_v57 = vrot.slane %v3399_v33, 2  ;;  %v3413_v15 = vmax.f32 %v3411_v2, %v3412_v11  ;;  %v3475_v51 = vrot.slane %v3474_v7, 4 }
 0x2e9   :  { %v3407_v63 = vrot.slane %v3406_v0, 2  ;;  %v1660_v45 = vcombine.high %v1658_v12, %v1658_v12  ;;  %v3481_v20 = vsel %vm2157_vm1, %v1659_v8, -inf  ;;  %v3488_v29 = vsel %vm2157_vm1, %v1658_v12, -inf }
 0x2ea   :  { %v3395_v31 = vrot.slane %v3394_v27, 1  ;;  %v3401_v14 = vmax.f32 %v3399_v33, %v3400_v57  ;;  %v3414_v30 = vrot.slane %v3413_v15, 2  ;;  %v3476_v40 = vmax.f32 %v3474_v7, %v3475_v51 }
 0x2eb   :  { %v3408_v25 = vmax.f32 %v3406_v0, %v3407_v63  ;;  %v3482_v38 = vrot.slane %v3481_v20, 4  ;;  %v3489_v32 = vrot.slane %v3488_v29, 4  ;;  %v3495_v47 = vsel %vm2157_vm1, %v1660_v45, -inf }
 0x2ec   :  { %v3396_v34 = vmax.f32 %v3394_v27, %v3395_v31  ;;  %v3402_v37 = vrot.slane %v3401_v14, 1  ;;  %v3415_v10 = vmax.f32 %v3413_v15, %v3414_v30  ;;  %v3477_v59 = vrot.slane %v3476_v40, 2 }
 0x2ed   :  { %v3409_v41 = vrot.slane %v3408_v25, 1  ;;  %v3483_v48 = vmax.f32 %v3481_v20, %v3482_v38  ;;  %v3490_v35 = vmax.f32 %v3488_v29, %v3489_v32  ;;  %v3496_v21 = vrot.slane %v3495_v47, 4 }
 0x2ee   :  { %v3403_v23 = vmax.f32 %v3401_v14, %v3402_v37  ;;  %v3416_v39 = vrot.slane %v3415_v10, 1  ;;  %v3478_v43 = vmax.f32 %v3476_v40, %v3477_v59  ;;  %v4328_v22 = vsel %vm4162_vm4, %v3473_v62, %v4327_v9  ;;  %v4566_v37 = vld [vmem:[#allocation3 + $0x28] sm:$0xff] }
 0x2ef   :  { %v3410_v24 = vmax.f32 %v3408_v25, %v3409_v41  ;;  %v3484_v50 = vrot.slane %v3483_v48, 2  ;;  %v3491_v54 = vrot.slane %v3490_v35, 2  ;;  %v3497_v1 = vmax.f32 %v3495_v47, %v3496_v21 }
 0x2f0   :  { %v3417_v58 = vmax.f32 %v3415_v10, %v3416_v39  ;;  %v4319_v4 = vsel %vm4158_vm2, %v3403_v23, %v3396_v34  ;;  %v3479_v16 = vrot.slane %v3478_v43, 1  ;;  %v764_v44 = vmax.f32 %v9893_v60, 0.0  ;;  %v4567_v10 = vld [vmem:[#allocation3 + $0x30] sm:$0xff] }
 0x2f1   :  { %v4320_v2 = vsel %vm4160_vm3, %v3410_v24, %v4319_v4  ;;  %v3485_v18 = vmax.f32 %v3483_v48, %v3484_v50  ;;  %v3492_v53 = vmax.f32 %v3490_v35, %v3491_v54  ;;  %v3498_v42 = vrot.slane %v3497_v1, 2 }
 0x2f2   :  { %v3480_v33 = vmax.f32 %v3478_v43, %v3479_v16  ;;  %v1610_v11 = vcombine.high %v764_v44, %v764_v44  ;;  %v1617_v62 = vrot.slane %v764_v44, %v8957_v52  ;;  %v9921_v9 = vsel %vm4162_vm4, %v3417_v58, %v4320_v2  ;;  %v9939_v44 = vpop.f32.mrb[60].mxu0 }
 0x2f3   :  { %v3486_v0 = vrot.slane %v3485_v18, 1  ;;  %v3493_v12 = vrot.slane %v3492_v53, 1  ;;  %v3499_v8 = vmax.f32 %v3497_v1, %v3498_v42  ;;  %v666_v60 = vadd.f32 %v9732_v49, %v9693_v5 }
 0x2f4   :  { %v4329_v7 = vsel %vm4164_vm5, %v3480_v33, %v4328_v22  ;;  %v1624_v6 = vrot.slane %v1610_v11, %v8957_v52  ;;  %v1625_v27 = vcombine.high %v1617_v62, %v1617_v62  ;;  %v3418_v57 = vsel %vm2157_vm1, %v1617_v62, -inf  ;;  %v8632_v62 = vld [vmem:[%s11134_s3 + $0x68] sm:$0xff]  }
 0x2f5   :  { %v3487_v15 = vmax.f32 %v3485_v18, %v3486_v0  ;;  %v3494_v51 = vmax.f32 %v3492_v53, %v3493_v12  ;;  %v3500_v63 = vrot.slane %v3499_v8, 1  ;;  %v3419_v45 = vrot.slane %v3418_v57, 4  ;;  %v9947_v0 = vpop.f32.mrb[61].mxu0  ;;  %8247 = vmatprep.subr.bf16.mxu1 %v8632_v62 }
 0x2f6   :  { %v1626_v20 = vcombine.high %v1624_v6, %v1624_v6  ;;  %v3425_v29 = vsel %vm2157_vm1, %v1625_v27, -inf  ;;  %v3432_v31 = vsel %vm2157_vm1, %v1624_v6, -inf  ;;  %v769_v14 = vmax.f32 %v666_v60, 0.0  ;;  %v8456_v6 = vpop.f32.mrb[62].mxu0 }
 0x2f7   :  { %v3501_v30 = vmax.f32 %v3499_v8, %v3500_v63  ;;  %v4330_v5 = vsel %vm4166_vm6, %v3487_v15, %v4329_v7  ;;  %v3420_v40 = vmax.f32 %v3418_v57, %v3419_v45  ;;  %v3426_v25 = vrot.slane %v3425_v29, 4 }
 0x2f8   :  { %v4331_v38 = vsel %vm4168_vm7, %v3494_v51, %v4330_v5  ;;  %v3433_v32 = vrot.slane %v3432_v31, 4  ;;  %v3439_v47 = vsel %vm2157_vm1, %v1626_v20, -inf  ;;  %v1695_v34 = vcombine.high %v769_v14, %v769_v14 }
 0x2f9   :  { %v4332_v59 = vsel %vm4170_vm8, %v3501_v30, %v4331_v38  ;;  %v3421_v41 = vrot.slane %v3420_v40, 2  ;;  %v3427_v48 = vmax.f32 %v3425_v29, %v3426_v25  ;;  %v3440_v35 = vrot.slane %v3439_v47, 4 }
 0x2fa   :  { %4438 = vst [vmem:[#allocation2 + $0xb8] sm:$0xff] %v4332_v59  ;;  %v3434_v21 = vmax.f32 %v3432_v31, %v3433_v32  ;;  %v1702_v23 = vrot.slane %v769_v14, %v8957_v52  ;;  %v1709_v39 = vrot.slane %v1695_v34, %v8957_v52  ;;  %v658_v43 = vadd.f32 %v9732_v49, %v9708_v46 }
 0x2fb   :  { %v3422_v22 = vmax.f32 %v3420_v40, %v3421_v41  ;;  %v3428_v24 = vrot.slane %v3427_v48, 2  ;;  %v3441_v50 = vmax.f32 %v3439_v47, %v3440_v35  ;;  %v4622_v54 = vpack.c.bf16 %v4567_v10, %v4566_v37  ;;  %v4585_v47 = vld [vmem:[#allocation3 + $0x41] sm:$0xff] }
 0x2fc   :  { %v3435_v1 = vrot.slane %v3434_v21, 2  ;;  %v1710_v58 = vcombine.high %v1702_v23, %v1702_v23  ;;  %v1711_v4 = vcombine.high %v1709_v39, %v1709_v39  ;;  %v3558_v16 = vsel %vm2157_vm1, %v1702_v23, -inf }
 0x2fd   :  { %v3423_v2 = vrot.slane %v3422_v22, 1  ;;  %v3429_v18 = vmax.f32 %v3427_v48, %v3428_v24  ;;  %v3442_v53 = vrot.slane %v3441_v50, 2  ;;  %v3559_v42 = vrot.slane %v3558_v16, 4  ;;  %5123 = vmatmul.mubr.bf16.gmra.mrb[40].mxu1 %v4622_v54 }
 0x2fe   :  { %v3436_v33 = vmax.f32 %v3434_v21, %v3435_v1  ;;  %v3565_v11 = vsel %vm2157_vm1, %v1710_v58, -inf  ;;  %v3572_v46 = vsel %vm2157_vm1, %v1709_v39, -inf  ;;  %v3579_v49 = vsel %vm2157_vm1, %v1711_v4, -inf  ;;  %v4584_v21 = vld [vmem:[#allocation3 + $0x39] sm:$0xff] }
 0x2ff   :  { %v3424_v12 = vmax.f32 %v3422_v22, %v3423_v2  ;;  %v3430_v8 = vrot.slane %v3429_v18, 1  ;;  %v3443_v60 = vmax.f32 %v3441_v50, %v3442_v53  ;;  %v3560_v7 = vmax.f32 %v3558_v16, %v3559_v42  ;;  %v9960_v53 = vpop.f32.mrb[63].mxu0 }
 0x300   :  { %v3437_v27 = vrot.slane %v3436_v33, 1  ;;  %v3566_v57 = vrot.slane %v3565_v11, 4  ;;  %v3573_v15 = vrot.slane %v3572_v46, 4  ;;  %v3580_v51 = vrot.slane %v3579_v49, 4 }
 0x301   :  { %v3431_v63 = vmax.f32 %v3429_v18, %v3430_v8  ;;  %v3444_v45 = vrot.slane %v3443_v60, 1  ;;  %v4322_v20 = vsel %vm4164_vm5, %v3424_v12, %v9921_v9  ;;  %v3561_v29 = vrot.slane %v3560_v7, 2  ;;  %v8633_v18 = vld [vmem:[%s11134_s3 + $0x28] sm:$0xff]  }
 0x302   :  { %v3438_v31 = vmax.f32 %v3436_v33, %v3437_v27  ;;  %v3567_v14 = vmax.f32 %v3565_v11, %v3566_v57  ;;  %v3574_v30 = vmax.f32 %v3572_v46, %v3573_v15  ;;  %v3581_v5 = vmax.f32 %v3579_v49, %v3580_v51  ;;  %v9964_v46 = vld [vmem:[#allocation6] ss:$0 sm:$0xff]  ;;  %8248 = vmatpush3.bf16.msra.mxu1 %v8633_v18 }
 0x303   :  { %v3445_v40 = vmax.f32 %v3443_v60, %v3444_v45  ;;  %v4323_v25 = vsel %vm4166_vm6, %v3431_v63, %v4322_v20  ;;  %v3562_v38 = vmax.f32 %v3560_v7, %v3561_v29  ;;  %v767_v32 = vmax.f32 %v658_v43, 0.0 }
 0x304   :  { %v4324_v34 = vsel %vm4168_vm7, %v3438_v31, %v4323_v25  ;;  %v3568_v37 = vrot.slane %v3567_v14, 2  ;;  %v3575_v10 = vrot.slane %v3574_v30, 2  ;;  %v3582_v59 = vrot.slane %v3581_v5, 2 }
 0x305   :  { %v4325_v41 = vsel %vm4170_vm8, %v3445_v40, %v4324_v34  ;;  %v3563_v48 = vrot.slane %v3562_v38, 1  ;;  %v1661_v9 = vcombine.high %v767_v32, %v767_v32  ;;  %v1668_v35 = vrot.slane %v767_v32, %v8957_v52 }
 0x306   :  { %4437 = vst [vmem:[#allocation2 + $0xb0] sm:$0xff] %v4325_v41  ;;  %v3569_v23 = vmax.f32 %v3567_v14, %v3568_v37  ;;  %v3576_v39 = vmax.f32 %v3574_v30, %v3575_v10  ;;  %v3583_v22 = vmax.f32 %v3581_v5, %v3582_v59  ;;  %v4628_v24 = vpack.c.bf16 %v4585_v47, %v4584_v21 }
 0x307   :  { %v3564_v50 = vmax.f32 %v3562_v38, %v3563_v48  ;;  %v1675_v43 = vrot.slane %v1661_v9, %v8957_v52  ;;  %v1676_v54 = vcombine.high %v1668_v35, %v1668_v35  ;;  %v3502_v1 = vsel %vm2157_vm1, %v1668_v35, -inf }
 0x308   :  { %v3570_v58 = vrot.slane %v3569_v23, 1  ;;  %v3577_v4 = vrot.slane %v3576_v39, 1  ;;  %v3584_v16 = vrot.slane %v3583_v22, 1  ;;  %v3503_v2 = vrot.slane %v3502_v1, 4  ;;  %5130 = vmatprep.mubr.bf16.mxu1 %v4628_v24 }
 0x309   :  { %v1677_v42 = vcombine.high %v1675_v43, %v1675_v43  ;;  %v3509_v33 = vsel %vm2157_vm1, %v1676_v54, -inf  ;;  %v3516_v11 = vsel %vm2157_vm1, %v1675_v43, -inf  ;;  %v669_v49 = vadd.f32 %v9964_v46, %v9724_v26 }
 0x30a   :  { %v3571_v62 = vmax.f32 %v3569_v23, %v3570_v58  ;;  %v3578_v12 = vmax.f32 %v3576_v39, %v3577_v4  ;;  %v3585_v8 = vmax.f32 %v3583_v22, %v3584_v16  ;;  %v3504_v60 = vmax.f32 %v3502_v1, %v3503_v2 }
 0x30b   :  { %v3510_v7 = vrot.slane %v3509_v33, 4  ;;  %v3517_v6 = vrot.slane %v3516_v11, 4  ;;  %v3523_v27 = vsel %vm2157_vm1, %v1677_v42, -inf  ;;  %v770_v57 = vmax.f32 %v669_v49, 0.0  ;;  %v6197_v49 = vld [vmem:[#allocation2 + $0x9d] sm:$0xff] }
 0x30c   :  { %v4340_v15 = vsel %vm4158_vm2, %v3571_v62, %v3564_v50  ;;  %v3505_v51 = vrot.slane %v3504_v60, 2  ;;  %v3524_v63 = vrot.slane %v3523_v27, 4  ;;  %v661_v45 = vadd.f32 %v9964_v46, %v9742_v17  ;;  %6214 = vst [vmem:[#allocation3 + $0xb0] sm:$0xff] %v6197_v49 }
 0x30d   :  { %v4341_v20 = vsel %vm4160_vm3, %v3578_v12, %v4340_v15  ;;  %v3511_v26 = vmax.f32 %v3509_v33, %v3510_v7  ;;  %v3518_v29 = vmax.f32 %v3516_v11, %v3517_v6  ;;  %v1712_v31 = vcombine.high %v770_v57, %v770_v57  ;;  %v8634_v33 = vld [vmem:[%s11134_s3 + $0x70] sm:$0xff]   ;;  %v8636_v6 = vld [vmem:[%s11134_s3 + $0x78] sm:$0xff]  }
 0x30e   :  { %v3506_v14 = vmax.f32 %v3504_v60, %v3505_v51  ;;  %v3525_v30 = vmax.f32 %v3523_v27, %v3524_v63  ;;  %v1719_v5 = vrot.slane %v770_v57, %v8957_v52  ;;  %v9975_v40 = vsel %vm4162_vm4, %v3585_v8, %v4341_v20  ;;  %v6196_v11 = vld [vmem:[#allocation2 + $0x95] sm:$0xff]  ;;  %8249 = vmatprep.subr.bf16.mxu1 %v8634_v33  ;;  %v6198_v63 = vld [vmem:[#allocation2 + $0xa5] sm:$0xff] }
 0x30f   :  { %v3512_v25 = vrot.slane %v3511_v26, 2  ;;  %v3519_v38 = vrot.slane %v3518_v29, 2  ;;  %v1726_v32 = vrot.slane %v1712_v31, %v8957_v52  ;;  %v768_v47 = vmax.f32 %v661_v45, 0.0  ;;  %6213 = vst [vmem:[#allocation3 + $0xa8] sm:$0xff] %v6196_v11  ;;  %v8635_v7 = vld [vmem:[%s11134_s3 + $0x30] sm:$0xff]   ;;  %6215 = vst [vmem:[#allocation3 + $0xb8] sm:$0xff] %v6198_v63 }
 0x310   :  { %v3507_v34 = vrot.slane %v3506_v14, 1  ;;  %v3526_v37 = vrot.slane %v3525_v30, 2  ;;  %v1727_v17 = vcombine.high %v1719_v5, %v1719_v5  ;;  %v3586_v10 = vsel %vm2157_vm1, %v1719_v5, -inf  ;;  %v6199_v45 = vld [vmem:[#allocation2 + $0xad] sm:$0xff]  ;;  %8250 = vmatpush3.bf16.msra.mxu1 %v8635_v7  ;;  %v4568_v33 = vld [vmem:[#allocation3 + $0x38] sm:$0xff]  ;;  %v4569_v11 = vld [vmem:[#allocation3 + $0x40] sm:$0xff] }
 0x311   :  { %v3513_v59 = vmax.f32 %v3511_v26, %v3512_v25  ;;  %v3520_v41 = vmax.f32 %v3518_v29, %v3519_v38  ;;  %v1728_v48 = vcombine.high %v1726_v32, %v1726_v32  ;;  %v3587_v9 = vrot.slane %v3586_v10, 4  ;;  %6216 = vst [vmem:[#allocation3 + $0xc0] sm:$0xff] %v6199_v45  ;;  %8251 = vmatprep.subr.bf16.mxu1 %v8636_v6 }
 0x312   :  { %v3508_v35 = vmax.f32 %v3506_v14, %v3507_v34  ;;  %v3527_v21 = vmax.f32 %v3525_v30, %v3526_v37  ;;  %v3593_v23 = vsel %vm2157_vm1, %v1727_v17, -inf  ;;  %v3600_v39 = vsel %vm2157_vm1, %v1726_v32, -inf  ;;  %v8637_v14 = vld [vmem:[%s11134_s3 + $0x38] sm:$0xff]  }
 0x313   :  { %v3514_v22 = vrot.slane %v3513_v59, 1  ;;  %v3521_v24 = vrot.slane %v3520_v41, 1  ;;  %v3588_v50 = vmax.f32 %v3586_v10, %v3587_v9  ;;  %v3594_v43 = vrot.slane %v3593_v23, 4  ;;  %v6200_v30 = vld [vmem:[#allocation2 + $0xb5] sm:$0xff] }
 0x314   :  { %v3528_v54 = vrot.slane %v3527_v21, 1  ;;  %v3601_v1 = vrot.slane %v3600_v39, 4  ;;  %v3607_v58 = vsel %vm2157_vm1, %v1728_v48, -inf  ;;  %v1678_v4 = vcombine.high %v768_v47, %v768_v47  ;;  %6217 = vst [vmem:[#allocation3 + $0xc8] sm:$0xff] %v6200_v30  ;;  %8252 = vmatpush3.bf16.msra.mxu1 %v8637_v14 }
 0x315   :  { %v3515_v16 = vmax.f32 %v3513_v59, %v3514_v22  ;;  %v3522_v2 = vmax.f32 %v3520_v41, %v3521_v24  ;;  %v3589_v18 = vrot.slane %v3588_v50, 2  ;;  %v3595_v42 = vmax.f32 %v3593_v23, %v3594_v43 }
 0x316   :  { %v3529_v62 = vmax.f32 %v3527_v21, %v3528_v54  ;;  %v3602_v12 = vmax.f32 %v3600_v39, %v3601_v1  ;;  %v3608_v8 = vrot.slane %v3607_v58, 4  ;;  %v1685_v60 = vrot.slane %v768_v47, %v8957_v52  ;;  %v8638_v47 = vld [vmem:[%s11134_s3 + $0x100] sm:$0xff]  }
 0x317   :  { %v4333_v27 = vsel %vm4158_vm2, %v3515_v16, %v3508_v35  ;;  %v3590_v57 = vmax.f32 %v3588_v50, %v3589_v18  ;;  %v3596_v15 = vrot.slane %v3595_v42, 2  ;;  %v1692_v51 = vrot.slane %v1678_v4, %v8957_v52  ;;  %8489 = vmatprep.subr.bf16.mxu1 %v8638_v47 }
 0x318   :  { %v4334_v20 = vsel %vm4160_vm3, %v3522_v2, %v4333_v27  ;;  %v3603_v26 = vrot.slane %v3602_v12, 2  ;;  %v3609_v29 = vmax.f32 %v3607_v58, %v3608_v8  ;;  %v1693_v31 = vcombine.high %v1685_v60, %v1685_v60 }
 0x319   :  { %v3591_v5 = vrot.slane %v3590_v57, 1  ;;  %v3597_v25 = vmax.f32 %v3595_v42, %v3596_v15  ;;  %v1694_v38 = vcombine.high %v1692_v51, %v1692_v51  ;;  %v3530_v32 = vsel %vm2157_vm1, %v1685_v60, -inf }
 0x31a   :  { %v3604_v34 = vmax.f32 %v3602_v12, %v3603_v26  ;;  %v3610_v37 = vrot.slane %v3609_v29, 2  ;;  %v3531_v17 = vrot.slane %v3530_v32, 4  ;;  %v3537_v10 = vsel %vm2157_vm1, %v1693_v31, -inf  ;;  %v4586_v31 = vld [vmem:[#allocation3 + $0x49] sm:$0xff] }
 0x31b   :  { %v3592_v59 = vmax.f32 %v3590_v57, %v3591_v5  ;;  %v3598_v41 = vrot.slane %v3597_v25, 1  ;;  %v3538_v48 = vrot.slane %v3537_v10, 4  ;;  %v3544_v9 = vsel %vm2157_vm1, %v1692_v51, -inf  ;;  %v4587_v57 = vld [vmem:[#allocation3 + $0x51] sm:$0xff] }
 0x31c   :  { %v3605_v35 = vrot.slane %v3604_v34, 1  ;;  %v3611_v21 = vmax.f32 %v3609_v29, %v3610_v37  ;;  %v3532_v23 = vmax.f32 %v3530_v32, %v3531_v17  ;;  %v3545_v39 = vrot.slane %v3544_v9, 4 }
 0x31d   :  { %v3599_v22 = vmax.f32 %v3597_v25, %v3598_v41  ;;  %v4343_v24 = vsel %vm4164_vm5, %v3592_v59, %v9975_v40  ;;  %v3539_v50 = vmax.f32 %v3537_v10, %v3538_v48  ;;  %v3551_v43 = vsel %vm2157_vm1, %v1694_v38, -inf }
 0x31e   :  { %v3606_v54 = vmax.f32 %v3604_v34, %v3605_v35  ;;  %v3612_v1 = vrot.slane %v3611_v21, 1  ;;  %v3533_v58 = vrot.slane %v3532_v23, 2  ;;  %v3546_v4 = vmax.f32 %v3544_v9, %v3545_v39 }
 0x31f   :  { %v4344_v16 = vsel %vm4166_vm6, %v3599_v22, %v4343_v24  ;;  %v3540_v2 = vrot.slane %v3539_v50, 2  ;;  %v3552_v18 = vrot.slane %v3551_v43, 4  ;;  %v4335_v42 = vsel %vm4162_vm4, %v3529_v62, %v4334_v20 }
 0x320   :  { %v3613_v49 = vmax.f32 %v3611_v21, %v3612_v1  ;;  %v4345_v12 = vsel %vm4168_vm7, %v3606_v54, %v4344_v16  ;;  %v3534_v40 = vmax.f32 %v3532_v23, %v3533_v58  ;;  %v3547_v8 = vrot.slane %v3546_v4, 2 }
 0x321   :  { %v3541_v60 = vmax.f32 %v3539_v50, %v3540_v2  ;;  %v3553_v7 = vmax.f32 %v3551_v43, %v3552_v18  ;;  %v682_v6 = vadd.f32 %v9964_v46, %v9771_v19  ;;  %v674_v27 = vadd.f32 %v9964_v46, %v9801_v55 }
 0x322   :  { %v4346_v15 = vsel %vm4170_vm8, %v3613_v49, %v4345_v12  ;;  %v3535_v51 = vrot.slane %v3534_v40, 1  ;;  %v3548_v62 = vmax.f32 %v3546_v4, %v3547_v8  ;;  %v4627_v63 = vpack.c.bf16 %v4569_v11, %v4568_v33 }
 0x323   :  { %4440 = vst [vmem:[#allocation2 + $0xc8] sm:$0xff] %v4346_v15  ;;  %v3542_v45 = vrot.slane %v3541_v60, 1  ;;  %v3554_v20 = vrot.slane %v3553_v7, 2  ;;  %v773_v26 = vmax.f32 %v682_v6, 0.0  ;;  %v771_v29 = vmax.f32 %v674_v27, 0.0 }
 0x324   :  { %v3536_v14 = vmax.f32 %v3534_v40, %v3535_v51  ;;  %v3549_v30 = vrot.slane %v3548_v62, 1  ;;  %5131 = vmatmul.mubr.bf16.gmra.mrb[44].mxu1 %v4627_v63  ;;  %v4633_v5 = vpack.c.bf16 %v4587_v57, %v4586_v31  ;;  %v10017_v19 = vadd.f32 %v9964_v46, %v9804_v61 }
 0x325   :  { %v3543_v55 = vmax.f32 %v3541_v60, %v3542_v45  ;;  %v3555_v25 = vmax.f32 %v3553_v7, %v3554_v20  ;;  %v1763_v38 = vcombine.high %v773_v26, %v773_v26  ;;  %v1770_v32 = vrot.slane %v773_v26, %v8957_v52 }
 0x326   :  { %v3550_v47 = vmax.f32 %v3548_v62, %v3549_v30  ;;  %v4336_v34 = vsel %vm4164_vm5, %v3536_v14, %v4335_v42  ;;  %v1729_v37 = vcombine.high %v771_v29, %v771_v29  ;;  %v1736_v17 = vrot.slane %v771_v29, %v8957_v52  ;;  %5138 = vmatprep.mubr.bf16.mxu1 %v4633_v5 }
 0x327   :  { %v3556_v10 = vrot.slane %v3555_v25, 1  ;;  %v4337_v59 = vsel %vm4166_vm6, %v3543_v55, %v4336_v34  ;;  %v1777_v41 = vrot.slane %v1763_v38, %v8957_v52  ;;  %v1778_v48 = vcombine.high %v1770_v32, %v1770_v32 }
 0x328   :  { %v4338_v61 = vsel %vm4168_vm7, %v3550_v47, %v4337_v59  ;;  %v3670_v9 = vsel %vm2157_vm1, %v1770_v32, -inf  ;;  %v1743_v35 = vrot.slane %v1729_v37, %v8957_v52  ;;  %v1744_v21 = vcombine.high %v1736_v17, %v1736_v17 }
 0x329   :  { %v3557_v23 = vmax.f32 %v3555_v25, %v3556_v10  ;;  %v1779_v39 = vcombine.high %v1777_v41, %v1777_v41  ;;  %v3671_v22 = vrot.slane %v3670_v9, 4  ;;  %v3677_v24 = vsel %vm2157_vm1, %v1778_v48, -inf }
 0x32a   :  { %v3678_v50 = vrot.slane %v3677_v24, 4  ;;  %v3684_v43 = vsel %vm2157_vm1, %v1777_v41, -inf  ;;  %v1745_v54 = vcombine.high %v1743_v35, %v1743_v35  ;;  %v3614_v1 = vsel %vm2157_vm1, %v1736_v17, -inf }
 0x32b   :  { %v4339_v58 = vsel %vm4170_vm8, %v3557_v23, %v4338_v61  ;;  %v3672_v4 = vmax.f32 %v3670_v9, %v3671_v22  ;;  %v3685_v16 = vrot.slane %v3684_v43, 4  ;;  %v3691_v2 = vsel %vm2157_vm1, %v1779_v39, -inf }
 0x32c   :  { %4439 = vst [vmem:[#allocation2 + $0xc0] sm:$0xff] %v4339_v58  ;;  %v3679_v18 = vmax.f32 %v3677_v24, %v3678_v50  ;;  %v3692_v42 = vrot.slane %v3691_v2, 4  ;;  %v3615_v33 = vrot.slane %v3614_v1, 4  ;;  %v3621_v11 = vsel %vm2157_vm1, %v1744_v21, -inf }
 0x32d   :  { %v3673_v49 = vrot.slane %v3672_v4, 2  ;;  %v3686_v12 = vmax.f32 %v3684_v43, %v3685_v16  ;;  %v3622_v40 = vrot.slane %v3621_v11, 4  ;;  %v3628_v8 = vsel %vm2157_vm1, %v1743_v35, -inf }
 0x32e   :  { %v3680_v60 = vrot.slane %v3679_v18, 2  ;;  %v3693_v7 = vmax.f32 %v3691_v2, %v3692_v42  ;;  %v3616_v6 = vmax.f32 %v3614_v1, %v3615_v33  ;;  %v3629_v27 = vrot.slane %v3628_v8, 4 }
 0x32f   :  { %v3674_v57 = vmax.f32 %v3672_v4, %v3673_v49  ;;  %v3687_v15 = vrot.slane %v3686_v12, 2  ;;  %v3623_v51 = vmax.f32 %v3621_v11, %v3622_v40  ;;  %v3635_v62 = vsel %vm2157_vm1, %v1745_v54, -inf }
 0x330   :  { %v3681_v63 = vmax.f32 %v3679_v18, %v3680_v60  ;;  %v3694_v45 = vrot.slane %v3693_v7, 2  ;;  %v3617_v20 = vrot.slane %v3616_v6, 2  ;;  %v3630_v26 = vmax.f32 %v3628_v8, %v3629_v27 }
 0x331   :  { %v3675_v29 = vrot.slane %v3674_v57, 1  ;;  %v3688_v31 = vmax.f32 %v3686_v12, %v3687_v15  ;;  %v3624_v14 = vrot.slane %v3623_v51, 2  ;;  %v3636_v30 = vrot.slane %v3635_v62, 4 }
 0x332   :  { %v3682_v5 = vrot.slane %v3681_v63, 1  ;;  %v3695_v55 = vmax.f32 %v3693_v7, %v3694_v45  ;;  %v3618_v25 = vmax.f32 %v3616_v6, %v3617_v20  ;;  %v3631_v38 = vrot.slane %v3630_v26, 2 }
 0x333   :  { %v3676_v32 = vmax.f32 %v3674_v57, %v3675_v29  ;;  %v3689_v47 = vrot.slane %v3688_v31, 1  ;;  %v3625_v34 = vmax.f32 %v3623_v51, %v3624_v14  ;;  %v3637_v37 = vmax.f32 %v3635_v62, %v3636_v30  ;;  %v10035_v17 = vld [vmem:[#allocation2 + $0xbd] sm:$0xff]  ;;  %v10037_v10 = vld [vmem:[#allocation2 + $0xc5] sm:$0xff] }
 0x334   :  { %v3683_v59 = vmax.f32 %v3681_v63, %v3682_v5  ;;  %v3696_v41 = vrot.slane %v3695_v55, 1  ;;  %v3619_v48 = vrot.slane %v3618_v25, 1  ;;  %v3632_v61 = vmax.f32 %v3630_v26, %v3631_v38  ;;  %6218 = vst [vmem:[#allocation3 + $0xd0] sm:$0xff] %v10035_v17  ;;  %6219 = vst [vmem:[#allocation3 + $0xd8] sm:$0xff] %v10037_v10 }
 0x335   :  { %v3690_v9 = vmax.f32 %v3688_v31, %v3689_v47  ;;  %v3626_v35 = vrot.slane %v3625_v34, 1  ;;  %v3638_v21 = vrot.slane %v3637_v37, 2  ;;  %v774_v23 = vmax.f32 %v10017_v19, 0.0 }
 0x336   :  { %v3697_v39 = vmax.f32 %v3695_v55, %v3696_v41  ;;  %v4354_v22 = vsel %vm4158_vm2, %v3683_v59, %v3676_v32  ;;  %v3620_v24 = vmax.f32 %v3618_v25, %v3619_v48  ;;  %v3633_v50 = vrot.slane %v3632_v61, 1 }
 0x337   :  { %v4355_v43 = vsel %vm4160_vm3, %v3690_v9, %v4354_v22  ;;  %v3627_v54 = vmax.f32 %v3625_v34, %v3626_v35  ;;  %v3639_v1 = vmax.f32 %v3637_v37, %v3638_v21  ;;  %v1780_v58 = vcombine.high %v774_v23, %v774_v23 }
 0x338   :  { %v3634_v4 = vmax.f32 %v3632_v61, %v3633_v50  ;;  %v1787_v16 = vrot.slane %v774_v23, %v8957_v52  ;;  %v4356_v2 = vsel %vm4162_vm4, %v3697_v39, %v4355_v43  ;;  %v677_v18 = vadd.f32 %v9964_v46, %v9857_v36 }
 0x339   :  { %v3640_v42 = vrot.slane %v3639_v1, 1  ;;  %v4347_v19 = vsel %vm4158_vm2, %v3627_v54, %v3620_v24  ;;  %v1794_v33 = vrot.slane %v1780_v58, %v8957_v52  ;;  %v698_v11 = vadd.f32 %v9964_v46, %v9865_v3 }
 0x33a   :  { %v4348_v49 = vsel %vm4160_vm3, %v3634_v4, %v4347_v19  ;;  %v1795_v12 = vcombine.high %v1787_v16, %v1787_v16  ;;  %v3698_v40 = vsel %vm2157_vm1, %v1787_v16, -inf  ;;  %v772_v8 = vmax.f32 %v677_v18, 0.0 }
 0x33b   :  { %v3641_v60 = vmax.f32 %v3639_v1, %v3640_v42  ;;  %v1796_v7 = vcombine.high %v1794_v33, %v1794_v33  ;;  %v3699_v6 = vrot.slane %v3698_v40, 4  ;;  %v3712_v27 = vsel %vm2157_vm1, %v1794_v33, -inf }
 0x33c   :  { %v3705_v36 = vsel %vm2157_vm1, %v1795_v12, -inf  ;;  %v3713_v57 = vrot.slane %v3712_v27, 4  ;;  %v1746_v15 = vcombine.high %v772_v8, %v772_v8  ;;  %v1753_v51 = vrot.slane %v772_v8, %v8957_v52 }
 0x33d   :  { %v3700_v62 = vmax.f32 %v3698_v40, %v3699_v6  ;;  %v3706_v63 = vrot.slane %v3705_v36, 4  ;;  %v3719_v3 = vsel %vm2157_vm1, %v1796_v7, -inf  ;;  %v4349_v45 = vsel %vm4162_vm4, %v3641_v60, %v4348_v49 }
 0x33e   :  { %v3714_v20 = vmax.f32 %v3712_v27, %v3713_v57  ;;  %v3720_v26 = vrot.slane %v3719_v3, 4  ;;  %v1760_v29 = vrot.slane %v1746_v15, %v8957_v52  ;;  %v1761_v31 = vcombine.high %v1753_v51, %v1753_v51 }
 0x33f   :  { %v3701_v14 = vrot.slane %v3700_v62, 2  ;;  %v3707_v30 = vmax.f32 %v3705_v36, %v3706_v63  ;;  %v3642_v5 = vsel %vm2157_vm1, %v1753_v51, -inf  ;;  %v777_v55 = vmax.f32 %v698_v11, 0.0 }
 0x340   :  { %v3715_v25 = vrot.slane %v3714_v20, 2  ;;  %v3721_v38 = vmax.f32 %v3719_v3, %v3720_v26  ;;  %v1762_v32 = vcombine.high %v1760_v29, %v1760_v29  ;;  %v3643_v47 = vrot.slane %v3642_v5, 4 }
 0x341   :  { %v3702_v34 = vmax.f32 %v3700_v62, %v3701_v14  ;;  %v3708_v37 = vrot.slane %v3707_v30, 2  ;;  %v3649_v59 = vsel %vm2157_vm1, %v1761_v31, -inf  ;;  %v3656_v41 = vsel %vm2157_vm1, %v1760_v29, -inf }
 0x342   :  { %v3716_v48 = vmax.f32 %v3714_v20, %v3715_v25  ;;  %v3722_v61 = vrot.slane %v3721_v38, 2  ;;  %v3644_v9 = vmax.f32 %v3642_v5, %v3643_v47  ;;  %v3650_v35 = vrot.slane %v3649_v59, 4  ;;  %v4570_v47 = vld [vmem:[#allocation3 + $0x48] sm:$0xff] }
 0x343   :  { %v3703_v21 = vrot.slane %v3702_v34, 1  ;;  %v3709_v23 = vmax.f32 %v3707_v30, %v3708_v37  ;;  %v3657_v39 = vrot.slane %v3656_v41, 4  ;;  %v3663_v22 = vsel %vm2157_vm1, %v1762_v32, -inf }
 0x344   :  { %v3717_v24 = vrot.slane %v3716_v48, 1  ;;  %v3723_v50 = vmax.f32 %v3721_v38, %v3722_v61  ;;  %v3645_v43 = vrot.slane %v3644_v9, 2  ;;  %v3651_v54 = vmax.f32 %v3649_v59, %v3650_v35  ;;  %v4589_v61 = vld [vmem:[#allocation3 + $0x61] sm:$0xff] }
 0x345   :  { %v3704_v1 = vmax.f32 %v3702_v34, %v3703_v21  ;;  %v3710_v58 = vrot.slane %v3709_v23, 1  ;;  %v3658_v4 = vmax.f32 %v3656_v41, %v3657_v39  ;;  %v3664_v16 = vrot.slane %v3663_v22, 4  ;;  %v4571_v34 = vld [vmem:[#allocation3 + $0x50] sm:$0xff] }
 0x346   :  { %v3718_v18 = vmax.f32 %v3716_v48, %v3717_v24  ;;  %v3724_v42 = vrot.slane %v3723_v50, 1  ;;  %v3646_v19 = vmax.f32 %v3644_v9, %v3645_v43  ;;  %v3652_v33 = vrot.slane %v3651_v54, 2 }
 0x347   :  { %v3711_v11 = vmax.f32 %v3709_v23, %v3710_v58  ;;  %v4357_v49 = vsel %vm4164_vm5, %v3704_v1, %v4356_v2  ;;  %v3659_v12 = vrot.slane %v3658_v4, 2  ;;  %v3665_v40 = vmax.f32 %v3663_v22, %v3664_v16 }
 0x348   :  { %v3725_v8 = vmax.f32 %v3723_v50, %v3724_v42  ;;  %v3647_v60 = vrot.slane %v3646_v19, 1  ;;  %v3653_v7 = vmax.f32 %v3651_v54, %v3652_v33  ;;  %v1831_v6 = vcombine.high %v777_v55, %v777_v55  ;;  %v4588_v50 = vld [vmem:[#allocation3 + $0x59] sm:$0xff] }
 0x349   :  { %v4358_v27 = vsel %vm4166_vm6, %v3711_v11, %v4357_v49  ;;  %v3660_v36 = vmax.f32 %v3658_v4, %v3659_v12  ;;  %v3666_v57 = vrot.slane %v3665_v40, 2  ;;  %v1838_v15 = vrot.slane %v777_v55, %v8957_v52 }
 0x34a   :  { %v4359_v51 = vsel %vm4168_vm7, %v3718_v18, %v4358_v27  ;;  %v3648_v62 = vmax.f32 %v3646_v19, %v3647_v60  ;;  %v3654_v63 = vrot.slane %v3653_v7, 1  ;;  %v1845_v3 = vrot.slane %v1831_v6, %v8957_v52 }
 0x34b   :  { %v4360_v2 = vsel %vm4170_vm8, %v3725_v8, %v4359_v51  ;;  %v3661_v20 = vrot.slane %v3660_v36, 1  ;;  %v3667_v26 = vmax.f32 %v3665_v40, %v3666_v57  ;;  %v1846_v29 = vcombine.high %v1838_v15, %v1838_v15 }
 0x34c   :  { %4442 = vst [vmem:[#allocation2 + $0xd8] sm:$0xff] %v4360_v2  ;;  %v3655_v31 = vmax.f32 %v3653_v7, %v3654_v63  ;;  %v4350_v14 = vsel %vm4164_vm5, %v3648_v62, %v4349_v45  ;;  %v1847_v30 = vcombine.high %v1845_v3, %v1845_v3  ;;  %v3782_v5 = vsel %vm2157_vm1, %v1838_v15, -inf }
 0x34d   :  { %v3662_v25 = vmax.f32 %v3660_v36, %v3661_v20  ;;  %v3668_v55 = vrot.slane %v3667_v26, 1  ;;  %v3783_v38 = vrot.slane %v3782_v5, 4  ;;  %v3789_v32 = vsel %vm2157_vm1, %v1846_v29, -inf }
 0x34e   :  { %v4351_v37 = vsel %vm4166_vm6, %v3655_v31, %v4350_v14  ;;  %v3790_v59 = vrot.slane %v3789_v32, 4  ;;  %v3796_v41 = vsel %vm2157_vm1, %v1845_v3, -inf  ;;  %v3803_v48 = vsel %vm2157_vm1, %v1847_v30, -inf }
 0x34f   :  { %v3669_v9 = vmax.f32 %v3667_v26, %v3668_v55  ;;  %v4352_v45 = vsel %vm4168_vm7, %v3662_v25, %v4351_v37  ;;  %v3784_v35 = vmax.f32 %v3782_v5, %v3783_v38  ;;  %v3797_v21 = vrot.slane %v3796_v41, 4 }
 0x350   :  { %v3791_v23 = vmax.f32 %v3789_v32, %v3790_v59  ;;  %v3804_v39 = vrot.slane %v3803_v48, 4  ;;  %v690_v22 = vadd.f32 %v9964_v46, %v9883_v28  ;;  %v4632_v24 = vpack.c.bf16 %v4571_v34, %v4570_v47 }
 0x351   :  { %v4353_v43 = vsel %vm4170_vm8, %v3669_v9, %v4352_v45  ;;  %v3785_v54 = vrot.slane %v3784_v35, 2  ;;  %v3798_v1 = vmax.f32 %v3796_v41, %v3797_v21  ;;  %v4638_v58 = vpack.c.bf16 %v4589_v61, %v4588_v50 }
 0x352   :  { %4441 = vst [vmem:[#allocation2 + $0xd0] sm:$0xff] %v4353_v43  ;;  %v3792_v4 = vrot.slane %v3791_v23, 2  ;;  %v3805_v16 = vmax.f32 %v3803_v48, %v3804_v39  ;;  %v775_v18 = vmax.f32 %v690_v22, 0.0  ;;  %5139 = vmatmul.mubr.bf16.gmra.mrb[48].mxu1 %v4632_v24  ;;  %v701_v42 = vadd.f32 %v9964_v46, %v9908_v13 }
 0x353   :  { %v3786_v19 = vmax.f32 %v3784_v35, %v3785_v54  ;;  %v3799_v33 = vrot.slane %v3798_v1, 2  ;;  %5146 = vmatprep.mubr.bf16.mxu1 %v4638_v58  ;;  %v693_v28 = vadd.f32 %v9964_v46, %v9916_v56  ;;  %v10086_v11 = vadd.f32 %v9964_v46, %v9939_v44 }
 0x354   :  { %v3793_v49 = vmax.f32 %v3791_v23, %v3792_v4  ;;  %v3806_v12 = vrot.slane %v3805_v16, 2  ;;  %v1797_v40 = vcombine.high %v775_v18, %v775_v18  ;;  %v1804_v8 = vrot.slane %v775_v18, %v8957_v52 }
 0x355   :  { %v3787_v60 = vrot.slane %v3786_v19, 1  ;;  %v3800_v7 = vmax.f32 %v3798_v1, %v3799_v33  ;;  %v778_v6 = vmax.f32 %v701_v42, 0.0  ;;  %v10089_v27 = vmax.f32 %v693_v28, 0.0 }
 0x356   :  { %v3794_v13 = vrot.slane %v3793_v49, 1  ;;  %v3807_v36 = vmax.f32 %v3805_v16, %v3806_v12  ;;  %v1811_v57 = vrot.slane %v1797_v40, %v8957_v52  ;;  %v1812_v15 = vcombine.high %v1804_v8, %v1804_v8  ;;  %v10110_v12 = vpop.f32.mrb[0].mxu1 }
 0x357   :  { %v3788_v56 = vmax.f32 %v3786_v19, %v3787_v60  ;;  %v3801_v51 = vrot.slane %v3800_v7, 1  ;;  %v3726_v44 = vsel %vm2157_vm1, %v1804_v8, -inf  ;;  %v1848_v62 = vcombine.high %v778_v6, %v778_v6 }
 0x358   :  { %v3795_v63 = vmax.f32 %v3793_v49, %v3794_v13  ;;  %v3808_v3 = vrot.slane %v3807_v36, 1  ;;  %v1813_v2 = vcombine.high %v1811_v57, %v1811_v57  ;;  %v3727_v20 = vrot.slane %v3726_v44, 4 }
 0x359   :  { %v3802_v26 = vmax.f32 %v3800_v7, %v3801_v51  ;;  %v3733_v29 = vsel %vm2157_vm1, %v1812_v15, -inf  ;;  %v3740_v31 = vsel %vm2157_vm1, %v1811_v57, -inf  ;;  %v1855_v14 = vrot.slane %v778_v6, %v8957_v52  ;;  %v10096_v30 = vld [vmem:[#allocation2 + $0xcd] sm:$0xff]  ;;  %v10098_v5 = vld [vmem:[#allocation2 + $0xd5] sm:$0xff]  ;;  %v10112_v6 = vpop.f32.mrb[1].mxu1 }
 0x35a   :  { %v3809_v25 = vmax.f32 %v3807_v36, %v3808_v3  ;;  %v4368_v55 = vsel %vm4158_vm2, %v3795_v63, %v3788_v56  ;;  %v3728_v38 = vmax.f32 %v3726_v44, %v3727_v20  ;;  %v3734_v32 = vrot.slane %v3733_v29, 4  ;;  %6220 = vst [vmem:[#allocation3 + $0xe0] sm:$0xff] %v10096_v30  ;;  %6221 = vst [vmem:[#allocation3 + $0xe8] sm:$0xff] %v10098_v5  ;;  %v10115_v63 = vpop.f32.mrb[2].mxu1 }
 0x35b   :  { %v4369_v47 = vsel %vm4160_vm3, %v3802_v26, %v4368_v55  ;;  %v3741_v34 = vrot.slane %v3740_v31, 4  ;;  %v3747_v37 = vsel %vm2157_vm1, %v1813_v2, -inf  ;;  %v1862_v59 = vrot.slane %v1848_v62, %v8957_v52 }
 0x35c   :  { %v3729_v41 = vrot.slane %v3728_v38, 2  ;;  %v3735_v48 = vmax.f32 %v3733_v29, %v3734_v32  ;;  %v3748_v61 = vrot.slane %v3747_v37, 4  ;;  %v1863_v9 = vcombine.high %v1855_v14, %v1855_v14  ;;  %v10117_v29 = vpop.f32.mrb[3].mxu1 }
 0x35d   :  { %v3742_v45 = vmax.f32 %v3740_v31, %v3741_v34  ;;  %v1864_v35 = vcombine.high %v1862_v59, %v1862_v59  ;;  %v3810_v21 = vsel %vm2157_vm1, %v1855_v14, -inf  ;;  %v3824_v23 = vsel %vm2157_vm1, %v1862_v59, -inf }
 0x35e   :  { %v3730_v39 = vmax.f32 %v3728_v38, %v3729_v41  ;;  %v3736_v22 = vrot.slane %v3735_v48, 2  ;;  %v3749_v24 = vmax.f32 %v3747_v37, %v3748_v61  ;;  %v3811_v50 = vrot.slane %v3810_v21, 4  ;;  %v10129_v61 = vpop.f32.mrb[4].mxu1 }
 0x35f   :  { %v3743_v43 = vrot.slane %v3742_v45, 2  ;;  %v3817_v54 = vsel %vm2157_vm1, %v1863_v9, -inf  ;;  %v3825_v1 = vrot.slane %v3824_v23, 4  ;;  %v3831_v58 = vsel %vm2157_vm1, %v1864_v35, -inf  ;;  %v10131_v9 = vpop.f32.mrb[64].mxu0 }
 0x360   :  { %v3731_v4 = vrot.slane %v3730_v39, 1  ;;  %v3737_v16 = vmax.f32 %v3735_v48, %v3736_v22  ;;  %v3750_v18 = vrot.slane %v3749_v24, 2  ;;  %v3812_v42 = vmax.f32 %v3810_v21, %v3811_v50  ;;  %11142 = vst [vmem:[#allocation12_spill] sm:$0xff] %v10131_v9  ;;  %v10136_v22 = vpop.f32.mrb[65].mxu0 }
 0x361   :  { %v3744_v19 = vmax.f32 %v3742_v45, %v3743_v43  ;;  %v3818_v33 = vrot.slane %v3817_v54, 4  ;;  %v3826_v28 = vmax.f32 %v3824_v23, %v3825_v1  ;;  %v3832_v49 = vrot.slane %v3831_v58, 4  ;;  %v10142_v1 = vpop.f32.mrb[66].mxu0 }
 0x362   :  { %v3732_v40 = vmax.f32 %v3730_v39, %v3731_v4  ;;  %v3738_v8 = vrot.slane %v3737_v16, 1  ;;  %v3751_v60 = vmax.f32 %v3749_v24, %v3750_v18  ;;  %v3813_v7 = vrot.slane %v3812_v42, 2  ;;  %v10134_v39 = vpop.f32.mrb[5].mxu1  ;;  %11143 = vst [vmem:[#allocation13_spill] sm:$0xff] %v10142_v1 }
 0x363   :  { %v3745_v13 = vrot.slane %v3744_v19, 1  ;;  %v3819_v36 = vmax.f32 %v3817_v54, %v3818_v33  ;;  %v3827_v57 = vrot.slane %v3826_v28, 2  ;;  %v3833_v15 = vmax.f32 %v3831_v58, %v3832_v49  ;;  %v10140_v54 = vpop.f32.mrb[6].mxu1 }
 0x364   :  { %v3739_v56 = vmax.f32 %v3737_v16, %v3738_v8  ;;  %v3752_v51 = vrot.slane %v3751_v60, 1  ;;  %v3814_v44 = vmax.f32 %v3812_v42, %v3813_v7  ;;  %v4370_v62 = vsel %vm4162_vm4, %v3809_v25, %v4369_v47  ;;  %v10147_v42 = vpop.f32.mrb[67].mxu0 }
 0x365   :  { %v3746_v3 = vmax.f32 %v3744_v19, %v3745_v13  ;;  %v3820_v2 = vrot.slane %v3819_v36, 2  ;;  %v3828_v20 = vmax.f32 %v3826_v28, %v3827_v57  ;;  %v3834_v26 = vrot.slane %v3833_v15, 2  ;;  %11144 = vst [vmem:[#allocation14_spill] sm:$0xff] %v10147_v42 }
 0x366   :  { %v3753_v31 = vmax.f32 %v3751_v60, %v3752_v51  ;;  %v4361_v14 = vsel %vm4158_vm2, %v3739_v56, %v3732_v40  ;;  %v3815_v55 = vrot.slane %v3814_v44, 1  ;;  %v1814_v38 = vcombine.high %v10089_v27, %v10089_v27 }
 0x367   :  { %v4362_v32 = vsel %vm4160_vm3, %v3746_v3, %v4361_v14  ;;  %v3821_v34 = vmax.f32 %v3819_v36, %v3820_v2  ;;  %v3829_v37 = vrot.slane %v3828_v20, 1  ;;  %v3835_v25 = vmax.f32 %v3833_v15, %v3834_v26  ;;  %v4572_v26 = vld [vmem:[#allocation3 + $0x58] sm:$0xff] }
 0x368   :  { %v3816_v47 = vmax.f32 %v3814_v44, %v3815_v55  ;;  %v1821_v59 = vrot.slane %v10089_v27, %v8957_v52  ;;  %v1828_v41 = vrot.slane %v1814_v38, %v8957_v52  ;;  %v10127_v48 = vsel %vm4162_vm4, %v3753_v31, %v4362_v32  ;;  %v4573_v31 = vld [vmem:[#allocation3 + $0x60] sm:$0xff] }
 0x369   :  { %v3822_v45 = vrot.slane %v3821_v34, 1  ;;  %v3830_v35 = vmax.f32 %v3828_v20, %v3829_v37  ;;  %v3836_v21 = vrot.slane %v3835_v25, 1  ;;  %v781_v23 = vmax.f32 %v10086_v11, 0.0  ;;  %v10145_v11 = vpop.f32.mrb[7].mxu1 }
 0x36a   :  { %v4371_v27 = vsel %vm4164_vm5, %v3816_v47, %v4370_v62  ;;  %v1829_v24 = vcombine.high %v1821_v59, %v1821_v59  ;;  %v1830_v50 = vcombine.high %v1828_v41, %v1828_v41  ;;  %v3754_v43 = vsel %vm2157_vm1, %v1821_v59, -inf  ;;  %v10152_v40 = vpop.f32.mrb[8].mxu1 }
 0x36b   :  { %v3823_v58 = vmax.f32 %v3821_v34, %v3822_v45  ;;  %v3837_v4 = vmax.f32 %v3835_v25, %v3836_v21  ;;  %v3755_v16 = vrot.slane %v3754_v43, 4  ;;  %v3768_v18 = vsel %vm2157_vm1, %v1828_v41, -inf  ;;  %v10155_v36 = vpop.f32.mrb[9].mxu1 }
 0x36c   :  { %v3761_v19 = vsel %vm2157_vm1, %v1829_v24, -inf  ;;  %v3769_v33 = vrot.slane %v3768_v18, 4  ;;  %v3775_v28 = vsel %vm2157_vm1, %v1830_v50, -inf  ;;  %v1905_v49 = vrot.slane %v781_v23, %v8957_v52  ;;  %v10159_v44 = vpop.f32.mrb[10].mxu1 }
 0x36d   :  { %v4372_v8 = vsel %vm4166_vm6, %v3823_v58, %v4371_v27  ;;  %v3756_v60 = vmax.f32 %v3754_v43, %v3755_v16  ;;  %v3762_v7 = vrot.slane %v3761_v19, 4  ;;  %v3776_v13 = vrot.slane %v3775_v28, 4  ;;  %v10162_v14 = vpop.f32.mrb[11].mxu1 }
 0x36e   :  { %v4373_v57 = vsel %vm4168_vm7, %v3830_v35, %v4372_v8  ;;  %v3770_v15 = vmax.f32 %v3768_v18, %v3769_v33  ;;  %v1906_v56 = vcombine.high %v1905_v49, %v1905_v49  ;;  %v3894_v51 = vsel %vm2157_vm1, %v1905_v49, -inf  ;;  %v10167_v37 = vpop.f32.mrb[12].mxu1 }
 0x36f   :  { %v4374_v62 = vsel %vm4170_vm8, %v3837_v4, %v4373_v57  ;;  %v3757_v3 = vrot.slane %v3756_v60, 2  ;;  %v3763_v2 = vmax.f32 %v3761_v19, %v3762_v7  ;;  %v3777_v20 = vmax.f32 %v3775_v28, %v3776_v13  ;;  %v10169_v45 = vpop.f32.mrb[13].mxu1 }
 0x370   :  { %4444 = vst [vmem:[#allocation2 + $0xe8] sm:$0xff] %v4374_v62  ;;  %v3771_v55 = vrot.slane %v3770_v15, 2  ;;  %v3895_v38 = vrot.slane %v3894_v51, 4  ;;  %v3901_v32 = vsel %vm2157_vm1, %v1906_v56, -inf  ;;  %v706_v34 = vadd.f32 %v9964_v46, %v9947_v0  ;;  %v10171_v24 = vpop.f32.mrb[14].mxu1 }
 0x371   :  { %v3758_v25 = vmax.f32 %v3756_v60, %v3757_v3  ;;  %v3764_v47 = vrot.slane %v3763_v2, 2  ;;  %v3778_v59 = vrot.slane %v3777_v20, 2  ;;  %v3902_v41 = vrot.slane %v3901_v32, 4  ;;  %v10173_v16 = vpop.f32.mrb[15].mxu1 }
 0x372   :  { %v3772_v35 = vmax.f32 %v3770_v15, %v3771_v55  ;;  %v3896_v21 = vmax.f32 %v3894_v51, %v3895_v38  ;;  %v779_v23 = vmax.f32 %v706_v34, 0.0  ;;  %v4637_v27 = vpack.c.bf16 %v4573_v31, %v4572_v26 }
 0x373   :  { %v3759_v50 = vrot.slane %v3758_v25, 1  ;;  %v3765_v43 = vmax.f32 %v3763_v2, %v3764_v47  ;;  %v3779_v58 = vmax.f32 %v3777_v20, %v3778_v59  ;;  %v3903_v4 = vmax.f32 %v3901_v32, %v3902_v41  ;;  %v10175_v0 = vpop.f32.mrb[68].mxu0  ;;  %v10178_v28 = vpop.f32.mrb[16].mxu1 }
 0x374   :  { %11145 = vst [vmem:[#allocation15_spill] sm:$0xff] %v10175_v0  ;;  %v3773_v46 = vrot.slane %v3772_v35, 1  ;;  %v3897_v18 = vrot.slane %v3896_v21, 2  ;;  %v1865_v19 = vcombine.high %v779_v23, %v779_v23  ;;  %v1872_v33 = vrot.slane %v779_v23, %v8957_v52  ;;  %5147 = vmatmul.mubr.bf16.gmra.mrb[52].mxu1 %v4637_v27  ;;  %v10180_v49 = vpop.f32.mrb[69].mxu0  ;;  %v10182_v57 = vpop.f32.mrb[17].mxu1  ;;  %v4590_v27 = vld [vmem:[#allocation3 + $0x69] sm:$0xff] }
 0x375   :  { %11146 = vst [vmem:[#allocation16_spill] sm:$0xff] %v10180_v49  ;;  %v3760_v8 = vmax.f32 %v3758_v25, %v3759_v50  ;;  %v3766_v60 = vrot.slane %v3765_v43, 1  ;;  %v3780_v7 = vrot.slane %v3779_v58, 1  ;;  %v3904_v13 = vrot.slane %v3903_v4, 2  ;;  %v10184_v15 = vpop.f32.mrb[70].mxu0  ;;  %v10187_v2 = vpop.f32.mrb[18].mxu1 }
 0x376   :  { %11147 = vst [vmem:[#allocation17_spill] sm:$0xff] %v10184_v15  ;;  %v3774_v56 = vmax.f32 %v3772_v35, %v3773_v46  ;;  %v3898_v51 = vmax.f32 %v3896_v21, %v3897_v18  ;;  %v1879_v62 = vrot.slane %v1865_v19, %v8957_v52  ;;  %v1880_v3 = vcombine.high %v1872_v33, %v1872_v33  ;;  %v10189_v20 = vpop.f32.mrb[71].mxu0  ;;  %v10193_v32 = vpop.f32.mrb[19].mxu1  ;;  %v4591_v50 = vld [vmem:[#allocation3 + $0x71] sm:$0xff]  ;;  %v6276_v46 = vld [vmem:[#allocation3 + $0xa1] sm:$0xff]  ;;  %v6277_v18 = vld [vmem:[#allocation3 + $0xa9] sm:$0xff] }
 0x377   :  { %11148 = vst [vmem:[#allocation18_spill] sm:$0xff] %v10189_v20  ;;  %v3767_v26 = vmax.f32 %v3765_v43, %v3766_v60  ;;  %v3781_v31 = vmax.f32 %v3779_v58, %v3780_v7  ;;  %v4364_v55 = vsel %vm4164_vm5, %v3760_v8, %v10127_v48  ;;  %v3905_v38 = vmax.f32 %v3903_v4, %v3904_v13  ;;  %v4574_v7 = vld [vmem:[#allocation3 + $0x68] sm:$0xff]  ;;  %v4575_v13 = vld [vmem:[#allocation3 + $0x70] sm:$0xff] }
 0x378   :  { %v3899_v34 = vrot.slane %v3898_v51, 1  ;;  %v1881_v25 = vcombine.high %v1879_v62, %v1879_v62  ;;  %v3838_v47 = vsel %vm2157_vm1, %v1872_v33, -inf  ;;  %v3845_v59 = vsel %vm2157_vm1, %v1880_v3, -inf  ;;  %v4592_v3 = vld [vmem:[#allocation3 + $0x79] sm:$0xff] }
 0x379   :  { %v4365_v41 = vsel %vm4166_vm6, %v3767_v26, %v4364_v55  ;;  %v3906_v35 = vrot.slane %v3905_v38, 1  ;;  %v3839_v21 = vrot.slane %v3838_v47, 4  ;;  %v3846_v23 = vrot.slane %v3845_v59, 4 }
 0x37a   :  { %v4366_v43 = vsel %vm4168_vm7, %v3774_v56, %v4365_v41  ;;  %v3900_v58 = vmax.f32 %v3898_v51, %v3899_v34  ;;  %v3852_v48 = vsel %vm2157_vm1, %v1879_v62, -inf  ;;  %v3859_v4 = vsel %vm2157_vm1, %v1881_v25, -inf  ;;  %v8650_v34 = vld [vmem:[#allocation6] ss:$0 sm:$0xff]  ;;  %v4593_v41 = vld [vmem:[#allocation3 + $0x81] sm:$0x1f] }
 0x37b   :  { %v4367_v19 = vsel %vm4170_vm8, %v3781_v31, %v4366_v43  ;;  %v3907_v33 = vmax.f32 %v3905_v38, %v3906_v35  ;;  %v3840_v8 = vmax.f32 %v3838_v47, %v3839_v21  ;;  %v3847_v60 = vmax.f32 %v3845_v59, %v3846_v23  ;;  %v10202_v26 = vpop.f32.mrb[20].mxu1  ;;  %v6260_v25 = vld [vmem:[#allocation3 + $0xa0] sm:$0xff] }
 0x37c   :  { %4443 = vst [vmem:[#allocation2 + $0xe0] sm:$0xff] %v4367_v19  ;;  %v3853_v55 = vrot.slane %v3852_v48, 4  ;;  %v3860_v56 = vrot.slane %v3859_v4, 4  ;;  %v4643_v51 = vpack.c.bf16 %v4591_v50, %v4590_v27  ;;  %v709_v62 = vadd.f32 %v8650_v34, %v9960_v53  ;;  %v10205_v15 = vpop.f32.mrb[21].mxu1  ;;  %v6278_v53 = vld [vmem:[#allocation3 + $0xb1] sm:$0xff]  ;;  %v6279_v19 = vld [vmem:[#allocation3 + $0xb9] sm:$0xff] }
 0x37d   :  { %v4382_v31 = vsel %vm4158_vm2, %v3907_v33, %v3900_v58  ;;  %v3841_v38 = vrot.slane %v3840_v8, 2  ;;  %v3848_v47 = vrot.slane %v3847_v60, 2  ;;  %v6314_v59 = vpack.c.bf16 %v6277_v18, %v6276_v46  ;;  %v10208_v35 = vpop.f32.mrb[22].mxu1  ;;  %v10210_v21 = vpop.f32.mrb[72].mxu0  ;;  %v8651_v46 = vld [vmem:[#allocation3 + $0xa8] sm:$0xff] }
 0x37e   :  { %11149 = vst [vmem:[#allocation19_spill] sm:$0xff] %v10210_v21  ;;  %4446 = vst [vmem:[#allocation2 + $0xf8] sm:$0x3] %v4382_v31  ;;  %v3854_v23 = vmax.f32 %v3852_v48, %v3853_v55  ;;  %v3861_v43 = vmax.f32 %v3859_v4, %v3860_v56  ;;  %5154 = vmatprep.mubr.bf16.mxu1 %v4643_v51  ;;  %v780_v27 = vmax.f32 %v709_v62, 0.0  ;;  %v10212_v34 = vpop.f32.mrb[23].mxu1  ;;  %v10214_v0 = vpop.f32.mrb[73].mxu0 }
 0x37f   :  { %v4642_v50 = vpack.c.bf16 %v4575_v13, %v4574_v7  ;;  %11150 = vst [vmem:[#allocation20_spill] sm:$0xff] %v10214_v0  ;;  %v3842_v58 = vmax.f32 %v3840_v8, %v3841_v38  ;;  %v3849_v33 = vmax.f32 %v3847_v60, %v3848_v47  ;;  %6810 = vmatprep.mubr.bf16.mxu0 %v6314_v59  ;;  %v10216_v49 = vpop.f32.mrb[74].mxu0  ;;  %v4577_v60 = vld [vmem:[#allocation3 + $0x80] sm:$0x1f] }
 0x380   :  { %v6313_v18 = vpack.c.bf16 %v8651_v46, %v6260_v25  ;;  %v4648_v20 = vpack.c.bf16 %v4593_v41, %v4592_v3  ;;  %11151 = vst [vmem:[#allocation21_spill] sm:$0xff] %v10216_v49  ;;  %v3855_v31 = vrot.slane %v3854_v23, 2  ;;  %v3862_v48 = vrot.slane %v3861_v43, 2  ;;  %v10219_v7 = vpop.f32.mrb[75].mxu0  ;;  %v4576_v41 = vld [vmem:[#allocation3 + $0x78] sm:$0xff] }
 0x381   :  { %v1882_v4 = vcombine.high %v780_v27, %v780_v27  ;;  %v1889_v55 = vrot.slane %v780_v27, %v8957_v52  ;;  %5155 = vmatmul.mubr.bf16.gmra.mrb[56].mxu1 %v4642_v50  ;;  %11152 = vst [vmem:[#allocation22_spill] sm:$0xff] %v10219_v7  ;;  %v3843_v13 = vrot.slane %v3842_v58, 1  ;;  %v3850_v56 = vrot.slane %v3849_v33, 1  ;;  %v6242_v27 = vld [vmem:[#allocation3 + $0x8f] sm:$0xff] }
 0x382   :  { %6811 = vmatmul.mubr.bf16.gmra.mrb[84].mxu0 %v6313_v18  ;;  %5162 = vmatprep.mubr.bf16.mxu1 %v4648_v20  ;;  %v6319_v8 = vpack.c.bf16 %v6279_v19, %v6278_v53  ;;  %v3856_v51 = vmax.f32 %v3854_v23, %v3855_v31  ;;  %v3863_v62 = vmax.f32 %v3861_v43, %v3862_v48  ;;  %v6243_v19 = vld [vmem:[#allocation3 + $0x97] sm:$0xff]  ;;  %v6280_v31 = vld [vmem:[#allocation3 + $0xc1] sm:$0xff]  ;;  %v6281_v48 = vld [vmem:[#allocation3 + $0xc9] sm:$0xff] }
 0x383   :  { %v1896_v3 = vrot.slane %v1882_v4, %v8957_v52  ;;  %v1897_v25 = vcombine.high %v1889_v55, %v1889_v55  ;;  %v3844_v38 = vmax.f32 %v3842_v58, %v3843_v13  ;;  %v3851_v47 = vmax.f32 %v3849_v33, %v3850_v56  ;;  %v10223_v50 = vld [vmem:[#allocation2 + $0xdd] sm:$0xff]  ;;  %v10225_v46 = vld [vmem:[#allocation2 + $0xe5] sm:$0xff]  ;;  %v10227_v18 = vpop.f32.mrb[24].mxu1  ;;  %v8652_v13 = vld [vmem:[#allocation3 + $0xb0] sm:$0xff] }
 0x384   :  { %v3866_v59 = vsel %vm2157_vm1, %v1889_v55, -inf  ;;  %6818 = vmatprep.mubr.bf16.mxu0 %v6319_v8  ;;  %11153 = vst [vmem:[#allocation23_spill] sm:$0xff] %v10223_v50  ;;  %11154 = vst [vmem:[#allocation24_spill] sm:$0xff] %v10225_v46  ;;  %v3857_v20 = vrot.slane %v3856_v51, 1  ;;  %v4647_v43 = vpack.c.bf16 %v4577_v60, %v4576_v41  ;;  %v10231_v58 = vpop.f32.mrb[25].mxu1  ;;  %v3864_v33 = vrot.slane %v3863_v62, 1 }
 0x385   :  { %v1898_v53 = vcombine.high %v1896_v3, %v1896_v3  ;;  %v3867_v23 = vrot.slane %v3866_v59, 4  ;;  %6222 = vst [vmem:[#allocation3 + $0xf0] sm:$0xff] %v10223_v50  ;;  %6223 = vst [vmem:[#allocation3 + $0xf8] sm:$0xff] %v10225_v46  ;;  %v3873_v4 = vsel %vm2157_vm1, %v1897_v25, -inf  ;;  %v3880_v55 = vsel %vm2157_vm1, %v1896_v3, -inf  ;;  %v8653_v56 = vld [vmem:[#allocation3 + $0xb8] sm:$0xff] }
 0x386   :  { %v6318_v8 = vpack.c.bf16 %v8653_v56, %v8652_v13  ;;  %v10235_v49 = vpop.f32.mrb[26].mxu1  ;;  %v10237_v60 = vpop.f32.mrb[76].mxu0  ;;  %v3858_v41 = vmax.f32 %v3856_v51, %v3857_v20  ;;  %v4375_v21 = vsel %vm4158_vm2, %v3851_v47, %v3844_v38  ;;  %v3874_v0 = vrot.slane %v3873_v4, 4  ;;  %v6227_v20 = vld [vmem:[#allocation3 + $0x96] sm:$0xff] }
 0x387   :  { %11155 = vst [vmem:[#allocation25_spill] sm:$0xff] %v10237_v60  ;;  %v3868_v7 = vmax.f32 %v3866_v59, %v3867_v23  ;;  %v10240_v1 = vpop.f32.mrb[27].mxu1  ;;  %v10242_v9 = vpop.f32.mrb[77].mxu0  ;;  %v3881_v52 = vrot.slane %v3880_v55, 4  ;;  %v3887_v25 = vsel %vm2157_vm1, %v1898_v53, -inf  ;;  %v6307_v3 = vpack.c.bf16 %v6243_v19, %v6242_v27  ;;  %v6226_v59 = vld [vmem:[#allocation3 + $0x8e] sm:$0xff] }
 0x388   :  { %v6324_v46 = vpack.c.bf16 %v6281_v48, %v6280_v31  ;;  %v10245_v50 = vpop.f32.mrb[78].mxu0  ;;  %v3875_v56 = vmax.f32 %v3873_v4, %v3874_v0  ;;  %v3888_v42 = vrot.slane %v3887_v25, 4  ;;  %v3865_v38 = vmax.f32 %v3863_v62, %v3864_v33  ;;  %v6282_v31 = vld [vmem:[#allocation3 + $0xd1] sm:$0xff]  ;;  %v6283_v48 = vld [vmem:[#allocation3 + $0xd9] sm:$0xff] }
 0x389   :  { %11156 = vst [vmem:[#allocation26_spill] sm:$0xff] %v10245_v50  ;;  %v3869_v13 = vrot.slane %v3868_v7, 2  ;;  %5163 = vmatmul.mubr.bf16.gmra.mrb[60].mxu1 %v4647_v43  ;;  %v10247_v51 = vpop.f32.mrb[79].mxu0  ;;  %v3882_v47 = vmax.f32 %v3880_v55, %v3881_v52  ;;  %v4376_v23 = vsel %vm4160_vm3, %v3858_v41, %v4375_v21  ;;  %v6306_v62 = vpack.c.bf16 %v6227_v20, %v6226_v59  ;;  %v8655_v21 = vld [vmem:[#allocation3 + $0xc8] sm:$0xff]  ;;  %v6244_v41 = vld [vmem:[#allocation3 + $0x9f] sm:$0xff] }
 0x38a   :  { %6819 = vmatmul.mubr.bf16.gmra.mrb[88].mxu0 %v6318_v8  ;;  %6705 = vmatprep.mubr.bf16.mxu1 %v6307_v3  ;;  %v3876_v53 = vrot.slane %v3875_v56, 2  ;;  %v3889_v27 = vmax.f32 %v3887_v25, %v3888_v42  ;;  %v4377_v55 = vsel %vm4162_vm4, %v3865_v38, %v4376_v23  ;;  %v8654_v8 = vld [vmem:[#allocation3 + $0xc0] sm:$0xff]  ;;  %v8639_v38 = vld [vmem:[%s11134_s3 + $0x108] sm:$0xff]  }
 0x38b   :  { %v3870_v60 = vmax.f32 %v3868_v7, %v3869_v13  ;;  %6826 = vmatprep.mubr.bf16.mxu0 %v6324_v46  ;;  %v3883_v19 = vrot.slane %v3882_v47, 2  ;;  %v10250_v0 = vpop.f32.mrb[28].mxu1  ;;  %v6323_v7 = vpack.c.bf16 %v8655_v21, %v8654_v8  ;;  %v6245_v42 = vld [vmem:[#allocation3 + $0xa7] sm:$0xff]  ;;  %v6333_v46 = vpack.c.bf16 %v10098_v5, %v10096_v30  ;;  %v10442_v30 = vld [vmem:[#allocation3 + $0xde] sm:$0xff] }
 0x38c   :  { %v3877_v4 = vmax.f32 %v3875_v56, %v3876_v53  ;;  %v3890_v50 = vrot.slane %v3889_v27, 2  ;;  %v10252_v52 = vpop.f32.mrb[29].mxu1  ;;  %v6329_v53 = vpack.c.bf16 %v6283_v48, %v6282_v31  ;;  %v6312_v8 = vpack.c.bf16 %v6245_v42, %v6244_v41  ;;  %v10444_v5 = vld [vmem:[#allocation3 + $0xe6] sm:$0xff] }
 0x38d   :  { %v3871_v43 = vrot.slane %v3870_v60, 1  ;;  %v3884_v33 = vmax.f32 %v3882_v47, %v3883_v19  ;;  %v10257_v25 = vpop.f32.mrb[30].mxu1 }
 0x38e   :  { %v3878_v13 = vrot.slane %v3877_v4, 1  ;;  %v3891_v56 = vmax.f32 %v3889_v27, %v3890_v50  ;;  %v10259_v59 = vpop.f32.mrb[31].mxu1  ;;  %v8656_v50 = vld [vmem:[%s11134_s3 + $0x100] sm:$0xff]  }
 0x38f   :  { %v3872_v3 = vmax.f32 %v3870_v60, %v3871_v43  ;;  %v3885_v20 = vrot.slane %v3884_v33, 1  ;;  %v6228_v60 = vld [vmem:[#allocation3 + $0x9e] sm:$0xff]  ;;  %v6229_v27 = vld [vmem:[#allocation3 + $0xa6] sm:$0xff] }
 0x390   :  { %v3879_v47 = vmax.f32 %v3877_v4, %v3878_v13  ;;  %v3892_v23 = vrot.slane %v3891_v56, 1  ;;  %v6284_v43 = vld [vmem:[#allocation3 + $0xe1] sm:$0xff]  ;;  %v6285_v4 = vld [vmem:[#allocation3 + $0xe9] sm:$0xff]  ;;  %v6311_v42 = vpack.c.bf16 %v6229_v27, %v6228_v60  ;;  %v8156_v27 = vadd.f32 %v10259_v59, %v10257_v25 }
 0x391   :  { %v4378_v19 = vsel %vm4164_vm5, %v3872_v3, %v4377_v55  ;;  %6706 = vmatmul.mubr.bf16.vlgmr.msra.gmra.mrb[64].mxu1 %v6306_v62  ;;  %v3886_v21 = vmax.f32 %v3884_v33, %v3885_v20  ;;  %v8640_v62 = vld [vmem:[%s11134_s3 + $0x110] sm:$0xff]   ;;  %v8657_v33 = vld [vmem:[#allocation3] sm:$0xff]  ;;  %v6328_v3 = vpack.c.bf16 %v10037_v10, %v10035_v17  ;;  %v6334_v20 = vpack.c.bf16 %v6285_v4, %v6284_v43  ;;  %v8643_v25 = vld [vmem:[%s11134_s3 + $0x128] sm:$0xff]  }
 0x392   :  { %6827 = vmatmul.mubr.bf16.gmra.mrb[92].mxu0 %v6323_v7  ;;  %8490 = vmatpush3.bf16.msra.mxu1 %v8656_v50  ;;  %v3893_v31 = vmax.f32 %v3891_v56, %v3892_v23  ;;  %v4379_v48 = vsel %vm4166_vm6, %v3879_v47, %v4378_v19  ;;  %4482 = vst.msk [vmem:[%s11136_s5] sm:$0xff] %vm4481_vm9, %v8657_v33  ;;  %4483 = vst.msk [vmem:[%s11136_s5 + $0x8] sm:$0xff] %vm4481_vm9, %v8657_v33  ;;  %v6246_v13 = vld [vmem:[#allocation3 + $0xaf] sm:$0xff]  ;;  %v6247_v56 = vld [vmem:[#allocation3 + $0xb7] sm:$0xff] }
 0x393   :  { %6713 = vmatprep.mubr.bf16.mxu1 %v6312_v8  ;;  %6834 = vmatprep.mubr.bf16.mxu0 %v6329_v53  ;;  %4484 = vst.msk [vmem:[%s11136_s5 + $0x10] sm:$0xff] %vm4481_vm9, %v8657_v33  ;;  %4485 = vst.msk [vmem:[%s11136_s5 + $0x18] sm:$0xff] %vm4481_vm9, %v8657_v33  ;;  %v4380_v55 = vsel %vm4168_vm7, %v3886_v21, %v4379_v48  ;;  %v8173_v7 = vpop.f32.mrb[32].mxu1  ;;  %v10340_v47 = vld [vmem:[#allocation8] ss:$0 sm:$0xff]  ;;  %v8111_v23 = vadd.f32 %v10112_v6, %v10110_v12 }
 0x394   :  { %4486 = vst.msk [vmem:[%s11136_s5 + $0x20] sm:$0xff] %vm4481_vm9, %v8657_v33  ;;  %4487 = vst.msk [vmem:[%s11136_s5 + $0x28] sm:$0xff] %vm4481_vm9, %v8657_v33  ;;  %8491 = vmatprep.subr.bf16.mxu1 %v8639_v38  ;;  %v4381_v41 = vsel %vm4170_vm8, %v3893_v31, %v4380_v55  ;;  %v8174_v53 = vpop.f32.mrb[33].mxu1  ;;  %v8114_v19 = vadd.f32 %v10117_v29, %v10115_v63  ;;  %v10348_v8 = vadd.f32 %v10134_v39, %v10129_v61  ;;  %v8641_v61 = vld [vmem:[%s11134_s3 + $0x118] sm:$0xff]   ;;  %v6250_v55 = vld [vmem:[#allocation3 + $0xcf] sm:$0xff] }
 0x395   :  { %4488 = vst.msk [vmem:[%s11136_s5 + $0x30] sm:$0xff] %vm4481_vm9, %v8657_v33  ;;  %4489 = vst.msk [vmem:[%s11136_s5 + $0x38] sm:$0xff] %vm4481_vm9, %v8657_v33  ;;  %v8176_v21 = vpop.f32.mrb[34].mxu1  ;;  %v10352_v17 = vadd.f32 %v10145_v11, %v10140_v54  ;;  %v10356_v10 = vadd.f32 %v10155_v36, %v10152_v40  ;;  %v10360_v12 = vadd.f32 %v10162_v14, %v10159_v44  ;;  %v6248_v50 = vld [vmem:[#allocation3 + $0xbf] sm:$0xff] }
 0x396   :  { %4490 = vst.msk [vmem:[%s11136_s5 + $0x40] sm:$0xff] %vm4481_vm9, %v8657_v33  ;;  %4491 = vst.msk [vmem:[%s11136_s5 + $0x48] sm:$0xff] %vm4481_vm9, %v8657_v33  ;;  %8492 = vmatpush3.bf16.msra.mxu1 %v8639_v38  ;;  %v8129_v6 = vadd.f32 %v10169_v45, %v10167_v37  ;;  %v8177_v63 = vpop.f32.mrb[35].mxu1  ;;  %v6317_v29 = vpack.c.bf16 %v6247_v56, %v6246_v13  ;;  %v8132_v39 = vadd.f32 %v10173_v16, %v10171_v24  ;;  %v6230_v37 = vld [vmem:[#allocation3 + $0xae] sm:$0xff]  ;;  %v6231_v38 = vld [vmem:[#allocation3 + $0xb6] sm:$0xff] }
 0x397   :  { %4492 = vst.msk [vmem:[%s11136_s5 + $0x50] sm:$0xff] %vm4481_vm9, %v8657_v33  ;;  %4493 = vst.msk [vmem:[%s11136_s5 + $0x58] sm:$0xff] %vm4481_vm9, %v8657_v33  ;;  %8493 = vmatprep.subr.bf16.mxu1 %v8640_v62  ;;  %v5012_v54 = vadd.f32 %v8111_v23, %v10340_v47  ;;  %v5015_v11 = vadd.f32 %v8114_v19, %v10340_v47  ;;  %v8135_v44 = vadd.f32 %v10182_v57, %v10178_v28  ;;  %v8642_v28 = vld [vmem:[%s11134_s3 + $0x120] sm:$0xff]   ;;  %v8644_v13 = vld [vmem:[%s11134_s3 + $0x130] sm:$0xff]  }
 0x398   :  { %4494 = vst.msk [vmem:[%s11136_s5 + $0x60] sm:$0xff] %vm4481_vm9, %v8657_v33  ;;  %4495 = vst.msk [vmem:[%s11136_s5 + $0x68] sm:$0xff] %vm4481_vm9, %v8657_v33  ;;  %v10372_v40 = vadd.f32 %v8129_v6, %v10340_v47  ;;  %v10375_v36 = vadd.f32 %v8132_v39, %v10340_v47  ;;  %v8138_v14 = vadd.f32 %v10193_v32, %v10187_v2  ;;  %v6232_v4 = vld [vmem:[#allocation3 + $0xbe] sm:$0xff]  ;;  %v6286_v23 = vld [vmem:[#allocation3 + $0xf1] sm:$0xff] }
 0x399   :  { %4496 = vst.msk [vmem:[%s11136_s5 + $0x70] sm:$0xff] %vm4481_vm9, %v8657_v33  ;;  %4497 = vst.msk [vmem:[%s11136_s5 + $0x78] sm:$0xff] %vm4481_vm9, %v8657_v33  ;;  %6714 = vmatmul.mubr.bf16.gmra.mrb[68].mxu1 %v6311_v42  ;;  %v8141_v45 = vadd.f32 %v10205_v15, %v10202_v26  ;;  %v8144_v24 = vadd.f32 %v10212_v34, %v10208_v35  ;;  %v8147_v16 = vadd.f32 %v10231_v58, %v10227_v18  ;;  %v6249_v26 = vld [vmem:[#allocation3 + $0xc7] sm:$0xff]  ;;  %v10431_v42 = vld [vmem:[#allocation3 + $0xd6] sm:$0xff] }
 0x39a   :  { %4445 = vst [vmem:[#allocation2 + $0xf0] sm:$0xff] %v4381_v41  ;;  %6835 = vmatmul.mubr.bf16.gmra.mrb[96].mxu0 %v6328_v3  ;;  %6721 = vmatprep.mubr.bf16.mxu1 %v6317_v29  ;;  %v10391_v57 = vadd.f32 %v8135_v44, %v10340_v47  ;;  %v10394_v2 = vadd.f32 %v8138_v14, %v10340_v47  ;;  %v6233_v33 = vld [vmem:[#allocation3 + $0xc6] sm:$0xff]  ;;  %v6251_v41 = vld [vmem:[#allocation3 + $0xd7] sm:$0xff] }
 0x39b   :  { %6842 = vmatprep.mubr.bf16.mxu0 %v6334_v20  ;;  %8494 = vmatpush3.bf16.msra.mxu1 %v8640_v62  ;;  %v8150_v15 = vadd.f32 %v10240_v1, %v10235_v49  ;;  %v8153_v32 = vadd.f32 %v10252_v52, %v10250_v0  ;;  %v10403_v18 = vadd.f32 %v8141_v45, %v10340_v47  ;;  %v10433_v3 = vld [vmem:[#allocation3 + $0xdf] sm:$0xff]  ;;  %v10440_v19 = vld [vmem:[#allocation3 + $0xe7] sm:$0xff] }
 0x39c   :  { %8495 = vmatprep.subr.bf16.mxu1 %v8641_v61  ;;  %v10406_v58 = vadd.f32 %v8144_v24, %v10340_v47  ;;  %v10409_v60 = vadd.f32 %v8147_v16, %v10340_v47  ;;  %v8175_v0 = vadd.f32 %v8174_v53, %v8173_v7  ;;  %v8178_v52 = vadd.f32 %v8177_v63, %v8176_v21  ;;  %v10429_v7 = vld [vmem:[#allocation3 + $0xce] sm:$0xff]  ;;  %v11157_v53 = vld [vmem:[#allocation14_spill] sm:$0xff] }
 0x39d   :  { %v10415_v1 = vadd.f32 %v8150_v15, %v10340_v47  ;;  %v10418_v49 = vadd.f32 %v8153_v32, %v10340_v47  ;;  %v6316_v31 = vpack.c.bf16 %v6231_v38, %v6230_v37  ;;  %v10421_v48 = vadd.f32 %v8156_v27, %v10340_v47  ;;  %v10448_v21 = vld [vmem:[#allocation3 + $0xf7] sm:$0xff]  ;;  %v11159_v39 = vld [vmem:[#allocation24_spill] sm:$0xff]  ;;  %v11160_v38 = vld [vmem:[#allocation11_spill] sm:$0xff] }
 0x39e   :  { %v6322_v43 = vpack.c.bf16 %v6249_v26, %v6248_v50  ;;  %v5109_v59 = vadd.f32 %v8175_v0, %v5012_v54  ;;  %v5112_v62 = vadd.f32 %v8178_v52, %v5015_v11  ;;  %v6327_v11 = vpack.c.bf16 %v6251_v41, %v6250_v55  ;;  %v8645_v0 = vld [vmem:[%s11134_s3 + $0x138] sm:$0xff]  }
 0x39f   :  { %8496 = vmatpush3.bf16.msra.mxu1 %v8641_v61  ;;  %v6321_v61 = vpack.c.bf16 %v6233_v33, %v6232_v4  ;;  %v6326_v45 = vpack.c.bf16 %v10431_v42, %v10429_v7  ;;  %v6332_v15 = vpack.c.bf16 %v10440_v19, %v10433_v3 }
 0x3a0   :  { %8497 = vmatprep.subr.bf16.mxu1 %v8642_v28  ;;  %v5206_v56 = vadd.f32 %v10136_v22, %v5109_v59  ;;  %v5209_v20 = vadd.f32 %v11157_v53, %v5112_v62  ;;  %v11158_v22 = vld [vmem:[#allocation23_spill] sm:$0xff] }
 0x3a1   :  { %v10400_v35 = vld [vmem:[#allocation2 + $0xed] sm:$0xff]  ;;  %v6208_v34 = vld [vmem:[#allocation2 + $0xf5] sm:$0x1f]  ;;  %6722 = vmatmul.mubr.bf16.gmra.mrb[72].mxu1 %v6316_v31  ;;  %v6338_v54 = vpack.c.bf16 %v11159_v39, %v11158_v22 }
 0x3a2   :  { %6224 = vst [vmem:[#allocation3 + $0x100] sm:$0xff] %v10400_v35  ;;  %6225 = vst [vmem:[#allocation3 + $0x108] sm:$0x1f] %v6208_v34  ;;  %6843 = vmatmul.mubr.bf16.gmra.mrb[100].mxu0 %v6333_v46  ;;  %6729 = vmatprep.mubr.bf16.mxu1 %v6322_v43  ;;  %v10446_v46 = vld [vmem:[#allocation3 + $0xef] sm:$0xff]  ;;  %v5268_v6 = vmax.f32 %v5206_v56, 0.0  ;;  %v5269_v63 = vmax.f32 %v5209_v20, 0.0  ;;  %v6331_v34 = vpack.c.bf16 %v10444_v5, %v10442_v30 }
 0x3a3   :  { %8498 = vmatpush3.bf16.msra.mxu1 %v8642_v28  ;;  %v6337_v27 = vpack.c.bf16 %v10448_v21, %v10446_v46 }
 0x3a4   :  { %8499 = vmatprep.subr.bf16.mxu1 %v8643_v25  ;;  %v5300_v16 = vcombine.high %v5268_v6, %v5268_v6  ;;  %v5307_v50 = vrot.slane %v5268_v6, %v11160_v38  ;;  %v5317_v32 = vcombine.high %v5269_v63, %v5269_v63  ;;  %v5324_v26 = vrot.slane %v5269_v63, %v11160_v38 }
 0x3a6   :  { %v5314_v52 = vrot.slane %v5300_v16, %v11160_v38  ;;  %v5626_v31 = vsel %vm5625_vm10, %v5307_v50, -inf  ;;  %v5315_v4 = vcombine.high %v5307_v50, %v5307_v50  ;;  %v5331_v59 = vrot.slane %v5317_v32, %v11160_v38 }
 0x3a7   :  { %8500 = vmatpush3.bf16.msra.mxu1 %v8643_v25  ;;  %v5627_v25 = vrot.slane %v5626_v31, 4  ;;  %v5332_v55 = vcombine.high %v5324_v26, %v5324_v26  ;;  %v5654_v41 = vsel %vm5625_vm10, %v5324_v26, -inf }
 0x3a8   :  { %8501 = vmatprep.subr.bf16.mxu1 %v8644_v13  ;;  %v5316_v62 = vcombine.high %v5314_v52, %v5314_v52  ;;  %v5640_v33 = vsel %vm5625_vm10, %v5314_v52, -inf  ;;  %v5633_v42 = vsel %vm5625_vm10, %v5315_v4, -inf  ;;  %v5333_v56 = vcombine.high %v5331_v59, %v5331_v59 }
 0x3a9   :  { %v6287_v29 = vld [vmem:[#allocation3 + $0xf9] sm:$0xff]  ;;  %v6288_v44 = vld [vmem:[#allocation3 + $0x101] sm:$0xff]  ;;  %v6289_v14 = vld [vmem:[#allocation3 + $0x109] sm:$0x1f]  ;;  %6730 = vmatmul.mubr.bf16.gmra.mrb[76].mxu1 %v6321_v61  ;;  %v5628_v7 = vmax.f32 %v5626_v31, %v5627_v25  ;;  %v5641_v3 = vrot.slane %v5640_v33, 4  ;;  %v5655_v20 = vrot.slane %v5654_v41, 4 }
 0x3aa   :  { %v6339_v37 = vpack.c.bf16 %v6287_v29, %v6286_v23  ;;  %v6273_v24 = vld [vmem:[#allocation3 + $0x108] sm:$0x1f]  ;;  %v6344_v28 = vpack.c.bf16 %v6289_v14, %v6288_v44  ;;  %6737 = vmatprep.mubr.bf16.mxu1 %v6327_v11  ;;  %v5647_v53 = vsel %vm5625_vm10, %v5316_v62, -inf  ;;  %v5661_v23 = vsel %vm5625_vm10, %v5332_v55, -inf }
 0x3ab   :  { %v6343_v43 = vpack.c.bf16 %v6273_v24, %v10400_v35  ;;  %8502 = vmatpush3.bf16.msra.mxu1 %v8644_v13  ;;  %v5634_v35 = vrot.slane %v5633_v42, 4  ;;  %v5629_v19 = vrot.slane %v5628_v7, 2  ;;  %v5642_v6 = vmax.f32 %v5640_v33, %v5641_v3 }
 0x3ac   :  { %6850 = vmatprep.mubr.bf16.mxu0 %v6339_v37  ;;  %8503 = vmatprep.subr.bf16.mxu1 %v8645_v0  ;;  %v5648_v63 = vrot.slane %v5647_v53, 4  ;;  %v5662_v29 = vrot.slane %v5661_v23, 4  ;;  %v5656_v22 = vmax.f32 %v5654_v41, %v5655_v20  ;;  %v5668_v13 = vsel %vm5625_vm10, %v5331_v59, -inf }
 0x3ad   :  { %6851 = vmatmul.mubr.bf16.gmra.mrb[104].mxu0 %v6338_v54  ;;  %v5635_v61 = vmax.f32 %v5633_v42, %v5634_v35  ;;  %v5675_v39 = vsel %vm5625_vm10, %v5333_v56, -inf  ;;  %v5630_v54 = vmax.f32 %v5628_v7, %v5629_v19  ;;  %v5643_v11 = vrot.slane %v5642_v6, 2 }
 0x3ae   :  { %6858 = vmatprep.mubr.bf16.mxu0 %v6344_v28  ;;  %v5649_v44 = vmax.f32 %v5647_v53, %v5648_v63  ;;  %v5663_v14 = vmax.f32 %v5661_v23, %v5662_v29  ;;  %v5657_v24 = vrot.slane %v5656_v22, 2  ;;  %v5669_v16 = vrot.slane %v5668_v13, 4 }
 0x3af   :  { %8504 = vmatpush3.bf16.msra.mxu1 %v8645_v0  ;;  %v5636_v37 = vrot.slane %v5635_v61, 2  ;;  %v5676_v50 = vrot.slane %v5675_v39, 4  ;;  %v5631_v28 = vrot.slane %v5630_v54, 1  ;;  %v5644_v32 = vmax.f32 %v5642_v6, %v5643_v11 }
 0x3b0   :  { %v5650_v26 = vrot.slane %v5649_v44, 2  ;;  %v5664_v52 = vrot.slane %v5663_v14, 2  ;;  %v5658_v4 = vmax.f32 %v5656_v22, %v5657_v24  ;;  %v5670_v25 = vmax.f32 %v5668_v13, %v5669_v16 }
 0x3b1   :  { %6738 = vmatmul.mubr.bf16.gmra.mrb[80].mxu1 %v6326_v45  ;;  %v5637_v31 = vmax.f32 %v5635_v61, %v5636_v37  ;;  %v8179_v59 = vpop.f32.mrb[36].mxu1  ;;  %v5020_v0 = vadd.f32 %v10348_v8, %v10340_v47  ;;  %v5645_v62 = vrot.slane %v5644_v32, 1  ;;  %v5632_v42 = vmax.f32 %v5630_v54, %v5631_v28  ;;  %v11161_v28 = vld [vmem:[#allocation12_spill] sm:$0xff] }
 0x3b2   :  { %6745 = vmatprep.mubr.bf16.mxu1 %v6332_v15  ;;  %v5651_v33 = vmax.f32 %v5649_v44, %v5650_v26  ;;  %v5665_v55 = vmax.f32 %v5663_v14, %v5664_v52  ;;  %v8317_v41 = vpop.f32.mrb[80].mxu0  ;;  %v8180_v7 = vpop.f32.mrb[37].mxu1  ;;  %v5671_v3 = vrot.slane %v5670_v25, 2  ;;  %v5677_v56 = vmax.f32 %v5675_v39, %v5676_v50 }
 0x3b3   :  { %v5638_v45 = vrot.slane %v5637_v31, 1  ;;  %v8318_v35 = vpop.f32.mrb[81].mxu0  ;;  %v8182_v53 = vpop.f32.mrb[38].mxu1  ;;  %v5659_v20 = vrot.slane %v5658_v4, 1  ;;  %v8181_v23 = vadd.f32 %v8180_v7, %v8179_v59  ;;  %v5023_v13 = vadd.f32 %v10352_v17, %v10340_v47  ;;  %v6256_v7 = vld [vmem:[#allocation3 + $0xff] sm:$0xff] }
 0x3b4   :  { %v5652_v15 = vrot.slane %v5651_v33, 1  ;;  %v8320_v19 = vpop.f32.mrb[82].mxu0  ;;  %v8183_v6 = vpop.f32.mrb[39].mxu1  ;;  %v5666_v29 = vrot.slane %v5665_v55, 1  ;;  %v5672_v8 = vmax.f32 %v5670_v25, %v5671_v3  ;;  %v5678_v61 = vrot.slane %v5677_v56, 2 }
 0x3b5   :  { %6859 = vmatmul.mubr.bf16.gmra.mrb[108].mxu0 %v6343_v43  ;;  %v5646_v43 = vmax.f32 %v5644_v32, %v5645_v62  ;;  %v5639_v63 = vmax.f32 %v5637_v31, %v5638_v45  ;;  %v8321_v22 = vpop.f32.mrb[83].mxu0  ;;  %v5117_v11 = vadd.f32 %v8181_v23, %v5020_v0  ;;  %v10480_v44 = vadd.f32 %v8318_v35, %v8317_v41  ;;  %v6239_v0 = vld [vmem:[#allocation3 + $0xf6] sm:$0xff]  ;;  %v6241_v23 = vld [vmem:[#allocation3 + $0x106] sm:$0x1f] }
 0x3b6   :  { %v5653_v54 = vmax.f32 %v5651_v33, %v5652_v15  ;;  %v5673_v14 = vrot.slane %v5672_v8, 1  ;;  %v5679_v37 = vmax.f32 %v5677_v56, %v5678_v61  ;;  %v8184_v24 = vadd.f32 %v8183_v6, %v8182_v53  ;;  %v11162_v33 = vld [vmem:[#allocation13_spill] sm:$0xff] }
 0x3b7   :  { %v6122_v39 = vsel %vm4158_vm2, %v5639_v63, %v5632_v42  ;;  %v5660_v50 = vmax.f32 %v5658_v4, %v5659_v20  ;;  %v5214_v32 = vadd.f32 %v11161_v28, %v5117_v11  ;;  %v10488_v26 = vadd.f32 %v8321_v22, %v8320_v19  ;;  %v6257_v42 = vld [vmem:[#allocation3 + $0x107] sm:$0x1f]  ;;  %v6240_v20 = vld [vmem:[#allocation3 + $0xfe] sm:$0xff]  ;;  %v6290_v19 = vld [vmem:[#allocation3 + $0x92] sm:$0xff] }
 0x3b8   :  { %v6123_v16 = vsel %vm4160_vm3, %v5646_v43, %v6122_v39  ;;  %v5667_v17 = vmax.f32 %v5665_v55, %v5666_v29  ;;  %v5680_v52 = vrot.slane %v5679_v37, 1  ;;  %v5120_v25 = vadd.f32 %v8184_v24, %v5023_v13  ;;  %v6291_v55 = vld [vmem:[#allocation3 + $0x9a] sm:$0xff] }
 0x3b9   :  { %6746 = vmatmul.mubr.bf16.gmra.mrb[84].mxu1 %v6331_v34  ;;  %v6124_v31 = vsel %vm4162_vm4, %v5653_v54, %v6123_v16  ;;  %v5674_v59 = vmax.f32 %v5672_v8, %v5673_v14  ;;  %v5270_v5 = vmax.f32 %v5214_v32, 0.0  ;;  %v6238_v34 = vld [vmem:[#allocation3 + $0xee] sm:$0xff]  ;;  %v6342_v15 = vpack.c.bf16 %v6257_v42, %v6256_v7 }
 0x3ba   :  { %6753 = vmatprep.mubr.bf16.mxu1 %v6337_v27  ;;  %v6125_v30 = vsel %vm4164_vm5, %v5660_v50, %v6124_v31  ;;  %v5681_v4 = vmax.f32 %v5679_v37, %v5680_v52  ;;  %v5217_v41 = vadd.f32 %v11162_v33, %v5120_v25  ;;  %v6336_v56 = vpack.c.bf16 %v6239_v0, %v6238_v34 }
 0x3bb   :  { %v6126_v62 = vsel %vm4166_vm6, %v5667_v17, %v6125_v30  ;;  %v5334_v21 = vcombine.high %v5270_v5, %v5270_v5  ;;  %v5341_v27 = vrot.slane %v5270_v5, %v11160_v38  ;;  %v6310_v8 = vpack.c.bf16 %v6291_v55, %v6290_v19 }
 0x3bc   :  { %v6127_v46 = vsel %vm4168_vm7, %v5674_v59, %v6126_v62  ;;  %v5271_v3 = vmax.f32 %v5217_v41, 0.0  ;;  %v6341_v37 = vpack.c.bf16 %v6241_v23, %v6240_v20  ;;  %v6293_v20 = vld [vmem:[#allocation3 + $0xaa] sm:$0xff] }
 0x3bd   :  { %v6128_v45 = vsel %vm4170_vm8, %v5681_v4, %v6127_v46  ;;  %v5348_v35 = vrot.slane %v5334_v21, %v11160_v38  ;;  %v5349_v53 = vcombine.high %v5341_v27, %v5341_v27  ;;  %v5682_v43 = vsel %vm5625_vm10, %v5341_v27, -inf }
 0x3be   :  { %6184 = vst.msk [vmem:[%s11136_s5] sm:$0xff] %vm4481_vm9, %v6128_v45  ;;  %v5683_v6 = vrot.slane %v5682_v43, 4  ;;  %v5351_v63 = vcombine.high %v5271_v3, %v5271_v3  ;;  %v5358_v29 = vrot.slane %v5271_v3, %v11160_v38 }
 0x3bf   :  { %v5350_v61 = vcombine.high %v5348_v35, %v5348_v35  ;;  %v5689_v22 = vsel %vm5625_vm10, %v5349_v53, -inf  ;;  %v5696_v13 = vsel %vm5625_vm10, %v5348_v35, -inf }
 0x3c0   :  { %v5684_v54 = vmax.f32 %v5682_v43, %v5683_v6  ;;  %v5690_v11 = vrot.slane %v5689_v22, 4  ;;  %v5697_v39 = vrot.slane %v5696_v13, 4  ;;  %v5365_v14 = vrot.slane %v5351_v63, %v11160_v38 }
 0x3c1   :  { %6754 = vmatmul.mubr.bf16.gmra.mrb[88].mxu1 %v6336_v56  ;;  %v5703_v24 = vsel %vm5625_vm10, %v5350_v61, -inf  ;;  %v5366_v16 = vcombine.high %v5358_v29, %v5358_v29  ;;  %v5710_v50 = vsel %vm5625_vm10, %v5358_v29, -inf }
 0x3c2   :  { %6761 = vmatprep.mubr.bf16.mxu1 %v6342_v15  ;;  %v5685_v28 = vrot.slane %v5684_v54, 2  ;;  %v5691_v32 = vmax.f32 %v5689_v22, %v5690_v11  ;;  %v5698_v17 = vmax.f32 %v5696_v13, %v5697_v39  ;;  %v5704_v52 = vrot.slane %v5703_v24, 4  ;;  %v6292_v15 = vld [vmem:[#allocation3 + $0xa2] sm:$0xff]  ;;  %v6295_v11 = vld [vmem:[#allocation3 + $0xba] sm:$0xff] }
 0x3c3   :  { %v5367_v31 = vcombine.high %v5365_v14, %v5365_v14  ;;  %v5711_v25 = vrot.slane %v5710_v50, 4  ;;  %v5717_v59 = vsel %vm5625_vm10, %v5366_v16, -inf  ;;  %v5724_v30 = vsel %vm5625_vm10, %v5365_v14, -inf }
 0x3c4   :  { %v5686_v5 = vmax.f32 %v5684_v54, %v5685_v28  ;;  %v5692_v34 = vrot.slane %v5691_v32, 2  ;;  %v5699_v0 = vrot.slane %v5698_v17, 2  ;;  %v5705_v4 = vmax.f32 %v5703_v24, %v5704_v52  ;;  %v6294_v54 = vld [vmem:[#allocation3 + $0xb2] sm:$0xff] }
 0x3c5   :  { %v5712_v62 = vmax.f32 %v5710_v50, %v5711_v25  ;;  %v5718_v33 = vrot.slane %v5717_v59, 4  ;;  %v5725_v41 = vrot.slane %v5724_v30, 4  ;;  %v5731_v7 = vsel %vm5625_vm10, %v5367_v31, -inf }
 0x3c6   :  { %v5687_v42 = vrot.slane %v5686_v5, 1  ;;  %v5693_v46 = vmax.f32 %v5691_v32, %v5692_v34  ;;  %v5700_v21 = vmax.f32 %v5698_v17, %v5699_v0  ;;  %v5706_v27 = vrot.slane %v5705_v4, 2 }
 0x3c7   :  { %v5713_v55 = vrot.slane %v5712_v62, 2  ;;  %v5719_v45 = vmax.f32 %v5717_v59, %v5718_v33  ;;  %v5726_v3 = vmax.f32 %v5724_v30, %v5725_v41  ;;  %v5732_v56 = vrot.slane %v5731_v7, 4 }
 0x3c8   :  { %v5694_v35 = vrot.slane %v5693_v46, 1  ;;  %v5701_v53 = vrot.slane %v5700_v21, 1  ;;  %v5707_v43 = vmax.f32 %v5705_v4, %v5706_v27  ;;  %v5688_v29 = vmax.f32 %v5686_v5, %v5687_v42 }
 0x3c9   :  { %6762 = vmatmul.mubr.bf16.gmra.mrb[92].mxu1 %v6341_v37  ;;  %v5714_v23 = vmax.f32 %v5712_v62, %v5713_v55  ;;  %v5720_v19 = vrot.slane %v5719_v45, 2  ;;  %v5727_v6 = vrot.slane %v5726_v3, 2  ;;  %v5733_v63 = vmax.f32 %v5731_v7, %v5732_v56  ;;  %v6299_v56 = vld [vmem:[#allocation3 + $0xda] sm:$0xff] }
 0x3ca   :  { %8505 = vmatprep.mubr.bf16.mxu1 %v6310_v8  ;;  %v5695_v61 = vmax.f32 %v5693_v46, %v5694_v35  ;;  %v5702_v22 = vmax.f32 %v5700_v21, %v5701_v53  ;;  %v5708_v13 = vrot.slane %v5707_v43, 1  ;;  %v6315_v8 = vpack.c.bf16 %v6293_v20, %v6292_v15  ;;  %v6296_v46 = vld [vmem:[#allocation3 + $0xc2] sm:$0xff]  ;;  %v6297_v21 = vld [vmem:[#allocation3 + $0xca] sm:$0xff] }
 0x3cb   :  { %v5715_v39 = vrot.slane %v5714_v23, 1  ;;  %v5721_v14 = vmax.f32 %v5719_v45, %v5720_v19  ;;  %v5728_v37 = vmax.f32 %v5726_v3, %v5727_v6  ;;  %v5734_v24 = vrot.slane %v5733_v63, 2  ;;  %v6298_v3 = vld [vmem:[#allocation3 + $0xd2] sm:$0xff] }
 0x3cc   :  { %v5709_v16 = vmax.f32 %v5707_v43, %v5708_v13  ;;  %v6129_v50 = vsel %vm4158_vm2, %v5695_v61, %v5688_v29  ;;  %v6320_v31 = vpack.c.bf16 %v6295_v11, %v6294_v54  ;;  %v5028_v33 = vadd.f32 %v10356_v10, %v10340_v47  ;;  %v11163_v20 = vld [vmem:[#allocation16_spill] sm:$0xff]  ;;  %v6303_v13 = vld [vmem:[#allocation3 + $0xfa] sm:$0xff]  ;;  %v6304_v54 = vld [vmem:[#allocation3 + $0x102] sm:$0xff] }
 0x3cd   :  { %v6130_v28 = vsel %vm4160_vm3, %v5702_v22, %v6129_v50  ;;  %v5716_v32 = vmax.f32 %v5714_v23, %v5715_v39  ;;  %v5722_v17 = vrot.slane %v5721_v14, 1  ;;  %v5729_v52 = vrot.slane %v5728_v37, 1  ;;  %v6301_v29 = vld [vmem:[#allocation3 + $0xea] sm:$0xff]  ;;  %v11164_v22 = vld [vmem:[#allocation18_spill] sm:$0xff] }
 0x3ce   :  { %v5735_v25 = vmax.f32 %v5733_v63, %v5734_v24  ;;  %v6131_v59 = vsel %vm4162_vm4, %v5709_v16, %v6130_v28  ;;  %v5031_v35 = vadd.f32 %v10360_v12, %v10340_v47  ;;  %v6325_v10 = vpack.c.bf16 %v6297_v21, %v6296_v46  ;;  %v6300_v63 = vld [vmem:[#allocation3 + $0xe2] sm:$0xff]  ;;  %v6302_v12 = vld [vmem:[#allocation3 + $0xf2] sm:$0xff]  ;;  %v6305_v11 = vld [vmem:[#allocation3 + $0x10a] sm:$0x1f] }
 0x3cf   :  { %v5723_v30 = vmax.f32 %v5721_v14, %v5722_v17  ;;  %v6132_v5 = vsel %vm4164_vm5, %v5716_v32, %v6131_v59  ;;  %v5730_v0 = vmax.f32 %v5728_v37, %v5729_v52  ;;  %v6330_v6 = vpack.c.bf16 %v6299_v56, %v6298_v3 }
 0x3d0   :  { %v8185_v34 = vpop.f32.mrb[40].mxu1  ;;  %v5736_v4 = vrot.slane %v5735_v25, 1  ;;  %v6335_v24 = vpack.c.bf16 %v6301_v29, %v6300_v63  ;;  %v6340_v32 = vpack.c.bf16 %v6303_v13, %v6302_v12  ;;  %v6345_v17 = vpack.c.bf16 %v6305_v11, %v6304_v54 }
 0x3d1   :  { %8506 = vmatmul.mubr.bf16.vlgmr.msra.gmra.mrb[96].mxu1 %v6315_v8  ;;  %v8186_v62 = vpop.f32.mrb[41].mxu1  ;;  %v6133_v41 = vsel %vm4166_vm6, %v5723_v30, %v6132_v5 }
 0x3d2   :  { %8509 = vmatprep.mubr.bf16.mxu1 %v6320_v31  ;;  %v8187_v7 = vadd.f32 %v8186_v62, %v8185_v34  ;;  %v8188_v42 = vpop.f32.mrb[42].mxu1  ;;  %v5737_v27 = vmax.f32 %v5735_v25, %v5736_v4  ;;  %v6134_v55 = vsel %vm4168_vm7, %v5730_v0, %v6133_v41 }
 0x3d3   :  { %v8189_v45 = vpop.f32.mrb[43].mxu1 }
 0x3d4   :  { %v5125_v53 = vadd.f32 %v8187_v7, %v5028_v33  ;;  %v8190_v43 = vadd.f32 %v8189_v45, %v8188_v42  ;;  %v6135_v15 = vsel %vm4170_vm8, %v5737_v27, %v6134_v55 }
 0x3d5   :  { %6185 = vst.msk [vmem:[%s11136_s5 + $0x8] sm:$0xff] %vm4481_vm9, %v6135_v15 }
 0x3d6   :  { %v5222_v23 = vadd.f32 %v11163_v20, %v5125_v53  ;;  %v5128_v19 = vadd.f32 %v8190_v43, %v5031_v35 }
 0x3d8   :  { %v5272_v61 = vmax.f32 %v5222_v23, 0.0  ;;  %v5225_v47 = vadd.f32 %v11164_v22, %v5128_v19 }
 0x3d9   :  { %8510 = vmatmul.mubr.bf16.gmra.mrb[100].mxu1 %v6325_v10 }
 0x3da   :  { %8513 = vmatprep.mubr.bf16.mxu1 %v6330_v6  ;;  %v5368_v39 = vcombine.high %v5272_v61, %v5272_v61  ;;  %v5375_v14 = vrot.slane %v5272_v61, %v11160_v38  ;;  %v5273_v37 = vmax.f32 %v5225_v47, 0.0 }
 0x3dc   :  { %v5382_v8 = vrot.slane %v5368_v39, %v11160_v38  ;;  %v5383_v16 = vcombine.high %v5375_v14, %v5375_v14  ;;  %v5738_v50 = vsel %vm5625_vm10, %v5375_v14, -inf  ;;  %v5385_v28 = vcombine.high %v5273_v37, %v5273_v37 }
 0x3dd   :  { %v5739_v52 = vrot.slane %v5738_v50, 4  ;;  %v5392_v31 = vrot.slane %v5273_v37, %v11160_v38 }
 0x3de   :  { %v5384_v25 = vcombine.high %v5382_v8, %v5382_v8  ;;  %v5745_v59 = vsel %vm5625_vm10, %v5383_v16, -inf  ;;  %v5752_v30 = vsel %vm5625_vm10, %v5382_v8, -inf  ;;  %v5399_v5 = vrot.slane %v5385_v28, %v11160_v38 }
 0x3df   :  { %v5740_v34 = vmax.f32 %v5738_v50, %v5739_v52  ;;  %v5746_v0 = vrot.slane %v5745_v59, 4  ;;  %v5753_v4 = vrot.slane %v5752_v30, 4  ;;  %v5400_v62 = vcombine.high %v5392_v31, %v5392_v31 }
 0x3e0   :  { %v5759_v33 = vsel %vm5625_vm10, %v5384_v25, -inf  ;;  %v5401_v41 = vcombine.high %v5399_v5, %v5399_v5  ;;  %v5766_v7 = vsel %vm5625_vm10, %v5392_v31, -inf  ;;  %v5780_v42 = vsel %vm5625_vm10, %v5399_v5, -inf }
 0x3e1   :  { %8514 = vmatmul.mubr.bf16.gmra.mrb[104].mxu1 %v6335_v24  ;;  %v5741_v46 = vrot.slane %v5740_v34, 2  ;;  %v5747_v21 = vmax.f32 %v5745_v59, %v5746_v0  ;;  %v5754_v27 = vmax.f32 %v5752_v30, %v5753_v4  ;;  %v5760_v55 = vrot.slane %v5759_v33, 4 }
 0x3e2   :  { %8517 = vmatprep.mubr.bf16.mxu1 %v6340_v32  ;;  %v5767_v45 = vrot.slane %v5766_v7, 4  ;;  %v5773_v3 = vsel %vm5625_vm10, %v5400_v62, -inf  ;;  %v5781_v56 = vrot.slane %v5780_v42, 4  ;;  %v5787_v35 = vsel %vm5625_vm10, %v5401_v41, -inf }
 0x3e3   :  { %v5742_v53 = vmax.f32 %v5740_v34, %v5741_v46  ;;  %v5748_v43 = vrot.slane %v5747_v21, 2  ;;  %v5755_v15 = vrot.slane %v5754_v27, 2  ;;  %v5761_v10 = vmax.f32 %v5759_v33, %v5760_v55 }
 0x3e4   :  { %v5768_v20 = vmax.f32 %v5766_v7, %v5767_v45  ;;  %v5774_v23 = vrot.slane %v5773_v3, 4  ;;  %v5782_v19 = vmax.f32 %v5780_v42, %v5781_v56  ;;  %v5788_v6 = vrot.slane %v5787_v35, 4 }
 0x3e5   :  { %v5743_v63 = vrot.slane %v5742_v53, 1  ;;  %v5749_v29 = vmax.f32 %v5747_v21, %v5748_v43  ;;  %v5756_v61 = vmax.f32 %v5754_v27, %v5755_v15  ;;  %v5762_v22 = vrot.slane %v5761_v10, 2 }
 0x3e6   :  { %v5769_v47 = vrot.slane %v5768_v20, 2  ;;  %v5775_v12 = vmax.f32 %v5773_v3, %v5774_v23  ;;  %v5783_v13 = vrot.slane %v5782_v19, 2  ;;  %v5789_v54 = vmax.f32 %v5787_v35, %v5788_v6  ;;  %v11166_v6 = vld [vmem:[#allocation17_spill] sm:$0xff] }
 0x3e7   :  { %v5750_v11 = vrot.slane %v5749_v29, 1  ;;  %v5757_v39 = vrot.slane %v5756_v61, 1  ;;  %v5763_v14 = vmax.f32 %v5761_v10, %v5762_v22  ;;  %v5744_v50 = vmax.f32 %v5742_v53, %v5743_v63  ;;  %v11165_v10 = vld [vmem:[#allocation15_spill] sm:$0xff] }
 0x3e8   :  { %v5770_v37 = vmax.f32 %v5768_v20, %v5769_v47  ;;  %v5776_v24 = vrot.slane %v5775_v12, 2  ;;  %v5784_v8 = vmax.f32 %v5782_v19, %v5783_v13  ;;  %v5790_v16 = vrot.slane %v5789_v54, 2 }
 0x3e9   :  { %8518 = vmatmul.mubr.bf16.gmra.mrb[108].mxu1 %v6345_v17  ;;  %v5751_v28 = vmax.f32 %v5749_v29, %v5750_v11  ;;  %v5758_v32 = vmax.f32 %v5756_v61, %v5757_v39  ;;  %v5764_v52 = vrot.slane %v5763_v14, 1 }
 0x3ea   :  { %v5771_v31 = vrot.slane %v5770_v37, 1  ;;  %v5777_v25 = vmax.f32 %v5775_v12, %v5776_v24  ;;  %v5791_v59 = vmax.f32 %v5789_v54, %v5790_v16  ;;  %v5785_v34 = vrot.slane %v5784_v8, 1 }
 0x3eb   :  { %v5765_v30 = vmax.f32 %v5763_v14, %v5764_v52  ;;  %v6136_v5 = vsel %vm4158_vm2, %v5751_v28, %v5744_v50 }
 0x3ec   :  { %v6137_v0 = vsel %vm4160_vm3, %v5758_v32, %v6136_v5  ;;  %v5772_v4 = vmax.f32 %v5770_v37, %v5771_v31  ;;  %v5778_v62 = vrot.slane %v5777_v25, 1  ;;  %v5792_v17 = vrot.slane %v5791_v59, 1 }
 0x3ed   :  { %v6138_v33 = vsel %vm4162_vm4, %v5765_v30, %v6137_v0  ;;  %v5786_v42 = vmax.f32 %v5784_v8, %v5785_v34 }
 0x3ee   :  { %v5779_v41 = vmax.f32 %v5777_v25, %v5778_v62  ;;  %v6139_v7 = vsel %vm4164_vm5, %v5772_v4, %v6138_v33  ;;  %v5793_v46 = vmax.f32 %v5791_v59, %v5792_v17 }
 0x3f0   :  { %v6140_v21 = vsel %vm4166_vm6, %v5779_v41, %v6139_v7 }
 0x3f1   :  { %v6141_v27 = vsel %vm4168_vm7, %v5786_v42, %v6140_v21 }
 0x3f2   :  { %v6142_v55 = vsel %vm4170_vm8, %v5793_v46, %v6141_v27 }
 0x3f3   :  { %6186 = vst.msk [vmem:[%s11136_s5 + $0x10] sm:$0xff] %vm4481_vm9, %v6142_v55 }
 0x3f7   :  { %v8191_v45 = vpop.f32.mrb[44].mxu1 }
 0x3f8   :  { %v8192_v3 = vpop.f32.mrb[45].mxu1 }
 0x3f9   :  { %v8193_v56 = vadd.f32 %v8192_v3, %v8191_v45  ;;  %v8194_v35 = vpop.f32.mrb[46].mxu1 }
 0x3fa   :  { %v8195_v53 = vpop.f32.mrb[47].mxu1 }
 0x3fb   :  { %v5133_v43 = vadd.f32 %v8193_v56, %v10372_v40  ;;  %v8196_v15 = vadd.f32 %v8195_v53, %v8194_v35 }
 0x3fd   :  { %v5230_v20 = vadd.f32 %v11165_v10, %v5133_v43  ;;  %v5136_v23 = vadd.f32 %v8196_v15, %v10375_v36 }
 0x3ff   :  { %v5274_v19 = vmax.f32 %v5230_v20, 0.0  ;;  %v5233_v63 = vadd.f32 %v11166_v6, %v5136_v23 }
 0x401   :  { %v5402_v29 = vcombine.high %v5274_v19, %v5274_v19  ;;  %v5409_v61 = vrot.slane %v5274_v19, %v11160_v38  ;;  %v5275_v22 = vmax.f32 %v5233_v63, 0.0 }
 0x403   :  { %v5416_v47 = vrot.slane %v5402_v29, %v11160_v38  ;;  %v5417_v12 = vcombine.high %v5409_v61, %v5409_v61  ;;  %v5794_v13 = vsel %vm5625_vm10, %v5409_v61, -inf  ;;  %v5419_v54 = vcombine.high %v5275_v22, %v5275_v22 }
 0x404   :  { %v5795_v11 = vrot.slane %v5794_v13, 4  ;;  %v5426_v40 = vrot.slane %v5275_v22, %v11160_v38 }
 0x405   :  { %v5418_v39 = vcombine.high %v5416_v47, %v5416_v47  ;;  %v5801_v14 = vsel %vm5625_vm10, %v5417_v12, -inf  ;;  %v5808_v36 = vsel %vm5625_vm10, %v5416_v47, -inf  ;;  %v5433_v37 = vrot.slane %v5419_v54, %v11160_v38 }
 0x406   :  { %v5796_v24 = vmax.f32 %v5794_v13, %v5795_v11  ;;  %v5802_v8 = vrot.slane %v5801_v14, 4  ;;  %v5809_v16 = vrot.slane %v5808_v36, 4  ;;  %v5434_v50 = vcombine.high %v5426_v40, %v5426_v40 }
 0x407   :  { %v5815_v28 = vsel %vm5625_vm10, %v5418_v39, -inf  ;;  %v5435_v32 = vcombine.high %v5433_v37, %v5433_v37  ;;  %v5822_v52 = vsel %vm5625_vm10, %v5426_v40, -inf  ;;  %v5836_v31 = vsel %vm5625_vm10, %v5433_v37, -inf }
 0x408   :  { %v5797_v25 = vrot.slane %v5796_v24, 2  ;;  %v5803_v59 = vmax.f32 %v5801_v14, %v5802_v8  ;;  %v5810_v30 = vmax.f32 %v5808_v36, %v5809_v16  ;;  %v5816_v5 = vrot.slane %v5815_v28, 4 }
 0x409   :  { %v5823_v34 = vrot.slane %v5822_v52, 4  ;;  %v5829_v0 = vsel %vm5625_vm10, %v5434_v50, -inf  ;;  %v5837_v4 = vrot.slane %v5836_v31, 4  ;;  %v5843_v62 = vsel %vm5625_vm10, %v5435_v32, -inf }
 0x40a   :  { %v5798_v17 = vmax.f32 %v5796_v24, %v5797_v25  ;;  %v5804_v33 = vrot.slane %v5803_v59, 2  ;;  %v5811_v41 = vrot.slane %v5810_v30, 2  ;;  %v5817_v7 = vmax.f32 %v5815_v28, %v5816_v5 }
 0x40b   :  { %v5824_v42 = vmax.f32 %v5822_v52, %v5823_v34  ;;  %v5830_v46 = vrot.slane %v5829_v0, 4  ;;  %v5838_v21 = vmax.f32 %v5836_v31, %v5837_v4  ;;  %v5844_v27 = vrot.slane %v5843_v62, 4 }
 0x40c   :  { %v5799_v55 = vrot.slane %v5798_v17, 1  ;;  %v5805_v45 = vmax.f32 %v5803_v59, %v5804_v33  ;;  %v5812_v3 = vmax.f32 %v5810_v30, %v5811_v41  ;;  %v5818_v56 = vrot.slane %v5817_v7, 2  ;;  %v11167_v33 = vld [vmem:[#allocation20_spill] sm:$0xff] }
 0x40d   :  { %v5825_v35 = vrot.slane %v5824_v42, 2  ;;  %v5831_v53 = vmax.f32 %v5829_v0, %v5830_v46  ;;  %v5839_v43 = vrot.slane %v5838_v21, 2  ;;  %v5845_v15 = vmax.f32 %v5843_v62, %v5844_v27  ;;  %v11168_v46 = vld [vmem:[#allocation22_spill] sm:$0xff] }
 0x40e   :  { %v5806_v10 = vrot.slane %v5805_v45, 1  ;;  %v5813_v20 = vrot.slane %v5812_v3, 1  ;;  %v5819_v23 = vmax.f32 %v5817_v7, %v5818_v56  ;;  %v5800_v61 = vmax.f32 %v5798_v17, %v5799_v55 }
 0x40f   :  { %v5826_v19 = vmax.f32 %v5824_v42, %v5825_v35  ;;  %v5832_v6 = vrot.slane %v5831_v53, 2  ;;  %v5840_v63 = vmax.f32 %v5838_v21, %v5839_v43  ;;  %v5846_v29 = vrot.slane %v5845_v15, 2 }
 0x410   :  { %v5807_v22 = vmax.f32 %v5805_v45, %v5806_v10  ;;  %v5814_v47 = vmax.f32 %v5812_v3, %v5813_v20  ;;  %v5820_v12 = vrot.slane %v5819_v23, 1 }
 0x411   :  { %v5827_v13 = vrot.slane %v5826_v19, 1  ;;  %v5833_v54 = vmax.f32 %v5831_v53, %v5832_v6  ;;  %v5847_v11 = vmax.f32 %v5845_v15, %v5846_v29  ;;  %v5841_v14 = vrot.slane %v5840_v63, 1 }
 0x412   :  { %v5821_v40 = vmax.f32 %v5819_v23, %v5820_v12  ;;  %v6143_v39 = vsel %vm4158_vm2, %v5807_v22, %v5800_v61 }
 0x413   :  { %v6144_v36 = vsel %vm4160_vm3, %v5814_v47, %v6143_v39  ;;  %v5828_v37 = vmax.f32 %v5826_v19, %v5827_v13  ;;  %v5834_v24 = vrot.slane %v5833_v54, 1  ;;  %v5848_v8 = vrot.slane %v5847_v11, 1 }
 0x414   :  { %v6145_v16 = vsel %vm4162_vm4, %v5821_v40, %v6144_v36  ;;  %v5842_v32 = vmax.f32 %v5840_v63, %v5841_v14 }
 0x415   :  { %v5835_v50 = vmax.f32 %v5833_v54, %v5834_v24  ;;  %v6146_v28 = vsel %vm4164_vm5, %v5828_v37, %v6145_v16  ;;  %v5849_v52 = vmax.f32 %v5847_v11, %v5848_v8 }
 0x417   :  { %v6147_v31 = vsel %vm4166_vm6, %v5835_v50, %v6146_v28 }
 0x418   :  { %v6148_v25 = vsel %vm4168_vm7, %v5842_v32, %v6147_v31 }
 0x419   :  { %v6149_v59 = vsel %vm4170_vm8, %v5849_v52, %v6148_v25 }
 0x41a   :  { %6187 = vst.msk [vmem:[%s11136_s5 + $0x18] sm:$0xff] %vm4481_vm9, %v6149_v59 }
 0x425   :  { %v8197_v30 = vpop.f32.mrb[48].mxu1 }
 0x426   :  { %v8198_v5 = vpop.f32.mrb[49].mxu1 }
 0x427   :  { %v8199_v34 = vadd.f32 %v8198_v5, %v8197_v30  ;;  %v8200_v0 = vpop.f32.mrb[50].mxu1 }
 0x428   :  { %v8201_v4 = vpop.f32.mrb[51].mxu1 }
 0x429   :  { %v5141_v62 = vadd.f32 %v8199_v34, %v10391_v57  ;;  %v8202_v17 = vadd.f32 %v8201_v4, %v8200_v0 }
 0x42b   :  { %v5238_v41 = vadd.f32 %v11167_v33, %v5141_v62  ;;  %v5144_v7 = vadd.f32 %v8202_v17, %v10394_v2 }
 0x42d   :  { %v5276_v42 = vmax.f32 %v5238_v41, 0.0  ;;  %v5241_v21 = vadd.f32 %v11168_v46, %v5144_v7 }
 0x42f   :  { %v5436_v27 = vcombine.high %v5276_v42, %v5276_v42  ;;  %v5443_v55 = vrot.slane %v5276_v42, %v11160_v38  ;;  %v5277_v45 = vmax.f32 %v5241_v21, 0.0 }
 0x431   :  { %v5450_v3 = vrot.slane %v5436_v27, %v11160_v38  ;;  %v5451_v56 = vcombine.high %v5443_v55, %v5443_v55  ;;  %v5850_v35 = vsel %vm5625_vm10, %v5443_v55, -inf  ;;  %v5453_v53 = vcombine.high %v5277_v45, %v5277_v45 }
 0x432   :  { %v5851_v43 = vrot.slane %v5850_v35, 4  ;;  %v5460_v57 = vrot.slane %v5277_v45, %v11160_v38 }
 0x433   :  { %v5452_v15 = vcombine.high %v5450_v3, %v5450_v3  ;;  %v5857_v10 = vsel %vm5625_vm10, %v5451_v56, -inf  ;;  %v5864_v2 = vsel %vm5625_vm10, %v5450_v3, -inf  ;;  %v5467_v20 = vrot.slane %v5453_v53, %v11160_v38 }
 0x434   :  { %v5852_v23 = vmax.f32 %v5850_v35, %v5851_v43  ;;  %v5858_v19 = vrot.slane %v5857_v10, 4  ;;  %v5865_v6 = vrot.slane %v5864_v2, 4  ;;  %v5468_v63 = vcombine.high %v5460_v57, %v5460_v57 }
 0x435   :  { %v5871_v29 = vsel %vm5625_vm10, %v5452_v15, -inf  ;;  %v5469_v61 = vcombine.high %v5467_v20, %v5467_v20  ;;  %v5878_v22 = vsel %vm5625_vm10, %v5460_v57, -inf  ;;  %v5892_v47 = vsel %vm5625_vm10, %v5467_v20, -inf }
 0x436   :  { %v5853_v12 = vrot.slane %v5852_v23, 2  ;;  %v5859_v13 = vmax.f32 %v5857_v10, %v5858_v19  ;;  %v5866_v54 = vmax.f32 %v5864_v2, %v5865_v6  ;;  %v5872_v11 = vrot.slane %v5871_v29, 4 }
 0x437   :  { %v5879_v40 = vrot.slane %v5878_v22, 4  ;;  %v5885_v39 = vsel %vm5625_vm10, %v5468_v63, -inf  ;;  %v5893_v14 = vrot.slane %v5892_v47, 4  ;;  %v5899_v36 = vsel %vm5625_vm10, %v5469_v61, -inf }
 0x438   :  { %v5854_v37 = vmax.f32 %v5852_v23, %v5853_v12  ;;  %v5860_v24 = vrot.slane %v5859_v13, 2  ;;  %v5867_v8 = vrot.slane %v5866_v54, 2  ;;  %v5873_v16 = vmax.f32 %v5871_v29, %v5872_v11 }
 0x439   :  { %v5880_v50 = vmax.f32 %v5878_v22, %v5879_v40  ;;  %v5886_v28 = vrot.slane %v5885_v39, 4  ;;  %v5894_v32 = vmax.f32 %v5892_v47, %v5893_v14  ;;  %v5900_v52 = vrot.slane %v5899_v36, 4 }
 0x43a   :  { %v5855_v31 = vrot.slane %v5854_v37, 1  ;;  %v5861_v25 = vmax.f32 %v5859_v13, %v5860_v24  ;;  %v5868_v59 = vmax.f32 %v5866_v54, %v5867_v8  ;;  %v5874_v30 = vrot.slane %v5873_v16, 2 }
 0x43b   :  { %v5881_v5 = vrot.slane %v5880_v50, 2  ;;  %v5887_v34 = vmax.f32 %v5885_v39, %v5886_v28  ;;  %v5895_v0 = vrot.slane %v5894_v32, 2  ;;  %v5901_v4 = vmax.f32 %v5899_v36, %v5900_v52  ;;  %v11169_v36 = vld [vmem:[#allocation19_spill] sm:$0xff] }
 0x43c   :  { %v5862_v62 = vrot.slane %v5861_v25, 1  ;;  %v5869_v17 = vrot.slane %v5868_v59, 1  ;;  %v5875_v33 = vmax.f32 %v5873_v16, %v5874_v30  ;;  %v5856_v21 = vmax.f32 %v5854_v37, %v5855_v31  ;;  %v11170_v16 = vld [vmem:[#allocation21_spill] sm:$0xff] }
 0x43d   :  { %v5882_v41 = vmax.f32 %v5880_v50, %v5881_v5  ;;  %v5888_v7 = vrot.slane %v5887_v34, 2  ;;  %v5896_v42 = vmax.f32 %v5894_v32, %v5895_v0  ;;  %v5902_v46 = vrot.slane %v5901_v4, 2 }
 0x43e   :  { %v5863_v27 = vmax.f32 %v5861_v25, %v5862_v62  ;;  %v5870_v55 = vmax.f32 %v5868_v59, %v5869_v17  ;;  %v5876_v45 = vrot.slane %v5875_v33, 1 }
 0x43f   :  { %v5883_v3 = vrot.slane %v5882_v41, 1  ;;  %v5889_v56 = vmax.f32 %v5887_v34, %v5888_v7  ;;  %v5903_v35 = vmax.f32 %v5901_v4, %v5902_v46  ;;  %v5897_v57 = vrot.slane %v5896_v42, 1 }
 0x440   :  { %v5877_v53 = vmax.f32 %v5875_v33, %v5876_v45  ;;  %v6150_v43 = vsel %vm4158_vm2, %v5863_v27, %v5856_v21 }
 0x441   :  { %v6151_v15 = vsel %vm4160_vm3, %v5870_v55, %v6150_v43  ;;  %v5884_v10 = vmax.f32 %v5882_v41, %v5883_v3  ;;  %v5890_v2 = vrot.slane %v5889_v56, 1  ;;  %v5904_v20 = vrot.slane %v5903_v35, 1 }
 0x442   :  { %v6152_v23 = vsel %vm4162_vm4, %v5877_v53, %v6151_v15  ;;  %v5898_v63 = vmax.f32 %v5896_v42, %v5897_v57 }
 0x443   :  { %v5891_v19 = vmax.f32 %v5889_v56, %v5890_v2  ;;  %v6153_v6 = vsel %vm4164_vm5, %v5884_v10, %v6152_v23  ;;  %v5905_v29 = vmax.f32 %v5903_v35, %v5904_v20 }
 0x445   :  { %v6154_v61 = vsel %vm4166_vm6, %v5891_v19, %v6153_v6 }
 0x446   :  { %v6155_v22 = vsel %vm4168_vm7, %v5898_v63, %v6154_v61 }
 0x447   :  { %v6156_v47 = vsel %vm4170_vm8, %v5905_v29, %v6155_v22  ;;  %v8203_v12 = vpop.f32.mrb[52].mxu1 }
 0x448   :  { %6188 = vst.msk [vmem:[%s11136_s5 + $0x20] sm:$0xff] %vm4481_vm9, %v6156_v47  ;;  %v8204_v13 = vpop.f32.mrb[53].mxu1 }
 0x449   :  { %v8205_v54 = vadd.f32 %v8204_v13, %v8203_v12  ;;  %v8206_v11 = vpop.f32.mrb[54].mxu1 }
 0x44a   :  { %v8207_v40 = vpop.f32.mrb[55].mxu1 }
 0x44b   :  { %v5149_v39 = vadd.f32 %v8205_v54, %v10403_v18  ;;  %v8208_v14 = vadd.f32 %v8207_v40, %v8206_v11 }
 0x44d   :  { %v5246_v37 = vadd.f32 %v11169_v36, %v5149_v39  ;;  %v5152_v24 = vadd.f32 %v8208_v14, %v10406_v58 }
 0x44f   :  { %v5278_v8 = vmax.f32 %v5246_v37, 0.0  ;;  %v5249_v50 = vadd.f32 %v11170_v16, %v5152_v24 }
 0x451   :  { %v5470_v28 = vcombine.high %v5278_v8, %v5278_v8  ;;  %v5477_v32 = vrot.slane %v5278_v8, %v11160_v38  ;;  %v5279_v52 = vmax.f32 %v5249_v50, 0.0 }
 0x453   :  { %v5484_v31 = vrot.slane %v5470_v28, %v11160_v38  ;;  %v5485_v25 = vcombine.high %v5477_v32, %v5477_v32  ;;  %v5906_v59 = vsel %vm5625_vm10, %v5477_v32, -inf  ;;  %v5487_v30 = vcombine.high %v5279_v52, %v5279_v52 }
 0x454   :  { %v10616_v5 = vpop.f32.mrb[56].mxu1  ;;  %v5907_v18 = vrot.slane %v5906_v59, 4  ;;  %v5494_v34 = vrot.slane %v5279_v52, %v11160_v38 }
 0x455   :  { %v10619_v0 = vpop.f32.mrb[84].mxu0  ;;  %v8210_v58 = vpop.f32.mrb[57].mxu1  ;;  %v5486_v4 = vcombine.high %v5484_v31, %v5484_v31  ;;  %v5913_v62 = vsel %vm5625_vm10, %v5485_v25, -inf  ;;  %v5920_v17 = vsel %vm5625_vm10, %v5484_v31, -inf  ;;  %v5501_v33 = vrot.slane %v5487_v30, %v11160_v38 }
 0x456   :  { %v10624_v41 = vpop.f32.mrb[85].mxu0  ;;  %v10626_v7 = vpop.f32.mrb[58].mxu1  ;;  %v5908_v42 = vmax.f32 %v5906_v59, %v5907_v18  ;;  %v5914_v46 = vrot.slane %v5913_v62, 4  ;;  %v5921_v21 = vrot.slane %v5920_v17, 4  ;;  %v5502_v27 = vcombine.high %v5494_v34, %v5494_v34 }
 0x457   :  { %v10628_v55 = vpop.f32.mrb[86].mxu0  ;;  %v10630_v45 = vpop.f32.mrb[59].mxu1  ;;  %v5927_v3 = vsel %vm5625_vm10, %v5486_v4, -inf  ;;  %v5503_v56 = vcombine.high %v5501_v33, %v5501_v33  ;;  %v5934_v35 = vsel %vm5625_vm10, %v5494_v34, -inf  ;;  %v5948_v53 = vsel %vm5625_vm10, %v5501_v33, -inf }
 0x458   :  { %v10635_v43 = vpop.f32.mrb[87].mxu0  ;;  %v5909_v57 = vrot.slane %v5908_v42, 2  ;;  %v5915_v15 = vmax.f32 %v5913_v62, %v5914_v46  ;;  %v5922_v10 = vmax.f32 %v5920_v17, %v5921_v21  ;;  %v5928_v2 = vrot.slane %v5927_v3, 4 }
 0x459   :  { %v5935_v20 = vrot.slane %v5934_v35, 4  ;;  %v5941_v23 = vsel %vm5625_vm10, %v5502_v27, -inf  ;;  %v5949_v19 = vrot.slane %v5948_v53, 4  ;;  %v5955_v6 = vsel %vm5625_vm10, %v5503_v56, -inf }
 0x45a   :  { %v5910_v63 = vmax.f32 %v5908_v42, %v5909_v57  ;;  %v5916_v29 = vrot.slane %v5915_v15, 2  ;;  %v5923_v61 = vrot.slane %v5922_v10, 2  ;;  %v5929_v22 = vmax.f32 %v5927_v3, %v5928_v2 }
 0x45b   :  { %v5936_v47 = vmax.f32 %v5934_v35, %v5935_v20  ;;  %v5942_v12 = vrot.slane %v5941_v23, 4  ;;  %v5950_v13 = vmax.f32 %v5948_v53, %v5949_v19  ;;  %v5956_v54 = vrot.slane %v5955_v6, 4 }
 0x45c   :  { %v8215_v11 = vpop.f32.mrb[60].mxu1  ;;  %v5911_v40 = vrot.slane %v5910_v63, 1  ;;  %v5917_v39 = vmax.f32 %v5915_v15, %v5916_v29  ;;  %v5924_v14 = vmax.f32 %v5922_v10, %v5923_v61  ;;  %v5930_v36 = vrot.slane %v5929_v22, 2 }
 0x45d   :  { %v8329_v37 = vpop.f32.mrb[88].mxu0  ;;  %v8216_v24 = vpop.f32.mrb[61].mxu1  ;;  %v5937_v8 = vrot.slane %v5936_v47, 2  ;;  %v5943_v16 = vmax.f32 %v5941_v23, %v5942_v12  ;;  %v5951_v50 = vrot.slane %v5950_v13, 2  ;;  %v5957_v28 = vmax.f32 %v5955_v6, %v5956_v54 }
 0x45e   :  { %v8330_v32 = vpop.f32.mrb[89].mxu0  ;;  %v8218_v52 = vpop.f32.mrb[62].mxu1  ;;  %v5912_v31 = vmax.f32 %v5910_v63, %v5911_v40  ;;  %v5918_v25 = vrot.slane %v5917_v39, 1  ;;  %v5925_v59 = vrot.slane %v5924_v14, 1  ;;  %v5931_v30 = vmax.f32 %v5929_v22, %v5930_v36 }
 0x45f   :  { %v8332_v18 = vpop.f32.mrb[90].mxu0  ;;  %v8219_v34 = vpop.f32.mrb[63].mxu1  ;;  %v5938_v4 = vmax.f32 %v5936_v47, %v5937_v8  ;;  %v5944_v62 = vrot.slane %v5943_v16, 2  ;;  %v5952_v17 = vmax.f32 %v5950_v13, %v5951_v50  ;;  %v5958_v33 = vrot.slane %v5957_v28, 2 }
 0x460   :  { %v8333_v42 = vpop.f32.mrb[91].mxu0  ;;  %v5919_v46 = vmax.f32 %v5917_v39, %v5918_v25  ;;  %v5926_v21 = vmax.f32 %v5924_v14, %v5925_v59  ;;  %v5932_v27 = vrot.slane %v5931_v30, 1  ;;  %v8211_v3 = vadd.f32 %v8210_v58, %v10616_v5 }
 0x461   :  { %v5939_v56 = vrot.slane %v5938_v4, 1  ;;  %v5945_v35 = vmax.f32 %v5943_v16, %v5944_v62  ;;  %v5953_v53 = vrot.slane %v5952_v17, 1  ;;  %v5959_v57 = vmax.f32 %v5957_v28, %v5958_v33  ;;  %v10678_v28 = vld [vmem:[#allocation8] ss:$0 sm:$0xff] }
 0x462   :  { %v5933_v15 = vmax.f32 %v5931_v30, %v5932_v27  ;;  %v6157_v10 = vsel %vm4158_vm2, %v5919_v46, %v5912_v31  ;;  %v5157_v2 = vadd.f32 %v8211_v3, %v10409_v60  ;;  %v10644_v20 = vadd.f32 %v10624_v41, %v10619_v0  ;;  %v11171_v31 = vld [vmem:[#allocation25_spill] sm:$0xff]  ;;  %v11172_v62 = vld [vmem:[#allocation26_spill] sm:$0xff] }
 0x463   :  { %v6158_v23 = vsel %vm4160_vm3, %v5926_v21, %v6157_v10  ;;  %v5940_v19 = vmax.f32 %v5938_v4, %v5939_v56  ;;  %v5946_v6 = vrot.slane %v5945_v35, 1  ;;  %v5954_v63 = vmax.f32 %v5952_v17, %v5953_v53 }
 0x464   :  { %v8253_v29 = vpop.f32.mrb[64].mxu1  ;;  %v5960_v5 = vrot.slane %v5959_v57, 1  ;;  %v6159_v58 = vsel %vm4162_vm4, %v5933_v15, %v6158_v23  ;;  %v5254_v61 = vadd.f32 %v10242_v9, %v5157_v2  ;;  %v8214_v22 = vadd.f32 %v10630_v45, %v10626_v7 }
 0x465   :  { %v10651_v47 = vpop.f32.mrb[92].mxu0  ;;  %v8254_v60 = vpop.f32.mrb[65].mxu1  ;;  %v5947_v12 = vmax.f32 %v5945_v35, %v5946_v6  ;;  %v6160_v0 = vsel %vm4164_vm5, %v5940_v19, %v6159_v58  ;;  %v10656_v41 = vadd.f32 %v10635_v43, %v10628_v55  ;;  %v8217_v13 = vadd.f32 %v8216_v24, %v8215_v11 }
 0x466   :  { %v10658_v54 = vpop.f32.mrb[93].mxu0  ;;  %v10660_v40 = vpop.f32.mrb[66].mxu1  ;;  %v5961_v39 = vmax.f32 %v5959_v57, %v5960_v5  ;;  %v5280_v9 = vmax.f32 %v5254_v61, 0.0  ;;  %v5160_v14 = vadd.f32 %v8214_v22, %v10415_v1  ;;  %v10663_v7 = vadd.f32 %v8330_v32, %v8329_v37 }
 0x467   :  { %v10665_v45 = vpop.f32.mrb[94].mxu0  ;;  %v10667_v36 = vpop.f32.mrb[67].mxu1  ;;  %v6161_v8 = vsel %vm4166_vm6, %v5947_v12, %v6160_v0  ;;  %v5165_v55 = vadd.f32 %v8217_v13, %v10418_v49  ;;  %v8220_v43 = vadd.f32 %v8219_v34, %v8218_v52  ;;  %v10671_v11 = vadd.f32 %v8333_v42, %v8332_v18 }
 0x468   :  { %v10673_v24 = vpop.f32.mrb[95].mxu0  ;;  %v6162_v16 = vsel %vm4168_vm7, %v5954_v63, %v6161_v8  ;;  %v5504_v50 = vcombine.high %v5280_v9, %v5280_v9  ;;  %v5511_v1 = vrot.slane %v5280_v9, %v11160_v38  ;;  %v5257_v37 = vadd.f32 %v10247_v51, %v5160_v14 }
 0x469   :  { %v6163_v32 = vsel %vm4170_vm8, %v5961_v39, %v6162_v16  ;;  %v5262_v25 = vadd.f32 %v11171_v31, %v5165_v55  ;;  %v5168_v49 = vadd.f32 %v8220_v43, %v10421_v48  ;;  %v8255_v52 = vadd.f32 %v8254_v60, %v8253_v29 }
 0x46a   :  { %6189 = vst.msk [vmem:[%s11136_s5 + $0x28] sm:$0xff] %vm4481_vm9, %v6163_v32  ;;  %v5518_v59 = vrot.slane %v5504_v50, %v11160_v38  ;;  %v5519_v30 = vcombine.high %v5511_v1, %v5511_v1  ;;  %v5962_v18 = vsel %vm5625_vm10, %v5511_v1, -inf  ;;  %v5281_v51 = vmax.f32 %v5257_v37, 0.0 }
 0x46b   :  { %v5963_v34 = vrot.slane %v5962_v18, 4  ;;  %v10689_v4 = vmax.f32 %v5262_v25, 0.0  ;;  %v10692_v17 = vadd.f32 %v11172_v62, %v5168_v49  ;;  %v10695_v48 = vadd.f32 %v8255_v52, %v10678_v28 }
 0x46c   :  { %v10697_v33 = vpop.f32.mrb[68].mxu1  ;;  %v5520_v42 = vcombine.high %v5518_v59, %v5518_v59  ;;  %v5969_v46 = vsel %vm5625_vm10, %v5519_v30, -inf  ;;  %v5976_v21 = vsel %vm5625_vm10, %v5518_v59, -inf  ;;  %v5521_v27 = vcombine.high %v5281_v51, %v5281_v51 }
 0x46d   :  { %v10701_v3 = vpop.f32.mrb[96].mxu0  ;;  %v10703_v56 = vpop.f32.mrb[69].mxu1  ;;  %v5964_v35 = vmax.f32 %v5962_v18, %v5963_v34  ;;  %v5970_v53 = vrot.slane %v5969_v46, 4  ;;  %v5977_v57 = vrot.slane %v5976_v21, 4  ;;  %v5528_v15 = vrot.slane %v5281_v51, %v11160_v38 }
 0x46e   :  { %v10706_v10 = vpop.f32.mrb[97].mxu0  ;;  %v10708_v2 = vpop.f32.mrb[70].mxu1  ;;  %v5983_v23 = vsel %vm5625_vm10, %v5520_v42, -inf  ;;  %v5535_v19 = vrot.slane %v5521_v27, %v11160_v38  ;;  %v5538_v6 = vcombine.high %v10689_v4, %v10689_v4  ;;  %v10716_v63 = vrot.slane %v10689_v4, %v11160_v38 }
 0x46f   :  { %v10718_v29 = vpop.f32.mrb[98].mxu0  ;;  %v10720_v5 = vpop.f32.mrb[71].mxu1  ;;  %v5965_v58 = vrot.slane %v5964_v35, 2  ;;  %v5971_v61 = vmax.f32 %v5969_v46, %v5970_v53  ;;  %v5978_v22 = vmax.f32 %v5976_v21, %v5977_v57  ;;  %v5984_v60 = vrot.slane %v5983_v23, 4 }
 0x470   :  { %v10722_v12 = vpop.f32.mrb[99].mxu0  ;;  %v5536_v0 = vcombine.high %v5528_v15, %v5528_v15  ;;  %v5537_v13 = vcombine.high %v5535_v19, %v5535_v19  ;;  %v5990_v39 = vsel %vm5625_vm10, %v5528_v15, -inf  ;;  %v6004_v9 = vsel %vm5625_vm10, %v5535_v19, -inf }
 0x471   :  { %v5966_v14 = vmax.f32 %v5964_v35, %v5965_v58  ;;  %v5972_v8 = vrot.slane %v5971_v61, 2  ;;  %v5979_v55 = vrot.slane %v5978_v22, 2  ;;  %v5985_v43 = vmax.f32 %v5983_v23, %v5984_v60 }
 0x472   :  { %v5991_v16 = vrot.slane %v5990_v39, 4  ;;  %v5997_v50 = vsel %vm5625_vm10, %v5536_v0, -inf  ;;  %v6005_v1 = vrot.slane %v6004_v9, 4  ;;  %v6011_v37 = vsel %vm5625_vm10, %v5537_v13, -inf }
 0x473   :  { %v5967_v32 = vrot.slane %v5966_v14, 1  ;;  %v5973_v31 = vmax.f32 %v5971_v61, %v5972_v8  ;;  %v5980_v25 = vmax.f32 %v5978_v22, %v5979_v55  ;;  %v5986_v49 = vrot.slane %v5985_v43, 2 }
 0x474   :  { %v10728_v52 = vpop.f32.mrb[72].mxu1  ;;  %v5992_v59 = vmax.f32 %v5990_v39, %v5991_v16  ;;  %v5998_v30 = vrot.slane %v5997_v50, 4  ;;  %v6006_v18 = vmax.f32 %v6004_v9, %v6005_v1  ;;  %v6012_v51 = vrot.slane %v6011_v37, 4 }
 0x475   :  { %v10730_v34 = vpop.f32.mrb[100].mxu0  ;;  %v10732_v4 = vpop.f32.mrb[73].mxu1  ;;  %v5968_v62 = vmax.f32 %v5966_v14, %v5967_v32  ;;  %v5974_v42 = vrot.slane %v5973_v31, 1  ;;  %v5981_v46 = vrot.slane %v5980_v25, 1  ;;  %v5987_v21 = vmax.f32 %v5985_v43, %v5986_v49 }
 0x476   :  { %v10734_v27 = vpop.f32.mrb[101].mxu0  ;;  %v10736_v35 = vpop.f32.mrb[74].mxu1  ;;  %v5993_v53 = vrot.slane %v5992_v59, 2  ;;  %v5999_v57 = vmax.f32 %v5997_v50, %v5998_v30  ;;  %v6007_v15 = vrot.slane %v6006_v18, 2  ;;  %v6013_v23 = vmax.f32 %v6011_v37, %v6012_v51 }
 0x477   :  { %v10738_v19 = vpop.f32.mrb[102].mxu0  ;;  %v10740_v58 = vpop.f32.mrb[75].mxu1  ;;  %v5975_v61 = vmax.f32 %v5973_v31, %v5974_v42  ;;  %v5982_v22 = vmax.f32 %v5980_v25, %v5981_v46  ;;  %v5988_v60 = vrot.slane %v5987_v21, 1  ;;  %v5552_v0 = vrot.slane %v5538_v6, %v11160_v38 }
 0x478   :  { %v10743_v13 = vpop.f32.mrb[103].mxu0  ;;  %v5994_v39 = vmax.f32 %v5992_v59, %v5993_v53  ;;  %v6000_v9 = vrot.slane %v5999_v57, 2  ;;  %v6008_v14 = vmax.f32 %v6006_v18, %v6007_v15  ;;  %v6014_v8 = vrot.slane %v6013_v23, 2 }
 0x479   :  { %v5989_v55 = vmax.f32 %v5987_v21, %v5988_v60  ;;  %v6164_v43 = vsel %vm4158_vm2, %v5975_v61, %v5968_v62  ;;  %v5553_v16 = vcombine.high %v10716_v63, %v10716_v63  ;;  %v5554_v50 = vcombine.high %v5552_v0, %v5552_v0 }
 0x47a   :  { %v6165_v1 = vsel %vm4160_vm3, %v5982_v22, %v6164_v43  ;;  %v5995_v37 = vrot.slane %v5994_v39, 1  ;;  %v6001_v32 = vmax.f32 %v5999_v57, %v6000_v9  ;;  %v6009_v31 = vrot.slane %v6008_v14, 1 }
 0x47b   :  { %v6015_v25 = vmax.f32 %v6013_v23, %v6014_v8  ;;  %v6166_v6 = vsel %vm4162_vm4, %v5989_v55, %v6165_v1  ;;  %v6018_v49 = vsel %vm5625_vm10, %v10716_v63, -inf  ;;  %v6025_v59 = vsel %vm5625_vm10, %v5553_v16, -inf }
 0x47c   :  { %v10753_v30 = vpop.f32.mrb[76].mxu1  ;;  %v5996_v18 = vmax.f32 %v5994_v39, %v5995_v37  ;;  %v6002_v51 = vrot.slane %v6001_v32, 1  ;;  %v6010_v62 = vmax.f32 %v6008_v14, %v6009_v31  ;;  %v6019_v42 = vrot.slane %v6018_v49, 4 }
 0x47d   :  { %v10757_v21 = vpop.f32.mrb[77].mxu1  ;;  %v6016_v53 = vrot.slane %v6015_v25, 1  ;;  %v6026_v57 = vrot.slane %v6025_v59, 4  ;;  %v6032_v15 = vsel %vm5625_vm10, %v5552_v0, -inf  ;;  %v6039_v23 = vsel %vm5625_vm10, %v5554_v50, -inf }
 0x47e   :  { %v10763_v63 = vpop.f32.mrb[78].mxu1  ;;  %v6003_v22 = vmax.f32 %v6001_v32, %v6002_v51  ;;  %v6167_v60 = vsel %vm4164_vm5, %v5996_v18, %v6166_v6  ;;  %v6020_v39 = vmax.f32 %v6018_v49, %v6019_v42  ;;  %v6033_v9 = vrot.slane %v6032_v15, 4 }
 0x47f   :  { %v10768_v8 = vpop.f32.mrb[79].mxu1  ;;  %v6017_v55 = vmax.f32 %v6015_v25, %v6016_v53  ;;  %v6027_v43 = vmax.f32 %v6025_v59, %v6026_v57  ;;  %v6040_v16 = vrot.slane %v6039_v23, 4  ;;  %v5283_v0 = vmax.f32 %v10692_v17, 0.0 }
 0x480   :  { %v10755_v46 = vpop.f32.mrb[104].mxu0  ;;  %v6168_v50 = vsel %vm4166_vm6, %v6003_v22, %v6167_v60  ;;  %v6021_v37 = vrot.slane %v6020_v39, 2  ;;  %v6034_v31 = vmax.f32 %v6032_v15, %v6033_v9  ;;  %v10776_v32 = vadd.f32 %v10658_v54, %v10651_v47 }
 0x481   :  { %v10761_v61 = vpop.f32.mrb[105].mxu0  ;;  %v6169_v6 = vsel %vm4168_vm7, %v6010_v62, %v6168_v50  ;;  %v6028_v49 = vrot.slane %v6027_v43, 2  ;;  %v6041_v18 = vmax.f32 %v6039_v23, %v6040_v16  ;;  %v5561_v25 = vrot.slane %v5283_v0, %v11160_v38 }
 0x482   :  { %v10766_v14 = vpop.f32.mrb[106].mxu0  ;;  %v6170_v59 = vsel %vm4170_vm8, %v6017_v55, %v6169_v6  ;;  %v6022_v51 = vmax.f32 %v6020_v39, %v6021_v37  ;;  %v6035_v17 = vrot.slane %v6034_v31, 2  ;;  %v8258_v42 = vadd.f32 %v10667_v36, %v10660_v40 }
 0x483   :  { %v10771_v1 = vpop.f32.mrb[107].mxu0  ;;  %6190 = vst.msk [vmem:[%s11136_s5 + $0x30] sm:$0xff] %vm4481_vm9, %v6170_v59  ;;  %v6029_v47 = vmax.f32 %v6027_v43, %v6028_v49  ;;  %v6042_v54 = vrot.slane %v6041_v18, 2  ;;  %v5562_v53 = vcombine.high %v5561_v25, %v5561_v25  ;;  %v6046_v62 = vsel %vm5625_vm10, %v5561_v25, -inf }
 0x484   :  { %v8277_v57 = vpop.f32.mrb[80].mxu1  ;;  %v6023_v15 = vrot.slane %v6022_v51, 1  ;;  %v6036_v23 = vmax.f32 %v6034_v31, %v6035_v17  ;;  %v6047_v22 = vrot.slane %v6046_v62, 4  ;;  %v10789_v60 = vadd.f32 %v8258_v42, %v10678_v28 }
 0x485   :  { %v8278_v9 = vpop.f32.mrb[81].mxu1  ;;  %v6030_v40 = vrot.slane %v6029_v47, 1  ;;  %v6043_v36 = vmax.f32 %v6041_v18, %v6042_v54  ;;  %v6053_v55 = vsel %vm5625_vm10, %v5562_v53, -inf  ;;  %v10794_v43 = vadd.f32 %v10673_v24, %v10665_v45 }
 0x486   :  { %v8280_v0 = vpop.f32.mrb[82].mxu1  ;;  %v6024_v50 = vmax.f32 %v6022_v51, %v6023_v15  ;;  %v6037_v37 = vrot.slane %v6036_v23, 1  ;;  %v6048_v6 = vmax.f32 %v6046_v62, %v6047_v22  ;;  %v6054_v31 = vrot.slane %v6053_v55, 4 }
 0x487   :  { %v8281_v25 = vpop.f32.mrb[83].mxu1  ;;  %v6031_v59 = vmax.f32 %v6029_v47, %v6030_v40  ;;  %v6044_v17 = vrot.slane %v6043_v36, 1  ;;  %v8261_v42 = vadd.f32 %v10703_v56, %v10697_v33  ;;  %v8343_v18 = vadd.f32 %v10706_v10, %v10701_v3 }
 0x488   :  { %v8359_v39 = vpop.f32.mrb[108].mxu0  ;;  %v6038_v53 = vmax.f32 %v6036_v23, %v6037_v37  ;;  %v6049_v45 = vrot.slane %v6048_v6, 2  ;;  %v6055_v24 = vmax.f32 %v6053_v55, %v6054_v31  ;;  %v8264_v51 = vadd.f32 %v10720_v5, %v10708_v2 }
 0x489   :  { %v8360_v16 = vpop.f32.mrb[109].mxu0  ;;  %v6045_v62 = vmax.f32 %v6043_v36, %v6044_v17  ;;  %v6171_v15 = vsel %vm4158_vm2, %v6031_v59, %v6024_v50  ;;  %v6716_v47 = vadd.f32 %v8261_v42, %v10678_v28  ;;  %v8346_v22 = vadd.f32 %v10722_v12, %v10718_v29 }
 0x48a   :  { %v8362_v49 = vpop.f32.mrb[110].mxu0  ;;  %v6172_v33 = vsel %vm4160_vm3, %v6038_v53, %v6171_v15  ;;  %v6050_v56 = vmax.f32 %v6048_v6, %v6049_v45  ;;  %v6056_v3 = vrot.slane %v6055_v24, 2  ;;  %v6719_v10 = vadd.f32 %v8264_v51, %v10678_v28 }
 0x48b   :  { %v8363_v54 = vpop.f32.mrb[111].mxu0  ;;  %v6173_v23 = vsel %vm4162_vm4, %v6045_v62, %v6172_v33  ;;  %v8267_v40 = vadd.f32 %v10732_v4, %v10728_v52  ;;  %v8349_v2 = vadd.f32 %v10734_v27, %v10730_v34  ;;  %v8270_v5 = vadd.f32 %v10740_v58, %v10736_v35 }
 0x48c   :  { %v8283_v36 = vpop.f32.mrb[84].mxu1  ;;  %v6051_v55 = vrot.slane %v6050_v56, 1  ;;  %v6057_v29 = vmax.f32 %v6055_v24, %v6056_v3  ;;  %v8352_v12 = vadd.f32 %v10743_v13, %v10738_v19  ;;  %v8273_v50 = vadd.f32 %v10757_v21, %v10753_v30 }
 0x48d   :  { %v8284_v37 = vpop.f32.mrb[85].mxu1  ;;  %v6724_v6 = vadd.f32 %v8267_v40, %v10678_v28  ;;  %v6727_v52 = vadd.f32 %v8270_v5, %v10678_v28  ;;  %v8355_v34 = vadd.f32 %v10761_v61, %v10755_v46  ;;  %v8276_v4 = vadd.f32 %v10768_v8, %v10763_v63 }
 0x48e   :  { %v8286_v27 = vpop.f32.mrb[86].mxu1  ;;  %v6052_v35 = vmax.f32 %v6050_v56, %v6051_v55  ;;  %v6058_v58 = vrot.slane %v6057_v29, 1  ;;  %v6732_v31 = vadd.f32 %v8273_v50, %v10678_v28  ;;  %v8358_v19 = vadd.f32 %v10771_v1, %v10766_v14 }
 0x48f   :  { %v8287_v13 = vpop.f32.mrb[87].mxu1  ;;  %v6735_v30 = vadd.f32 %v8276_v4, %v10678_v28  ;;  %v8279_v21 = vadd.f32 %v8278_v9, %v8277_v57  ;;  %v8361_v59 = vadd.f32 %v8360_v16, %v8359_v39  ;;  %v8282_v17 = vadd.f32 %v8281_v25, %v8280_v0 }
 0x490   :  { %v6059_v42 = vmax.f32 %v6057_v29, %v6058_v58  ;;  %v6174_v46 = vsel %vm4164_vm5, %v6052_v35, %v6173_v23  ;;  %v8364_v61 = vadd.f32 %v8363_v54, %v8362_v49  ;;  %v8285_v53 = vadd.f32 %v8284_v37, %v8283_v36 }
 0x491   :  { %v6740_v63 = vadd.f32 %v8279_v21, %v10678_v28  ;;  %v6743_v8 = vadd.f32 %v8282_v17, %v10678_v28  ;;  %v8288_v45 = vadd.f32 %v8287_v13, %v8286_v27  ;;  %v6813_v24 = vadd.f32 %v10644_v20, %v6716_v47 }
 0x492   :  { %v6175_v14 = vsel %vm4166_vm6, %v6059_v42, %v6174_v46  ;;  %v6748_v1 = vadd.f32 %v8285_v53, %v10678_v28  ;;  %v6805_v57 = vadd.f32 %v10480_v44, %v10695_v48  ;;  %v6816_v39 = vadd.f32 %v10656_v41, %v6719_v10 }
 0x493   :  { %6192 = vst.msk [vmem:[%s11136_s5 + $0x38] sm:$0x3f] %vm6191_vm11, %v6175_v14  ;;  %v6751_v9 = vadd.f32 %v8288_v45, %v10678_v28  ;;  %v6808_v20 = vadd.f32 %v10488_v26, %v10789_v60  ;;  %v10846_v0 = vadd.f32 %v10776_v32, %v6732_v31  ;;  %v10849_v49 = vadd.f32 %v10663_v7, %v6724_v6 }
 0x494   :  { %v8289_v16 = vpop.f32.mrb[88].mxu1  ;;  %v10852_v41 = vadd.f32 %v10794_v43, %v6735_v30  ;;  %v10855_v48 = vadd.f32 %v10671_v11, %v6727_v52  ;;  %v10857_v25 = vadd.f32 %v8349_v2, %v6748_v1  ;;  %v10859_v54 = vadd.f32 %v8343_v18, %v6740_v63 }
 0x495   :  { %v8290_v44 = vpop.f32.mrb[89].mxu1  ;;  %v10861_v26 = vadd.f32 %v8352_v12, %v6751_v9  ;;  %v10863_v32 = vadd.f32 %v8346_v22, %v6743_v8 }
 0x496   :  { %v8291_v51 = vadd.f32 %v8290_v44, %v8289_v16  ;;  %v8292_v62 = vpop.f32.mrb[90].mxu1 }
 0x497   :  { %v8293_v60 = vpop.f32.mrb[91].mxu1 }
 0x498   :  { %v6756_v7 = vadd.f32 %v8291_v51, %v10678_v28  ;;  %v8294_v15 = vadd.f32 %v8293_v60, %v8292_v62 }
 0x49a   :  { %v6759_v43 = vadd.f32 %v8294_v15, %v10678_v28  ;;  %v10867_v47 = vadd.f32 %v8355_v34, %v6756_v7 }
 0x49c   :  { %v8295_v11 = vpop.f32.mrb[92].mxu1  ;;  %v10869_v33 = vadd.f32 %v8358_v19, %v6759_v43 }
 0x49d   :  { %v8296_v56 = vpop.f32.mrb[93].mxu1 }
 0x49e   :  { %v8297_v18 = vadd.f32 %v8296_v56, %v8295_v11  ;;  %v8298_v3 = vpop.f32.mrb[94].mxu1 }
 0x49f   :  { %v8299_v10 = vpop.f32.mrb[95].mxu1 }
 0x4a0   :  { %v6764_v23 = vadd.f32 %v8297_v18, %v10678_v28  ;;  %v8300_v40 = vadd.f32 %v8299_v10, %v8298_v3 }
 0x4a2   :  { %v6767_v22 = vadd.f32 %v8300_v40, %v10678_v28  ;;  %v10873_v2 = vadd.f32 %v8361_v59, %v6764_v23 }
 0x4a4   :  { %v8507_v5 = vpop.f32.mrb[96].mxu1  ;;  %v10875_v36 = vadd.f32 %v8364_v61, %v6767_v22 }
 0x4a5   :  { %v6910_v55 = vadd.f32 %v8507_v5, %v6813_v24  ;;  %v6901_v29 = vpop.f32.mrb[97].mxu1 }
 0x4a6   :  { %v6902_v12 = vadd.f32 %v6901_v29, %v6805_v57  ;;  %v8508_v50 = vpop.f32.mrb[98].mxu1 }
 0x4a7   :  { %v6966_v37 = vmax.f32 %v6910_v55, 0.0  ;;  %v6913_v6 = vadd.f32 %v8508_v50, %v6816_v39  ;;  %v6904_v52 = vpop.f32.mrb[99].mxu1 }
 0x4a8   :  { %v6964_v34 = vmax.f32 %v6902_v12, 0.0  ;;  %v6905_v4 = vadd.f32 %v6904_v52, %v6808_v20 }
 0x4a9   :  { %v7030_v27 = vcombine.high %v6966_v37, %v6966_v37  ;;  %v7037_v35 = vrot.slane %v6966_v37, %v11160_v38  ;;  %v10878_v58 = vmax.f32 %v6913_v6, 0.0 }
 0x4aa   :  { %v6996_v28 = vcombine.high %v6964_v34, %v6964_v34  ;;  %v7003_v31 = vrot.slane %v6964_v34, %v11160_v38  ;;  %v10881_v19 = vmax.f32 %v6905_v4, 0.0 }
 0x4ab   :  { %v7044_v13 = vrot.slane %v7030_v27, %v11160_v38  ;;  %v7045_v30 = vcombine.high %v7037_v35, %v7037_v35  ;;  %v7377_v21 = vsel %vm5625_vm10, %v7037_v35, -inf  ;;  %v7047_v59 = vcombine.high %v10878_v58, %v10878_v58 }
 0x4ac   :  { %v7378_v17 = vrot.slane %v7377_v21, 4  ;;  %v7010_v42 = vrot.slane %v6996_v28, %v11160_v38  ;;  %v7011_v46 = vcombine.high %v7003_v31, %v7003_v31  ;;  %v7321_v61 = vsel %vm5625_vm10, %v7003_v31, -inf  ;;  %v10889_v53 = vpop.f32.mrb[100].mxu1 }
 0x4ad   :  { %v7046_v63 = vcombine.high %v7044_v13, %v7044_v13  ;;  %v7384_v8 = vsel %vm5625_vm10, %v7045_v30, -inf  ;;  %v7391_v45 = vsel %vm5625_vm10, %v7044_v13, -inf  ;;  %v7322_v24 = vrot.slane %v7321_v61, 4  ;;  %v10893_v14 = vpop.f32.mrb[101].mxu1 }
 0x4ae   :  { %v7379_v1 = vmax.f32 %v7377_v21, %v7378_v17  ;;  %v7385_v57 = vrot.slane %v7384_v8, 4  ;;  %v7392_v39 = vrot.slane %v7391_v45, 4  ;;  %v7012_v9 = vcombine.high %v7010_v42, %v7010_v42  ;;  %v10895_v16 = vpop.f32.mrb[102].mxu1 }
 0x4af   :  { %v7398_v20 = vsel %vm5625_vm10, %v7046_v63, -inf  ;;  %v7323_v44 = vmax.f32 %v7321_v61, %v7322_v24  ;;  %v7328_v51 = vsel %vm5625_vm10, %v7011_v46, -inf  ;;  %v7335_v62 = vsel %vm5625_vm10, %v7010_v42, -inf  ;;  %v10900_v60 = vpop.f32.mrb[103].mxu1 }
 0x4b0   :  { %v7380_v7 = vrot.slane %v7379_v1, 2  ;;  %v7386_v15 = vmax.f32 %v7384_v8, %v7385_v57  ;;  %v7393_v43 = vmax.f32 %v7391_v45, %v7392_v39  ;;  %v7399_v11 = vrot.slane %v7398_v20, 4 }
 0x4b1   :  { %v7324_v56 = vrot.slane %v7323_v44, 2  ;;  %v7329_v18 = vrot.slane %v7328_v51, 4  ;;  %v7336_v3 = vrot.slane %v7335_v62, 4  ;;  %v7342_v10 = vsel %vm5625_vm10, %v7012_v9, -inf }
 0x4b2   :  { %v7381_v23 = vmax.f32 %v7379_v1, %v7380_v7  ;;  %v7387_v40 = vrot.slane %v7386_v15, 2  ;;  %v7394_v22 = vrot.slane %v7393_v43, 2  ;;  %v7400_v5 = vmax.f32 %v7398_v20, %v7399_v11 }
 0x4b3   :  { %v7325_v55 = vmax.f32 %v7323_v44, %v7324_v56  ;;  %v7330_v29 = vmax.f32 %v7328_v51, %v7329_v18  ;;  %v7337_v12 = vmax.f32 %v7335_v62, %v7336_v3  ;;  %v7343_v50 = vrot.slane %v7342_v10, 4 }
 0x4b4   :  { %v7382_v37 = vrot.slane %v7381_v23, 1  ;;  %v7388_v6 = vmax.f32 %v7386_v15, %v7387_v40  ;;  %v7395_v52 = vmax.f32 %v7393_v43, %v7394_v22  ;;  %v7401_v34 = vrot.slane %v7400_v5, 2  ;;  %v10903_v4 = vpop.f32.mrb[104].mxu1 }
 0x4b5   :  { %v7326_v27 = vrot.slane %v7325_v55, 1  ;;  %v7331_v35 = vrot.slane %v7330_v29, 2  ;;  %v7338_v28 = vrot.slane %v7337_v12, 2  ;;  %v7344_v31 = vmax.f32 %v7342_v10, %v7343_v50  ;;  %v10905_v13 = vpop.f32.mrb[105].mxu1 }
 0x4b6   :  { %v7383_v30 = vmax.f32 %v7381_v23, %v7382_v37  ;;  %v7389_v21 = vrot.slane %v7388_v6, 1  ;;  %v7396_v17 = vrot.slane %v7395_v52, 1  ;;  %v7402_v42 = vmax.f32 %v7400_v5, %v7401_v34  ;;  %v10907_v46 = vpop.f32.mrb[106].mxu1 }
 0x4b7   :  { %v7327_v61 = vmax.f32 %v7325_v55, %v7326_v27  ;;  %v7332_v63 = vmax.f32 %v7330_v29, %v7331_v35  ;;  %v7339_v8 = vmax.f32 %v7337_v12, %v7338_v28  ;;  %v7345_v45 = vrot.slane %v7344_v31, 2  ;;  %v10909_v24 = vpop.f32.mrb[107].mxu1 }
 0x4b8   :  { %v7390_v1 = vmax.f32 %v7388_v6, %v7389_v21  ;;  %v7397_v57 = vmax.f32 %v7395_v52, %v7396_v17  ;;  %v7403_v39 = vrot.slane %v7402_v42, 1  ;;  %v7054_v9 = vrot.slane %v10878_v58, %v11160_v38 }
 0x4b9   :  { %v7333_v20 = vrot.slane %v7332_v63, 1  ;;  %v7340_v44 = vrot.slane %v7339_v8, 1  ;;  %v7346_v51 = vmax.f32 %v7344_v31, %v7345_v45  ;;  %v7061_v62 = vrot.slane %v7047_v59, %v11160_v38 }
 0x4ba   :  { %v7404_v7 = vmax.f32 %v7402_v42, %v7403_v39  ;;  %v7824_v15 = vsel %vm4158_vm2, %v7390_v1, %v7383_v30  ;;  %v7062_v43 = vcombine.high %v7054_v9, %v7054_v9  ;;  %v7405_v11 = vsel %vm5625_vm10, %v7054_v9, -inf }
 0x4bb   :  { %v7825_v56 = vsel %vm4160_vm3, %v7397_v57, %v7824_v15  ;;  %v7334_v18 = vmax.f32 %v7332_v63, %v7333_v20  ;;  %v7341_v3 = vmax.f32 %v7339_v8, %v7340_v44  ;;  %v7347_v10 = vrot.slane %v7346_v51, 1 }
 0x4bc   :  { %v7063_v23 = vcombine.high %v7061_v62, %v7061_v62  ;;  %v7406_v40 = vrot.slane %v7405_v11, 4  ;;  %v7412_v22 = vsel %vm5625_vm10, %v7062_v43, -inf  ;;  %v7419_v5 = vsel %vm5625_vm10, %v7061_v62, -inf  ;;  %v10922_v55 = vpop.f32.mrb[108].mxu1 }
 0x4bd   :  { %v7348_v58 = vmax.f32 %v7346_v51, %v7347_v10  ;;  %v7817_v59 = vsel %vm4158_vm2, %v7334_v18, %v7327_v61  ;;  %v7413_v29 = vrot.slane %v7412_v22, 4  ;;  %v7420_v12 = vrot.slane %v7419_v5, 4  ;;  %v10925_v50 = vpop.f32.mrb[109].mxu1 }
 0x4be   :  { %v7818_v37 = vsel %vm4160_vm3, %v7341_v3, %v7817_v59  ;;  %v7407_v6 = vmax.f32 %v7405_v11, %v7406_v40  ;;  %v7426_v52 = vsel %vm5625_vm10, %v7063_v23, -inf  ;;  %v7826_v34 = vsel %vm4162_vm4, %v7404_v7, %v7825_v56  ;;  %v10930_v27 = vpop.f32.mrb[110].mxu1 }
 0x4bf   :  { %v7414_v35 = vmax.f32 %v7412_v22, %v7413_v29  ;;  %v7421_v28 = vmax.f32 %v7419_v5, %v7420_v12  ;;  %v7427_v31 = vrot.slane %v7426_v52, 4  ;;  %v7013_v30 = vcombine.high %v10881_v19, %v10881_v19  ;;  %v10934_v21 = vpop.f32.mrb[111].mxu1 }
 0x4c0   :  { %v7408_v17 = vrot.slane %v7407_v6, 2  ;;  %v7020_v42 = vrot.slane %v10881_v19, %v11160_v38  ;;  %v10939_v61 = vsel %vm4162_vm4, %v7348_v58, %v7818_v37  ;;  %v6926_v63 = vadd.f32 %v10889_v53, %v10846_v0 }
 0x4c1   :  { %v7415_v8 = vrot.slane %v7414_v35, 2  ;;  %v7422_v45 = vrot.slane %v7421_v28, 2  ;;  %v7428_v1 = vmax.f32 %v7426_v52, %v7427_v31  ;;  %v7027_v57 = vrot.slane %v7013_v30, %v11160_v38 }
 0x4c2   :  { %v7409_v39 = vmax.f32 %v7407_v6, %v7408_v17  ;;  %v7028_v9 = vcombine.high %v7020_v42, %v7020_v42  ;;  %v7349_v20 = vsel %vm5625_vm10, %v7020_v42, -inf  ;;  %v6970_v44 = vmax.f32 %v6926_v63, 0.0 }
 0x4c3   :  { %v7416_v51 = vmax.f32 %v7414_v35, %v7415_v8  ;;  %v7423_v62 = vmax.f32 %v7421_v28, %v7422_v45  ;;  %v7429_v7 = vrot.slane %v7428_v1, 2  ;;  %v7029_v19 = vcombine.high %v7027_v57, %v7027_v57 }
 0x4c4   :  { %v7410_v15 = vrot.slane %v7409_v39, 1  ;;  %v7350_v43 = vrot.slane %v7349_v20, 4  ;;  %v7356_v11 = vsel %vm5625_vm10, %v7028_v9, -inf  ;;  %v7363_v0 = vsel %vm5625_vm10, %v7027_v57, -inf }
 0x4c5   :  { %v7417_v53 = vrot.slane %v7416_v51, 1  ;;  %v7424_v56 = vrot.slane %v7423_v62, 1  ;;  %v7430_v18 = vmax.f32 %v7428_v1, %v7429_v7  ;;  %v7357_v3 = vrot.slane %v7356_v11, 4 }
 0x4c6   :  { %v7411_v10 = vmax.f32 %v7409_v39, %v7410_v15  ;;  %v7351_v23 = vmax.f32 %v7349_v20, %v7350_v43  ;;  %v7364_v40 = vrot.slane %v7363_v0, 4  ;;  %v7370_v22 = vsel %vm5625_vm10, %v7029_v19, -inf }
 0x4c7   :  { %v7418_v5 = vmax.f32 %v7416_v51, %v7417_v53  ;;  %v7425_v58 = vmax.f32 %v7423_v62, %v7424_v56  ;;  %v7431_v59 = vrot.slane %v7430_v18, 1  ;;  %v7358_v29 = vmax.f32 %v7356_v11, %v7357_v3 }
 0x4c8   :  { %v7827_v12 = vsel %vm4164_vm5, %v7411_v10, %v7826_v34  ;;  %v7352_v37 = vrot.slane %v7351_v23, 2  ;;  %v7365_v6 = vmax.f32 %v7363_v0, %v7364_v40  ;;  %v7371_v52 = vrot.slane %v7370_v22, 4 }
 0x4c9   :  { %v7432_v35 = vmax.f32 %v7430_v18, %v7431_v59  ;;  %v7828_v28 = vsel %vm4166_vm6, %v7418_v5, %v7827_v12  ;;  %v7359_v31 = vrot.slane %v7358_v29, 2  ;;  %v7098_v30 = vcombine.high %v6970_v44, %v6970_v44 }
 0x4ca   :  { %v7829_v17 = vsel %vm4168_vm7, %v7425_v58, %v7828_v28  ;;  %v7353_v42 = vmax.f32 %v7351_v23, %v7352_v37  ;;  %v7366_v63 = vrot.slane %v7365_v6, 2  ;;  %v7372_v8 = vmax.f32 %v7370_v22, %v7371_v52 }
 0x4cb   :  { %v7830_v45 = vsel %vm4170_vm8, %v7432_v35, %v7829_v17  ;;  %v7360_v1 = vmax.f32 %v7358_v29, %v7359_v31  ;;  %v7105_v57 = vrot.slane %v6970_v44, %v11160_v38  ;;  %v7112_v34 = vrot.slane %v7098_v30, %v11160_v38 }
 0x4cc   :  { %8048 = vst.msk [vmem:[%s11136_s5 + $0x48] sm:$0xff] %vm4481_vm9, %v7830_v45  ;;  %v7354_v39 = vrot.slane %v7353_v42, 1  ;;  %v7367_v9 = vmax.f32 %v7365_v6, %v7366_v63  ;;  %v7373_v20 = vrot.slane %v7372_v8, 2  ;;  %v6918_v51 = vadd.f32 %v10893_v14, %v10849_v49 }
 0x4cd   :  { %v7361_v62 = vrot.slane %v7360_v1, 1  ;;  %v7113_v7 = vcombine.high %v7105_v57, %v7105_v57  ;;  %v7114_v19 = vcombine.high %v7112_v34, %v7112_v34  ;;  %v7489_v15 = vsel %vm5625_vm10, %v7105_v57, -inf }
 0x4ce   :  { %v7355_v43 = vmax.f32 %v7353_v42, %v7354_v39  ;;  %v7368_v44 = vrot.slane %v7367_v9, 1  ;;  %v7374_v11 = vmax.f32 %v7372_v8, %v7373_v20  ;;  %v7490_v0 = vrot.slane %v7489_v15, 4 }
 0x4cf   :  { %v7362_v53 = vmax.f32 %v7360_v1, %v7361_v62  ;;  %v7496_v56 = vsel %vm5625_vm10, %v7113_v7, -inf  ;;  %v7503_v18 = vsel %vm5625_vm10, %v7112_v34, -inf  ;;  %v7510_v3 = vsel %vm5625_vm10, %v7114_v19, -inf }
 0x4d0   :  { %v7369_v10 = vmax.f32 %v7367_v9, %v7368_v44  ;;  %v7375_v23 = vrot.slane %v7374_v11, 1  ;;  %v7820_v49 = vsel %vm4164_vm5, %v7355_v43, %v10939_v61  ;;  %v7491_v14 = vmax.f32 %v7489_v15, %v7490_v0 }
 0x4d1   :  { %v7821_v40 = vsel %vm4166_vm6, %v7362_v53, %v7820_v49  ;;  %v7497_v22 = vrot.slane %v7496_v56, 4  ;;  %v7504_v5 = vrot.slane %v7503_v18, 4  ;;  %v7511_v58 = vrot.slane %v7510_v3, 4 }
 0x4d2   :  { %v7376_v59 = vmax.f32 %v7374_v11, %v7375_v23  ;;  %v7822_v29 = vsel %vm4168_vm7, %v7369_v10, %v7821_v40  ;;  %v7492_v12 = vrot.slane %v7491_v14, 2  ;;  %v6968_v37 = vmax.f32 %v6918_v51, 0.0 }
 0x4d3   :  { %v7498_v6 = vmax.f32 %v7496_v56, %v7497_v22  ;;  %v7505_v52 = vmax.f32 %v7503_v18, %v7504_v5  ;;  %v7512_v35 = vmax.f32 %v7510_v3, %v7511_v58  ;;  %v6929_v28 = vadd.f32 %v10895_v16, %v10852_v41 }
 0x4d4   :  { %v7823_v31 = vsel %vm4170_vm8, %v7376_v59, %v7822_v29  ;;  %v7493_v61 = vmax.f32 %v7491_v14, %v7492_v12  ;;  %v7064_v30 = vcombine.high %v6968_v37, %v6968_v37  ;;  %v7071_v17 = vrot.slane %v6968_v37, %v11160_v38 }
 0x4d5   :  { %8047 = vst.msk [vmem:[%s11136_s5 + $0x40] sm:$0xff] %vm4481_vm9, %v7823_v31  ;;  %v7499_v42 = vrot.slane %v7498_v6, 2  ;;  %v7506_v63 = vrot.slane %v7505_v52, 2  ;;  %v7513_v8 = vrot.slane %v7512_v35, 2  ;;  %v6971_v45 = vmax.f32 %v6929_v28, 0.0 }
 0x4d6   :  { %v7494_v1 = vrot.slane %v7493_v61, 1  ;;  %v7078_v57 = vrot.slane %v7064_v30, %v11160_v38  ;;  %v7079_v34 = vcombine.high %v7071_v17, %v7071_v17  ;;  %v7433_v41 = vsel %vm5625_vm10, %v7071_v17, -inf }
 0x4d7   :  { %v7500_v16 = vmax.f32 %v7498_v6, %v7499_v42  ;;  %v7507_v39 = vmax.f32 %v7505_v52, %v7506_v63  ;;  %v7514_v9 = vmax.f32 %v7512_v35, %v7513_v8  ;;  %v7434_v20 = vrot.slane %v7433_v41, 4 }
 0x4d8   :  { %v7495_v51 = vmax.f32 %v7493_v61, %v7494_v1  ;;  %v7080_v62 = vcombine.high %v7078_v57, %v7078_v57  ;;  %v7440_v7 = vsel %vm5625_vm10, %v7079_v34, -inf  ;;  %v7447_v19 = vsel %vm5625_vm10, %v7078_v57, -inf }
 0x4d9   :  { %v7501_v15 = vrot.slane %v7500_v16, 1  ;;  %v7508_v43 = vrot.slane %v7507_v39, 1  ;;  %v7515_v44 = vrot.slane %v7514_v9, 1  ;;  %v7435_v11 = vmax.f32 %v7433_v41, %v7434_v20 }
 0x4da   :  { %v7441_v0 = vrot.slane %v7440_v7, 4  ;;  %v7448_v53 = vrot.slane %v7447_v19, 4  ;;  %v7454_v56 = vsel %vm5625_vm10, %v7080_v62, -inf  ;;  %v7115_v18 = vcombine.high %v6971_v45, %v6971_v45 }
 0x4db   :  { %v7502_v3 = vmax.f32 %v7500_v16, %v7501_v15  ;;  %v7509_v10 = vmax.f32 %v7507_v39, %v7508_v43  ;;  %v7516_v23 = vmax.f32 %v7514_v9, %v7515_v44  ;;  %v7436_v49 = vrot.slane %v7435_v11, 2 }
 0x4dc   :  { %v7442_v14 = vmax.f32 %v7440_v7, %v7441_v0  ;;  %v7449_v40 = vmax.f32 %v7447_v19, %v7448_v53  ;;  %v7455_v22 = vrot.slane %v7454_v56, 4  ;;  %v7122_v5 = vrot.slane %v6971_v45, %v11160_v38 }
 0x4dd   :  { %v7838_v58 = vsel %vm4158_vm2, %v7502_v3, %v7495_v51  ;;  %v7437_v59 = vmax.f32 %v7435_v11, %v7436_v49  ;;  %v7129_v29 = vrot.slane %v7115_v18, %v11160_v38  ;;  %v6921_v12 = vadd.f32 %v10900_v60, %v10855_v48 }
 0x4de   :  { %v7839_v37 = vsel %vm4160_vm3, %v7509_v10, %v7838_v58  ;;  %v7443_v6 = vrot.slane %v7442_v14, 2  ;;  %v7450_v52 = vrot.slane %v7449_v40, 2  ;;  %v7456_v35 = vmax.f32 %v7454_v56, %v7455_v22 }
 0x4df   :  { %v7438_v28 = vrot.slane %v7437_v59, 1  ;;  %v7130_v31 = vcombine.high %v7122_v5, %v7122_v5  ;;  %v7131_v61 = vcombine.high %v7129_v29, %v7129_v29  ;;  %v7517_v30 = vsel %vm5625_vm10, %v7122_v5, -inf }
 0x4e0   :  { %v7444_v17 = vmax.f32 %v7442_v14, %v7443_v6  ;;  %v7451_v42 = vmax.f32 %v7449_v40, %v7450_v52  ;;  %v7457_v63 = vrot.slane %v7456_v35, 2  ;;  %v7518_v8 = vrot.slane %v7517_v30, 4 }
 0x4e1   :  { %v7439_v45 = vmax.f32 %v7437_v59, %v7438_v28  ;;  %v7524_v1 = vsel %vm5625_vm10, %v7130_v31, -inf  ;;  %v7531_v57 = vsel %vm5625_vm10, %v7129_v29, -inf  ;;  %v7538_v48 = vsel %vm5625_vm10, %v7131_v61, -inf }
 0x4e2   :  { %v7445_v60 = vrot.slane %v7444_v17, 1  ;;  %v7452_v34 = vrot.slane %v7451_v42, 1  ;;  %v7458_v41 = vmax.f32 %v7456_v35, %v7457_v63  ;;  %v7519_v16 = vmax.f32 %v7517_v30, %v7518_v8 }
 0x4e3   :  { %v7525_v39 = vrot.slane %v7524_v1, 4  ;;  %v7532_v9 = vrot.slane %v7531_v57, 4  ;;  %v7539_v20 = vrot.slane %v7538_v48, 4  ;;  %v7840_v51 = vsel %vm4162_vm4, %v7516_v23, %v7839_v37 }
 0x4e4   :  { %v7446_v62 = vmax.f32 %v7444_v17, %v7445_v60  ;;  %v7453_v7 = vmax.f32 %v7451_v42, %v7452_v34  ;;  %v7459_v19 = vrot.slane %v7458_v41, 1  ;;  %v7520_v15 = vrot.slane %v7519_v16, 2 }
 0x4e5   :  { %v7526_v43 = vmax.f32 %v7524_v1, %v7525_v39  ;;  %v7533_v44 = vmax.f32 %v7531_v57, %v7532_v9  ;;  %v7540_v11 = vmax.f32 %v7538_v48, %v7539_v20  ;;  %v6969_v0 = vmax.f32 %v6921_v12, 0.0 }
 0x4e6   :  { %v7460_v53 = vmax.f32 %v7458_v41, %v7459_v19  ;;  %v7831_v56 = vsel %vm4158_vm2, %v7446_v62, %v7439_v45  ;;  %v7521_v18 = vmax.f32 %v7519_v16, %v7520_v15  ;;  %v6942_v3 = vadd.f32 %v10903_v4, %v10857_v25 }
 0x4e7   :  { %v7832_v10 = vsel %vm4160_vm3, %v7453_v7, %v7831_v56  ;;  %v7527_v49 = vrot.slane %v7526_v43, 2  ;;  %v7534_v14 = vrot.slane %v7533_v44, 2  ;;  %v7541_v23 = vrot.slane %v7540_v11, 2 }
 0x4e8   :  { %v7522_v40 = vrot.slane %v7521_v18, 1  ;;  %v7081_v22 = vcombine.high %v6969_v0, %v6969_v0  ;;  %v7088_v5 = vrot.slane %v6969_v0, %v11160_v38  ;;  %v7833_v58 = vsel %vm4162_vm4, %v7460_v53, %v7832_v10 }
 0x4e9   :  { %v7528_v59 = vmax.f32 %v7526_v43, %v7527_v49  ;;  %v7535_v29 = vmax.f32 %v7533_v44, %v7534_v14  ;;  %v7542_v12 = vmax.f32 %v7540_v11, %v7541_v23  ;;  %v6974_v37 = vmax.f32 %v6942_v3, 0.0 }
 0x4ea   :  { %v7523_v6 = vmax.f32 %v7521_v18, %v7522_v40  ;;  %v7095_v52 = vrot.slane %v7081_v22, %v11160_v38  ;;  %v7096_v35 = vcombine.high %v7088_v5, %v7088_v5  ;;  %v7461_v25 = vsel %vm5625_vm10, %v7088_v5, -inf }
 0x4eb   :  { %v7529_v4 = vrot.slane %v7528_v59, 1  ;;  %v7536_v28 = vrot.slane %v7535_v29, 1  ;;  %v7543_v31 = vrot.slane %v7542_v12, 1  ;;  %v7462_v61 = vrot.slane %v7461_v25, 4 }
 0x4ec   :  { %v7841_v30 = vsel %vm4164_vm5, %v7523_v6, %v7840_v51  ;;  %v7097_v17 = vcombine.high %v7095_v52, %v7095_v52  ;;  %v7468_v42 = vsel %vm5625_vm10, %v7096_v35, -inf  ;;  %v7475_v63 = vsel %vm5625_vm10, %v7095_v52, -inf }
 0x4ed   :  { %v7530_v8 = vmax.f32 %v7528_v59, %v7529_v4  ;;  %v7537_v45 = vmax.f32 %v7535_v29, %v7536_v28  ;;  %v7544_v1 = vmax.f32 %v7542_v12, %v7543_v31  ;;  %v7463_v57 = vmax.f32 %v7461_v25, %v7462_v61 }
 0x4ee   :  { %v7469_v48 = vrot.slane %v7468_v42, 4  ;;  %v7476_v60 = vrot.slane %v7475_v63, 4  ;;  %v7482_v34 = vsel %vm5625_vm10, %v7097_v17, -inf  ;;  %v7166_v41 = vcombine.high %v6974_v37, %v6974_v37 }
 0x4ef   :  { %v7842_v16 = vsel %vm4166_vm6, %v7530_v8, %v7841_v30  ;;  %v7464_v39 = vrot.slane %v7463_v57, 2  ;;  %v7483_v9 = vrot.slane %v7482_v34, 4  ;;  %v7173_v20 = vrot.slane %v6974_v37, %v11160_v38 }
 0x4f0   :  { %v7843_v51 = vsel %vm4168_vm7, %v7537_v45, %v7842_v16  ;;  %v7470_v62 = vmax.f32 %v7468_v42, %v7469_v48  ;;  %v7477_v7 = vmax.f32 %v7475_v63, %v7476_v60  ;;  %v7180_v19 = vrot.slane %v7166_v41, %v11160_v38 }
 0x4f1   :  { %v7844_v15 = vsel %vm4170_vm8, %v7544_v1, %v7843_v51  ;;  %v7465_v43 = vmax.f32 %v7463_v57, %v7464_v39  ;;  %v7484_v44 = vmax.f32 %v7482_v34, %v7483_v9  ;;  %v7181_v11 = vcombine.high %v7173_v20, %v7173_v20 }
 0x4f2   :  { %8050 = vst.msk [vmem:[%s11136_s5 + $0x58] sm:$0xff] %vm4481_vm9, %v7844_v15  ;;  %v7471_v0 = vrot.slane %v7470_v62, 2  ;;  %v7478_v53 = vrot.slane %v7477_v7, 2  ;;  %v7182_v56 = vcombine.high %v7180_v19, %v7180_v19  ;;  %v7601_v18 = vsel %vm5625_vm10, %v7173_v20, -inf }
 0x4f3   :  { %v7466_v3 = vrot.slane %v7465_v43, 1  ;;  %v7485_v10 = vrot.slane %v7484_v44, 2  ;;  %v7602_v49 = vrot.slane %v7601_v18, 4  ;;  %v7608_v14 = vsel %vm5625_vm10, %v7181_v11, -inf }
 0x4f4   :  { %v7472_v23 = vmax.f32 %v7470_v62, %v7471_v0  ;;  %v7479_v40 = vmax.f32 %v7477_v7, %v7478_v53  ;;  %v7609_v22 = vrot.slane %v7608_v14, 4  ;;  %v7615_v5 = vsel %vm5625_vm10, %v7180_v19, -inf }
 0x4f5   :  { %v7467_v59 = vmax.f32 %v7465_v43, %v7466_v3  ;;  %v7486_v29 = vmax.f32 %v7484_v44, %v7485_v10  ;;  %v7603_v12 = vmax.f32 %v7601_v18, %v7602_v49  ;;  %v7616_v37 = vrot.slane %v7615_v5, 4 }
 0x4f6   :  { %v7473_v6 = vrot.slane %v7472_v23, 1  ;;  %v7480_v52 = vrot.slane %v7479_v40, 1  ;;  %v7610_v35 = vmax.f32 %v7608_v14, %v7609_v22  ;;  %v7622_v25 = vsel %vm5625_vm10, %v7182_v56, -inf }
 0x4f7   :  { %v7487_v4 = vrot.slane %v7486_v29, 1  ;;  %v7834_v28 = vsel %vm4164_vm5, %v7467_v59, %v7833_v58  ;;  %v7604_v31 = vrot.slane %v7603_v12, 2  ;;  %v7617_v61 = vmax.f32 %v7615_v5, %v7616_v37 }
 0x4f8   :  { %v7474_v30 = vmax.f32 %v7472_v23, %v7473_v6  ;;  %v7481_v17 = vmax.f32 %v7479_v40, %v7480_v52  ;;  %v7611_v42 = vrot.slane %v7610_v35, 2  ;;  %v7623_v63 = vrot.slane %v7622_v25, 4 }
 0x4f9   :  { %v7488_v8 = vmax.f32 %v7486_v29, %v7487_v4  ;;  %v7605_v45 = vmax.f32 %v7603_v12, %v7604_v31  ;;  %v7618_v1 = vrot.slane %v7617_v61, 2  ;;  %v6934_v57 = vadd.f32 %v10905_v13, %v10859_v54 }
 0x4fa   :  { %v7835_v48 = vsel %vm4166_vm6, %v7474_v30, %v7834_v28  ;;  %v7612_v60 = vmax.f32 %v7610_v35, %v7611_v42  ;;  %v7624_v34 = vmax.f32 %v7622_v25, %v7623_v63  ;;  %v6945_v41 = vadd.f32 %v10907_v46, %v10861_v26 }
 0x4fb   :  { %v7836_v58 = vsel %vm4168_vm7, %v7481_v17, %v7835_v48  ;;  %v7606_v16 = vrot.slane %v7605_v45, 1  ;;  %v7619_v39 = vmax.f32 %v7617_v61, %v7618_v1  ;;  %v6972_v9 = vmax.f32 %v6934_v57, 0.0 }
 0x4fc   :  { %v7837_v20 = vsel %vm4170_vm8, %v7488_v8, %v7836_v58  ;;  %v7613_v51 = vrot.slane %v7612_v60, 1  ;;  %v7625_v62 = vrot.slane %v7624_v34, 2  ;;  %v6975_v7 = vmax.f32 %v6945_v41, 0.0 }
 0x4fd   :  { %8049 = vst.msk [vmem:[%s11136_s5 + $0x50] sm:$0xff] %vm4481_vm9, %v7837_v20  ;;  %v7607_v54 = vmax.f32 %v7605_v45, %v7606_v16  ;;  %v7620_v13 = vrot.slane %v7619_v39, 1  ;;  %v7132_v19 = vcombine.high %v6972_v9, %v6972_v9  ;;  %v7139_v26 = vrot.slane %v6972_v9, %v11160_v38 }
 0x4fe   :  { %v7614_v46 = vmax.f32 %v7612_v60, %v7613_v51  ;;  %v7626_v15 = vmax.f32 %v7624_v34, %v7625_v62  ;;  %v7183_v43 = vcombine.high %v6975_v7, %v6975_v7  ;;  %v7190_v44 = vrot.slane %v6975_v7, %v11160_v38 }
 0x4ff   :  { %v7621_v11 = vmax.f32 %v7619_v39, %v7620_v13  ;;  %v7146_v0 = vrot.slane %v7132_v19, %v11160_v38  ;;  %v7147_v53 = vcombine.high %v7139_v26, %v7139_v26  ;;  %v7545_v56 = vsel %vm5625_vm10, %v7139_v26, -inf }
 0x500   :  { %v7627_v18 = vrot.slane %v7626_v15, 1  ;;  %v7852_v3 = vsel %vm4158_vm2, %v7614_v46, %v7607_v54  ;;  %v7546_v10 = vrot.slane %v7545_v56, 4  ;;  %v7197_v49 = vrot.slane %v7183_v43, %v11160_v38 }
 0x501   :  { %v7853_v14 = vsel %vm4160_vm3, %v7621_v11, %v7852_v3  ;;  %v7148_v23 = vcombine.high %v7146_v0, %v7146_v0  ;;  %v7552_v40 = vsel %vm5625_vm10, %v7147_v53, -inf  ;;  %v7559_v22 = vsel %vm5625_vm10, %v7146_v0, -inf }
 0x502   :  { %v7628_v5 = vmax.f32 %v7626_v15, %v7627_v18  ;;  %v7547_v59 = vmax.f32 %v7545_v56, %v7546_v10  ;;  %v7553_v29 = vrot.slane %v7552_v40, 4  ;;  %v7560_v12 = vrot.slane %v7559_v22, 4 }
 0x503   :  { %v7566_v37 = vsel %vm5625_vm10, %v7148_v23, -inf  ;;  %v7198_v6 = vcombine.high %v7190_v44, %v7190_v44  ;;  %v7199_v52 = vcombine.high %v7197_v49, %v7197_v49  ;;  %v7629_v35 = vsel %vm5625_vm10, %v7190_v44, -inf }
 0x504   :  { %v7548_v25 = vrot.slane %v7547_v59, 2  ;;  %v7554_v4 = vmax.f32 %v7552_v40, %v7553_v29  ;;  %v7561_v28 = vmax.f32 %v7559_v22, %v7560_v12  ;;  %v7567_v31 = vrot.slane %v7566_v37, 4 }
 0x505   :  { %v7630_v61 = vrot.slane %v7629_v35, 4  ;;  %v7636_v30 = vsel %vm5625_vm10, %v7198_v6, -inf  ;;  %v7643_v17 = vsel %vm5625_vm10, %v7197_v49, -inf  ;;  %v7650_v42 = vsel %vm5625_vm10, %v7199_v52, -inf }
 0x506   :  { %v7549_v63 = vmax.f32 %v7547_v59, %v7548_v25  ;;  %v7555_v8 = vrot.slane %v7554_v4, 2  ;;  %v7562_v45 = vrot.slane %v7561_v28, 2  ;;  %v7568_v1 = vmax.f32 %v7566_v37, %v7567_v31 }
 0x507   :  { %v7631_v57 = vmax.f32 %v7629_v35, %v7630_v61  ;;  %v7637_v48 = vrot.slane %v7636_v30, 4  ;;  %v7644_v60 = vrot.slane %v7643_v17, 4  ;;  %v7651_v34 = vrot.slane %v7650_v42, 4 }
 0x508   :  { %v7550_v41 = vrot.slane %v7549_v63, 1  ;;  %v7556_v58 = vmax.f32 %v7554_v4, %v7555_v8  ;;  %v7563_v16 = vmax.f32 %v7561_v28, %v7562_v45  ;;  %v7569_v39 = vrot.slane %v7568_v1, 2 }
 0x509   :  { %v7632_v9 = vrot.slane %v7631_v57, 2  ;;  %v7638_v20 = vmax.f32 %v7636_v30, %v7637_v48  ;;  %v7645_v51 = vmax.f32 %v7643_v17, %v7644_v60  ;;  %v7652_v62 = vmax.f32 %v7650_v42, %v7651_v34 }
 0x50a   :  { %v7551_v7 = vmax.f32 %v7549_v63, %v7550_v41  ;;  %v7557_v54 = vrot.slane %v7556_v58, 1  ;;  %v7564_v13 = vrot.slane %v7563_v16, 1  ;;  %v7570_v19 = vmax.f32 %v7568_v1, %v7569_v39 }
 0x50b   :  { %v7633_v26 = vmax.f32 %v7631_v57, %v7632_v9  ;;  %v7639_v46 = vrot.slane %v7638_v20, 2  ;;  %v7646_v15 = vrot.slane %v7645_v51, 2  ;;  %v7653_v43 = vrot.slane %v7652_v62, 2 }
 0x50c   :  { %v7558_v44 = vmax.f32 %v7556_v58, %v7557_v54  ;;  %v7565_v11 = vmax.f32 %v7563_v16, %v7564_v13  ;;  %v7571_v0 = vrot.slane %v7570_v19, 1  ;;  %v7854_v53 = vsel %vm4162_vm4, %v7628_v5, %v7853_v14 }
 0x50d   :  { %v7634_v56 = vrot.slane %v7633_v26, 1  ;;  %v7640_v18 = vmax.f32 %v7638_v20, %v7639_v46  ;;  %v7647_v3 = vmax.f32 %v7645_v51, %v7646_v15  ;;  %v7654_v10 = vmax.f32 %v7652_v62, %v7653_v43 }
 0x50e   :  { %v7572_v49 = vmax.f32 %v7570_v19, %v7571_v0  ;;  %v7845_v23 = vsel %vm4158_vm2, %v7558_v44, %v7551_v7  ;;  %v6937_v40 = vadd.f32 %v10909_v24, %v10863_v32  ;;  %v6958_v22 = vadd.f32 %v10922_v55, %v10873_v2 }
 0x50f   :  { %v7846_v59 = vsel %vm4160_vm3, %v7565_v11, %v7845_v23  ;;  %v7635_v29 = vmax.f32 %v7633_v26, %v7634_v56  ;;  %v7641_v12 = vrot.slane %v7640_v18, 1  ;;  %v7648_v37 = vrot.slane %v7647_v3, 1 }
 0x510   :  { %v7655_v6 = vrot.slane %v7654_v10, 1  ;;  %v6973_v14 = vmax.f32 %v6937_v40, 0.0  ;;  %v11051_v5 = vsel %vm4162_vm4, %v7572_v49, %v7846_v59  ;;  %v6978_v52 = vmax.f32 %v6958_v22, 0.0 }
 0x511   :  { %v7642_v35 = vmax.f32 %v7640_v18, %v7641_v12  ;;  %v7649_v25 = vmax.f32 %v7647_v3, %v7648_v37  ;;  %v7855_v4 = vsel %vm4164_vm5, %v7635_v29, %v7854_v53  ;;  %v6950_v32 = vadd.f32 %v10925_v50, %v10867_v47 }
 0x512   :  { %v7656_v24 = vmax.f32 %v7654_v10, %v7655_v6  ;;  %v7149_v2 = vcombine.high %v6973_v14, %v6973_v14  ;;  %v7156_v55 = vrot.slane %v6973_v14, %v11160_v38  ;;  %v7234_v28 = vcombine.high %v6978_v52, %v6978_v52 }
 0x513   :  { %v7856_v31 = vsel %vm4166_vm6, %v7642_v35, %v7855_v4  ;;  %v7241_v61 = vrot.slane %v6978_v52, %v11160_v38  ;;  %v11059_v30 = vmax.f32 %v6950_v32, 0.0  ;;  %v11063_v17 = vadd.f32 %v10930_v27, %v10875_v36 }
 0x514   :  { %v7857_v42 = vsel %vm4168_vm7, %v7649_v25, %v7856_v31  ;;  %v7163_v63 = vrot.slane %v7149_v2, %v11160_v38  ;;  %v7164_v47 = vcombine.high %v7156_v55, %v7156_v55  ;;  %v7573_v50 = vsel %vm5625_vm10, %v7156_v55, -inf }
 0x515   :  { %v7858_v8 = vsel %vm4170_vm8, %v7656_v24, %v7857_v42  ;;  %v7574_v45 = vrot.slane %v7573_v50, 4  ;;  %v7248_v1 = vrot.slane %v7234_v28, %v11160_v38  ;;  %v7249_v57 = vcombine.high %v7241_v61, %v7241_v61 }
 0x516   :  { %8052 = vst.msk [vmem:[%s11136_s5 + $0x68] sm:$0xff] %vm4481_vm9, %v7858_v8  ;;  %v7165_v36 = vcombine.high %v7163_v63, %v7163_v63  ;;  %v7580_v27 = vsel %vm5625_vm10, %v7164_v47, -inf  ;;  %v7587_v48 = vsel %vm5625_vm10, %v7163_v63, -inf  ;;  %v7713_v60 = vsel %vm5625_vm10, %v7241_v61, -inf }
 0x517   :  { %v7575_v34 = vmax.f32 %v7573_v50, %v7574_v45  ;;  %v7581_v41 = vrot.slane %v7580_v27, 4  ;;  %v7588_v58 = vrot.slane %v7587_v48, 4  ;;  %v7250_v16 = vcombine.high %v7248_v1, %v7248_v1 }
 0x518   :  { %v7594_v39 = vsel %vm5625_vm10, %v7165_v36, -inf  ;;  %v7714_v9 = vrot.slane %v7713_v60, 4  ;;  %v7720_v20 = vsel %vm5625_vm10, %v7249_v57, -inf  ;;  %v7727_v51 = vsel %vm5625_vm10, %v7248_v1, -inf }
 0x519   :  { %v7576_v62 = vrot.slane %v7575_v34, 2  ;;  %v7582_v7 = vmax.f32 %v7580_v27, %v7581_v41  ;;  %v7589_v54 = vmax.f32 %v7587_v48, %v7588_v58  ;;  %v7595_v13 = vrot.slane %v7594_v39, 4 }
 0x51a   :  { %v7715_v19 = vmax.f32 %v7713_v60, %v7714_v9  ;;  %v7721_v26 = vrot.slane %v7720_v20, 4  ;;  %v7728_v46 = vrot.slane %v7727_v51, 4  ;;  %v7734_v15 = vsel %vm5625_vm10, %v7250_v16, -inf }
 0x51b   :  { %v7577_v43 = vmax.f32 %v7575_v34, %v7576_v62  ;;  %v7583_v44 = vrot.slane %v7582_v7, 2  ;;  %v7590_v11 = vrot.slane %v7589_v54, 2  ;;  %v7596_v0 = vmax.f32 %v7594_v39, %v7595_v13 }
 0x51c   :  { %v7716_v53 = vrot.slane %v7715_v19, 2  ;;  %v7722_v56 = vmax.f32 %v7720_v20, %v7721_v26  ;;  %v7729_v18 = vmax.f32 %v7727_v51, %v7728_v46  ;;  %v7735_v3 = vrot.slane %v7734_v15, 4 }
 0x51d   :  { %v7578_v10 = vrot.slane %v7577_v43, 1  ;;  %v7584_v49 = vmax.f32 %v7582_v7, %v7583_v44  ;;  %v7591_v23 = vmax.f32 %v7589_v54, %v7590_v11  ;;  %v7597_v40 = vrot.slane %v7596_v0, 2 }
 0x51e   :  { %v7717_v22 = vmax.f32 %v7715_v19, %v7716_v53  ;;  %v7723_v59 = vrot.slane %v7722_v56, 2  ;;  %v7730_v29 = vrot.slane %v7729_v18, 2  ;;  %v7736_v12 = vmax.f32 %v7734_v15, %v7735_v3 }
 0x51f   :  { %v7579_v37 = vmax.f32 %v7577_v43, %v7578_v10  ;;  %v7585_v6 = vrot.slane %v7584_v49, 1  ;;  %v7592_v14 = vrot.slane %v7591_v23, 1  ;;  %v7598_v52 = vmax.f32 %v7596_v0, %v7597_v40 }
 0x520   :  { %v7724_v35 = vmax.f32 %v7722_v56, %v7723_v59  ;;  %v7731_v25 = vmax.f32 %v7729_v18, %v7730_v29  ;;  %v7737_v4 = vrot.slane %v7736_v12, 2  ;;  %v7718_v28 = vrot.slane %v7717_v22, 1 }
 0x521   :  { %v7586_v32 = vmax.f32 %v7584_v49, %v7585_v6  ;;  %v7599_v24 = vrot.slane %v7598_v52, 1  ;;  %v7848_v2 = vsel %vm4164_vm5, %v7579_v37, %v11051_v5  ;;  %v7593_v55 = vmax.f32 %v7591_v23, %v7592_v14 }
 0x522   :  { %v7725_v31 = vrot.slane %v7724_v35, 1  ;;  %v7738_v61 = vmax.f32 %v7736_v12, %v7737_v4  ;;  %v7200_v47 = vcombine.high %v11059_v30, %v11059_v30  ;;  %v7207_v50 = vrot.slane %v11059_v30, %v11160_v38 }
 0x523   :  { %v7600_v42 = vmax.f32 %v7598_v52, %v7599_v24  ;;  %v7849_v63 = vsel %vm4166_vm6, %v7586_v32, %v7848_v2  ;;  %v7732_v45 = vrot.slane %v7731_v25, 1  ;;  %v7719_v48 = vmax.f32 %v7717_v22, %v7718_v28 }
 0x524   :  { %v7850_v8 = vsel %vm4168_vm7, %v7593_v55, %v7849_v63  ;;  %v7739_v1 = vrot.slane %v7738_v61, 1  ;;  %v7214_v5 = vrot.slane %v7200_v47, %v11160_v38  ;;  %v7215_v36 = vcombine.high %v7207_v50, %v7207_v50 }
 0x525   :  { %v7851_v57 = vsel %vm4170_vm8, %v7600_v42, %v7850_v8  ;;  %v7657_v27 = vsel %vm5625_vm10, %v7207_v50, -inf  ;;  %v6979_v30 = vmax.f32 %v11063_v17, 0.0  ;;  %v7726_v34 = vmax.f32 %v7724_v35, %v7725_v31 }
 0x526   :  { %8051 = vst.msk [vmem:[%s11136_s5 + $0x60] sm:$0xff] %vm4481_vm9, %v7851_v57  ;;  %v7658_v60 = vrot.slane %v7657_v27, 4  ;;  %v7216_v41 = vcombine.high %v7214_v5, %v7214_v5  ;;  %v7664_v58 = vsel %vm5625_vm10, %v7215_v36, -inf  ;;  %v7671_v16 = vsel %vm5625_vm10, %v7214_v5, -inf }
 0x527   :  { %v7665_v9 = vrot.slane %v7664_v58, 4  ;;  %v7672_v20 = vrot.slane %v7671_v16, 4  ;;  %v7257_v51 = vrot.slane %v6979_v30, %v11160_v38  ;;  %v7733_v62 = vmax.f32 %v7731_v25, %v7732_v45 }
 0x528   :  { %v7659_v39 = vmax.f32 %v7657_v27, %v7658_v60  ;;  %v7740_v7 = vmax.f32 %v7738_v61, %v7739_v1  ;;  %v7678_v54 = vsel %vm5625_vm10, %v7216_v41, -inf  ;;  %v6953_v13 = vadd.f32 %v10934_v21, %v10869_v33 }
 0x529   :  { %v7666_v17 = vmax.f32 %v7664_v58, %v7665_v9  ;;  %v7673_v26 = vmax.f32 %v7671_v16, %v7672_v20  ;;  %v7679_v46 = vrot.slane %v7678_v54, 4  ;;  %v7866_v15 = vsel %vm4158_vm2, %v7726_v34, %v7719_v48 }
 0x52a   :  { %v7660_v19 = vrot.slane %v7659_v39, 2  ;;  %v7258_v43 = vcombine.high %v7257_v51, %v7257_v51  ;;  %v7741_v44 = vsel %vm5625_vm10, %v7257_v51, -inf  ;;  %v6977_v11 = vmax.f32 %v6953_v13, 0.0 }
 0x52b   :  { %v7667_v53 = vrot.slane %v7666_v17, 2  ;;  %v7674_v56 = vrot.slane %v7673_v26, 2  ;;  %v7680_v18 = vmax.f32 %v7678_v54, %v7679_v46  ;;  %v7742_v3 = vrot.slane %v7741_v44, 4 }
 0x52c   :  { %v7661_v0 = vmax.f32 %v7659_v39, %v7660_v19  ;;  %v7748_v10 = vsel %vm5625_vm10, %v7258_v43, -inf  ;;  %v7217_v49 = vcombine.high %v6977_v11, %v6977_v11  ;;  %v7224_v33 = vrot.slane %v6977_v11, %v11160_v38 }
 0x52d   :  { %v7668_v23 = vmax.f32 %v7666_v17, %v7667_v53  ;;  %v7675_v40 = vmax.f32 %v7673_v26, %v7674_v56  ;;  %v7681_v22 = vrot.slane %v7680_v18, 2  ;;  %v7743_v59 = vmax.f32 %v7741_v44, %v7742_v3 }
 0x52e   :  { %v7662_v21 = vrot.slane %v7661_v0, 1  ;;  %v7749_v29 = vrot.slane %v7748_v10, 4  ;;  %v7231_v12 = vrot.slane %v7217_v49, %v11160_v38  ;;  %v7232_v37 = vcombine.high %v7224_v33, %v7224_v33 }
 0x52f   :  { %v7867_v6 = vsel %vm4160_vm3, %v7733_v62, %v7866_v15  ;;  %v7669_v14 = vrot.slane %v7668_v23, 1  ;;  %v7676_v52 = vrot.slane %v7675_v40, 1  ;;  %v7682_v35 = vmax.f32 %v7680_v18, %v7681_v22 }
 0x530   :  { %v7663_v25 = vmax.f32 %v7661_v0, %v7662_v21  ;;  %v7744_v4 = vrot.slane %v7743_v59, 2  ;;  %v7750_v32 = vmax.f32 %v7748_v10, %v7749_v29  ;;  %v7685_v24 = vsel %vm5625_vm10, %v7224_v33, -inf }
 0x531   :  { %v7670_v2 = vmax.f32 %v7668_v23, %v7669_v14  ;;  %v7683_v55 = vrot.slane %v7682_v35, 1  ;;  %v7233_v28 = vcombine.high %v7231_v12, %v7231_v12  ;;  %v7686_v31 = vrot.slane %v7685_v24, 4 }
 0x532   :  { %v7745_v61 = vmax.f32 %v7743_v59, %v7744_v4  ;;  %v7751_v42 = vrot.slane %v7750_v32, 2  ;;  %v7692_v63 = vsel %vm5625_vm10, %v7232_v37, -inf  ;;  %v7699_v38 = vsel %vm5625_vm10, %v7231_v12, -inf }
 0x533   :  { %v7677_v47 = vmax.f32 %v7675_v40, %v7676_v52  ;;  %v7868_v50 = vsel %vm4162_vm4, %v7740_v7, %v7867_v6  ;;  %v7687_v8 = vmax.f32 %v7685_v24, %v7686_v31  ;;  %v7693_v45 = vrot.slane %v7692_v63, 4 }
 0x534   :  { %v7859_v1 = vsel %vm4158_vm2, %v7670_v2, %v7663_v25  ;;  %v7746_v57 = vrot.slane %v7745_v61, 1  ;;  %v7752_v5 = vmax.f32 %v7750_v32, %v7751_v42  ;;  %v7700_v36 = vrot.slane %v7699_v38, 4 }
 0x535   :  { %v7684_v27 = vmax.f32 %v7682_v35, %v7683_v55  ;;  %v7688_v48 = vrot.slane %v7687_v8, 2  ;;  %v7694_v60 = vmax.f32 %v7692_v63, %v7693_v45  ;;  %v7706_v30 = vsel %vm5625_vm10, %v7233_v28, -inf }
 0x536   :  { %v7747_v34 = vmax.f32 %v7745_v61, %v7746_v57  ;;  %v7753_v41 = vrot.slane %v7752_v5, 1  ;;  %v7701_v58 = vmax.f32 %v7699_v38, %v7700_v36  ;;  %v7707_v16 = vrot.slane %v7706_v30, 4 }
 0x537   :  { %v7860_v39 = vsel %vm4160_vm3, %v7677_v47, %v7859_v1  ;;  %v7689_v9 = vmax.f32 %v7687_v8, %v7688_v48  ;;  %v7695_v20 = vrot.slane %v7694_v60, 2 }
 0x538   :  { %v7754_v51 = vmax.f32 %v7752_v5, %v7753_v41  ;;  %v7869_v62 = vsel %vm4164_vm5, %v7747_v34, %v7868_v50  ;;  %v7702_v7 = vrot.slane %v7701_v58, 2  ;;  %v7708_v54 = vmax.f32 %v7706_v30, %v7707_v16 }
 0x539   :  { %v7690_v13 = vrot.slane %v7689_v9, 1  ;;  %v7696_v19 = vmax.f32 %v7694_v60, %v7695_v20  ;;  %v7861_v15 = vsel %vm4162_vm4, %v7684_v27, %v7860_v39 }
 0x53a   :  { %v7870_v17 = vsel %vm4166_vm6, %v7754_v51, %v7869_v62  ;;  %v7703_v26 = vmax.f32 %v7701_v58, %v7702_v7  ;;  %v7709_v46 = vrot.slane %v7708_v54, 2 }
 0x53b   :  { %8054 = vst.msk [vmem:[%s11136_s5 + $0x78] sm:$0x3f] %vm6191_vm11, %v7870_v17  ;;  %v7691_v43 = vmax.f32 %v7689_v9, %v7690_v13  ;;  %v7697_v44 = vrot.slane %v7696_v19, 1 }
 0x53c   :  { %v7704_v11 = vrot.slane %v7703_v26, 1  ;;  %v7710_v0 = vmax.f32 %v7708_v54, %v7709_v46 }
 0x53d   :  { %v7698_v53 = vmax.f32 %v7696_v19, %v7697_v44  ;;  %v7862_v56 = vsel %vm4164_vm5, %v7691_v43, %v7861_v15 }
 0x53e   :  { %v7705_v18 = vmax.f32 %v7703_v26, %v7704_v11  ;;  %v7711_v3 = vrot.slane %v7710_v0, 1 }
 0x53f   :  { %v7863_v10 = vsel %vm4166_vm6, %v7698_v53, %v7862_v56 }
 0x540   :  { %v7712_v49 = vmax.f32 %v7710_v0, %v7711_v3  ;;  %v7864_v33 = vsel %vm4168_vm7, %v7705_v18, %v7863_v10 }
 0x542   :  { %v7865_v21 = vsel %vm4170_vm8, %v7712_v49, %v7864_v33 }
 0x543   :  { %8053 = vst.msk [vmem:[%s11136_s5 + $0x70] sm:$0xff] %vm4481_vm9, %v7865_v21 }
 0x544   :  { %7892 = vsyncpa [#allocation5], 1 }
 0x545   :  { %7893 = vsyncpa [#allocation7], 1 }

</bundles_post_ra>
